<compile_context>
chip_gen: v7x
topology: tpu7x:2x2x1
jax: 0.10.0
libtpu: 0.0.40
codegen_flags: <defaults>
</compile_context>

<pallas_src>
import functools

import jax
import jax.numpy as jnp
from jax.experimental import pallas as pl
from jax.experimental.pallas import tpu as pltpu

KEY_OUTPUT = "output"


def _round_up(x, m):
    return (x + m - 1) // m * m


def _k_tiles(K):
    """Pick (tk, Kp) for the contraction dim: one step if K<=512, else the
    largest 128-multiple tile <=512 that divides K, else pad K to a 256-multiple."""
    if K <= 512:
        return K, K
    for tk in (512, 384, 256, 128):
        if K % tk == 0:
            return tk, K
    Kp = _round_up(K, 256)
    return 256, Kp


# ----------------------------- Pallas kernels ------------------------------

def _gemm_kernel(*refs, relu, has_res):
    """Tiled GEMM with fused bias (+residual) (+ReLU) epilogue, f32 accumulator."""
    if has_res:
        a_ref, b_ref, bias_ref, res_ref, o_ref, acc_ref = refs
    else:
        a_ref, b_ref, bias_ref, o_ref, acc_ref = refs
        res_ref = None

    @pl.when(pl.program_id(2) == 0)
    def _():
        acc_ref[...] = jnp.zeros_like(acc_ref)

    acc_ref[...] += jnp.dot(a_ref[...], b_ref[...],
                            preferred_element_type=jnp.float32)

    @pl.when(pl.program_id(2) == pl.num_programs(2) - 1)
    def _():
        out = acc_ref[...] + bias_ref[...]
        if has_res:
            out = out + res_ref[...]
        if relu:
            out = jnp.maximum(out, 0.0)
        o_ref[...] = out.astype(o_ref.dtype)


def matmul_bias(a, w_p, bias_p, *, n_out, relu, residual=None):
    """a:(M,K) [any float dtype] @ w_p:(Kp,Np) [bf16, pre-padded] + bias_p:(1,Np).

    Optionally fuses `residual` (M,n_out) add + ReLU in the epilogue.
    Returns f32 (M, n_out).
    """
    M, K = a.shape
    Kp, Np = w_p.shape
    tk, kp_expect = _k_tiles(K)
    assert Kp == kp_expect, (K, Kp, kp_expect)
    tm = min(128, _round_up(M, 8))
    Mp = _round_up(M, tm)
    tn = min(256, Np)
    assert Np % tn == 0

    a = a.astype(jnp.bfloat16)
    if (Mp, Kp) != (M, K):
        a = jnp.pad(a, ((0, Mp - M), (0, Kp - K)))

    in_arrays = [a, w_p, bias_p]
    in_specs = [
        pl.BlockSpec((tm, tk), lambda i, j, k: (i, k)),
        pl.BlockSpec((tk, tn), lambda i, j, k: (k, j)),
        pl.BlockSpec((1, tn), lambda i, j, k: (0, j)),
    ]
    has_res = residual is not None
    if has_res:
        res = residual.astype(jnp.float32)
        rM, rN = res.shape
        if (Mp, Np) != (rM, rN):
            res = jnp.pad(res, ((0, Mp - rM), (0, Np - rN)))
        in_arrays.append(res)
        in_specs.append(pl.BlockSpec((tm, tn), lambda i, j, k: (i, j)))

    grid = (Mp // tm, Np // tn, Kp // tk)
    out = pl.pallas_call(
        functools.partial(_gemm_kernel, relu=relu, has_res=has_res),
        out_shape=jax.ShapeDtypeStruct((Mp, Np), jnp.float32),
        grid=grid,
        in_specs=in_specs,
        out_specs=pl.BlockSpec((tm, tn), lambda i, j, k: (i, j)),
        scratch_shapes=[pltpu.VMEM((tm, tn), jnp.float32)],
        compiler_params=pltpu.CompilerParams(
            dimension_semantics=("parallel", "parallel", "arbitrary")),
    )(*in_arrays)
    return out[:M, :n_out]


def _maxtaps_kernel(*refs):
    """Running elementwise max over the 9 pooling taps (lane-dense blocks)."""
    o_ref = refs[-1]
    m = refs[0][...]
    for r in refs[1:-1]:
        m = jnp.maximum(m, r[...])
    o_ref[...] = m


def _global_avgpool_kernel(x_ref, o_ref):
    o_ref[...] = jnp.mean(x_ref[...], axis=1)


def _l2_normalize_kernel(x_ref, o_ref):
    x = x_ref[...]
    norm = jnp.sqrt(jnp.sum(x * x, axis=1, keepdims=True))
    o_ref[...] = x / jnp.maximum(norm, 1e-12)   # F.normalize(dim=1), eps=1e-12


# ------------------------------- conv helpers -------------------------------

def _im2col(x, kh, kw, stride, pad):
    """x:(N,H,W,C) f32 -> bf16 patches (N*Ho*Wo, kh*kw*C), ordered (kh, kw, C)."""
    N, H, W, C = x.shape
    Ho = (H + 2 * pad - kh) // stride + 1
    Wo = (W + 2 * pad - kw) // stride + 1
    xp = jnp.pad(x.astype(jnp.bfloat16),
                 ((0, 0), (pad, pad), (pad, pad), (0, 0)))
    cols = []
    for i in range(kh):
        for j in range(kw):
            cols.append(xp[:, i:i + stride * Ho:stride,
                           j:j + stride * Wo:stride, :])
    patches = jnp.stack(cols, axis=3)                 # (N,Ho,Wo,kh*kw,C) bf16
    return patches.reshape(N * Ho * Wo, kh * kw * C), (N, Ho, Wo)


def conv_bn(x, p, *, stride, pad, relu, residual=None):
    """Conv2d(bias=False)+BN(eval) [+residual] [+ReLU]; BN pre-folded into p."""
    cols, (N, Ho, Wo) = _im2col(x, p["kh"], p["kw"], stride, pad)
    out = matmul_bias(cols, p["w"], p["b"], n_out=p["cout"], relu=relu,
                      residual=residual)
    return out.reshape(N, Ho, Wo, p["cout"])


def maxpool_3x3_s2(x):
    """MaxPool2d(kernel=3, stride=2, padding=1): running max over 9 taps."""
    N, H, W, C = x.shape
    k, s, pad = 3, 2, 1
    Ho = (H + 2 * pad - k) // s + 1
    Wo = (W + 2 * pad - k) // s + 1
    xp = jnp.pad(x, ((0, 0), (pad, pad), (pad, pad), (0, 0)),
                 constant_values=-jnp.inf)
    taps = [xp[:, i:i + s * Ho:s, j:j + s * Wo:s, :].reshape(-1)
            for i in range(k) for j in range(k)]
    total = N * Ho * Wo * C
    LANE = 512                                        # lane-dense output
    rows = pl.cdiv(total, LANE)
    br = min(256, _round_up(rows, 8))
    rows_p = _round_up(rows, br)
    padded = rows_p * LANE
    taps = [jnp.pad(t, (0, padded - total)).reshape(rows_p, LANE) for t in taps]
    out = pl.pallas_call(
        _maxtaps_kernel,
        out_shape=jax.ShapeDtypeStruct((rows_p, LANE), jnp.float32),
        grid=(rows_p // br,),
        in_specs=[pl.BlockSpec((br, LANE), lambda i: (i, 0))] * 9,
        out_specs=pl.BlockSpec((br, LANE), lambda i: (i, 0)),
        compiler_params=pltpu.CompilerParams(
            dimension_semantics=("parallel",)),
    )(*taps)
    return out.reshape(-1)[:total].reshape(N, Ho, Wo, C)


# ---------------------------- parameter building ----------------------------

def _init_conv_bn(key, kh, kw, cin, cout):
    k1, k2, k3, k4, k5 = jax.random.split(key, 5)
    return {
        "w": 0.05 * jax.random.normal(k1, (kh, kw, cin, cout), jnp.float32),
        "gamma": 1.0 + 0.1 * jax.random.normal(k2, (cout,), jnp.float32),
        "beta": 0.01 * jax.random.normal(k3, (cout,), jnp.float32),
        "mean": 0.1 * jax.random.normal(k4, (cout,), jnp.float32),
        "var": 1.0 + 0.1 * jnp.abs(jax.random.normal(k5, (cout,), jnp.float32)),
    }


def init_embeddingnet_params(key, num_classes=16):
    """ResNet-18 topology: conv1(7x7,64,s2) + 4 stages of 2 BasicBlocks + fc."""
    keys = iter(jax.random.split(key, 64))
    params = {"conv1": _init_conv_bn(next(keys), 7, 7, 3, 64)}
    stage_cfg = [(64, 2, 1), (128, 2, 2), (256, 2, 2), (512, 2, 2)]
    in_c = 64
    layers = []
    for cout, nblocks, stride in stage_cfg:
        blocks = []
        for b in range(nblocks):
            s = stride if b == 0 else 1
            blk = {
                "stride": s,
                "conv1": _init_conv_bn(next(keys), 3, 3, in_c, cout),
                "conv2": _init_conv_bn(next(keys), 3, 3, cout, cout),
            }
            if s != 1 or in_c != cout:
                blk["downsample"] = _init_conv_bn(next(keys), 1, 1, in_c, cout)
            blocks.append(blk)
            in_c = cout
        layers.append(blocks)
    params["layers"] = layers
    # init_weight(): num_classes != 1000 -> new fc, weight ~ N(0, 0.01), zero bias
    params["fc_w"] = 0.01 * jax.random.normal(next(keys), (512, num_classes),
                                              jnp.float32)
    params["fc_b"] = jnp.zeros((num_classes,), jnp.float32)
    return params


def _fold_conv(p):
    """Fold BN into conv, reshape to GEMM layout, pad to (Kp,Np) bf16 once."""
    w = p["w"]
    kh, kw, cin, cout = w.shape
    scale = p["gamma"] / jnp.sqrt(p["var"] + 1e-5)    # BN eps = 1e-5
    w_fold = (w * scale).reshape(kh * kw * cin, cout)
    b_fold = p["beta"] - p["mean"] * scale
    K, N = w_fold.shape
    _, Kp = _k_tiles(K)
    Np = _round_up(N, 128)
    w_p = jnp.zeros((Kp, Np), jnp.bfloat16).at[:K, :N].set(
        w_fold.astype(jnp.bfloat16))
    b_p = jnp.zeros((1, Np), jnp.float32).at[0, :N].set(b_fold)
    return {"w": w_p, "b": b_p, "kh": kh, "kw": kw, "cin": cin, "cout": cout}


def fold_params(raw):
    """One-time inference-param prep: BN folding + padding + bf16 cast."""
    folded = {"conv1": _fold_conv(raw["conv1"])}
    layers = []
    for blocks in raw["layers"]:
        fb = []
        for blk in blocks:
            nb = {"stride": blk["stride"],
                  "conv1": _fold_conv(blk["conv1"]),
                  "conv2": _fold_conv(blk["conv2"])}
            if "downsample" in blk:
                nb["downsample"] = _fold_conv(blk["downsample"])
            fb.append(nb)
        layers.append(fb)
    folded["layers"] = layers
    K, n_cls = raw["fc_w"].shape
    _, Kp = _k_tiles(K)
    Np = _round_up(n_cls, 128)
    fc_w = jnp.zeros((Kp, Np), jnp.bfloat16).at[:K, :n_cls].set(
        raw["fc_w"].astype(jnp.bfloat16))
    fc_b = jnp.zeros((1, Np), jnp.float32).at[0, :n_cls].set(raw["fc_b"])
    folded["fc"] = {"w": fc_w, "b": fc_b, "n": n_cls}
    return folded


# -------------------------------- forward -----------------------------------

def basic_block(x, blk):
    s = blk["stride"]
    out = conv_bn(x, blk["conv1"], stride=s, pad=1, relu=True)
    if "downsample" in blk:
        identity = conv_bn(x, blk["downsample"], stride=s, pad=0, relu=False)
    else:
        identity = x
    res2d = identity.reshape(-1, identity.shape[-1])
    # residual add + ReLU fused into conv2's GEMM epilogue
    return conv_bn(out, blk["conv2"], stride=1, pad=1, relu=True,
                   residual=res2d)


def embeddingnet_forward(params, x_nchw):
    x = jnp.transpose(x_nchw.astype(jnp.float32), (0, 2, 3, 1))  # NCHW -> NHWC
    x = conv_bn(x, params["conv1"], stride=2, pad=3, relu=True)
    x = maxpool_3x3_s2(x)
    for blocks in params["layers"]:
        for blk in blocks:
            x = basic_block(x, blk)
    N, H, W, C = x.shape
    feat = pl.pallas_call(
        _global_avgpool_kernel,
        out_shape=jax.ShapeDtypeStruct((N, C), jnp.float32),
    )(x.reshape(N, H * W, C))                                     # AdaptiveAvgPool2d(1)
    logits = matmul_bias(feat, params["fc"]["w"], params["fc"]["b"],
                         n_out=params["fc"]["n"], relu=False)
    emb = pl.pallas_call(
        _l2_normalize_kernel,
        out_shape=jax.ShapeDtypeStruct(logits.shape, jnp.float32),
    )(logits)                                                     # F.normalize(dim=1)
    return {KEY_OUTPUT: emb}


if __name__ == "__main__":
    key = jax.random.PRNGKey(0)
    k_params, k_x = jax.random.split(key)
    raw_params = init_embeddingnet_params(k_params, num_classes=16)
    params = fold_params(raw_params)                  # one-time weight prep
    x = jax.random.normal(k_x, (2, 3, 32, 32), jnp.float32)       # NCHW like PyTorch
    fwd = jax.jit(functools.partial(embeddingnet_forward, params))
    out = fwd(x)
    emb = jax.block_until_ready(out[KEY_OUTPUT])
    assert emb.shape == (2, 16) and emb.dtype == jnp.float32
    print("KERNEL_OK")
</pallas_src>

<mosaic_0001>
module attributes {stable_mosaic.version = 11 : i64} {
  func.func @_gemm_kernel(%arg0: i32, %arg1: i32, %arg2: i32, %arg3: memref<128x147xbf16, #tpu.memory_space<vmem>>, %arg4: memref<147x128xbf16, #tpu.memory_space<vmem>>, %arg5: memref<1x128xf32, #tpu.memory_space<vmem>>, %arg6: memref<128x128xf32, #tpu.memory_space<vmem>>, %arg7: memref<128x128xf32, #tpu.memory_space<vmem>>) attributes {dimension_semantics = [#tpu.dimension_semantics<parallel>, #tpu.dimension_semantics<parallel>, #tpu.dimension_semantics<arbitrary>], iteration_bounds = array<i64: 4, 1, 1>, scalar_prefetch = 0 : i64, scratch_operands = 1 : i64, tpu.core_type = #tpu.core_type<tc>, window_params = [{transform_indices = @transform_0, window_bounds = array<i64: 128, 147>}, {transform_indices = @transform_1, window_bounds = array<i64: 147, 128>}, {transform_indices = @transform_2, window_bounds = array<i64: 1, 128>}, {transform_indices = @transform_3, window_bounds = array<i64: 128, 128>}]} {
    %c0_i32 = arith.constant 0 : i32
    %0 = arith.cmpi eq, %arg2, %c0_i32 : i32
    %1 = arith.extui %0 : i1 to i32
    %c0_i32_0 = arith.constant 0 : i32
    %2 = arith.cmpi ne, %1, %c0_i32_0 : i32
    scf.if %2 {
      %cst_10 = arith.constant 0.000000e+00 : f32
      %12 = vector.broadcast %cst_10 : f32 to vector<128x128xf32>
      %c0_11 = arith.constant 0 : index
      %c0_12 = arith.constant 0 : index
      %13 = vector.load %arg7[%c0_11, %c0_12] : memref<128x128xf32, #tpu.memory_space<vmem>>, vector<128x128xf32>
      tpu.vector_store %arg7[%c0_11, %c0_12], %12 {strides = array<i32>} : memref<128x128xf32, #tpu.memory_space<vmem>>, vector<128x128xf32>,
    } else {
    }
    %c0 = arith.constant 0 : index
    %c0_1 = arith.constant 0 : index
    %3 = vector.load %arg7[%c0, %c0_1] : memref<128x128xf32, #tpu.memory_space<vmem>>, vector<128x128xf32>
    %c0_2 = arith.constant 0 : index
    %c0_3 = arith.constant 0 : index
    %4 = vector.load %arg3[%c0_2, %c0_3] : memref<128x147xbf16, #tpu.memory_space<vmem>>, vector<128x147xbf16>
    %c0_4 = arith.constant 0 : index
    %c0_5 = arith.constant 0 : index
    %5 = vector.load %arg4[%c0_4, %c0_5] : memref<147x128xbf16, #tpu.memory_space<vmem>>, vector<147x128xbf16>
    %cst = arith.constant dense<0.000000e+00> : vector<128x128xf32>
    %6 = tpu.matmul %4, %5, %cst {dimension_numbers = #tpu.dot_dimension_numbers<[1], [0], [0], [1], [0, 0, 1, 1], [], []>} : vector<128x147xbf16>, vector<147x128xbf16>, vector<128x128xf32> -> vector<128x128xf32>
    %7 = arith.addf %3, %6 : vector<128x128xf32>
    %c0_6 = arith.constant 0 : index
    %c0_7 = arith.constant 0 : index
    %8 = vector.load %arg7[%c0_6, %c0_7] : memref<128x128xf32, #tpu.memory_space<vmem>>, vector<128x128xf32>
    tpu.vector_store %arg7[%c0_6, %c0_7], %7 {strides = array<i32>} : memref<128x128xf32, #tpu.memory_space<vmem>>, vector<128x128xf32>,
    %c0_i32_8 = arith.constant 0 : i32
    %9 = arith.cmpi eq, %arg2, %c0_i32_8 : i32
    %10 = arith.extui %9 : i1 to i32
    %c0_i32_9 = arith.constant 0 : i32
    %11 = arith.cmpi ne, %10, %c0_i32_9 : i32
    scf.if %11 {
      %c0_10 = arith.constant 0 : index
      %c0_11 = arith.constant 0 : index
      %12 = vector.load %arg7[%c0_10, %c0_11] : memref<128x128xf32, #tpu.memory_space<vmem>>, vector<128x128xf32>
      %c0_12 = arith.constant 0 : index
      %c0_13 = arith.constant 0 : index
      %13 = vector.load %arg5[%c0_12, %c0_13] : memref<1x128xf32, #tpu.memory_space<vmem>>, vector<1x128xf32>
      %14 = vector.broadcast %13 : vector<1x128xf32> to vector<128x128xf32>
      %15 = arith.addf %12, %14 : vector<128x128xf32>
      %cst_14 = arith.constant 0.000000e+00 : f32
      %16 = vector.broadcast %cst_14 : f32 to vector<128x128xf32>
      %17 = arith.maximumf %15, %16 : vector<128x128xf32>
      %c0_15 = arith.constant 0 : index
      %c0_16 = arith.constant 0 : index
      %18 = vector.load %arg6[%c0_15, %c0_16] : memref<128x128xf32, #tpu.memory_space<vmem>>, vector<128x128xf32>
      tpu.vector_store %arg6[%c0_15, %c0_16], %17 {strides = array<i32>} : memref<128x128xf32, #tpu.memory_space<vmem>>, vector<128x128xf32>,
    } else {
    }
    return
  }
  func.func @transform_0(%arg0: i32, %arg1: i32, %arg2: i32) -> (i32, i32) {
    %c0_i32 = arith.constant 0 : i32
    return %arg0, %arg2 : i32, i32
  }
  func.func @transform_1(%arg0: i32, %arg1: i32, %arg2: i32) -> (i32, i32) {
    %c0_i32 = arith.constant 0 : i32
    return %arg2, %arg1 : i32, i32
  }
  func.func @transform_2(%arg0: i32, %arg1: i32, %arg2: i32) -> (i32, i32) {
    %c0_i32 = arith.constant 0 : i32
    %c0_i32_0 = arith.constant 0 : i32
    return %c0_i32, %arg1 : i32, i32
  }
  func.func @transform_3(%arg0: i32, %arg1: i32, %arg2: i32) -> (i32, i32) {
    %c0_i32 = arith.constant 0 : i32
    return %arg0, %arg1 : i32, i32
  }
}

module attributes {stable_mosaic.version = 11 : i64} {
  func.func @_maxtaps_kernel(%arg0: i32, %arg1: memref<16x512xf32, #tpu.memory_space<vmem>>, %arg2: memref<16x512xf32, #tpu.memory_space<vmem>>, %arg3: memref<16x512xf32, #tpu.memory_space<vmem>>, %arg4: memref<16x512xf32, #tpu.memory_space<vmem>>, %arg5: memref<16x512xf32, #tpu.memory_space<vmem>>, %arg6: memref<16x512xf32, #tpu.memory_space<vmem>>, %arg7: memref<16x512xf32, #tpu.memory_space<vmem>>, %arg8: memref<16x512xf32, #tpu.memory_space<vmem>>, %arg9: memref<16x512xf32, #tpu.memory_space<vmem>>, %arg10: memref<16x512xf32, #tpu.memory_space<vmem>>) attributes {dimension_semantics = [#tpu.dimension_semantics<parallel>], iteration_bounds = array<i64: 1>, scalar_prefetch = 0 : i64, scratch_operands = 0 : i64, tpu.core_type = #tpu.core_type<tc>, window_params = [{transform_indices = @transform_0, window_bounds = array<i64: 16, 512>}, {transform_indices = @transform_1, window_bounds = array<i64: 16, 512>}, {transform_indices = @transform_2, window_bounds = array<i64: 16, 512>}, {transform_indices = @transform_3, window_bounds = array<i64: 16, 512>}, {transform_indices = @transform_4, window_bounds = array<i64: 16, 512>}, {transform_indices = @transform_5, window_bounds = array<i64: 16, 512>}, {transform_indices = @transform_6, window_bounds = array<i64: 16, 512>}, {transform_indices = @transform_7, window_bounds = array<i64: 16, 512>}, {transform_indices = @transform_8, window_bounds = array<i64: 16, 512>}, {transform_indices = @transform_9, window_bounds = array<i64: 16, 512>}]} {
    %c0 = arith.constant 0 : index
    %c0_0 = arith.constant 0 : index
    %0 = vector.load %arg1[%c0, %c0_0] : memref<16x512xf32, #tpu.memory_space<vmem>>, vector<16x512xf32>
    %c0_1 = arith.constant 0 : index
    %c0_2 = arith.constant 0 : index
    %1 = vector.load %arg2[%c0_1, %c0_2] : memref<16x512xf32, #tpu.memory_space<vmem>>, vector<16x512xf32>
    %2 = arith.maximumf %0, %1 : vector<16x512xf32>
    %c0_3 = arith.constant 0 : index
    %c0_4 = arith.constant 0 : index
    %3 = vector.load %arg3[%c0_3, %c0_4] : memref<16x512xf32, #tpu.memory_space<vmem>>, vector<16x512xf32>
    %4 = arith.maximumf %2, %3 : vector<16x512xf32>
    %c0_5 = arith.constant 0 : index
    %c0_6 = arith.constant 0 : index
    %5 = vector.load %arg4[%c0_5, %c0_6] : memref<16x512xf32, #tpu.memory_space<vmem>>, vector<16x512xf32>
    %6 = arith.maximumf %4, %5 : vector<16x512xf32>
    %c0_7 = arith.constant 0 : index
    %c0_8 = arith.constant 0 : index
    %7 = vector.load %arg5[%c0_7, %c0_8] : memref<16x512xf32, #tpu.memory_space<vmem>>, vector<16x512xf32>
    %8 = arith.maximumf %6, %7 : vector<16x512xf32>
    %c0_9 = arith.constant 0 : index
    %c0_10 = arith.constant 0 : index
    %9 = vector.load %arg6[%c0_9, %c0_10] : memref<16x512xf32, #tpu.memory_space<vmem>>, vector<16x512xf32>
    %10 = arith.maximumf %8, %9 : vector<16x512xf32>
    %c0_11 = arith.constant 0 : index
    %c0_12 = arith.constant 0 : index
    %11 = vector.load %arg7[%c0_11, %c0_12] : memref<16x512xf32, #tpu.memory_space<vmem>>, vector<16x512xf32>
    %12 = arith.maximumf %10, %11 : vector<16x512xf32>
    %c0_13 = arith.constant 0 : index
    %c0_14 = arith.constant 0 : index
    %13 = vector.load %arg8[%c0_13, %c0_14] : memref<16x512xf32, #tpu.memory_space<vmem>>, vector<16x512xf32>
    %14 = arith.maximumf %12, %13 : vector<16x512xf32>
    %c0_15 = arith.constant 0 : index
    %c0_16 = arith.constant 0 : index
    %15 = vector.load %arg9[%c0_15, %c0_16] : memref<16x512xf32, #tpu.memory_space<vmem>>, vector<16x512xf32>
    %16 = arith.maximumf %14, %15 : vector<16x512xf32>
    %c0_17 = arith.constant 0 : index
    %c0_18 = arith.constant 0 : index
    %17 = vector.load %arg10[%c0_17, %c0_18] : memref<16x512xf32, #tpu.memory_space<vmem>>, vector<16x512xf32>
    tpu.vector_store %arg10[%c0_17, %c0_18], %16 {strides = array<i32>} : memref<16x512xf32, #tpu.memory_space<vmem>>, vector<16x512xf32>,
    return
  }
  func.func @transform_0(%arg0: i32) -> (i32, i32) {
    %c0_i32 = arith.constant 0 : i32
    %c0_i32_0 = arith.constant 0 : i32
    return %arg0, %c0_i32 : i32, i32
  }
  func.func @transform_1(%arg0: i32) -> (i32, i32) {
    %c0_i32 = arith.constant 0 : i32
    %c0_i32_0 = arith.constant 0 : i32
    return %arg0, %c0_i32 : i32, i32
  }
  func.func @transform_2(%arg0: i32) -> (i32, i32) {
    %c0_i32 = arith.constant 0 : i32
    %c0_i32_0 = arith.constant 0 : i32
    return %arg0, %c0_i32 : i32, i32
  }
  func.func @transform_3(%arg0: i32) -> (i32, i32) {
    %c0_i32 = arith.constant 0 : i32
    %c0_i32_0 = arith.constant 0 : i32
    return %arg0, %c0_i32 : i32, i32
  }
  func.func @transform_4(%arg0: i32) -> (i32, i32) {
    %c0_i32 = arith.constant 0 : i32
    %c0_i32_0 = arith.constant 0 : i32
    return %arg0, %c0_i32 : i32, i32
  }
  func.func @transform_5(%arg0: i32) -> (i32, i32) {
    %c0_i32 = arith.constant 0 : i32
    %c0_i32_0 = arith.constant 0 : i32
    return %arg0, %c0_i32 : i32, i32
  }
  func.func @transform_6(%arg0: i32) -> (i32, i32) {
    %c0_i32 = arith.constant 0 : i32
    %c0_i32_0 = arith.constant 0 : i32
    return %arg0, %c0_i32 : i32, i32
  }
  func.func @transform_7(%arg0: i32) -> (i32, i32) {
    %c0_i32 = arith.constant 0 : i32
    %c0_i32_0 = arith.constant 0 : i32
    return %arg0, %c0_i32 : i32, i32
  }
  func.func @transform_8(%arg0: i32) -> (i32, i32) {
    %c0_i32 = arith.constant 0 : i32
    %c0_i32_0 = arith.constant 0 : i32
    return %arg0, %c0_i32 : i32, i32
  }
  func.func @transform_9(%arg0: i32) -> (i32, i32) {
    %c0_i32 = arith.constant 0 : i32
    %c0_i32_0 = arith.constant 0 : i32
    return %arg0, %c0_i32 : i32, i32
  }
}

module attributes {stable_mosaic.version = 11 : i64} {
  func.func @_gemm_kernel(%arg0: i32, %arg1: i32, %arg2: i32, %arg3: memref<128x256xbf16, #tpu.memory_space<vmem>>, %arg4: memref<256x128xbf16, #tpu.memory_space<vmem>>, %arg5: memref<1x128xf32, #tpu.memory_space<vmem>>, %arg6: memref<128x128xf32, #tpu.memory_space<vmem>>, %arg7: memref<128x128xf32, #tpu.memory_space<vmem>>) attributes {dimension_semantics = [#tpu.dimension_semantics<parallel>, #tpu.dimension_semantics<parallel>, #tpu.dimension_semantics<arbitrary>], iteration_bounds = array<i64: 1, 1, 3>, scalar_prefetch = 0 : i64, scratch_operands = 1 : i64, tpu.core_type = #tpu.core_type<tc>, window_params = [{transform_indices = @transform_0, window_bounds = array<i64: 128, 256>}, {transform_indices = @transform_1, window_bounds = array<i64: 256, 128>}, {transform_indices = @transform_2, window_bounds = array<i64: 1, 128>}, {transform_indices = @transform_3, window_bounds = array<i64: 128, 128>}]} {
    %c0_i32 = arith.constant 0 : i32
    %0 = arith.cmpi eq, %arg2, %c0_i32 : i32
    %1 = arith.extui %0 : i1 to i32
    %c0_i32_0 = arith.constant 0 : i32
    %2 = arith.cmpi ne, %1, %c0_i32_0 : i32
    scf.if %2 {
      %cst_9 = arith.constant 0.000000e+00 : f32
      %12 = vector.broadcast %cst_9 : f32 to vector<128x128xf32>
      %c0_10 = arith.constant 0 : index
      %c0_11 = arith.constant 0 : index
      %13 = vector.load %arg7[%c0_10, %c0_11] : memref<128x128xf32, #tpu.memory_space<vmem>>, vector<128x128xf32>
      tpu.vector_store %arg7[%c0_10, %c0_11], %12 {strides = array<i32>} : memref<128x128xf32, #tpu.memory_space<vmem>>, vector<128x128xf32>,
    } else {
    }
    %c0 = arith.constant 0 : index
    %c0_1 = arith.constant 0 : index
    %3 = vector.load %arg7[%c0, %c0_1] : memref<128x128xf32, #tpu.memory_space<vmem>>, vector<128x128xf32>
    %c0_2 = arith.constant 0 : index
    %c0_3 = arith.constant 0 : index
    %4 = vector.load %arg3[%c0_2, %c0_3] : memref<128x256xbf16, #tpu.memory_space<vmem>>, vector<128x256xbf16>
    %c0_4 = arith.constant 0 : index
    %c0_5 = arith.constant 0 : index
    %5 = vector.load %arg4[%c0_4, %c0_5] : memref<256x128xbf16, #tpu.memory_space<vmem>>, vector<256x128xbf16>
    %cst = arith.constant dense<0.000000e+00> : vector<128x128xf32>
    %6 = tpu.matmul %4, %5, %cst {dimension_numbers = #tpu.dot_dimension_numbers<[1], [0], [0], [1], [0, 0, 1, 1], [], []>} : vector<128x256xbf16>, vector<256x128xbf16>, vector<128x128xf32> -> vector<128x128xf32>
    %7 = arith.addf %3, %6 : vector<128x128xf32>
    %c0_6 = arith.constant 0 : index
    %c0_7 = arith.constant 0 : index
    %8 = vector.load %arg7[%c0_6, %c0_7] : memref<128x128xf32, #tpu.memory_space<vmem>>, vector<128x128xf32>
    tpu.vector_store %arg7[%c0_6, %c0_7], %7 {strides = array<i32>} : memref<128x128xf32, #tpu.memory_space<vmem>>, vector<128x128xf32>,
    %c2_i32 = arith.constant 2 : i32
    %9 = arith.cmpi eq, %arg2, %c2_i32 : i32
    %10 = arith.extui %9 : i1 to i32
    %c0_i32_8 = arith.constant 0 : i32
    %11 = arith.cmpi ne, %10, %c0_i32_8 : i32
    scf.if %11 {
      %c0_9 = arith.constant 0 : index
      %c0_10 = arith.constant 0 : index
      %12 = vector.load %arg7[%c0_9, %c0_10] : memref<128x128xf32, #tpu.memory_space<vmem>>, vector<128x128xf32>
      %c0_11 = arith.constant 0 : index
      %c0_12 = arith.constant 0 : index
      %13 = vector.load %arg5[%c0_11, %c0_12] : memref<1x128xf32, #tpu.memory_space<vmem>>, vector<1x128xf32>
      %14 = vector.broadcast %13 : vector<1x128xf32> to vector<128x128xf32>
      %15 = arith.addf %12, %14 : vector<128x128xf32>
      %cst_13 = arith.constant 0.000000e+00 : f32
      %16 = vector.broadcast %cst_13 : f32 to vector<128x128xf32>
      %17 = arith.maximumf %15, %16 : vector<128x128xf32>
      %c0_14 = arith.constant 0 : index
      %c0_15 = arith.constant 0 : index
      %18 = vector.load %arg6[%c0_14, %c0_15] : memref<128x128xf32, #tpu.memory_space<vmem>>, vector<128x128xf32>
      tpu.vector_store %arg6[%c0_14, %c0_15], %17 {strides = array<i32>} : memref<128x128xf32, #tpu.memory_space<vmem>>, vector<128x128xf32>,
    } else {
    }
    return
  }
  func.func @transform_0(%arg0: i32, %arg1: i32, %arg2: i32) -> (i32, i32) {
    %c0_i32 = arith.constant 0 : i32
    return %arg0, %arg2 : i32, i32
  }
  func.func @transform_1(%arg0: i32, %arg1: i32, %arg2: i32) -> (i32, i32) {
    %c0_i32 = arith.constant 0 : i32
    return %arg2, %arg1 : i32, i32
  }
  func.func @transform_2(%arg0: i32, %arg1: i32, %arg2: i32) -> (i32, i32) {
    %c0_i32 = arith.constant 0 : i32
    %c0_i32_0 = arith.constant 0 : i32
    return %c0_i32, %arg1 : i32, i32
  }
  func.func @transform_3(%arg0: i32, %arg1: i32, %arg2: i32) -> (i32, i32) {
    %c0_i32 = arith.constant 0 : i32
    return %arg0, %arg1 : i32, i32
  }
}

module attributes {stable_mosaic.version = 11 : i64} {
  func.func @_gemm_kernel(%arg0: i32, %arg1: i32, %arg2: i32, %arg3: memref<128x256xbf16, #tpu.memory_space<vmem>>, %arg4: memref<256x128xbf16, #tpu.memory_space<vmem>>, %arg5: memref<1x128xf32, #tpu.memory_space<vmem>>, %arg6: memref<128x128xf32, #tpu.memory_space<vmem>>, %arg7: memref<128x128xf32, #tpu.memory_space<vmem>>, %arg8: memref<128x128xf32, #tpu.memory_space<vmem>>) attributes {dimension_semantics = [#tpu.dimension_semantics<parallel>, #tpu.dimension_semantics<parallel>, #tpu.dimension_semantics<arbitrary>], iteration_bounds = array<i64: 1, 1, 3>, scalar_prefetch = 0 : i64, scratch_operands = 1 : i64, tpu.core_type = #tpu.core_type<tc>, window_params = [{transform_indices = @transform_0, window_bounds = array<i64: 128, 256>}, {transform_indices = @transform_1, window_bounds = array<i64: 256, 128>}, {transform_indices = @transform_2, window_bounds = array<i64: 1, 128>}, {transform_indices = @transform_3, window_bounds = array<i64: 128, 128>}, {transform_indices = @transform_4, window_bounds = array<i64: 128, 128>}]} {
    %c0_i32 = arith.constant 0 : i32
    %0 = arith.cmpi eq, %arg2, %c0_i32 : i32
    %1 = arith.extui %0 : i1 to i32
    %c0_i32_0 = arith.constant 0 : i32
    %2 = arith.cmpi ne, %1, %c0_i32_0 : i32
    scf.if %2 {
      %cst_9 = arith.constant 0.000000e+00 : f32
      %12 = vector.broadcast %cst_9 : f32 to vector<128x128xf32>
      %c0_10 = arith.constant 0 : index
      %c0_11 = arith.constant 0 : index
      %13 = vector.load %arg8[%c0_10, %c0_11] : memref<128x128xf32, #tpu.memory_space<vmem>>, vector<128x128xf32>
      tpu.vector_store %arg8[%c0_10, %c0_11], %12 {strides = array<i32>} : memref<128x128xf32, #tpu.memory_space<vmem>>, vector<128x128xf32>,
    } else {
    }
    %c0 = arith.constant 0 : index
    %c0_1 = arith.constant 0 : index
    %3 = vector.load %arg8[%c0, %c0_1] : memref<128x128xf32, #tpu.memory_space<vmem>>, vector<128x128xf32>
    %c0_2 = arith.constant 0 : index
    %c0_3 = arith.constant 0 : index
    %4 = vector.load %arg3[%c0_2, %c0_3] : memref<128x256xbf16, #tpu.memory_space<vmem>>, vector<128x256xbf16>
    %c0_4 = arith.constant 0 : index
    %c0_5 = arith.constant 0 : index
    %5 = vector.load %arg4[%c0_4, %c0_5] : memref<256x128xbf16, #tpu.memory_space<vmem>>, vector<256x128xbf16>
    %cst = arith.constant dense<0.000000e+00> : vector<128x128xf32>
    %6 = tpu.matmul %4, %5, %cst {dimension_numbers = #tpu.dot_dimension_numbers<[1], [0], [0], [1], [0, 0, 1, 1], [], []>} : vector<128x256xbf16>, vector<256x128xbf16>, vector<128x128xf32> -> vector<128x128xf32>
    %7 = arith.addf %3, %6 : vector<128x128xf32>
    %c0_6 = arith.constant 0 : index
    %c0_7 = arith.constant 0 : index
    %8 = vector.load %arg8[%c0_6, %c0_7] : memref<128x128xf32, #tpu.memory_space<vmem>>, vector<128x128xf32>
    tpu.vector_store %arg8[%c0_6, %c0_7], %7 {strides = array<i32>} : memref<128x128xf32, #tpu.memory_space<vmem>>, vector<128x128xf32>,
    %c2_i32 = arith.constant 2 : i32
    %9 = arith.cmpi eq, %arg2, %c2_i32 : i32
    %10 = arith.extui %9 : i1 to i32
    %c0_i32_8 = arith.constant 0 : i32
    %11 = arith.cmpi ne, %10, %c0_i32_8 : i32
    scf.if %11 {
      %c0_9 = arith.constant 0 : index
      %c0_10 = arith.constant 0 : index
      %12 = vector.load %arg8[%c0_9, %c0_10] : memref<128x128xf32, #tpu.memory_space<vmem>>, vector<128x128xf32>
      %c0_11 = arith.constant 0 : index
      %c0_12 = arith.constant 0 : index
      %13 = vector.load %arg5[%c0_11, %c0_12] : memref<1x128xf32, #tpu.memory_space<vmem>>, vector<1x128xf32>
      %14 = vector.broadcast %13 : vector<1x128xf32> to vector<128x128xf32>
      %15 = arith.addf %12, %14 : vector<128x128xf32>
      %c0_13 = arith.constant 0 : index
      %c0_14 = arith.constant 0 : index
      %16 = vector.load %arg6[%c0_13, %c0_14] : memref<128x128xf32, #tpu.memory_space<vmem>>, vector<128x128xf32>
      %17 = arith.addf %15, %16 : vector<128x128xf32>
      %cst_15 = arith.constant 0.000000e+00 : f32
      %18 = vector.broadcast %cst_15 : f32 to vector<128x128xf32>
      %19 = arith.maximumf %17, %18 : vector<128x128xf32>
      %c0_16 = arith.constant 0 : index
      %c0_17 = arith.constant 0 : index
      %20 = vector.load %arg7[%c0_16, %c0_17] : memref<128x128xf32, #tpu.memory_space<vmem>>, vector<128x128xf32>
      tpu.vector_store %arg7[%c0_16, %c0_17], %19 {strides = array<i32>} : memref<128x128xf32, #tpu.memory_space<vmem>>, vector<128x128xf32>,
    } else {
    }
    return
  }
  func.func @transform_0(%arg0: i32, %arg1: i32, %arg2: i32) -> (i32, i32) {
    %c0_i32 = arith.constant 0 : i32
    return %arg0, %arg2 : i32, i32
  }
  func.func @transform_1(%arg0: i32, %arg1: i32, %arg2: i32) -> (i32, i32) {
    %c0_i32 = arith.constant 0 : i32
    return %arg2, %arg1 : i32, i32
  }
  func.func @transform_2(%arg0: i32, %arg1: i32, %arg2: i32) -> (i32, i32) {
    %c0_i32 = arith.constant 0 : i32
    %c0_i32_0 = arith.constant 0 : i32
    return %c0_i32, %arg1 : i32, i32
  }
  func.func @transform_3(%arg0: i32, %arg1: i32, %arg2: i32) -> (i32, i32) {
    %c0_i32 = arith.constant 0 : i32
    return %arg0, %arg1 : i32, i32
  }
  func.func @transform_4(%arg0: i32, %arg1: i32, %arg2: i32) -> (i32, i32) {
    %c0_i32 = arith.constant 0 : i32
    return %arg0, %arg1 : i32, i32
  }
}

module attributes {stable_mosaic.version = 11 : i64} {
  func.func @_gemm_kernel(%arg0: i32, %arg1: i32, %arg2: i32, %arg3: memref<32x256xbf16, #tpu.memory_space<vmem>>, %arg4: memref<256x128xbf16, #tpu.memory_space<vmem>>, %arg5: memref<1x128xf32, #tpu.memory_space<vmem>>, %arg6: memref<32x128xf32, #tpu.memory_space<vmem>>, %arg7: memref<32x128xf32, #tpu.memory_space<vmem>>) attributes {dimension_semantics = [#tpu.dimension_semantics<parallel>, #tpu.dimension_semantics<parallel>, #tpu.dimension_semantics<arbitrary>], iteration_bounds = array<i64: 1, 1, 3>, scalar_prefetch = 0 : i64, scratch_operands = 1 : i64, tpu.core_type = #tpu.core_type<tc>, window_params = [{transform_indices = @transform_0, window_bounds = array<i64: 32, 256>}, {transform_indices = @transform_1, window_bounds = array<i64: 256, 128>}, {transform_indices = @transform_2, window_bounds = array<i64: 1, 128>}, {transform_indices = @transform_3, window_bounds = array<i64: 32, 128>}]} {
    %c0_i32 = arith.constant 0 : i32
    %0 = arith.cmpi eq, %arg2, %c0_i32 : i32
    %1 = arith.extui %0 : i1 to i32
    %c0_i32_0 = arith.constant 0 : i32
    %2 = arith.cmpi ne, %1, %c0_i32_0 : i32
    scf.if %2 {
      %cst_9 = arith.constant 0.000000e+00 : f32
      %12 = vector.broadcast %cst_9 : f32 to vector<32x128xf32>
      %c0_10 = arith.constant 0 : index
      %c0_11 = arith.constant 0 : index
      %13 = vector.load %arg7[%c0_10, %c0_11] : memref<32x128xf32, #tpu.memory_space<vmem>>, vector<32x128xf32>
      tpu.vector_store %arg7[%c0_10, %c0_11], %12 {strides = array<i32>} : memref<32x128xf32, #tpu.memory_space<vmem>>, vector<32x128xf32>,
    } else {
    }
    %c0 = arith.constant 0 : index
    %c0_1 = arith.constant 0 : index
    %3 = vector.load %arg7[%c0, %c0_1] : memref<32x128xf32, #tpu.memory_space<vmem>>, vector<32x128xf32>
    %c0_2 = arith.constant 0 : index
    %c0_3 = arith.constant 0 : index
    %4 = vector.load %arg3[%c0_2, %c0_3] : memref<32x256xbf16, #tpu.memory_space<vmem>>, vector<32x256xbf16>
    %c0_4 = arith.constant 0 : index
    %c0_5 = arith.constant 0 : index
    %5 = vector.load %arg4[%c0_4, %c0_5] : memref<256x128xbf16, #tpu.memory_space<vmem>>, vector<256x128xbf16>
    %cst = arith.constant dense<0.000000e+00> : vector<32x128xf32>
    %6 = tpu.matmul %4, %5, %cst {dimension_numbers = #tpu.dot_dimension_numbers<[1], [0], [0], [1], [0, 0, 1, 1], [], []>} : vector<32x256xbf16>, vector<256x128xbf16>, vector<32x128xf32> -> vector<32x128xf32>
    %7 = arith.addf %3, %6 : vector<32x128xf32>
    %c0_6 = arith.constant 0 : index
    %c0_7 = arith.constant 0 : index
    %8 = vector.load %arg7[%c0_6, %c0_7] : memref<32x128xf32, #tpu.memory_space<vmem>>, vector<32x128xf32>
    tpu.vector_store %arg7[%c0_6, %c0_7], %7 {strides = array<i32>} : memref<32x128xf32, #tpu.memory_space<vmem>>, vector<32x128xf32>,
    %c2_i32 = arith.constant 2 : i32
    %9 = arith.cmpi eq, %arg2, %c2_i32 : i32
    %10 = arith.extui %9 : i1 to i32
    %c0_i32_8 = arith.constant 0 : i32
    %11 = arith.cmpi ne, %10, %c0_i32_8 : i32
    scf.if %11 {
      %c0_9 = arith.constant 0 : index
      %c0_10 = arith.constant 0 : index
      %12 = vector.load %arg7[%c0_9, %c0_10] : memref<32x128xf32, #tpu.memory_space<vmem>>, vector<32x128xf32>
      %c0_11 = arith.constant 0 : index
      %c0_12 = arith.constant 0 : index
      %13 = vector.load %arg5[%c0_11, %c0_12] : memref<1x128xf32, #tpu.memory_space<vmem>>, vector<1x128xf32>
      %14 = vector.broadcast %13 : vector<1x128xf32> to vector<32x128xf32>
      %15 = arith.addf %12, %14 : vector<32x128xf32>
      %cst_13 = arith.constant 0.000000e+00 : f32
      %16 = vector.broadcast %cst_13 : f32 to vector<32x128xf32>
      %17 = arith.maximumf %15, %16 : vector<32x128xf32>
      %c0_14 = arith.constant 0 : index
      %c0_15 = arith.constant 0 : index
      %18 = vector.load %arg6[%c0_14, %c0_15] : memref<32x128xf32, #tpu.memory_space<vmem>>, vector<32x128xf32>
      tpu.vector_store %arg6[%c0_14, %c0_15], %17 {strides = array<i32>} : memref<32x128xf32, #tpu.memory_space<vmem>>, vector<32x128xf32>,
    } else {
    }
    return
  }
  func.func @transform_0(%arg0: i32, %arg1: i32, %arg2: i32) -> (i32, i32) {
    %c0_i32 = arith.constant 0 : i32
    return %arg0, %arg2 : i32, i32
  }
  func.func @transform_1(%arg0: i32, %arg1: i32, %arg2: i32) -> (i32, i32) {
    %c0_i32 = arith.constant 0 : i32
    return %arg2, %arg1 : i32, i32
  }
  func.func @transform_2(%arg0: i32, %arg1: i32, %arg2: i32) -> (i32, i32) {
    %c0_i32 = arith.constant 0 : i32
    %c0_i32_0 = arith.constant 0 : i32
    return %c0_i32, %arg1 : i32, i32
  }
  func.func @transform_3(%arg0: i32, %arg1: i32, %arg2: i32) -> (i32, i32) {
    %c0_i32 = arith.constant 0 : i32
    return %arg0, %arg1 : i32, i32
  }
}

module attributes {stable_mosaic.version = 11 : i64} {
  func.func @_gemm_kernel(%arg0: i32, %arg1: i32, %arg2: i32, %arg3: memref<32x384xbf16, #tpu.memory_space<vmem>>, %arg4: memref<384x128xbf16, #tpu.memory_space<vmem>>, %arg5: memref<1x128xf32, #tpu.memory_space<vmem>>, %arg6: memref<32x128xf32, #tpu.memory_space<vmem>>, %arg7: memref<32x128xf32, #tpu.memory_space<vmem>>, %arg8: memref<32x128xf32, #tpu.memory_space<vmem>>) attributes {dimension_semantics = [#tpu.dimension_semantics<parallel>, #tpu.dimension_semantics<parallel>, #tpu.dimension_semantics<arbitrary>], iteration_bounds = array<i64: 1, 1, 3>, scalar_prefetch = 0 : i64, scratch_operands = 1 : i64, tpu.core_type = #tpu.core_type<tc>, window_params = [{transform_indices = @transform_0, window_bounds = array<i64: 32, 384>}, {transform_indices = @transform_1, window_bounds = array<i64: 384, 128>}, {transform_indices = @transform_2, window_bounds = array<i64: 1, 128>}, {transform_indices = @transform_3, window_bounds = array<i64: 32, 128>}, {transform_indices = @transform_4, window_bounds = array<i64: 32, 128>}]} {
    %c0_i32 = arith.constant 0 : i32
    %0 = arith.cmpi eq, %arg2, %c0_i32 : i32
    %1 = arith.extui %0 : i1 to i32
    %c0_i32_0 = arith.constant 0 : i32
    %2 = arith.cmpi ne, %1, %c0_i32_0 : i32
    scf.if %2 {
      %cst_9 = arith.constant 0.000000e+00 : f32
      %12 = vector.broadcast %cst_9 : f32 to vector<32x128xf32>
      %c0_10 = arith.constant 0 : index
      %c0_11 = arith.constant 0 : index
      %13 = vector.load %arg8[%c0_10, %c0_11] : memref<32x128xf32, #tpu.memory_space<vmem>>, vector<32x128xf32>
      tpu.vector_store %arg8[%c0_10, %c0_11], %12 {strides = array<i32>} : memref<32x128xf32, #tpu.memory_space<vmem>>, vector<32x128xf32>,
    } else {
    }
    %c0 = arith.constant 0 : index
    %c0_1 = arith.constant 0 : index
    %3 = vector.load %arg8[%c0, %c0_1] : memref<32x128xf32, #tpu.memory_space<vmem>>, vector<32x128xf32>
    %c0_2 = arith.constant 0 : index
    %c0_3 = arith.constant 0 : index
    %4 = vector.load %arg3[%c0_2, %c0_3] : memref<32x384xbf16, #tpu.memory_space<vmem>>, vector<32x384xbf16>
    %c0_4 = arith.constant 0 : index
    %c0_5 = arith.constant 0 : index
    %5 = vector.load %arg4[%c0_4, %c0_5] : memref<384x128xbf16, #tpu.memory_space<vmem>>, vector<384x128xbf16>
    %cst = arith.constant dense<0.000000e+00> : vector<32x128xf32>
    %6 = tpu.matmul %4, %5, %cst {dimension_numbers = #tpu.dot_dimension_numbers<[1], [0], [0], [1], [0, 0, 1, 1], [], []>} : vector<32x384xbf16>, vector<384x128xbf16>, vector<32x128xf32> -> vector<32x128xf32>
    %7 = arith.addf %3, %6 : vector<32x128xf32>
    %c0_6 = arith.constant 0 : index
    %c0_7 = arith.constant 0 : index
    %8 = vector.load %arg8[%c0_6, %c0_7] : memref<32x128xf32, #tpu.memory_space<vmem>>, vector<32x128xf32>
    tpu.vector_store %arg8[%c0_6, %c0_7], %7 {strides = array<i32>} : memref<32x128xf32, #tpu.memory_space<vmem>>, vector<32x128xf32>,
    %c2_i32 = arith.constant 2 : i32
    %9 = arith.cmpi eq, %arg2, %c2_i32 : i32
    %10 = arith.extui %9 : i1 to i32
    %c0_i32_8 = arith.constant 0 : i32
    %11 = arith.cmpi ne, %10, %c0_i32_8 : i32
    scf.if %11 {
      %c0_9 = arith.constant 0 : index
      %c0_10 = arith.constant 0 : index
      %12 = vector.load %arg8[%c0_9, %c0_10] : memref<32x128xf32, #tpu.memory_space<vmem>>, vector<32x128xf32>
      %c0_11 = arith.constant 0 : index
      %c0_12 = arith.constant 0 : index
      %13 = vector.load %arg5[%c0_11, %c0_12] : memref<1x128xf32, #tpu.memory_space<vmem>>, vector<1x128xf32>
      %14 = vector.broadcast %13 : vector<1x128xf32> to vector<32x128xf32>
      %15 = arith.addf %12, %14 : vector<32x128xf32>
      %c0_13 = arith.constant 0 : index
      %c0_14 = arith.constant 0 : index
      %16 = vector.load %arg6[%c0_13, %c0_14] : memref<32x128xf32, #tpu.memory_space<vmem>>, vector<32x128xf32>
      %17 = arith.addf %15, %16 : vector<32x128xf32>
      %cst_15 = arith.constant 0.000000e+00 : f32
      %18 = vector.broadcast %cst_15 : f32 to vector<32x128xf32>
      %19 = arith.maximumf %17, %18 : vector<32x128xf32>
      %c0_16 = arith.constant 0 : index
      %c0_17 = arith.constant 0 : index
      %20 = vector.load %arg7[%c0_16, %c0_17] : memref<32x128xf32, #tpu.memory_space<vmem>>, vector<32x128xf32>
      tpu.vector_store %arg7[%c0_16, %c0_17], %19 {strides = array<i32>} : memref<32x128xf32, #tpu.memory_space<vmem>>, vector<32x128xf32>,
    } else {
    }
    return
  }
  func.func @transform_0(%arg0: i32, %arg1: i32, %arg2: i32) -> (i32, i32) {
    %c0_i32 = arith.constant 0 : i32
    return %arg0, %arg2 : i32, i32
  }
  func.func @transform_1(%arg0: i32, %arg1: i32, %arg2: i32) -> (i32, i32) {
    %c0_i32 = arith.constant 0 : i32
    return %arg2, %arg1 : i32, i32
  }
  func.func @transform_2(%arg0: i32, %arg1: i32, %arg2: i32) -> (i32, i32) {
    %c0_i32 = arith.constant 0 : i32
    %c0_i32_0 = arith.constant 0 : i32
    return %c0_i32, %arg1 : i32, i32
  }
  func.func @transform_3(%arg0: i32, %arg1: i32, %arg2: i32) -> (i32, i32) {
    %c0_i32 = arith.constant 0 : i32
    return %arg0, %arg1 : i32, i32
  }
  func.func @transform_4(%arg0: i32, %arg1: i32, %arg2: i32) -> (i32, i32) {
    %c0_i32 = arith.constant 0 : i32
    return %arg0, %arg1 : i32, i32
  }
}

module attributes {stable_mosaic.version = 11 : i64} {
  func.func @_gemm_kernel(%arg0: i32, %arg1: i32, %arg2: i32, %arg3: memref<32x384xbf16, #tpu.memory_space<vmem>>, %arg4: memref<384x128xbf16, #tpu.memory_space<vmem>>, %arg5: memref<1x128xf32, #tpu.memory_space<vmem>>, %arg6: memref<32x128xf32, #tpu.memory_space<vmem>>, %arg7: memref<32x128xf32, #tpu.memory_space<vmem>>) attributes {dimension_semantics = [#tpu.dimension_semantics<parallel>, #tpu.dimension_semantics<parallel>, #tpu.dimension_semantics<arbitrary>], iteration_bounds = array<i64: 1, 1, 3>, scalar_prefetch = 0 : i64, scratch_operands = 1 : i64, tpu.core_type = #tpu.core_type<tc>, window_params = [{transform_indices = @transform_0, window_bounds = array<i64: 32, 384>}, {transform_indices = @transform_1, window_bounds = array<i64: 384, 128>}, {transform_indices = @transform_2, window_bounds = array<i64: 1, 128>}, {transform_indices = @transform_3, window_bounds = array<i64: 32, 128>}]} {
    %c0_i32 = arith.constant 0 : i32
    %0 = arith.cmpi eq, %arg2, %c0_i32 : i32
    %1 = arith.extui %0 : i1 to i32
    %c0_i32_0 = arith.constant 0 : i32
    %2 = arith.cmpi ne, %1, %c0_i32_0 : i32
    scf.if %2 {
      %cst_9 = arith.constant 0.000000e+00 : f32
      %12 = vector.broadcast %cst_9 : f32 to vector<32x128xf32>
      %c0_10 = arith.constant 0 : index
      %c0_11 = arith.constant 0 : index
      %13 = vector.load %arg7[%c0_10, %c0_11] : memref<32x128xf32, #tpu.memory_space<vmem>>, vector<32x128xf32>
      tpu.vector_store %arg7[%c0_10, %c0_11], %12 {strides = array<i32>} : memref<32x128xf32, #tpu.memory_space<vmem>>, vector<32x128xf32>,
    } else {
    }
    %c0 = arith.constant 0 : index
    %c0_1 = arith.constant 0 : index
    %3 = vector.load %arg7[%c0, %c0_1] : memref<32x128xf32, #tpu.memory_space<vmem>>, vector<32x128xf32>
    %c0_2 = arith.constant 0 : index
    %c0_3 = arith.constant 0 : index
    %4 = vector.load %arg3[%c0_2, %c0_3] : memref<32x384xbf16, #tpu.memory_space<vmem>>, vector<32x384xbf16>
    %c0_4 = arith.constant 0 : index
    %c0_5 = arith.constant 0 : index
    %5 = vector.load %arg4[%c0_4, %c0_5] : memref<384x128xbf16, #tpu.memory_space<vmem>>, vector<384x128xbf16>
    %cst = arith.constant dense<0.000000e+00> : vector<32x128xf32>
    %6 = tpu.matmul %4, %5, %cst {dimension_numbers = #tpu.dot_dimension_numbers<[1], [0], [0], [1], [0, 0, 1, 1], [], []>} : vector<32x384xbf16>, vector<384x128xbf16>, vector<32x128xf32> -> vector<32x128xf32>
    %7 = arith.addf %3, %6 : vector<32x128xf32>
    %c0_6 = arith.constant 0 : index
    %c0_7 = arith.constant 0 : index
    %8 = vector.load %arg7[%c0_6, %c0_7] : memref<32x128xf32, #tpu.memory_space<vmem>>, vector<32x128xf32>
    tpu.vector_store %arg7[%c0_6, %c0_7], %7 {strides = array<i32>} : memref<32x128xf32, #tpu.memory_space<vmem>>, vector<32x128xf32>,
    %c2_i32 = arith.constant 2 : i32
    %9 = arith.cmpi eq, %arg2, %c2_i32 : i32
    %10 = arith.extui %9 : i1 to i32
    %c0_i32_8 = arith.constant 0 : i32
    %11 = arith.cmpi ne, %10, %c0_i32_8 : i32
    scf.if %11 {
      %c0_9 = arith.constant 0 : index
      %c0_10 = arith.constant 0 : index
      %12 = vector.load %arg7[%c0_9, %c0_10] : memref<32x128xf32, #tpu.memory_space<vmem>>, vector<32x128xf32>
      %c0_11 = arith.constant 0 : index
      %c0_12 = arith.constant 0 : index
      %13 = vector.load %arg5[%c0_11, %c0_12] : memref<1x128xf32, #tpu.memory_space<vmem>>, vector<1x128xf32>
      %14 = vector.broadcast %13 : vector<1x128xf32> to vector<32x128xf32>
      %15 = arith.addf %12, %14 : vector<32x128xf32>
      %cst_13 = arith.constant 0.000000e+00 : f32
      %16 = vector.broadcast %cst_13 : f32 to vector<32x128xf32>
      %17 = arith.maximumf %15, %16 : vector<32x128xf32>
      %c0_14 = arith.constant 0 : index
      %c0_15 = arith.constant 0 : index
      %18 = vector.load %arg6[%c0_14, %c0_15] : memref<32x128xf32, #tpu.memory_space<vmem>>, vector<32x128xf32>
      tpu.vector_store %arg6[%c0_14, %c0_15], %17 {strides = array<i32>} : memref<32x128xf32, #tpu.memory_space<vmem>>, vector<32x128xf32>,
    } else {
    }
    return
  }
  func.func @transform_0(%arg0: i32, %arg1: i32, %arg2: i32) -> (i32, i32) {
    %c0_i32 = arith.constant 0 : i32
    return %arg0, %arg2 : i32, i32
  }
  func.func @transform_1(%arg0: i32, %arg1: i32, %arg2: i32) -> (i32, i32) {
    %c0_i32 = arith.constant 0 : i32
    return %arg2, %arg1 : i32, i32
  }
  func.func @transform_2(%arg0: i32, %arg1: i32, %arg2: i32) -> (i32, i32) {
    %c0_i32 = arith.constant 0 : i32
    %c0_i32_0 = arith.constant 0 : i32
    return %c0_i32, %arg1 : i32, i32
  }
  func.func @transform_3(%arg0: i32, %arg1: i32, %arg2: i32) -> (i32, i32) {
    %c0_i32 = arith.constant 0 : i32
    return %arg0, %arg1 : i32, i32
  }
}

module attributes {stable_mosaic.version = 11 : i64} {
  func.func @_gemm_kernel(%arg0: i32, %arg1: i32, %arg2: i32, %arg3: memref<32x64xbf16, #tpu.memory_space<vmem>>, %arg4: memref<64x128xbf16, #tpu.memory_space<vmem>>, %arg5: memref<1x128xf32, #tpu.memory_space<vmem>>, %arg6: memref<32x128xf32, #tpu.memory_space<vmem>>, %arg7: memref<32x128xf32, #tpu.memory_space<vmem>>) attributes {dimension_semantics = [#tpu.dimension_semantics<parallel>, #tpu.dimension_semantics<parallel>, #tpu.dimension_semantics<arbitrary>], iteration_bounds = array<i64: 1, 1, 1>, scalar_prefetch = 0 : i64, scratch_operands = 1 : i64, tpu.core_type = #tpu.core_type<tc>, window_params = [{transform_indices = @transform_0, window_bounds = array<i64: 32, 64>}, {transform_indices = @transform_1, window_bounds = array<i64: 64, 128>}, {transform_indices = @transform_2, window_bounds = array<i64: 1, 128>}, {transform_indices = @transform_3, window_bounds = array<i64: 32, 128>}]} {
    %c0_i32 = arith.constant 0 : i32
    %0 = arith.cmpi eq, %arg2, %c0_i32 : i32
    %1 = arith.extui %0 : i1 to i32
    %c0_i32_0 = arith.constant 0 : i32
    %2 = arith.cmpi ne, %1, %c0_i32_0 : i32
    scf.if %2 {
      %cst_10 = arith.constant 0.000000e+00 : f32
      %12 = vector.broadcast %cst_10 : f32 to vector<32x128xf32>
      %c0_11 = arith.constant 0 : index
      %c0_12 = arith.constant 0 : index
      %13 = vector.load %arg7[%c0_11, %c0_12] : memref<32x128xf32, #tpu.memory_space<vmem>>, vector<32x128xf32>
      tpu.vector_store %arg7[%c0_11, %c0_12], %12 {strides = array<i32>} : memref<32x128xf32, #tpu.memory_space<vmem>>, vector<32x128xf32>,
    } else {
    }
    %c0 = arith.constant 0 : index
    %c0_1 = arith.constant 0 : index
    %3 = vector.load %arg7[%c0, %c0_1] : memref<32x128xf32, #tpu.memory_space<vmem>>, vector<32x128xf32>
    %c0_2 = arith.constant 0 : index
    %c0_3 = arith.constant 0 : index
    %4 = vector.load %arg3[%c0_2, %c0_3] : memref<32x64xbf16, #tpu.memory_space<vmem>>, vector<32x64xbf16>
    %c0_4 = arith.constant 0 : index
    %c0_5 = arith.constant 0 : index
    %5 = vector.load %arg4[%c0_4, %c0_5] : memref<64x128xbf16, #tpu.memory_space<vmem>>, vector<64x128xbf16>
    %cst = arith.constant dense<0.000000e+00> : vector<32x128xf32>
    %6 = tpu.matmul %4, %5, %cst {dimension_numbers = #tpu.dot_dimension_numbers<[1], [0], [0], [1], [0, 0, 1, 1], [], []>} : vector<32x64xbf16>, vector<64x128xbf16>, vector<32x128xf32> -> vector<32x128xf32>
    %7 = arith.addf %3, %6 : vector<32x128xf32>
    %c0_6 = arith.constant 0 : index
    %c0_7 = arith.constant 0 : index
    %8 = vector.load %arg7[%c0_6, %c0_7] : memref<32x128xf32, #tpu.memory_space<vmem>>, vector<32x128xf32>
    tpu.vector_store %arg7[%c0_6, %c0_7], %7 {strides = array<i32>} : memref<32x128xf32, #tpu.memory_space<vmem>>, vector<32x128xf32>,
    %c0_i32_8 = arith.constant 0 : i32
    %9 = arith.cmpi eq, %arg2, %c0_i32_8 : i32
    %10 = arith.extui %9 : i1 to i32
    %c0_i32_9 = arith.constant 0 : i32
    %11 = arith.cmpi ne, %10, %c0_i32_9 : i32
    scf.if %11 {
      %c0_10 = arith.constant 0 : index
      %c0_11 = arith.constant 0 : index
      %12 = vector.load %arg7[%c0_10, %c0_11] : memref<32x128xf32, #tpu.memory_space<vmem>>, vector<32x128xf32>
      %c0_12 = arith.constant 0 : index
      %c0_13 = arith.constant 0 : index
      %13 = vector.load %arg5[%c0_12, %c0_13] : memref<1x128xf32, #tpu.memory_space<vmem>>, vector<1x128xf32>
      %14 = vector.broadcast %13 : vector<1x128xf32> to vector<32x128xf32>
      %15 = arith.addf %12, %14 : vector<32x128xf32>
      %c0_14 = arith.constant 0 : index
      %c0_15 = arith.constant 0 : index
      %16 = vector.load %arg6[%c0_14, %c0_15] : memref<32x128xf32, #tpu.memory_space<vmem>>, vector<32x128xf32>
      tpu.vector_store %arg6[%c0_14, %c0_15], %15 {strides = array<i32>} : memref<32x128xf32, #tpu.memory_space<vmem>>, vector<32x128xf32>,
    } else {
    }
    return
  }
  func.func @transform_0(%arg0: i32, %arg1: i32, %arg2: i32) -> (i32, i32) {
    %c0_i32 = arith.constant 0 : i32
    return %arg0, %arg2 : i32, i32
  }
  func.func @transform_1(%arg0: i32, %arg1: i32, %arg2: i32) -> (i32, i32) {
    %c0_i32 = arith.constant 0 : i32
    return %arg2, %arg1 : i32, i32
  }
  func.func @transform_2(%arg0: i32, %arg1: i32, %arg2: i32) -> (i32, i32) {
    %c0_i32 = arith.constant 0 : i32
    %c0_i32_0 = arith.constant 0 : i32
    return %c0_i32, %arg1 : i32, i32
  }
  func.func @transform_3(%arg0: i32, %arg1: i32, %arg2: i32) -> (i32, i32) {
    %c0_i32 = arith.constant 0 : i32
    return %arg0, %arg1 : i32, i32
  }
}

module attributes {stable_mosaic.version = 11 : i64} {
  func.func @_gemm_kernel(%arg0: i32, %arg1: i32, %arg2: i32, %arg3: memref<8x384xbf16, #tpu.memory_space<vmem>>, %arg4: memref<384x256xbf16, #tpu.memory_space<vmem>>, %arg5: memref<1x256xf32, #tpu.memory_space<vmem>>, %arg6: memref<8x256xf32, #tpu.memory_space<vmem>>, %arg7: memref<8x256xf32, #tpu.memory_space<vmem>>) attributes {dimension_semantics = [#tpu.dimension_semantics<parallel>, #tpu.dimension_semantics<parallel>, #tpu.dimension_semantics<arbitrary>], iteration_bounds = array<i64: 1, 1, 3>, scalar_prefetch = 0 : i64, scratch_operands = 1 : i64, tpu.core_type = #tpu.core_type<tc>, window_params = [{transform_indices = @transform_0, window_bounds = array<i64: 8, 384>}, {transform_indices = @transform_1, window_bounds = array<i64: 384, 256>}, {transform_indices = @transform_2, window_bounds = array<i64: 1, 256>}, {transform_indices = @transform_3, window_bounds = array<i64: 8, 256>}]} {
    %c0_i32 = arith.constant 0 : i32
    %0 = arith.cmpi eq, %arg2, %c0_i32 : i32
    %1 = arith.extui %0 : i1 to i32
    %c0_i32_0 = arith.constant 0 : i32
    %2 = arith.cmpi ne, %1, %c0_i32_0 : i32
    scf.if %2 {
      %cst_9 = arith.constant 0.000000e+00 : f32
      %12 = vector.broadcast %cst_9 : f32 to vector<8x256xf32>
      %c0_10 = arith.constant 0 : index
      %c0_11 = arith.constant 0 : index
      %13 = vector.load %arg7[%c0_10, %c0_11] : memref<8x256xf32, #tpu.memory_space<vmem>>, vector<8x256xf32>
      tpu.vector_store %arg7[%c0_10, %c0_11], %12 {strides = array<i32>} : memref<8x256xf32, #tpu.memory_space<vmem>>, vector<8x256xf32>,
    } else {
    }
    %c0 = arith.constant 0 : index
    %c0_1 = arith.constant 0 : index
    %3 = vector.load %arg7[%c0, %c0_1] : memref<8x256xf32, #tpu.memory_space<vmem>>, vector<8x256xf32>
    %c0_2 = arith.constant 0 : index
    %c0_3 = arith.constant 0 : index
    %4 = vector.load %arg3[%c0_2, %c0_3] : memref<8x384xbf16, #tpu.memory_space<vmem>>, vector<8x384xbf16>
    %c0_4 = arith.constant 0 : index
    %c0_5 = arith.constant 0 : index
    %5 = vector.load %arg4[%c0_4, %c0_5] : memref<384x256xbf16, #tpu.memory_space<vmem>>, vector<384x256xbf16>
    %cst = arith.constant dense<0.000000e+00> : vector<8x256xf32>
    %6 = tpu.matmul %4, %5, %cst {dimension_numbers = #tpu.dot_dimension_numbers<[1], [0], [0], [1], [0, 0, 1, 1], [], []>} : vector<8x384xbf16>, vector<384x256xbf16>, vector<8x256xf32> -> vector<8x256xf32>
    %7 = arith.addf %3, %6 : vector<8x256xf32>
    %c0_6 = arith.constant 0 : index
    %c0_7 = arith.constant 0 : index
    %8 = vector.load %arg7[%c0_6, %c0_7] : memref<8x256xf32, #tpu.memory_space<vmem>>, vector<8x256xf32>
    tpu.vector_store %arg7[%c0_6, %c0_7], %7 {strides = array<i32>} : memref<8x256xf32, #tpu.memory_space<vmem>>, vector<8x256xf32>,
    %c2_i32 = arith.constant 2 : i32
    %9 = arith.cmpi eq, %arg2, %c2_i32 : i32
    %10 = arith.extui %9 : i1 to i32
    %c0_i32_8 = arith.constant 0 : i32
    %11 = arith.cmpi ne, %10, %c0_i32_8 : i32
    scf.if %11 {
      %c0_9 = arith.constant 0 : index
      %c0_10 = arith.constant 0 : index
      %12 = vector.load %arg7[%c0_9, %c0_10] : memref<8x256xf32, #tpu.memory_space<vmem>>, vector<8x256xf32>
      %c0_11 = arith.constant 0 : index
      %c0_12 = arith.constant 0 : index
      %13 = vector.load %arg5[%c0_11, %c0_12] : memref<1x256xf32, #tpu.memory_space<vmem>>, vector<1x256xf32>
      %14 = vector.broadcast %13 : vector<1x256xf32> to vector<8x256xf32>
      %15 = arith.addf %12, %14 : vector<8x256xf32>
      %cst_13 = arith.constant 0.000000e+00 : f32
      %16 = vector.broadcast %cst_13 : f32 to vector<8x256xf32>
      %17 = arith.maximumf %15, %16 : vector<8x256xf32>
      %c0_14 = arith.constant 0 : index
      %c0_15 = arith.constant 0 : index
      %18 = vector.load %arg6[%c0_14, %c0_15] : memref<8x256xf32, #tpu.memory_space<vmem>>, vector<8x256xf32>
      tpu.vector_store %arg6[%c0_14, %c0_15], %17 {strides = array<i32>} : memref<8x256xf32, #tpu.memory_space<vmem>>, vector<8x256xf32>,
    } else {
    }
    return
  }
  func.func @transform_0(%arg0: i32, %arg1: i32, %arg2: i32) -> (i32, i32) {
    %c0_i32 = arith.constant 0 : i32
    return %arg0, %arg2 : i32, i32
  }
  func.func @transform_1(%arg0: i32, %arg1: i32, %arg2: i32) -> (i32, i32) {
    %c0_i32 = arith.constant 0 : i32
    return %arg2, %arg1 : i32, i32
  }
  func.func @transform_2(%arg0: i32, %arg1: i32, %arg2: i32) -> (i32, i32) {
    %c0_i32 = arith.constant 0 : i32
    %c0_i32_0 = arith.constant 0 : i32
    return %c0_i32, %arg1 : i32, i32
  }
  func.func @transform_3(%arg0: i32, %arg1: i32, %arg2: i32) -> (i32, i32) {
    %c0_i32 = arith.constant 0 : i32
    return %arg0, %arg1 : i32, i32
  }
}

module attributes {stable_mosaic.version = 11 : i64} {
  func.func @_gemm_kernel(%arg0: i32, %arg1: i32, %arg2: i32, %arg3: memref<8x384xbf16, #tpu.memory_space<vmem>>, %arg4: memref<384x256xbf16, #tpu.memory_space<vmem>>, %arg5: memref<1x256xf32, #tpu.memory_space<vmem>>, %arg6: memref<8x256xf32, #tpu.memory_space<vmem>>, %arg7: memref<8x256xf32, #tpu.memory_space<vmem>>, %arg8: memref<8x256xf32, #tpu.memory_space<vmem>>) attributes {dimension_semantics = [#tpu.dimension_semantics<parallel>, #tpu.dimension_semantics<parallel>, #tpu.dimension_semantics<arbitrary>], iteration_bounds = array<i64: 1, 1, 6>, scalar_prefetch = 0 : i64, scratch_operands = 1 : i64, tpu.core_type = #tpu.core_type<tc>, window_params = [{transform_indices = @transform_0, window_bounds = array<i64: 8, 384>}, {transform_indices = @transform_1, window_bounds = array<i64: 384, 256>}, {transform_indices = @transform_2, window_bounds = array<i64: 1, 256>}, {transform_indices = @transform_3, window_bounds = array<i64: 8, 256>}, {transform_indices = @transform_4, window_bounds = array<i64: 8, 256>}]} {
    %c0_i32 = arith.constant 0 : i32
    %0 = arith.cmpi eq, %arg2, %c0_i32 : i32
    %1 = arith.extui %0 : i1 to i32
    %c0_i32_0 = arith.constant 0 : i32
    %2 = arith.cmpi ne, %1, %c0_i32_0 : i32
    scf.if %2 {
      %cst_9 = arith.constant 0.000000e+00 : f32
      %12 = vector.broadcast %cst_9 : f32 to vector<8x256xf32>
      %c0_10 = arith.constant 0 : index
      %c0_11 = arith.constant 0 : index
      %13 = vector.load %arg8[%c0_10, %c0_11] : memref<8x256xf32, #tpu.memory_space<vmem>>, vector<8x256xf32>
      tpu.vector_store %arg8[%c0_10, %c0_11], %12 {strides = array<i32>} : memref<8x256xf32, #tpu.memory_space<vmem>>, vector<8x256xf32>,
    } else {
    }
    %c0 = arith.constant 0 : index
    %c0_1 = arith.constant 0 : index
    %3 = vector.load %arg8[%c0, %c0_1] : memref<8x256xf32, #tpu.memory_space<vmem>>, vector<8x256xf32>
    %c0_2 = arith.constant 0 : index
    %c0_3 = arith.constant 0 : index
    %4 = vector.load %arg3[%c0_2, %c0_3] : memref<8x384xbf16, #tpu.memory_space<vmem>>, vector<8x384xbf16>
    %c0_4 = arith.constant 0 : index
    %c0_5 = arith.constant 0 : index
    %5 = vector.load %arg4[%c0_4, %c0_5] : memref<384x256xbf16, #tpu.memory_space<vmem>>, vector<384x256xbf16>
    %cst = arith.constant dense<0.000000e+00> : vector<8x256xf32>
    %6 = tpu.matmul %4, %5, %cst {dimension_numbers = #tpu.dot_dimension_numbers<[1], [0], [0], [1], [0, 0, 1, 1], [], []>} : vector<8x384xbf16>, vector<384x256xbf16>, vector<8x256xf32> -> vector<8x256xf32>
    %7 = arith.addf %3, %6 : vector<8x256xf32>
    %c0_6 = arith.constant 0 : index
    %c0_7 = arith.constant 0 : index
    %8 = vector.load %arg8[%c0_6, %c0_7] : memref<8x256xf32, #tpu.memory_space<vmem>>, vector<8x256xf32>
    tpu.vector_store %arg8[%c0_6, %c0_7], %7 {strides = array<i32>} : memref<8x256xf32, #tpu.memory_space<vmem>>, vector<8x256xf32>,
    %c5_i32 = arith.constant 5 : i32
    %9 = arith.cmpi eq, %arg2, %c5_i32 : i32
    %10 = arith.extui %9 : i1 to i32
    %c0_i32_8 = arith.constant 0 : i32
    %11 = arith.cmpi ne, %10, %c0_i32_8 : i32
    scf.if %11 {
      %c0_9 = arith.constant 0 : index
      %c0_10 = arith.constant 0 : index
      %12 = vector.load %arg8[%c0_9, %c0_10] : memref<8x256xf32, #tpu.memory_space<vmem>>, vector<8x256xf32>
      %c0_11 = arith.constant 0 : index
      %c0_12 = arith.constant 0 : index
      %13 = vector.load %arg5[%c0_11, %c0_12] : memref<1x256xf32, #tpu.memory_space<vmem>>, vector<1x256xf32>
      %14 = vector.broadcast %13 : vector<1x256xf32> to vector<8x256xf32>
      %15 = arith.addf %12, %14 : vector<8x256xf32>
      %c0_13 = arith.constant 0 : index
      %c0_14 = arith.constant 0 : index
      %16 = vector.load %arg6[%c0_13, %c0_14] : memref<8x256xf32, #tpu.memory_space<vmem>>, vector<8x256xf32>
      %17 = arith.addf %15, %16 : vector<8x256xf32>
      %cst_15 = arith.constant 0.000000e+00 : f32
      %18 = vector.broadcast %cst_15 : f32 to vector<8x256xf32>
      %19 = arith.maximumf %17, %18 : vector<8x256xf32>
      %c0_16 = arith.constant 0 : index
      %c0_17 = arith.constant 0 : index
      %20 = vector.load %arg7[%c0_16, %c0_17] : memref<8x256xf32, #tpu.memory_space<vmem>>, vector<8x256xf32>
      tpu.vector_store %arg7[%c0_16, %c0_17], %19 {strides = array<i32>} : memref<8x256xf32, #tpu.memory_space<vmem>>, vector<8x256xf32>,
    } else {
    }
    return
  }
  func.func @transform_0(%arg0: i32, %arg1: i32, %arg2: i32) -> (i32, i32) {
    %c0_i32 = arith.constant 0 : i32
    return %arg0, %arg2 : i32, i32
  }
  func.func @transform_1(%arg0: i32, %arg1: i32, %arg2: i32) -> (i32, i32) {
    %c0_i32 = arith.constant 0 : i32
    return %arg2, %arg1 : i32, i32
  }
  func.func @transform_2(%arg0: i32, %arg1: i32, %arg2: i32) -> (i32, i32) {
    %c0_i32 = arith.constant 0 : i32
    %c0_i32_0 = arith.constant 0 : i32
    return %c0_i32, %arg1 : i32, i32
  }
  func.func @transform_3(%arg0: i32, %arg1: i32, %arg2: i32) -> (i32, i32) {
    %c0_i32 = arith.constant 0 : i32
    return %arg0, %arg1 : i32, i32
  }
  func.func @transform_4(%arg0: i32, %arg1: i32, %arg2: i32) -> (i32, i32) {
    %c0_i32 = arith.constant 0 : i32
    return %arg0, %arg1 : i32, i32
  }
}

module attributes {stable_mosaic.version = 11 : i64} {
  func.func @_gemm_kernel(%arg0: i32, %arg1: i32, %arg2: i32, %arg3: memref<8x128xbf16, #tpu.memory_space<vmem>>, %arg4: memref<128x256xbf16, #tpu.memory_space<vmem>>, %arg5: memref<1x256xf32, #tpu.memory_space<vmem>>, %arg6: memref<8x256xf32, #tpu.memory_space<vmem>>, %arg7: memref<8x256xf32, #tpu.memory_space<vmem>>) attributes {dimension_semantics = [#tpu.dimension_semantics<parallel>, #tpu.dimension_semantics<parallel>, #tpu.dimension_semantics<arbitrary>], iteration_bounds = array<i64: 1, 1, 1>, scalar_prefetch = 0 : i64, scratch_operands = 1 : i64, tpu.core_type = #tpu.core_type<tc>, window_params = [{transform_indices = @transform_0, window_bounds = array<i64: 8, 128>}, {transform_indices = @transform_1, window_bounds = array<i64: 128, 256>}, {transform_indices = @transform_2, window_bounds = array<i64: 1, 256>}, {transform_indices = @transform_3, window_bounds = array<i64: 8, 256>}]} {
    %c0_i32 = arith.constant 0 : i32
    %0 = arith.cmpi eq, %arg2, %c0_i32 : i32
    %1 = arith.extui %0 : i1 to i32
    %c0_i32_0 = arith.constant 0 : i32
    %2 = arith.cmpi ne, %1, %c0_i32_0 : i32
    scf.if %2 {
      %cst_10 = arith.constant 0.000000e+00 : f32
      %12 = vector.broadcast %cst_10 : f32 to vector<8x256xf32>
      %c0_11 = arith.constant 0 : index
      %c0_12 = arith.constant 0 : index
      %13 = vector.load %arg7[%c0_11, %c0_12] : memref<8x256xf32, #tpu.memory_space<vmem>>, vector<8x256xf32>
      tpu.vector_store %arg7[%c0_11, %c0_12], %12 {strides = array<i32>} : memref<8x256xf32, #tpu.memory_space<vmem>>, vector<8x256xf32>,
    } else {
    }
    %c0 = arith.constant 0 : index
    %c0_1 = arith.constant 0 : index
    %3 = vector.load %arg7[%c0, %c0_1] : memref<8x256xf32, #tpu.memory_space<vmem>>, vector<8x256xf32>
    %c0_2 = arith.constant 0 : index
    %c0_3 = arith.constant 0 : index
    %4 = vector.load %arg3[%c0_2, %c0_3] : memref<8x128xbf16, #tpu.memory_space<vmem>>, vector<8x128xbf16>
    %c0_4 = arith.constant 0 : index
    %c0_5 = arith.constant 0 : index
    %5 = vector.load %arg4[%c0_4, %c0_5] : memref<128x256xbf16, #tpu.memory_space<vmem>>, vector<128x256xbf16>
    %cst = arith.constant dense<0.000000e+00> : vector<8x256xf32>
    %6 = tpu.matmul %4, %5, %cst {dimension_numbers = #tpu.dot_dimension_numbers<[1], [0], [0], [1], [0, 0, 1, 1], [], []>} : vector<8x128xbf16>, vector<128x256xbf16>, vector<8x256xf32> -> vector<8x256xf32>
    %7 = arith.addf %3, %6 : vector<8x256xf32>
    %c0_6 = arith.constant 0 : index
    %c0_7 = arith.constant 0 : index
    %8 = vector.load %arg7[%c0_6, %c0_7] : memref<8x256xf32, #tpu.memory_space<vmem>>, vector<8x256xf32>
    tpu.vector_store %arg7[%c0_6, %c0_7], %7 {strides = array<i32>} : memref<8x256xf32, #tpu.memory_space<vmem>>, vector<8x256xf32>,
    %c0_i32_8 = arith.constant 0 : i32
    %9 = arith.cmpi eq, %arg2, %c0_i32_8 : i32
    %10 = arith.extui %9 : i1 to i32
    %c0_i32_9 = arith.constant 0 : i32
    %11 = arith.cmpi ne, %10, %c0_i32_9 : i32
    scf.if %11 {
      %c0_10 = arith.constant 0 : index
      %c0_11 = arith.constant 0 : index
      %12 = vector.load %arg7[%c0_10, %c0_11] : memref<8x256xf32, #tpu.memory_space<vmem>>, vector<8x256xf32>
      %c0_12 = arith.constant 0 : index
      %c0_13 = arith.constant 0 : index
      %13 = vector.load %arg5[%c0_12, %c0_13] : memref<1x256xf32, #tpu.memory_space<vmem>>, vector<1x256xf32>
      %14 = vector.broadcast %13 : vector<1x256xf32> to vector<8x256xf32>
      %15 = arith.addf %12, %14 : vector<8x256xf32>
      %c0_14 = arith.constant 0 : index
      %c0_15 = arith.constant 0 : index
      %16 = vector.load %arg6[%c0_14, %c0_15] : memref<8x256xf32, #tpu.memory_space<vmem>>, vector<8x256xf32>
      tpu.vector_store %arg6[%c0_14, %c0_15], %15 {strides = array<i32>} : memref<8x256xf32, #tpu.memory_space<vmem>>, vector<8x256xf32>,
    } else {
    }
    return
  }
  func.func @transform_0(%arg0: i32, %arg1: i32, %arg2: i32) -> (i32, i32) {
    %c0_i32 = arith.constant 0 : i32
    return %arg0, %arg2 : i32, i32
  }
  func.func @transform_1(%arg0: i32, %arg1: i32, %arg2: i32) -> (i32, i32) {
    %c0_i32 = arith.constant 0 : i32
    return %arg2, %arg1 : i32, i32
  }
  func.func @transform_2(%arg0: i32, %arg1: i32, %arg2: i32) -> (i32, i32) {
    %c0_i32 = arith.constant 0 : i32
    %c0_i32_0 = arith.constant 0 : i32
    return %c0_i32, %arg1 : i32, i32
  }
  func.func @transform_3(%arg0: i32, %arg1: i32, %arg2: i32) -> (i32, i32) {
    %c0_i32 = arith.constant 0 : i32
    return %arg0, %arg1 : i32, i32
  }
}

module attributes {stable_mosaic.version = 11 : i64} {
  func.func @_gemm_kernel(%arg0: i32, %arg1: i32, %arg2: i32, %arg3: memref<8x384xbf16, #tpu.memory_space<vmem>>, %arg4: memref<384x256xbf16, #tpu.memory_space<vmem>>, %arg5: memref<1x256xf32, #tpu.memory_space<vmem>>, %arg6: memref<8x256xf32, #tpu.memory_space<vmem>>, %arg7: memref<8x256xf32, #tpu.memory_space<vmem>>) attributes {dimension_semantics = [#tpu.dimension_semantics<parallel>, #tpu.dimension_semantics<parallel>, #tpu.dimension_semantics<arbitrary>], iteration_bounds = array<i64: 1, 1, 6>, scalar_prefetch = 0 : i64, scratch_operands = 1 : i64, tpu.core_type = #tpu.core_type<tc>, window_params = [{transform_indices = @transform_0, window_bounds = array<i64: 8, 384>}, {transform_indices = @transform_1, window_bounds = array<i64: 384, 256>}, {transform_indices = @transform_2, window_bounds = array<i64: 1, 256>}, {transform_indices = @transform_3, window_bounds = array<i64: 8, 256>}]} {
    %c0_i32 = arith.constant 0 : i32
    %0 = arith.cmpi eq, %arg2, %c0_i32 : i32
    %1 = arith.extui %0 : i1 to i32
    %c0_i32_0 = arith.constant 0 : i32
    %2 = arith.cmpi ne, %1, %c0_i32_0 : i32
    scf.if %2 {
      %cst_9 = arith.constant 0.000000e+00 : f32
      %12 = vector.broadcast %cst_9 : f32 to vector<8x256xf32>
      %c0_10 = arith.constant 0 : index
      %c0_11 = arith.constant 0 : index
      %13 = vector.load %arg7[%c0_10, %c0_11] : memref<8x256xf32, #tpu.memory_space<vmem>>, vector<8x256xf32>
      tpu.vector_store %arg7[%c0_10, %c0_11], %12 {strides = array<i32>} : memref<8x256xf32, #tpu.memory_space<vmem>>, vector<8x256xf32>,
    } else {
    }
    %c0 = arith.constant 0 : index
    %c0_1 = arith.constant 0 : index
    %3 = vector.load %arg7[%c0, %c0_1] : memref<8x256xf32, #tpu.memory_space<vmem>>, vector<8x256xf32>
    %c0_2 = arith.constant 0 : index
    %c0_3 = arith.constant 0 : index
    %4 = vector.load %arg3[%c0_2, %c0_3] : memref<8x384xbf16, #tpu.memory_space<vmem>>, vector<8x384xbf16>
    %c0_4 = arith.constant 0 : index
    %c0_5 = arith.constant 0 : index
    %5 = vector.load %arg4[%c0_4, %c0_5] : memref<384x256xbf16, #tpu.memory_space<vmem>>, vector<384x256xbf16>
    %cst = arith.constant dense<0.000000e+00> : vector<8x256xf32>
    %6 = tpu.matmul %4, %5, %cst {dimension_numbers = #tpu.dot_dimension_numbers<[1], [0], [0], [1], [0, 0, 1, 1], [], []>} : vector<8x384xbf16>, vector<384x256xbf16>, vector<8x256xf32> -> vector<8x256xf32>
    %7 = arith.addf %3, %6 : vector<8x256xf32>
    %c0_6 = arith.constant 0 : index
    %c0_7 = arith.constant 0 : index
    %8 = vector.load %arg7[%c0_6, %c0_7] : memref<8x256xf32, #tpu.memory_space<vmem>>, vector<8x256xf32>
    tpu.vector_store %arg7[%c0_6, %c0_7], %7 {strides = array<i32>} : memref<8x256xf32, #tpu.memory_space<vmem>>, vector<8x256xf32>,
    %c5_i32 = arith.constant 5 : i32
    %9 = arith.cmpi eq, %arg2, %c5_i32 : i32
    %10 = arith.extui %9 : i1 to i32
    %c0_i32_8 = arith.constant 0 : i32
    %11 = arith.cmpi ne, %10, %c0_i32_8 : i32
    scf.if %11 {
      %c0_9 = arith.constant 0 : index
      %c0_10 = arith.constant 0 : index
      %12 = vector.load %arg7[%c0_9, %c0_10] : memref<8x256xf32, #tpu.memory_space<vmem>>, vector<8x256xf32>
      %c0_11 = arith.constant 0 : index
      %c0_12 = arith.constant 0 : index
      %13 = vector.load %arg5[%c0_11, %c0_12] : memref<1x256xf32, #tpu.memory_space<vmem>>, vector<1x256xf32>
      %14 = vector.broadcast %13 : vector<1x256xf32> to vector<8x256xf32>
      %15 = arith.addf %12, %14 : vector<8x256xf32>
      %cst_13 = arith.constant 0.000000e+00 : f32
      %16 = vector.broadcast %cst_13 : f32 to vector<8x256xf32>
      %17 = arith.maximumf %15, %16 : vector<8x256xf32>
      %c0_14 = arith.constant 0 : index
      %c0_15 = arith.constant 0 : index
      %18 = vector.load %arg6[%c0_14, %c0_15] : memref<8x256xf32, #tpu.memory_space<vmem>>, vector<8x256xf32>
      tpu.vector_store %arg6[%c0_14, %c0_15], %17 {strides = array<i32>} : memref<8x256xf32, #tpu.memory_space<vmem>>, vector<8x256xf32>,
    } else {
    }
    return
  }
  func.func @transform_0(%arg0: i32, %arg1: i32, %arg2: i32) -> (i32, i32) {
    %c0_i32 = arith.constant 0 : i32
    return %arg0, %arg2 : i32, i32
  }
  func.func @transform_1(%arg0: i32, %arg1: i32, %arg2: i32) -> (i32, i32) {
    %c0_i32 = arith.constant 0 : i32
    return %arg2, %arg1 : i32, i32
  }
  func.func @transform_2(%arg0: i32, %arg1: i32, %arg2: i32) -> (i32, i32) {
    %c0_i32 = arith.constant 0 : i32
    %c0_i32_0 = arith.constant 0 : i32
    return %c0_i32, %arg1 : i32, i32
  }
  func.func @transform_3(%arg0: i32, %arg1: i32, %arg2: i32) -> (i32, i32) {
    %c0_i32 = arith.constant 0 : i32
    return %arg0, %arg1 : i32, i32
  }
}

module attributes {stable_mosaic.version = 11 : i64} {
  func.func @_gemm_kernel(%arg0: i32, %arg1: i32, %arg2: i32, %arg3: memref<8x384xbf16, #tpu.memory_space<vmem>>, %arg4: memref<384x256xbf16, #tpu.memory_space<vmem>>, %arg5: memref<1x256xf32, #tpu.memory_space<vmem>>, %arg6: memref<8x256xf32, #tpu.memory_space<vmem>>, %arg7: memref<8x256xf32, #tpu.memory_space<vmem>>) attributes {dimension_semantics = [#tpu.dimension_semantics<parallel>, #tpu.dimension_semantics<parallel>, #tpu.dimension_semantics<arbitrary>], iteration_bounds = array<i64: 1, 2, 6>, scalar_prefetch = 0 : i64, scratch_operands = 1 : i64, tpu.core_type = #tpu.core_type<tc>, window_params = [{transform_indices = @transform_0, window_bounds = array<i64: 8, 384>}, {transform_indices = @transform_1, window_bounds = array<i64: 384, 256>}, {transform_indices = @transform_2, window_bounds = array<i64: 1, 256>}, {transform_indices = @transform_3, window_bounds = array<i64: 8, 256>}]} {
    %c0_i32 = arith.constant 0 : i32
    %0 = arith.cmpi eq, %arg2, %c0_i32 : i32
    %1 = arith.extui %0 : i1 to i32
    %c0_i32_0 = arith.constant 0 : i32
    %2 = arith.cmpi ne, %1, %c0_i32_0 : i32
    scf.if %2 {
      %cst_9 = arith.constant 0.000000e+00 : f32
      %12 = vector.broadcast %cst_9 : f32 to vector<8x256xf32>
      %c0_10 = arith.constant 0 : index
      %c0_11 = arith.constant 0 : index
      %13 = vector.load %arg7[%c0_10, %c0_11] : memref<8x256xf32, #tpu.memory_space<vmem>>, vector<8x256xf32>
      tpu.vector_store %arg7[%c0_10, %c0_11], %12 {strides = array<i32>} : memref<8x256xf32, #tpu.memory_space<vmem>>, vector<8x256xf32>,
    } else {
    }
    %c0 = arith.constant 0 : index
    %c0_1 = arith.constant 0 : index
    %3 = vector.load %arg7[%c0, %c0_1] : memref<8x256xf32, #tpu.memory_space<vmem>>, vector<8x256xf32>
    %c0_2 = arith.constant 0 : index
    %c0_3 = arith.constant 0 : index
    %4 = vector.load %arg3[%c0_2, %c0_3] : memref<8x384xbf16, #tpu.memory_space<vmem>>, vector<8x384xbf16>
    %c0_4 = arith.constant 0 : index
    %c0_5 = arith.constant 0 : index
    %5 = vector.load %arg4[%c0_4, %c0_5] : memref<384x256xbf16, #tpu.memory_space<vmem>>, vector<384x256xbf16>
    %cst = arith.constant dense<0.000000e+00> : vector<8x256xf32>
    %6 = tpu.matmul %4, %5, %cst {dimension_numbers = #tpu.dot_dimension_numbers<[1], [0], [0], [1], [0, 0, 1, 1], [], []>} : vector<8x384xbf16>, vector<384x256xbf16>, vector<8x256xf32> -> vector<8x256xf32>
    %7 = arith.addf %3, %6 : vector<8x256xf32>
    %c0_6 = arith.constant 0 : index
    %c0_7 = arith.constant 0 : index
    %8 = vector.load %arg7[%c0_6, %c0_7] : memref<8x256xf32, #tpu.memory_space<vmem>>, vector<8x256xf32>
    tpu.vector_store %arg7[%c0_6, %c0_7], %7 {strides = array<i32>} : memref<8x256xf32, #tpu.memory_space<vmem>>, vector<8x256xf32>,
    %c5_i32 = arith.constant 5 : i32
    %9 = arith.cmpi eq, %arg2, %c5_i32 : i32
    %10 = arith.extui %9 : i1 to i32
    %c0_i32_8 = arith.constant 0 : i32
    %11 = arith.cmpi ne, %10, %c0_i32_8 : i32
    scf.if %11 {
      %c0_9 = arith.constant 0 : index
      %c0_10 = arith.constant 0 : index
      %12 = vector.load %arg7[%c0_9, %c0_10] : memref<8x256xf32, #tpu.memory_space<vmem>>, vector<8x256xf32>
      %c0_11 = arith.constant 0 : index
      %c0_12 = arith.constant 0 : index
      %13 = vector.load %arg5[%c0_11, %c0_12] : memref<1x256xf32, #tpu.memory_space<vmem>>, vector<1x256xf32>
      %14 = vector.broadcast %13 : vector<1x256xf32> to vector<8x256xf32>
      %15 = arith.addf %12, %14 : vector<8x256xf32>
      %cst_13 = arith.constant 0.000000e+00 : f32
      %16 = vector.broadcast %cst_13 : f32 to vector<8x256xf32>
      %17 = arith.maximumf %15, %16 : vector<8x256xf32>
      %c0_14 = arith.constant 0 : index
      %c0_15 = arith.constant 0 : index
      %18 = vector.load %arg6[%c0_14, %c0_15] : memref<8x256xf32, #tpu.memory_space<vmem>>, vector<8x256xf32>
      tpu.vector_store %arg6[%c0_14, %c0_15], %17 {strides = array<i32>} : memref<8x256xf32, #tpu.memory_space<vmem>>, vector<8x256xf32>,
    } else {
    }
    return
  }
  func.func @transform_0(%arg0: i32, %arg1: i32, %arg2: i32) -> (i32, i32) {
    %c0_i32 = arith.constant 0 : i32
    return %arg0, %arg2 : i32, i32
  }
  func.func @transform_1(%arg0: i32, %arg1: i32, %arg2: i32) -> (i32, i32) {
    %c0_i32 = arith.constant 0 : i32
    return %arg2, %arg1 : i32, i32
  }
  func.func @transform_2(%arg0: i32, %arg1: i32, %arg2: i32) -> (i32, i32) {
    %c0_i32 = arith.constant 0 : i32
    %c0_i32_0 = arith.constant 0 : i32
    return %c0_i32, %arg1 : i32, i32
  }
  func.func @transform_3(%arg0: i32, %arg1: i32, %arg2: i32) -> (i32, i32) {
    %c0_i32 = arith.constant 0 : i32
    return %arg0, %arg1 : i32, i32
  }
}

module attributes {stable_mosaic.version = 11 : i64} {
  func.func @_gemm_kernel(%arg0: i32, %arg1: i32, %arg2: i32, %arg3: memref<8x256xbf16, #tpu.memory_space<vmem>>, %arg4: memref<256x256xbf16, #tpu.memory_space<vmem>>, %arg5: memref<1x256xf32, #tpu.memory_space<vmem>>, %arg6: memref<8x256xf32, #tpu.memory_space<vmem>>, %arg7: memref<8x256xf32, #tpu.memory_space<vmem>>) attributes {dimension_semantics = [#tpu.dimension_semantics<parallel>, #tpu.dimension_semantics<parallel>, #tpu.dimension_semantics<arbitrary>], iteration_bounds = array<i64: 1, 2, 1>, scalar_prefetch = 0 : i64, scratch_operands = 1 : i64, tpu.core_type = #tpu.core_type<tc>, window_params = [{transform_indices = @transform_0, window_bounds = array<i64: 8, 256>}, {transform_indices = @transform_1, window_bounds = array<i64: 256, 256>}, {transform_indices = @transform_2, window_bounds = array<i64: 1, 256>}, {transform_indices = @transform_3, window_bounds = array<i64: 8, 256>}]} {
    %c0_i32 = arith.constant 0 : i32
    %0 = arith.cmpi eq, %arg2, %c0_i32 : i32
    %1 = arith.extui %0 : i1 to i32
    %c0_i32_0 = arith.constant 0 : i32
    %2 = arith.cmpi ne, %1, %c0_i32_0 : i32
    scf.if %2 {
      %cst_10 = arith.constant 0.000000e+00 : f32
      %12 = vector.broadcast %cst_10 : f32 to vector<8x256xf32>
      %c0_11 = arith.constant 0 : index
      %c0_12 = arith.constant 0 : index
      %13 = vector.load %arg7[%c0_11, %c0_12] : memref<8x256xf32, #tpu.memory_space<vmem>>, vector<8x256xf32>
      tpu.vector_store %arg7[%c0_11, %c0_12], %12 {strides = array<i32>} : memref<8x256xf32, #tpu.memory_space<vmem>>, vector<8x256xf32>,
    } else {
    }
    %c0 = arith.constant 0 : index
    %c0_1 = arith.constant 0 : index
    %3 = vector.load %arg7[%c0, %c0_1] : memref<8x256xf32, #tpu.memory_space<vmem>>, vector<8x256xf32>
    %c0_2 = arith.constant 0 : index
    %c0_3 = arith.constant 0 : index
    %4 = vector.load %arg3[%c0_2, %c0_3] : memref<8x256xbf16, #tpu.memory_space<vmem>>, vector<8x256xbf16>
    %c0_4 = arith.constant 0 : index
    %c0_5 = arith.constant 0 : index
    %5 = vector.load %arg4[%c0_4, %c0_5] : memref<256x256xbf16, #tpu.memory_space<vmem>>, vector<256x256xbf16>
    %cst = arith.constant dense<0.000000e+00> : vector<8x256xf32>
    %6 = tpu.matmul %4, %5, %cst {dimension_numbers = #tpu.dot_dimension_numbers<[1], [0], [0], [1], [0, 0, 1, 1], [], []>} : vector<8x256xbf16>, vector<256x256xbf16>, vector<8x256xf32> -> vector<8x256xf32>
    %7 = arith.addf %3, %6 : vector<8x256xf32>
    %c0_6 = arith.constant 0 : index
    %c0_7 = arith.constant 0 : index
    %8 = vector.load %arg7[%c0_6, %c0_7] : memref<8x256xf32, #tpu.memory_space<vmem>>, vector<8x256xf32>
    tpu.vector_store %arg7[%c0_6, %c0_7], %7 {strides = array<i32>} : memref<8x256xf32, #tpu.memory_space<vmem>>, vector<8x256xf32>,
    %c0_i32_8 = arith.constant 0 : i32
    %9 = arith.cmpi eq, %arg2, %c0_i32_8 : i32
    %10 = arith.extui %9 : i1 to i32
    %c0_i32_9 = arith.constant 0 : i32
    %11 = arith.cmpi ne, %10, %c0_i32_9 : i32
    scf.if %11 {
      %c0_10 = arith.constant 0 : index
      %c0_11 = arith.constant 0 : index
      %12 = vector.load %arg7[%c0_10, %c0_11] : memref<8x256xf32, #tpu.memory_space<vmem>>, vector<8x256xf32>
      %c0_12 = arith.constant 0 : index
      %c0_13 = arith.constant 0 : index
      %13 = vector.load %arg5[%c0_12, %c0_13] : memref<1x256xf32, #tpu.memory_space<vmem>>, vector<1x256xf32>
      %14 = vector.broadcast %13 : vector<1x256xf32> to vector<8x256xf32>
      %15 = arith.addf %12, %14 : vector<8x256xf32>
      %c0_14 = arith.constant 0 : index
      %c0_15 = arith.constant 0 : index
      %16 = vector.load %arg6[%c0_14, %c0_15] : memref<8x256xf32, #tpu.memory_space<vmem>>, vector<8x256xf32>
      tpu.vector_store %arg6[%c0_14, %c0_15], %15 {strides = array<i32>} : memref<8x256xf32, #tpu.memory_space<vmem>>, vector<8x256xf32>,
    } else {
    }
    return
  }
  func.func @transform_0(%arg0: i32, %arg1: i32, %arg2: i32) -> (i32, i32) {
    %c0_i32 = arith.constant 0 : i32
    return %arg0, %arg2 : i32, i32
  }
  func.func @transform_1(%arg0: i32, %arg1: i32, %arg2: i32) -> (i32, i32) {
    %c0_i32 = arith.constant 0 : i32
    return %arg2, %arg1 : i32, i32
  }
  func.func @transform_2(%arg0: i32, %arg1: i32, %arg2: i32) -> (i32, i32) {
    %c0_i32 = arith.constant 0 : i32
    %c0_i32_0 = arith.constant 0 : i32
    return %c0_i32, %arg1 : i32, i32
  }
  func.func @transform_3(%arg0: i32, %arg1: i32, %arg2: i32) -> (i32, i32) {
    %c0_i32 = arith.constant 0 : i32
    return %arg0, %arg1 : i32, i32
  }
}

module attributes {stable_mosaic.version = 11 : i64} {
  func.func @_gemm_kernel(%arg0: i32, %arg1: i32, %arg2: i32, %arg3: memref<8x512xbf16, #tpu.memory_space<vmem>>, %arg4: memref<512x256xbf16, #tpu.memory_space<vmem>>, %arg5: memref<1x256xf32, #tpu.memory_space<vmem>>, %arg6: memref<8x256xf32, #tpu.memory_space<vmem>>, %arg7: memref<8x256xf32, #tpu.memory_space<vmem>>, %arg8: memref<8x256xf32, #tpu.memory_space<vmem>>) attributes {dimension_semantics = [#tpu.dimension_semantics<parallel>, #tpu.dimension_semantics<parallel>, #tpu.dimension_semantics<arbitrary>], iteration_bounds = array<i64: 1, 2, 9>, scalar_prefetch = 0 : i64, scratch_operands = 1 : i64, tpu.core_type = #tpu.core_type<tc>, window_params = [{transform_indices = @transform_0, window_bounds = array<i64: 8, 512>}, {transform_indices = @transform_1, window_bounds = array<i64: 512, 256>}, {transform_indices = @transform_2, window_bounds = array<i64: 1, 256>}, {transform_indices = @transform_3, window_bounds = array<i64: 8, 256>}, {transform_indices = @transform_4, window_bounds = array<i64: 8, 256>}]} {
    %c0_i32 = arith.constant 0 : i32
    %0 = arith.cmpi eq, %arg2, %c0_i32 : i32
    %1 = arith.extui %0 : i1 to i32
    %c0_i32_0 = arith.constant 0 : i32
    %2 = arith.cmpi ne, %1, %c0_i32_0 : i32
    scf.if %2 {
      %cst_9 = arith.constant 0.000000e+00 : f32
      %12 = vector.broadcast %cst_9 : f32 to vector<8x256xf32>
      %c0_10 = arith.constant 0 : index
      %c0_11 = arith.constant 0 : index
      %13 = vector.load %arg8[%c0_10, %c0_11] : memref<8x256xf32, #tpu.memory_space<vmem>>, vector<8x256xf32>
      tpu.vector_store %arg8[%c0_10, %c0_11], %12 {strides = array<i32>} : memref<8x256xf32, #tpu.memory_space<vmem>>, vector<8x256xf32>,
    } else {
    }
    %c0 = arith.constant 0 : index
    %c0_1 = arith.constant 0 : index
    %3 = vector.load %arg8[%c0, %c0_1] : memref<8x256xf32, #tpu.memory_space<vmem>>, vector<8x256xf32>
    %c0_2 = arith.constant 0 : index
    %c0_3 = arith.constant 0 : index
    %4 = vector.load %arg3[%c0_2, %c0_3] : memref<8x512xbf16, #tpu.memory_space<vmem>>, vector<8x512xbf16>
    %c0_4 = arith.constant 0 : index
    %c0_5 = arith.constant 0 : index
    %5 = vector.load %arg4[%c0_4, %c0_5] : memref<512x256xbf16, #tpu.memory_space<vmem>>, vector<512x256xbf16>
    %cst = arith.constant dense<0.000000e+00> : vector<8x256xf32>
    %6 = tpu.matmul %4, %5, %cst {dimension_numbers = #tpu.dot_dimension_numbers<[1], [0], [0], [1], [0, 0, 1, 1], [], []>} : vector<8x512xbf16>, vector<512x256xbf16>, vector<8x256xf32> -> vector<8x256xf32>
    %7 = arith.addf %3, %6 : vector<8x256xf32>
    %c0_6 = arith.constant 0 : index
    %c0_7 = arith.constant 0 : index
    %8 = vector.load %arg8[%c0_6, %c0_7] : memref<8x256xf32, #tpu.memory_space<vmem>>, vector<8x256xf32>
    tpu.vector_store %arg8[%c0_6, %c0_7], %7 {strides = array<i32>} : memref<8x256xf32, #tpu.memory_space<vmem>>, vector<8x256xf32>,
    %c8_i32 = arith.constant 8 : i32
    %9 = arith.cmpi eq, %arg2, %c8_i32 : i32
    %10 = arith.extui %9 : i1 to i32
    %c0_i32_8 = arith.constant 0 : i32
    %11 = arith.cmpi ne, %10, %c0_i32_8 : i32
    scf.if %11 {
      %c0_9 = arith.constant 0 : index
      %c0_10 = arith.constant 0 : index
      %12 = vector.load %arg8[%c0_9, %c0_10] : memref<8x256xf32, #tpu.memory_space<vmem>>, vector<8x256xf32>
      %c0_11 = arith.constant 0 : index
      %c0_12 = arith.constant 0 : index
      %13 = vector.load %arg5[%c0_11, %c0_12] : memref<1x256xf32, #tpu.memory_space<vmem>>, vector<1x256xf32>
      %14 = vector.broadcast %13 : vector<1x256xf32> to vector<8x256xf32>
      %15 = arith.addf %12, %14 : vector<8x256xf32>
      %c0_13 = arith.constant 0 : index
      %c0_14 = arith.constant 0 : index
      %16 = vector.load %arg6[%c0_13, %c0_14] : memref<8x256xf32, #tpu.memory_space<vmem>>, vector<8x256xf32>
      %17 = arith.addf %15, %16 : vector<8x256xf32>
      %cst_15 = arith.constant 0.000000e+00 : f32
      %18 = vector.broadcast %cst_15 : f32 to vector<8x256xf32>
      %19 = arith.maximumf %17, %18 : vector<8x256xf32>
      %c0_16 = arith.constant 0 : index
      %c0_17 = arith.constant 0 : index
      %20 = vector.load %arg7[%c0_16, %c0_17] : memref<8x256xf32, #tpu.memory_space<vmem>>, vector<8x256xf32>
      tpu.vector_store %arg7[%c0_16, %c0_17], %19 {strides = array<i32>} : memref<8x256xf32, #tpu.memory_space<vmem>>, vector<8x256xf32>,
    } else {
    }
    return
  }
  func.func @transform_0(%arg0: i32, %arg1: i32, %arg2: i32) -> (i32, i32) {
    %c0_i32 = arith.constant 0 : i32
    return %arg0, %arg2 : i32, i32
  }
  func.func @transform_1(%arg0: i32, %arg1: i32, %arg2: i32) -> (i32, i32) {
    %c0_i32 = arith.constant 0 : i32
    return %arg2, %arg1 : i32, i32
  }
  func.func @transform_2(%arg0: i32, %arg1: i32, %arg2: i32) -> (i32, i32) {
    %c0_i32 = arith.constant 0 : i32
    %c0_i32_0 = arith.constant 0 : i32
    return %c0_i32, %arg1 : i32, i32
  }
  func.func @transform_3(%arg0: i32, %arg1: i32, %arg2: i32) -> (i32, i32) {
    %c0_i32 = arith.constant 0 : i32
    return %arg0, %arg1 : i32, i32
  }
  func.func @transform_4(%arg0: i32, %arg1: i32, %arg2: i32) -> (i32, i32) {
    %c0_i32 = arith.constant 0 : i32
    return %arg0, %arg1 : i32, i32
  }
}

module attributes {stable_mosaic.version = 11 : i64} {
  func.func @_gemm_kernel(%arg0: i32, %arg1: i32, %arg2: i32, %arg3: memref<8x512xbf16, #tpu.memory_space<vmem>>, %arg4: memref<512x256xbf16, #tpu.memory_space<vmem>>, %arg5: memref<1x256xf32, #tpu.memory_space<vmem>>, %arg6: memref<8x256xf32, #tpu.memory_space<vmem>>, %arg7: memref<8x256xf32, #tpu.memory_space<vmem>>) attributes {dimension_semantics = [#tpu.dimension_semantics<parallel>, #tpu.dimension_semantics<parallel>, #tpu.dimension_semantics<arbitrary>], iteration_bounds = array<i64: 1, 2, 9>, scalar_prefetch = 0 : i64, scratch_operands = 1 : i64, tpu.core_type = #tpu.core_type<tc>, window_params = [{transform_indices = @transform_0, window_bounds = array<i64: 8, 512>}, {transform_indices = @transform_1, window_bounds = array<i64: 512, 256>}, {transform_indices = @transform_2, window_bounds = array<i64: 1, 256>}, {transform_indices = @transform_3, window_bounds = array<i64: 8, 256>}]} {
    %c0_i32 = arith.constant 0 : i32
    %0 = arith.cmpi eq, %arg2, %c0_i32 : i32
    %1 = arith.extui %0 : i1 to i32
    %c0_i32_0 = arith.constant 0 : i32
    %2 = arith.cmpi ne, %1, %c0_i32_0 : i32
    scf.if %2 {
      %cst_9 = arith.constant 0.000000e+00 : f32
      %12 = vector.broadcast %cst_9 : f32 to vector<8x256xf32>
      %c0_10 = arith.constant 0 : index
      %c0_11 = arith.constant 0 : index
      %13 = vector.load %arg7[%c0_10, %c0_11] : memref<8x256xf32, #tpu.memory_space<vmem>>, vector<8x256xf32>
      tpu.vector_store %arg7[%c0_10, %c0_11], %12 {strides = array<i32>} : memref<8x256xf32, #tpu.memory_space<vmem>>, vector<8x256xf32>,
    } else {
    }
    %c0 = arith.constant 0 : index
    %c0_1 = arith.constant 0 : index
    %3 = vector.load %arg7[%c0, %c0_1] : memref<8x256xf32, #tpu.memory_space<vmem>>, vector<8x256xf32>
    %c0_2 = arith.constant 0 : index
    %c0_3 = arith.constant 0 : index
    %4 = vector.load %arg3[%c0_2, %c0_3] : memref<8x512xbf16, #tpu.memory_space<vmem>>, vector<8x512xbf16>
    %c0_4 = arith.constant 0 : index
    %c0_5 = arith.constant 0 : index
    %5 = vector.load %arg4[%c0_4, %c0_5] : memref<512x256xbf16, #tpu.memory_space<vmem>>, vector<512x256xbf16>
    %cst = arith.constant dense<0.000000e+00> : vector<8x256xf32>
    %6 = tpu.matmul %4, %5, %cst {dimension_numbers = #tpu.dot_dimension_numbers<[1], [0], [0], [1], [0, 0, 1, 1], [], []>} : vector<8x512xbf16>, vector<512x256xbf16>, vector<8x256xf32> -> vector<8x256xf32>
    %7 = arith.addf %3, %6 : vector<8x256xf32>
    %c0_6 = arith.constant 0 : index
    %c0_7 = arith.constant 0 : index
    %8 = vector.load %arg7[%c0_6, %c0_7] : memref<8x256xf32, #tpu.memory_space<vmem>>, vector<8x256xf32>
    tpu.vector_store %arg7[%c0_6, %c0_7], %7 {strides = array<i32>} : memref<8x256xf32, #tpu.memory_space<vmem>>, vector<8x256xf32>,
    %c8_i32 = arith.constant 8 : i32
    %9 = arith.cmpi eq, %arg2, %c8_i32 : i32
    %10 = arith.extui %9 : i1 to i32
    %c0_i32_8 = arith.constant 0 : i32
    %11 = arith.cmpi ne, %10, %c0_i32_8 : i32
    scf.if %11 {
      %c0_9 = arith.constant 0 : index
      %c0_10 = arith.constant 0 : index
      %12 = vector.load %arg7[%c0_9, %c0_10] : memref<8x256xf32, #tpu.memory_space<vmem>>, vector<8x256xf32>
      %c0_11 = arith.constant 0 : index
      %c0_12 = arith.constant 0 : index
      %13 = vector.load %arg5[%c0_11, %c0_12] : memref<1x256xf32, #tpu.memory_space<vmem>>, vector<1x256xf32>
      %14 = vector.broadcast %13 : vector<1x256xf32> to vector<8x256xf32>
      %15 = arith.addf %12, %14 : vector<8x256xf32>
      %cst_13 = arith.constant 0.000000e+00 : f32
      %16 = vector.broadcast %cst_13 : f32 to vector<8x256xf32>
      %17 = arith.maximumf %15, %16 : vector<8x256xf32>
      %c0_14 = arith.constant 0 : index
      %c0_15 = arith.constant 0 : index
      %18 = vector.load %arg6[%c0_14, %c0_15] : memref<8x256xf32, #tpu.memory_space<vmem>>, vector<8x256xf32>
      tpu.vector_store %arg6[%c0_14, %c0_15], %17 {strides = array<i32>} : memref<8x256xf32, #tpu.memory_space<vmem>>, vector<8x256xf32>,
    } else {
    }
    return
  }
  func.func @transform_0(%arg0: i32, %arg1: i32, %arg2: i32) -> (i32, i32) {
    %c0_i32 = arith.constant 0 : i32
    return %arg0, %arg2 : i32, i32
  }
  func.func @transform_1(%arg0: i32, %arg1: i32, %arg2: i32) -> (i32, i32) {
    %c0_i32 = arith.constant 0 : i32
    return %arg2, %arg1 : i32, i32
  }
  func.func @transform_2(%arg0: i32, %arg1: i32, %arg2: i32) -> (i32, i32) {
    %c0_i32 = arith.constant 0 : i32
    %c0_i32_0 = arith.constant 0 : i32
    return %c0_i32, %arg1 : i32, i32
  }
  func.func @transform_3(%arg0: i32, %arg1: i32, %arg2: i32) -> (i32, i32) {
    %c0_i32 = arith.constant 0 : i32
    return %arg0, %arg1 : i32, i32
  }
}

module attributes {stable_mosaic.version = 11 : i64} {
  func.func @_global_avgpool_kernel(%arg0: memref<2x1x512xf32, #tpu.memory_space<vmem>>, %arg1: memref<2x512xf32, #tpu.memory_space<vmem>>) attributes {dimension_semantics = [], scalar_prefetch = 0 : i64, scratch_operands = 0 : i64, tpu.core_type = #tpu.core_type<tc>} {
    %c0 = arith.constant 0 : index
    %c0_0 = arith.constant 0 : index
    %c0_1 = arith.constant 0 : index
    %0 = vector.load %arg0[%c0, %c0_0, %c0_1] : memref<2x1x512xf32, #tpu.memory_space<vmem>>, vector<2x1x512xf32>
    %cst = arith.constant dense<0.000000e+00> : vector<2x512xf32>
    %1 = vector.multi_reduction <add>, %0, %cst [1] : vector<2x1x512xf32> to vector<2x512xf32>
    %cst_2 = arith.constant 1.000000e+00 : f32
    %2 = vector.broadcast %cst_2 : f32 to vector<2x512xf32>
    %3 = arith.divf %1, %2 : vector<2x512xf32>
    %c0_3 = arith.constant 0 : index
    %c0_4 = arith.constant 0 : index
    %4 = vector.load %arg1[%c0_3, %c0_4] : memref<2x512xf32, #tpu.memory_space<vmem>>, vector<2x512xf32>
    tpu.vector_store %arg1[%c0_3, %c0_4], %3 {strides = array<i32>} : memref<2x512xf32, #tpu.memory_space<vmem>>, vector<2x512xf32>,
    return
  }
}

module attributes {stable_mosaic.version = 11 : i64} {
  func.func @_gemm_kernel(%arg0: i32, %arg1: i32, %arg2: i32, %arg3: memref<8x512xbf16, #tpu.memory_space<vmem>>, %arg4: memref<512x128xbf16, #tpu.memory_space<vmem>>, %arg5: memref<1x128xf32, #tpu.memory_space<vmem>>, %arg6: memref<8x128xf32, #tpu.memory_space<vmem>>, %arg7: memref<8x128xf32, #tpu.memory_space<vmem>>) attributes {dimension_semantics = [#tpu.dimension_semantics<parallel>, #tpu.dimension_semantics<parallel>, #tpu.dimension_semantics<arbitrary>], iteration_bounds = array<i64: 1, 1, 1>, scalar_prefetch = 0 : i64, scratch_operands = 1 : i64, tpu.core_type = #tpu.core_type<tc>, window_params = [{transform_indices = @transform_0, window_bounds = array<i64: 8, 512>}, {transform_indices = @transform_1, window_bounds = array<i64: 512, 128>}, {transform_indices = @transform_2, window_bounds = array<i64: 1, 128>}, {transform_indices = @transform_3, window_bounds = array<i64: 8, 128>}]} {
    %c0_i32 = arith.constant 0 : i32
    %0 = arith.cmpi eq, %arg2, %c0_i32 : i32
    %1 = arith.extui %0 : i1 to i32
    %c0_i32_0 = arith.constant 0 : i32
    %2 = arith.cmpi ne, %1, %c0_i32_0 : i32
    scf.if %2 {
      %cst_10 = arith.constant 0.000000e+00 : f32
      %12 = vector.broadcast %cst_10 : f32 to vector<8x128xf32>
      %c0_11 = arith.constant 0 : index
      %c0_12 = arith.constant 0 : index
      %13 = vector.load %arg7[%c0_11, %c0_12] : memref<8x128xf32, #tpu.memory_space<vmem>>, vector<8x128xf32>
      tpu.vector_store %arg7[%c0_11, %c0_12], %12 {strides = array<i32>} : memref<8x128xf32, #tpu.memory_space<vmem>>, vector<8x128xf32>,
    } else {
    }
    %c0 = arith.constant 0 : index
    %c0_1 = arith.constant 0 : index
    %3 = vector.load %arg7[%c0, %c0_1] : memref<8x128xf32, #tpu.memory_space<vmem>>, vector<8x128xf32>
    %c0_2 = arith.constant 0 : index
    %c0_3 = arith.constant 0 : index
    %4 = vector.load %arg3[%c0_2, %c0_3] : memref<8x512xbf16, #tpu.memory_space<vmem>>, vector<8x512xbf16>
    %c0_4 = arith.constant 0 : index
    %c0_5 = arith.constant 0 : index
    %5 = vector.load %arg4[%c0_4, %c0_5] : memref<512x128xbf16, #tpu.memory_space<vmem>>, vector<512x128xbf16>
    %cst = arith.constant dense<0.000000e+00> : vector<8x128xf32>
    %6 = tpu.matmul %4, %5, %cst {dimension_numbers = #tpu.dot_dimension_numbers<[1], [0], [0], [1], [0, 0, 1, 1], [], []>} : vector<8x512xbf16>, vector<512x128xbf16>, vector<8x128xf32> -> vector<8x128xf32>
    %7 = arith.addf %3, %6 : vector<8x128xf32>
    %c0_6 = arith.constant 0 : index
    %c0_7 = arith.constant 0 : index
    %8 = vector.load %arg7[%c0_6, %c0_7] : memref<8x128xf32, #tpu.memory_space<vmem>>, vector<8x128xf32>
    tpu.vector_store %arg7[%c0_6, %c0_7], %7 {strides = array<i32>} : memref<8x128xf32, #tpu.memory_space<vmem>>, vector<8x128xf32>,
    %c0_i32_8 = arith.constant 0 : i32
    %9 = arith.cmpi eq, %arg2, %c0_i32_8 : i32
    %10 = arith.extui %9 : i1 to i32
    %c0_i32_9 = arith.constant 0 : i32
    %11 = arith.cmpi ne, %10, %c0_i32_9 : i32
    scf.if %11 {
      %c0_10 = arith.constant 0 : index
      %c0_11 = arith.constant 0 : index
      %12 = vector.load %arg7[%c0_10, %c0_11] : memref<8x128xf32, #tpu.memory_space<vmem>>, vector<8x128xf32>
      %c0_12 = arith.constant 0 : index
      %c0_13 = arith.constant 0 : index
      %13 = vector.load %arg5[%c0_12, %c0_13] : memref<1x128xf32, #tpu.memory_space<vmem>>, vector<1x128xf32>
      %14 = vector.broadcast %13 : vector<1x128xf32> to vector<8x128xf32>
      %15 = arith.addf %12, %14 : vector<8x128xf32>
      %c0_14 = arith.constant 0 : index
      %c0_15 = arith.constant 0 : index
      %16 = vector.load %arg6[%c0_14, %c0_15] : memref<8x128xf32, #tpu.memory_space<vmem>>, vector<8x128xf32>
      tpu.vector_store %arg6[%c0_14, %c0_15], %15 {strides = array<i32>} : memref<8x128xf32, #tpu.memory_space<vmem>>, vector<8x128xf32>,
    } else {
    }
    return
  }
  func.func @transform_0(%arg0: i32, %arg1: i32, %arg2: i32) -> (i32, i32) {
    %c0_i32 = arith.constant 0 : i32
    return %arg0, %arg2 : i32, i32
  }
  func.func @transform_1(%arg0: i32, %arg1: i32, %arg2: i32) -> (i32, i32) {
    %c0_i32 = arith.constant 0 : i32
    return %arg2, %arg1 : i32, i32
  }
  func.func @transform_2(%arg0: i32, %arg1: i32, %arg2: i32) -> (i32, i32) {
    %c0_i32 = arith.constant 0 : i32
    %c0_i32_0 = arith.constant 0 : i32
    return %c0_i32, %arg1 : i32, i32
  }
  func.func @transform_3(%arg0: i32, %arg1: i32, %arg2: i32) -> (i32, i32) {
    %c0_i32 = arith.constant 0 : i32
    return %arg0, %arg1 : i32, i32
  }
}

module attributes {stable_mosaic.version = 11 : i64} {
  func.func @_l2_normalize_kernel(%arg0: memref<2x16xf32, #tpu.memory_space<vmem>>, %arg1: memref<2x16xf32, #tpu.memory_space<vmem>>) attributes {dimension_semantics = [], scalar_prefetch = 0 : i64, scratch_operands = 0 : i64, tpu.core_type = #tpu.core_type<tc>} {
    %c0 = arith.constant 0 : index
    %c0_0 = arith.constant 0 : index
    %0 = vector.load %arg0[%c0, %c0_0] : memref<2x16xf32, #tpu.memory_space<vmem>>, vector<2x16xf32>
    %1 = arith.mulf %0, %0 : vector<2x16xf32>
    %cst = arith.constant dense<0.000000e+00> : vector<2xf32>
    %2 = vector.multi_reduction <add>, %1, %cst [1] : vector<2x16xf32> to vector<2xf32>
    %3 = vector.shape_cast %2 : vector<2xf32> to vector<2x1xf32>
    %4 = math.sqrt %3 : vector<2x1xf32>
    %cst_1 = arith.constant 9.99999996E-13 : f32
    %5 = vector.broadcast %cst_1 : f32 to vector<2x1xf32>
    %6 = arith.maximumf %4, %5 : vector<2x1xf32>
    %7 = vector.broadcast %6 : vector<2x1xf32> to vector<2x16xf32>
    %8 = arith.divf %0, %7 : vector<2x16xf32>
    %c0_2 = arith.constant 0 : index
    %c0_3 = arith.constant 0 : index
    %9 = vector.load %arg1[%c0_2, %c0_3] : memref<2x16xf32, #tpu.memory_space<vmem>>, vector<2x16xf32>
    tpu.vector_store %arg1[%c0_2, %c0_3], %8 {strides = array<i32>} : memref<2x16xf32, #tpu.memory_space<vmem>>, vector<2x16xf32>,
    return
  }
}

</mosaic_0001>

<bundles_post_ra>
// kernel: embeddingnet_forward.24
= control target key start
LH: loop header
LB: loop body
LE: loop exit
PB: predicated region body
PF: predicated region fallthrough
CT: control target
= control target key end

     0   :  { %s993_s12 = smov 0   ;;  %s995_s13 = smov 0   ;;  %s1128_s0 = inlined_call_operand.vmem [shape: bf16[512,147], index: 0, kind: input, shape index: {}]   ;;  %s1129_s1 = inlined_call_operand.vmem [shape: bf16[147,128], index: 1, kind: input, shape index: {}]   ;;  %s1130_s2 = inlined_call_operand.vmem [shape: f32[1,128], index: 2, kind: input, shape index: {}]   ;;  %s1131_s3 = inlined_call_operand.vmem [shape: f32[512,128], index: 3, kind: output, shape index: {}]  }
   0x1   :  { %s997_s14 = smov 0  }
   0x2 LB: > { %s32_s15 = sadd.s32 1, %s965_s13  ;;  %p823_p0 = scmp.ge.s32.totalorder %s969_s14, 1  ;;  %s969_s14 = sphi %s997_s14, %s13_s14   ;;  %s965_s13 = sphi %s995_s13, %s1133_s13   ;;  %s961_s12 = sphi %s993_s12, %s1132_s12  }
   0x3   : > { %p34_p1 = scmp.ge.s32.totalorder %s32_s15, 4  ;;  %p191_p2 = scmp.lt.s32.totalorder %s969_s14, 5 }
   0x5   : > { %s1135_s15 = smov (%p34_p1, %s32_s15), 0  ;;  %p192_p3 = pnand %p823_p0, %p191_p2 }
   0x6   : > { %v913_v0 = vld [vmem:[%s1129_s1] sm:$0xff] (!%p192_p3)   ;;  %v971_v1 = vmov (!%p192_p3), 0   ;;  %v914_v2 = vld [vmem:[%s1129_s1 + $0x8] sm:$0xff] (!%p192_p3)   ;;  %v915_v3 = vld [vmem:[%s1129_s1 + $0x10] sm:$0xff] (!%p192_p3)   ;;  %s824_s22 = sshll.u32 (!%p192_p3), %s961_s12, 4  ;;  %vm468_vm0 = vcmask (!%p192_p3), 154624  }
   0x7   : > { %195 = sbr.rel (%p192_p3) target bundleno = 290 (0x122), region = 32  ;;  %500 = vmatprep.subr.bf16.mxu0 (!%p192_p3), %v971_v1  ;;  %867 = vmatprep.subr.bf16.mxu1 (!%p192_p3), %v971_v1  ;;  %p236_p4 = scmp.lt.s32.totalorder (!%p192_p3), %s824_s22, 63  ;;  %v916_v4 = vld [vmem:[%s1129_s1 + $0x18] sm:$0xff] (!%p192_p3)   ;;  %v917_v5 = vld [vmem:[%s1129_s1 + $0x20] sm:$0xff] (!%p192_p3)   ;;  %v918_v8 = vld [vmem:[%s1129_s1 + $0x28] sm:$0xff] (!%p192_p3)   ;;  %vm493_vm1 = vcmask (!%p192_p3), 1040384  }
   0x8   : > { %501 = vmatpush1.bf16.msra.mxu0 (!%p192_p3), %v913_v0  ;;  %877 = vmatpush1.bf16.msra.mxu1 (!%p192_p3), %v913_v0  ;;  %v919_v9 = vld [vmem:[%s1129_s1 + $0x30] sm:$0xff] (!%p192_p3)   ;;  %v920_v10 = vld [vmem:[%s1129_s1 + $0x38] sm:$0xff] (!%p192_p3)   ;;  %vm494_vm2 = vcmask (!%p192_p3), 1041408   ;;  %v972_v11 = vmov (!%p192_p3), 65535   ;;  %v921_v13 = vld [vmem:[%s1129_s1 + $0x40] sm:$0xff] (!%p192_p3)  }
   0x9   : > { %502 = vmatprep.subr.bf16.mxu0 (!%p192_p3), %v971_v1  ;;  %868 = vmatprep.subr.bf16.mxu1 (!%p192_p3), %v971_v1  ;;  %v495_v12 = vsel (!%p192_p3), %vm493_vm1, 4294967295, %v972_v11  ;;  %v922_v14 = vld [vmem:[%s1129_s1 + $0x48] ss:$0 sps:$4 sm:$0x33] (!%p192_p3)   ;;  %v1078_v31 = vld [vmem:[%s1130_s2] ss:$0 sm:$0xff] (!%p192_p3) }
   0xa   : > { %v496_v15 = vsel (!%p192_p3), %vm494_vm2, %v495_v12, 0 }
   0xb   : > { %v498_v16 = vand.u32 (!%p192_p3), %v922_v14, %v496_v15 }
   0xc   : > { %503 = vmatpush1.bf16.msra.mxu0 (!%p192_p3), %v914_v2  ;;  %878 = vmatpush1.bf16.msra.mxu1 (!%p192_p3), %v914_v2 }
   0xd   : > { %504 = vmatprep.subr.bf16.mxu0 (!%p192_p3), %v971_v1  ;;  %869 = vmatprep.subr.bf16.mxu1 (!%p192_p3), %v971_v1 }
   0xe   : > { %s1137_s22 = smov (!%p236_p4, %s824_s22), 63 }
   0xf   : > { %s866_s25 = sshll.u32 %s1137_s22, 3 }
  0x10   : > { %505 = vmatpush1.bf16.msra.mxu0 %v915_v3  ;;  %879 = vmatpush1.bf16.msra.mxu1 %v915_v3  ;;  %s1031_s28 = scalar_lea.vmem %s1128_s0, %s866_s25  ;;  %s1087_s21 = scalar_lea.vmem %s1131_s3, %s866_s25 }
  0x11   : > { %506 = vmatprep.subr.bf16.mxu0 %v971_v1  ;;  %870 = vmatprep.subr.bf16.mxu1 %v971_v1  ;;  %v925_v6 = vld [vmem:[%s1031_s28 + $0x4] ss:$8 sps:$4 sm:$0xff]   ;;  %v923_v17 = vld [vmem:[%s1031_s28] ss:$8 sps:$4 sm:$0xff]   ;;  %v929_v19 = vld [vmem:[%s1031_s28 + $0x14] ss:$8 sps:$4 sm:$0xff]  }
  0x12   : > { %v928_v7 = vld [vmem:[%s1031_s28 + $0x44] ss:$8 sps:$4 sm:$0xff]   ;;  %855 = vmatprep.mubr.msk.bf16.mxu0 %vm468_vm0, %v925_v6  ;;  %v926_v18 = vld [vmem:[%s1031_s28 + $0x40] ss:$8 sps:$4 sm:$0xff]   ;;  %v931_v20 = vld [vmem:[%s1031_s28 + $0x54] ss:$8 sps:$4 sm:$0xff]  }
  0x13   : > { %859 = vmatprep.mubr.msk.bf16.mxu1 %vm468_vm0, %v928_v7  ;;  %v933_v21 = vld [vmem:[%s1031_s28 + $0x10] ss:$8 sps:$4 sm:$0xff]   ;;  %v935_v23 = vld [vmem:[%s1031_s28 + $0x24] ss:$8 sps:$4 sm:$0xff]   ;;  %v939_v25 = vld [vmem:[%s1031_s28 + $0x20] ss:$8 sps:$4 sm:$0xff]  }
  0x14   : > { %507 = vmatpush1.bf16.msra.mxu0 %v916_v4  ;;  %880 = vmatpush1.bf16.msra.mxu1 %v916_v4  ;;  %v934_v22 = vld [vmem:[%s1031_s28 + $0x50] ss:$8 sps:$4 sm:$0xff]   ;;  %v937_v24 = vld [vmem:[%s1031_s28 + $0x64] ss:$8 sps:$4 sm:$0xff]   ;;  %v940_v26 = vld [vmem:[%s1031_s28 + $0x60] ss:$8 sps:$4 sm:$0xff]  }
  0x15   : > { %508 = vmatprep.subr.bf16.mxu0 %v971_v1  ;;  %871 = vmatprep.subr.bf16.mxu1 %v971_v1  ;;  %v941_v27 = vld [vmem:[%s1031_s28 + $0x34] ss:$8 sps:$4 sm:$0xff]   ;;  %v945_v29 = vld [vmem:[%s1031_s28 + $0x30] ss:$8 sps:$4 sm:$0xff]  }
  0x16   : > { %v943_v28 = vld [vmem:[%s1031_s28 + $0x74] ss:$8 sps:$4 sm:$0xff]   ;;  %v946_v30 = vld [vmem:[%s1031_s28 + $0x70] ss:$8 sps:$4 sm:$0xff]  }
  0x18   : > { %509 = vmatpush1.bf16.msra.mxu0 %v917_v5  ;;  %881 = vmatpush1.bf16.msra.mxu1 %v917_v5 }
  0x19   : > { %510 = vmatprep.subr.bf16.mxu0 %v971_v1  ;;  %872 = vmatprep.subr.bf16.mxu1 %v971_v1 }
  0x1c   : > { %511 = vmatpush1.bf16.msra.mxu0 %v918_v8  ;;  %882 = vmatpush1.bf16.msra.mxu1 %v918_v8 }
  0x1d   : > { %512 = vmatprep.subr.bf16.mxu0 %v971_v1  ;;  %873 = vmatprep.subr.bf16.mxu1 %v971_v1 }
  0x20   : > { %513 = vmatpush1.bf16.msra.mxu0 %v919_v9  ;;  %883 = vmatpush1.bf16.msra.mxu1 %v919_v9 }
  0x21   : > { %514 = vmatprep.subr.bf16.mxu0 %v971_v1  ;;  %874 = vmatprep.subr.bf16.mxu1 %v971_v1 }
  0x24   : > { %515 = vmatpush1.bf16.msra.mxu0 %v920_v10  ;;  %884 = vmatpush1.bf16.msra.mxu1 %v920_v10 }
  0x25   : > { %516 = vmatprep.subr.bf16.mxu0 %v971_v1  ;;  %875 = vmatprep.subr.bf16.mxu1 %v971_v1 }
  0x28   : > { %517 = vmatpush1.bf16.msra.mxu0 %v921_v13  ;;  %885 = vmatpush1.bf16.msra.mxu1 %v921_v13 }
  0x29   : > { %518 = vmatprep.subr.bf16.mxu0 %v971_v1  ;;  %876 = vmatprep.subr.bf16.mxu1 %v971_v1 }
  0x2c   : > { %519 = vmatpush1.bf16.msra.mxu0 %v498_v16  ;;  %886 = vmatpush1.bf16.msra.mxu1 %v498_v16 }
  0x2f   : > { %533 = vmatmul.mubr.bf16.vlgmr.msra.gmra.mrb[0].mxu0 %v923_v17  ;;  %565 = vmatmul.mubr.bf16.vlgmr.msra.gmra.mrb[0].mxu1 %v926_v18 }
  0x30   : > { %856 = vmatprep.mubr.msk.bf16.mxu0 %vm468_vm0, %v929_v19  ;;  %860 = vmatprep.mubr.msk.bf16.mxu1 %vm468_vm0, %v931_v20 }
  0x37   : > { %541 = vmatmul.mubr.bf16.gmra.mrb[4].mxu0 %v933_v21  ;;  %573 = vmatmul.mubr.bf16.gmra.mrb[4].mxu1 %v934_v22 }
  0x38   : > { %857 = vmatprep.mubr.msk.bf16.mxu0 %vm468_vm0, %v935_v23  ;;  %861 = vmatprep.mubr.msk.bf16.mxu1 %vm468_vm0, %v937_v24 }
  0x3f   : > { %549 = vmatmul.mubr.bf16.gmra.mrb[8].mxu0 %v939_v25  ;;  %581 = vmatmul.mubr.bf16.gmra.mrb[8].mxu1 %v940_v26 }
  0x40   : > { %858 = vmatprep.mubr.msk.bf16.mxu0 %vm468_vm0, %v941_v27  ;;  %862 = vmatprep.mubr.msk.bf16.mxu1 %vm468_vm0, %v943_v28 }
  0x47   : > { %557 = vmatmul.mubr.bf16.gmra.mrb[12].mxu0 %v945_v29  ;;  %589 = vmatmul.mubr.bf16.gmra.mrb[12].mxu1 %v946_v30 }
 0x102   : > { %v534_v32 = vpop.f32.mrb[0].mxu0  ;;  %v566_v33 = vpop.f32.mrb[0].mxu1 }
 0x103   : > { %v655_v34 = vadd.f32 %v1078_v31, %v534_v32  ;;  %v663_v35 = vadd.f32 %v1078_v31, %v566_v33  ;;  %v536_v36 = vpop.f32.mrb[1].mxu0  ;;  %v568_v37 = vpop.f32.mrb[1].mxu1 }
 0x104   : > { %v537_v38 = vpop.f32.mrb[2].mxu0  ;;  %v569_v39 = vpop.f32.mrb[2].mxu1 }
 0x105   : > { %v671_v40 = vmax.f32 %v655_v34, 0.0  ;;  %v679_v41 = vmax.f32 %v663_v35, 0.0  ;;  %v656_v42 = vadd.f32 %v1078_v31, %v537_v38  ;;  %v664_v43 = vadd.f32 %v1078_v31, %v569_v39  ;;  %v539_v44 = vpop.f32.mrb[3].mxu0  ;;  %v571_v45 = vpop.f32.mrb[3].mxu1 }
 0x107   : > { %687 = vst [vmem:[%s1087_s21] sm:$0xff] %v671_v40  ;;  %695 = vst [vmem:[%s1087_s21 + $0x40] sm:$0xff] %v679_v41  ;;  %v672_v46 = vmax.f32 %v656_v42, 0.0  ;;  %v680_v47 = vmax.f32 %v664_v43, 0.0 }
 0x109   : > { %688 = vst [vmem:[%s1087_s21 + $0x8] sm:$0xff] %v672_v46  ;;  %696 = vst [vmem:[%s1087_s21 + $0x48] sm:$0xff] %v680_v47 }
 0x10a   : > { %v542_v48 = vpop.f32.mrb[4].mxu0  ;;  %v574_v49 = vpop.f32.mrb[4].mxu1 }
 0x10b   : > { %v657_v50 = vadd.f32 %v1078_v31, %v542_v48  ;;  %v665_v51 = vadd.f32 %v1078_v31, %v574_v49  ;;  %v544_v52 = vpop.f32.mrb[5].mxu0  ;;  %v576_v53 = vpop.f32.mrb[5].mxu1 }
 0x10c   : > { %v545_v54 = vpop.f32.mrb[6].mxu0  ;;  %v577_v55 = vpop.f32.mrb[6].mxu1 }
 0x10d   : > { %v673_v56 = vmax.f32 %v657_v50, 0.0  ;;  %v681_v57 = vmax.f32 %v665_v51, 0.0  ;;  %v658_v58 = vadd.f32 %v1078_v31, %v545_v54  ;;  %v666_v59 = vadd.f32 %v1078_v31, %v577_v55  ;;  %v547_v60 = vpop.f32.mrb[7].mxu0  ;;  %v579_v61 = vpop.f32.mrb[7].mxu1 }
 0x10f   : > { %689 = vst [vmem:[%s1087_s21 + $0x10] sm:$0xff] %v673_v56  ;;  %697 = vst [vmem:[%s1087_s21 + $0x50] sm:$0xff] %v681_v57  ;;  %v674_v62 = vmax.f32 %v658_v58, 0.0  ;;  %v682_v63 = vmax.f32 %v666_v59, 0.0 }
 0x111   : > { %690 = vst [vmem:[%s1087_s21 + $0x18] sm:$0xff] %v674_v62  ;;  %698 = vst [vmem:[%s1087_s21 + $0x58] sm:$0xff] %v682_v63 }
 0x112   : > { %v550_v0 = vpop.f32.mrb[8].mxu0  ;;  %v582_v1 = vpop.f32.mrb[8].mxu1 }
 0x113   : > { %v659_v2 = vadd.f32 %v1078_v31, %v550_v0  ;;  %v667_v3 = vadd.f32 %v1078_v31, %v582_v1  ;;  %v552_v4 = vpop.f32.mrb[9].mxu0  ;;  %v584_v5 = vpop.f32.mrb[9].mxu1 }
 0x114   : > { %v553_v6 = vpop.f32.mrb[10].mxu0  ;;  %v585_v7 = vpop.f32.mrb[10].mxu1 }
 0x115   : > { %v675_v8 = vmax.f32 %v659_v2, 0.0  ;;  %v683_v9 = vmax.f32 %v667_v3, 0.0  ;;  %v660_v10 = vadd.f32 %v1078_v31, %v553_v6  ;;  %v668_v11 = vadd.f32 %v1078_v31, %v585_v7  ;;  %v555_v12 = vpop.f32.mrb[11].mxu0  ;;  %v587_v13 = vpop.f32.mrb[11].mxu1 }
 0x117   : > { %691 = vst [vmem:[%s1087_s21 + $0x20] sm:$0xff] %v675_v8  ;;  %699 = vst [vmem:[%s1087_s21 + $0x60] sm:$0xff] %v683_v9  ;;  %v676_v14 = vmax.f32 %v660_v10, 0.0  ;;  %v684_v15 = vmax.f32 %v668_v11, 0.0 }
 0x119   : > { %692 = vst [vmem:[%s1087_s21 + $0x28] sm:$0xff] %v676_v14  ;;  %700 = vst [vmem:[%s1087_s21 + $0x68] sm:$0xff] %v684_v15 }
 0x11a   : > { %v558_v16 = vpop.f32.mrb[12].mxu0  ;;  %v590_v17 = vpop.f32.mrb[12].mxu1 }
 0x11b   : > { %v661_v18 = vadd.f32 %v1078_v31, %v558_v16  ;;  %v669_v19 = vadd.f32 %v1078_v31, %v590_v17  ;;  %v560_v20 = vpop.f32.mrb[13].mxu0  ;;  %v592_v21 = vpop.f32.mrb[13].mxu1 }
 0x11c   : > { %v561_v22 = vpop.f32.mrb[14].mxu0  ;;  %v593_v23 = vpop.f32.mrb[14].mxu1 }
 0x11d   : > { %v677_v24 = vmax.f32 %v661_v18, 0.0  ;;  %v685_v25 = vmax.f32 %v669_v19, 0.0  ;;  %v662_v26 = vadd.f32 %v1078_v31, %v561_v22  ;;  %v670_v27 = vadd.f32 %v1078_v31, %v593_v23  ;;  %v563_v28 = vpop.f32.mrb[15].mxu0  ;;  %v595_v29 = vpop.f32.mrb[15].mxu1 }
 0x11f   : > { %693 = vst [vmem:[%s1087_s21 + $0x30] sm:$0xff] %v677_v24  ;;  %701 = vst [vmem:[%s1087_s21 + $0x70] sm:$0xff] %v685_v25  ;;  %v678_v30 = vmax.f32 %v662_v26, 0.0  ;;  %v686_v32 = vmax.f32 %v670_v27, 0.0 }
 0x121   : > { %694 = vst [vmem:[%s1087_s21 + $0x38] sm:$0xff] %v678_v30  ;;  %702 = vst [vmem:[%s1087_s21 + $0x78] sm:$0xff] %v686_v32 }
 0x122 PF: > { %s13_s14 = sadd.s32 1, %s969_s14   ;;  %s1132_s12 = smov %s965_s13 }
 0x123   : > { %p10_p5 = scmp.ge.s32.totalorder %s13_s14, 6   ;;  %s1133_s13 = smov %s1135_s15 }
 0x125   :  { %12 = sbr.rel (!%p10_p5) target bundleno = 2 (0x2), region = 76 }

// kernel: embeddingnet_forward.25
= control target key start
LH: loop header
LB: loop body
LE: loop exit
PB: predicated region body
PF: predicated region fallthrough
CT: control target
= control target key end

     0   :  { %s470_s0 = inlined_call_operand.vmem [shape: f32[16,512], index: 0, kind: input, shape index: {}]   ;;  %s471_s1 = inlined_call_operand.vmem [shape: f32[16,512], index: 1, kind: input, shape index: {}]   ;;  %s472_s2 = inlined_call_operand.vmem [shape: f32[16,512], index: 2, kind: input, shape index: {}]   ;;  %s473_s3 = inlined_call_operand.vmem [shape: f32[16,512], index: 3, kind: input, shape index: {}]   ;;  %s474_s4 = inlined_call_operand.vmem [shape: f32[16,512], index: 4, kind: input, shape index: {}]   ;;  %s475_s5 = inlined_call_operand.vmem [shape: f32[16,512], index: 5, kind: input, shape index: {}]   ;;  %s476_s6 = inlined_call_operand.vmem [shape: f32[16,512], index: 6, kind: input, shape index: {}]   ;;  %s477_s7 = inlined_call_operand.vmem [shape: f32[16,512], index: 7, kind: input, shape index: {}]   ;;  %s478_s8 = inlined_call_operand.vmem [shape: f32[16,512], index: 8, kind: input, shape index: {}]   ;;  %s479_s9 = inlined_call_operand.vmem [shape: f32[16,512], index: 9, kind: output, shape index: {}]  }
   0x1   :  { %v32_v0 = vld [vmem:[%s470_s0] sm:$0xff]  ;;  %v33_v6 = vld [vmem:[%s470_s0 + $0x8] sm:$0xff]  ;;  %v34_v15 = vld [vmem:[%s470_s0 + $0x10] sm:$0xff] }
   0x2   :  { %v40_v1 = vld [vmem:[%s471_s1] sm:$0xff]  ;;  %v41_v7 = vld [vmem:[%s471_s1 + $0x8] sm:$0xff]  ;;  %v42_v16 = vld [vmem:[%s471_s1 + $0x10] sm:$0xff] }
   0x3   :  { %v56_v2 = vld [vmem:[%s472_s2] sm:$0xff]  ;;  %v48_v3 = vmax.f32 %v32_v0, %v40_v1  ;;  %v57_v8 = vld [vmem:[%s472_s2 + $0x8] sm:$0xff]  ;;  %v49_v10 = vmax.f32 %v33_v6, %v41_v7  ;;  %v58_v17 = vld [vmem:[%s472_s2 + $0x10] sm:$0xff]  ;;  %v50_v20 = vmax.f32 %v34_v15, %v42_v16 }
   0x4   :  { %v72_v4 = vld [vmem:[%s473_s3] sm:$0xff]  ;;  %v73_v13 = vld [vmem:[%s473_s3 + $0x8] sm:$0xff]  ;;  %v74_v24 = vld [vmem:[%s473_s3 + $0x10] sm:$0xff] }
   0x5   :  { %v64_v5 = vmax.f32 %v48_v3, %v56_v2  ;;  %v88_v9 = vld [vmem:[%s474_s4] sm:$0xff]  ;;  %v65_v14 = vmax.f32 %v49_v10, %v57_v8  ;;  %v89_v19 = vld [vmem:[%s474_s4 + $0x8] sm:$0xff]  ;;  %v66_v26 = vmax.f32 %v50_v20, %v58_v17  ;;  %v35_v27 = vld [vmem:[%s470_s0 + $0x18] sm:$0xff] }
   0x6   :  { %v104_v12 = vld [vmem:[%s475_s5] sm:$0xff]  ;;  %v105_v23 = vld [vmem:[%s475_s5 + $0x8] sm:$0xff]  ;;  %v43_v28 = vld [vmem:[%s471_s1 + $0x18] sm:$0xff] }
   0x7   :  { %v80_v11 = vmax.f32 %v64_v5, %v72_v4  ;;  %v120_v21 = vld [vmem:[%s476_s6] sm:$0xff]  ;;  %v81_v22 = vmax.f32 %v65_v14, %v73_v13  ;;  %v59_v29 = vld [vmem:[%s472_s2 + $0x18] sm:$0xff]  ;;  %v90_v33 = vld [vmem:[%s474_s4 + $0x10] sm:$0xff]  ;;  %v51_v34 = vmax.f32 %v35_v27, %v43_v28  ;;  %v82_v37 = vmax.f32 %v66_v26, %v74_v24 }
   0x8   :  { %v136_v30 = vld [vmem:[%s477_s7] sm:$0xff]  ;;  %v121_v36 = vld [vmem:[%s476_s6 + $0x8] sm:$0xff]  ;;  %v106_v38 = vld [vmem:[%s475_s5 + $0x10] sm:$0xff] }
   0x9   :  { %v96_v18 = vmax.f32 %v80_v11, %v88_v9  ;;  %v152_v31 = vld [vmem:[%s478_s8] sm:$0xff]  ;;  %v97_v32 = vmax.f32 %v81_v22, %v89_v19  ;;  %v75_v39 = vld [vmem:[%s473_s3 + $0x18] sm:$0xff]  ;;  %v67_v41 = vmax.f32 %v51_v34, %v59_v29  ;;  %v137_v46 = vld [vmem:[%s477_s7 + $0x8] sm:$0xff]  ;;  %v98_v48 = vmax.f32 %v82_v37, %v90_v33 }
   0xa   :  { %v36_v42 = vld [vmem:[%s470_s0 + $0x20] sm:$0xff]  ;;  %v153_v47 = vld [vmem:[%s478_s8 + $0x8] sm:$0xff]  ;;  %v91_v49 = vld [vmem:[%s474_s4 + $0x18] sm:$0xff] }
   0xb   :  { %v112_v25 = vmax.f32 %v96_v18, %v104_v12  ;;  %v113_v40 = vmax.f32 %v97_v32, %v105_v23  ;;  %v44_v43 = vld [vmem:[%s471_s1 + $0x20] sm:$0xff]  ;;  %v122_v52 = vld [vmem:[%s476_s6 + $0x10] sm:$0xff]  ;;  %v83_v53 = vmax.f32 %v67_v41, %v75_v39  ;;  %v107_v54 = vld [vmem:[%s475_s5 + $0x18] sm:$0xff]  ;;  %v114_v57 = vmax.f32 %v98_v48, %v106_v38 }
   0xc   :  { %v60_v44 = vld [vmem:[%s472_s2 + $0x20] sm:$0xff]  ;;  %v52_v50 = vmax.f32 %v36_v42, %v44_v43  ;;  %v37_v59 = vld [vmem:[%s470_s0 + $0x28] sm:$0xff]  ;;  %v138_v63 = vld [vmem:[%s477_s7 + $0x10] sm:$0xff] }
   0xd   :  { %v128_v35 = vmax.f32 %v112_v25, %v120_v21  ;;  %v129_v51 = vmax.f32 %v113_v40, %v121_v36  ;;  %v76_v55 = vld [vmem:[%s473_s3 + $0x20] sm:$0xff]  ;;  %v45_v60 = vld [vmem:[%s471_s1 + $0x28] sm:$0xff]  ;;  %v154_v0 = vld [vmem:[%s478_s8 + $0x10] sm:$0xff]  ;;  %v99_v1 = vmax.f32 %v83_v53, %v91_v49  ;;  %v130_v4 = vmax.f32 %v114_v57, %v122_v52 }
   0xe   :  { %v68_v58 = vmax.f32 %v52_v50, %v60_v44  ;;  %v61_v61 = vld [vmem:[%s472_s2 + $0x28] sm:$0xff]  ;;  %v92_v2 = vld [vmem:[%s474_s4 + $0x20] sm:$0xff]  ;;  %v53_v3 = vmax.f32 %v37_v59, %v45_v60  ;;  %v123_v5 = vld [vmem:[%s476_s6 + $0x18] sm:$0xff] }
   0xf   :  { %v144_v45 = vmax.f32 %v128_v35, %v136_v30  ;;  %v145_v62 = vmax.f32 %v129_v51, %v137_v46  ;;  %v108_v7 = vld [vmem:[%s475_s5 + $0x20] sm:$0xff]  ;;  %v77_v8 = vld [vmem:[%s473_s3 + $0x28] sm:$0xff]  ;;  %v115_v10 = vmax.f32 %v99_v1, %v107_v54  ;;  %v38_v12 = vld [vmem:[%s470_s0 + $0x30] sm:$0xff]  ;;  %v146_v15 = vmax.f32 %v130_v4, %v138_v63 }
  0x10   :  { %v84_v6 = vmax.f32 %v68_v58, %v76_v55  ;;  %v69_v11 = vmax.f32 %v53_v3, %v61_v61  ;;  %v46_v13 = vld [vmem:[%s471_s1 + $0x30] sm:$0xff]  ;;  %v139_v16 = vld [vmem:[%s477_s7 + $0x18] sm:$0xff]  ;;  %v93_v19 = vld [vmem:[%s474_s4 + $0x28] sm:$0xff] }
  0x11   :  { %v160_v56 = vmax.f32 %v144_v45, %v152_v31  ;;  %v161_v9 = vmax.f32 %v145_v62, %v153_v47  ;;  %v62_v14 = vld [vmem:[%s472_s2 + $0x30] sm:$0xff]  ;;  %v155_v17 = vld [vmem:[%s478_s8 + $0x18] sm:$0xff]  ;;  %v54_v20 = vmax.f32 %v38_v12, %v46_v13  ;;  %v131_v21 = vmax.f32 %v115_v10, %v123_v5  ;;  %v124_v22 = vld [vmem:[%s476_s6 + $0x20] sm:$0xff] }
  0x12   :  { %v100_v18 = vmax.f32 %v84_v6, %v92_v2  ;;  %v85_v23 = vmax.f32 %v69_v11, %v77_v8  ;;  %v109_v24 = vld [vmem:[%s475_s5 + $0x28] sm:$0xff]  ;;  %v78_v25 = vld [vmem:[%s473_s3 + $0x30] sm:$0xff]  ;;  %v162_v26 = vmax.f32 %v146_v15, %v154_v0  ;;  %v39_v29 = vld [vmem:[%s470_s0 + $0x38] sm:$0xff] }
  0x13   :  { %168 = vst [vmem:[%s479_s9] sm:$0xff] %v160_v56  ;;  %169 = vst [vmem:[%s479_s9 + $0x8] sm:$0xff] %v161_v9  ;;  %v70_v28 = vmax.f32 %v54_v20, %v62_v14  ;;  %v47_v30 = vld [vmem:[%s471_s1 + $0x38] sm:$0xff]  ;;  %v147_v32 = vmax.f32 %v131_v21, %v139_v16  ;;  %v140_v33 = vld [vmem:[%s477_s7 + $0x20] sm:$0xff] }
  0x14   :  { %v116_v27 = vmax.f32 %v100_v18, %v108_v7  ;;  %v63_v31 = vld [vmem:[%s472_s2 + $0x38] sm:$0xff]  ;;  %v101_v34 = vmax.f32 %v85_v23, %v93_v19  ;;  %v94_v35 = vld [vmem:[%s474_s4 + $0x30] sm:$0xff]  ;;  %v55_v36 = vmax.f32 %v39_v29, %v47_v30  ;;  %170 = vst [vmem:[%s479_s9 + $0x10] sm:$0xff] %v162_v26  ;;  %v125_v38 = vld [vmem:[%s476_s6 + $0x28] sm:$0xff] }
  0x15   :  { %v86_v39 = vmax.f32 %v70_v28, %v78_v25  ;;  %v79_v40 = vld [vmem:[%s473_s3 + $0x38] sm:$0xff]  ;;  %v163_v41 = vmax.f32 %v147_v32, %v155_v17  ;;  %v156_v42 = vld [vmem:[%s478_s8 + $0x20] sm:$0xff]  ;;  %v110_v44 = vld [vmem:[%s475_s5 + $0x30] sm:$0xff] }
  0x16   :  { %v132_v37 = vmax.f32 %v116_v27, %v124_v22  ;;  %v117_v43 = vmax.f32 %v101_v34, %v109_v24  ;;  %v71_v45 = vmax.f32 %v55_v36, %v63_v31  ;;  %v141_v47 = vld [vmem:[%s477_s7 + $0x28] sm:$0xff]  ;;  %v95_v49 = vld [vmem:[%s474_s4 + $0x38] sm:$0xff]  ;;  %v126_v51 = vld [vmem:[%s476_s6 + $0x30] sm:$0xff] }
  0x17   :  { %v102_v48 = vmax.f32 %v86_v39, %v94_v35  ;;  %171 = vst [vmem:[%s479_s9 + $0x18] sm:$0xff] %v163_v41  ;;  %v157_v54 = vld [vmem:[%s478_s8 + $0x28] sm:$0xff]  ;;  %v111_v56 = vld [vmem:[%s475_s5 + $0x38] sm:$0xff]  ;;  %v142_v58 = vld [vmem:[%s477_s7 + $0x30] sm:$0xff] }
  0x18   :  { %v148_v46 = vmax.f32 %v132_v37, %v140_v33  ;;  %v133_v50 = vmax.f32 %v117_v43, %v125_v38  ;;  %v87_v52 = vmax.f32 %v71_v45, %v79_v40  ;;  %v127_v61 = vld [vmem:[%s476_s6 + $0x38] sm:$0xff]  ;;  %v158_v63 = vld [vmem:[%s478_s8 + $0x30] sm:$0xff] }
  0x19   :  { %v118_v55 = vmax.f32 %v102_v48, %v110_v44  ;;  %v143_v2 = vld [vmem:[%s477_s7 + $0x38] sm:$0xff] }
  0x1a   :  { %v164_v53 = vmax.f32 %v148_v46, %v156_v42  ;;  %v149_v57 = vmax.f32 %v133_v50, %v141_v47  ;;  %v103_v59 = vmax.f32 %v87_v52, %v95_v49  ;;  %v159_v5 = vld [vmem:[%s478_s8 + $0x38] sm:$0xff] }
  0x1b   :  { %v134_v60 = vmax.f32 %v118_v55, %v126_v51 }
  0x1c   :  { %172 = vst [vmem:[%s479_s9 + $0x20] sm:$0xff] %v164_v53  ;;  %v165_v62 = vmax.f32 %v149_v57, %v157_v54  ;;  %v119_v0 = vmax.f32 %v103_v59, %v111_v56 }
  0x1d   :  { %v150_v1 = vmax.f32 %v134_v60, %v142_v58 }
  0x1e   :  { %173 = vst [vmem:[%s479_s9 + $0x28] sm:$0xff] %v165_v62  ;;  %v135_v3 = vmax.f32 %v119_v0, %v127_v61 }
  0x1f   :  { %v166_v4 = vmax.f32 %v150_v1, %v158_v63 }
  0x20   :  { %v151_v6 = vmax.f32 %v135_v3, %v143_v2 }
  0x21   :  { %174 = vst [vmem:[%s479_s9 + $0x30] sm:$0xff] %v166_v4 }
  0x22   :  { %v167_v7 = vmax.f32 %v151_v6, %v159_v5 }
  0x24   :  { %175 = vst [vmem:[%s479_s9 + $0x38] sm:$0xff] %v167_v7 }

// kernel: embeddingnet_forward.26
= control target key start
LH: loop header
LB: loop body
LE: loop exit
PB: predicated region body
PF: predicated region fallthrough
CT: control target
= control target key end

     0   :  { %s1197_s12 = smov 0   ;;  %s1199_s13 = smov 0   ;;  %s1369_s0 = inlined_call_operand.vmem [shape: bf16[128,768], index: 0, kind: input, shape index: {}]   ;;  %s1370_s1 = inlined_call_operand.vmem [shape: bf16[768,128], index: 1, kind: input, shape index: {}]   ;;  %s1371_s2 = inlined_call_operand.vmem [shape: f32[1,128], index: 2, kind: input, shape index: {}]   ;;  %s1372_s3 = inlined_call_operand.vmem [shape: f32[128,128], index: 3, kind: output, shape index: {}]  }
   0x1   :  { %s1201_s14 = smov 0   ;;  %s1203_s15 = smov 0  }
   0x2   :  { %s1205_s16 = smov 0  }
   0x3 LB: > { %s25_s17 = sadd.s32 1, %s1170_s15  ;;  %p48_p1 = scmp.ne.s32.totalorder %s1162_s13, %s1158_s12  ;;  %s1174_s16 = sphi %s1205_s16, %s13_s16   ;;  %s1170_s15 = sphi %s1203_s15, %s1376_s15   ;;  %s1166_s14 = sphi %s1201_s14, %s1375_s14   ;;  %s1162_s13 = sphi %s1199_s13, %s1374_s13   ;;  %s1158_s12 = sphi %s1197_s12, %s1373_s12  }
   0x4   : > { %p26_p0 = scmp.ge.s32.totalorder %s25_s17, 3  ;;  %p49_p2 = scmp.eq.s32.totalorder %s1174_s16, 0 }
   0x5   : > { %s41_s19 = sadd.s32 1, %s1162_s13  ;;  %p927_p5 = scmp.ge.s32.totalorder %s1174_s16, 3 }
   0x6   : > { %s1378_s17 = smov (%p26_p0, %s25_s17), 0  ;;  %p50_p3 = por %p49_p2, %p48_p1 }
   0x7   : > { %s37_s18 = ssub.s32 %s1170_s15, %s1378_s17  ;;  %162 = sbr.rel (%p927_p5) target bundleno = 26 (0x1a), region = 20 }
   0x8   : > { %p39_p4 = scmp.eq.s32.totalorder %s37_s18, 0 }
   0xa   : > { %s1232_s20 = scalar_select %p39_p4, %s1162_s13, %s41_s19  }
   0xe   : > { %165 = sbr.rel (!%p50_p3) target bundleno = 26 (0x1a), region = 24  ;;  %s167_s21 = sand.u32 (%p50_p3), 1, %s1162_s13  }
   0xf   : > { %s974_s22 = sshll.u32 (%p50_p3), %s1170_s15, 3  ;;  %s928_s23 = sshll.u32 (%p50_p3), %s167_s21, 7 }
  0x10   : > { %s1240_s26 = scalar_lea.vmem (%p50_p3), %s1369_s0, %s974_s22  ;;  %s169_s27 = scalar_lea.vmem (%p50_p3), [#allocation3], %s928_s23 }
  0x11   : > { %v233_v0 = vld [vmem:[%s1240_s26] sm:$0xff] (%p50_p3)  ;;  %v235_v1 = vld [vmem:[%s1240_s26 + $0x18] sm:$0xff] (%p50_p3)  ;;  %v237_v2 = vld [vmem:[%s1240_s26 + $0x30] sm:$0xff] (%p50_p3) }
  0x12   : > { %234 = vst [vmem:[%s169_s27] sm:$0xff] (%p50_p3), %v233_v0  ;;  %236 = vst [vmem:[%s169_s27 + $0x8] sm:$0xff] (%p50_p3), %v235_v1  ;;  %v239_v3 = vld [vmem:[%s1240_s26 + $0x48] sm:$0xff] (%p50_p3)  ;;  %v241_v4 = vld [vmem:[%s1240_s26 + $0x60] sm:$0xff] (%p50_p3) }
  0x13   : > { %238 = vst [vmem:[%s169_s27 + $0x10] sm:$0xff] (%p50_p3), %v237_v2  ;;  %v243_v5 = vld [vmem:[%s1240_s26 + $0x78] sm:$0xff] (%p50_p3)  ;;  %240 = vst [vmem:[%s169_s27 + $0x18] sm:$0xff] (%p50_p3), %v239_v3  ;;  %v245_v6 = vld [vmem:[%s1240_s26 + $0x90] sm:$0xff] (%p50_p3) }
  0x14   : > { %242 = vst [vmem:[%s169_s27 + $0x20] sm:$0xff] (%p50_p3), %v241_v4  ;;  %244 = vst [vmem:[%s169_s27 + $0x28] sm:$0xff] (%p50_p3), %v243_v5  ;;  %v247_v7 = vld [vmem:[%s1240_s26 + $0xa8] sm:$0xff] (%p50_p3)  ;;  %v249_v8 = vld [vmem:[%s1240_s26 + $0xc0] sm:$0xff] (%p50_p3) }
  0x15   : > { %246 = vst [vmem:[%s169_s27 + $0x30] sm:$0xff] %v245_v6  ;;  %248 = vst [vmem:[%s169_s27 + $0x38] sm:$0xff] %v247_v7  ;;  %v251_v9 = vld [vmem:[%s1240_s26 + $0xd8] sm:$0xff]  ;;  %v253_v10 = vld [vmem:[%s1240_s26 + $0xf0] sm:$0xff] }
  0x16   : > { %250 = vst [vmem:[%s169_s27 + $0x40] sm:$0xff] %v249_v8  ;;  %v255_v11 = vld [vmem:[%s1240_s26 + $0x108] sm:$0xff]  ;;  %252 = vst [vmem:[%s169_s27 + $0x48] sm:$0xff] %v251_v9  ;;  %v257_v12 = vld [vmem:[%s1240_s26 + $0x120] sm:$0xff] }
  0x17   : > { %254 = vst [vmem:[%s169_s27 + $0x50] sm:$0xff] %v253_v10  ;;  %256 = vst [vmem:[%s169_s27 + $0x58] sm:$0xff] %v255_v11  ;;  %v259_v13 = vld [vmem:[%s1240_s26 + $0x138] sm:$0xff]  ;;  %v261_v14 = vld [vmem:[%s1240_s26 + $0x150] sm:$0xff] }
  0x18   : > { %258 = vst [vmem:[%s169_s27 + $0x60] sm:$0xff] %v257_v12  ;;  %260 = vst [vmem:[%s169_s27 + $0x68] sm:$0xff] %v259_v13  ;;  %v263_v15 = vld [vmem:[%s1240_s26 + $0x168] sm:$0xff] }
  0x19   : > { %262 = vst [vmem:[%s169_s27 + $0x70] sm:$0xff] %v261_v14  ;;  %264 = vst [vmem:[%s169_s27 + $0x78] sm:$0xff] %v263_v15 }
  0x1a PF: > { %p931_p6 = scmp.ge.s32.totalorder %s1174_s16, 1  ;;  %p281_p7 = scmp.lt.s32.totalorder %s1174_s16, 4 }
  0x1c   : > { %p282_p8 = pnand %p931_p6, %p281_p7 }
  0x1d   : > { %s288_s28 = sand.u32 (!%p282_p8), 1, %s1158_s12   ;;  %s933_s29 = sshll.u32 (!%p282_p8), %s1166_s14, 5 }
  0x1e   : > { %285 = sbr.rel (%p282_p8) target bundleno = 337 (0x151), region = 66  ;;  %s932_s30 = sshll.u32 (!%p282_p8), %s288_s28, 7 }
  0x1f   : > { %p328_p9 = scmp.lt.s32.totalorder (!%p282_p8), %s933_s29, 95  ;;  %s1267_s8 = scalar_lea.vmem (!%p282_p8), [#allocation3], %s932_s30 }
  0x20   : > { %p935_p10 = scmp.ne.s32.totalorder (!%p282_p8), %s1166_s14, 0 }
  0x25   : > { %s1380_s29 = smov (!%p328_p9, %s933_s29), 95  ;;  %352 = sbr.rel (%p935_p10) target bundleno = 47 (0x2f), region = 74 }
  0x26   : > { %s934_s4 = sshll.u32 %s1380_s29, 2  ;;  %v1176_v16 = vmov (!%p935_p10), 0.0  }
  0x27   : > { %s1265_s7 = scalar_lea.vmem %s1370_s1, %s934_s4  ;;  %353 = vst [vmem:[#allocation2] sm:$0xff] (!%p935_p10), %v1176_v16  ;;  %354 = vst [vmem:[#allocation2 + $0x8] sm:$0xff] (!%p935_p10), %v1176_v16 }
  0x28   : > { %355 = vst [vmem:[#allocation2 + $0x10] sm:$0xff] (!%p935_p10), %v1176_v16  ;;  %356 = vst [vmem:[#allocation2 + $0x18] sm:$0xff] (!%p935_p10), %v1176_v16 }
  0x29   : > { %357 = vst [vmem:[#allocation2 + $0x20] sm:$0xff] (!%p935_p10), %v1176_v16  ;;  %358 = vst [vmem:[#allocation2 + $0x28] sm:$0xff] (!%p935_p10), %v1176_v16 }
  0x2a   : > { %359 = vst [vmem:[#allocation2 + $0x30] sm:$0xff] (!%p935_p10), %v1176_v16  ;;  %360 = vst [vmem:[#allocation2 + $0x38] sm:$0xff] (!%p935_p10), %v1176_v16 }
  0x2b   : > { %361 = vst [vmem:[#allocation2 + $0x40] sm:$0xff] (!%p935_p10), %v1176_v16  ;;  %362 = vst [vmem:[#allocation2 + $0x48] sm:$0xff] (!%p935_p10), %v1176_v16 }
  0x2c   : > { %363 = vst [vmem:[#allocation2 + $0x50] sm:$0xff] %v1176_v16  ;;  %364 = vst [vmem:[#allocation2 + $0x58] sm:$0xff] %v1176_v16 }
  0x2d   : > { %365 = vst [vmem:[#allocation2 + $0x60] sm:$0xff] %v1176_v16  ;;  %366 = vst [vmem:[#allocation2 + $0x68] sm:$0xff] %v1176_v16 }
  0x2e   : > { %367 = vst [vmem:[#allocation2 + $0x70] sm:$0xff] %v1176_v16  ;;  %368 = vst [vmem:[#allocation2 + $0x78] sm:$0xff] %v1176_v16 }
  0x2f PF: > { %v1096_v17 = vld [vmem:[%s1265_s7 + $0x40] sm:$0xff]   ;;  %v1098_v19 = vld [vmem:[%s1265_s7 + $0x48] sm:$0xff]   ;;  %v1100_v21 = vld [vmem:[%s1265_s7 + $0x50] sm:$0xff]   ;;  %p968_p11 = scmp.ne.s32.totalorder %s1166_s14, 2 }
  0x30   : > { %v1097_v18 = vld [vmem:[%s1265_s7] sm:$0xff]   ;;  %975 = vmatprep.subr.bf16.mxu0 %v1096_v17  ;;  %1039 = vmatprep.subr.bf16.mxu1 %v1096_v17  ;;  %v1099_v20 = vld [vmem:[%s1265_s7 + $0x8] sm:$0xff]   ;;  %v1101_v22 = vld [vmem:[%s1265_s7 + $0x10] sm:$0xff]  }
  0x31   : > { %976 = vmatpush3.bf16.msra.mxu0 %v1097_v18  ;;  %1047 = vmatpush3.bf16.msra.mxu1 %v1097_v18  ;;  %v1102_v23 = vld [vmem:[%s1265_s7 + $0x58] sm:$0xff]   ;;  %v1104_v25 = vld [vmem:[%s1265_s7 + $0x60] sm:$0xff]   ;;  %v1106_v27 = vld [vmem:[%s1265_s7 + $0x68] sm:$0xff]  }
  0x32   : > { %977 = vmatprep.subr.bf16.mxu0 %v1098_v19  ;;  %1040 = vmatprep.subr.bf16.mxu1 %v1098_v19  ;;  %v1103_v24 = vld [vmem:[%s1265_s7 + $0x18] sm:$0xff]   ;;  %v1105_v26 = vld [vmem:[%s1265_s7 + $0x20] sm:$0xff]   ;;  %v1107_v30 = vld [vmem:[%s1265_s7 + $0x28] sm:$0xff]  }
  0x33   : > { %v1114_v28 = vld [vmem:[%s1267_s8 + $0x4] ss:$8 sps:$4 sm:$0xff]   ;;  %v1108_v31 = vld [vmem:[%s1265_s7 + $0x70] sm:$0xff]   ;;  %v1110_v33 = vld [vmem:[%s1265_s7 + $0x78] sm:$0xff]  }
  0x34   : > { %v1117_v29 = vld [vmem:[%s1267_s8 + $0x44] ss:$8 sps:$4 sm:$0xff]   ;;  %641 = vmatprep.mubr.bf16.mxu0 %v1114_v28  ;;  %v1109_v32 = vld [vmem:[%s1265_s7 + $0x30] sm:$0xff]   ;;  %v1111_v34 = vld [vmem:[%s1265_s7 + $0x38] sm:$0xff]  }
  0x35   : > { %978 = vmatpush3.bf16.msra.mxu0 %v1099_v20  ;;  %1048 = vmatpush3.bf16.msra.mxu1 %v1099_v20  ;;  %v1112_v35 = vld [vmem:[%s1267_s8] ss:$8 sps:$4 sm:$0xff]   ;;  %v1118_v37 = vld [vmem:[%s1267_s8 + $0x14] ss:$8 sps:$4 sm:$0xff]   ;;  %v1122_v39 = vld [vmem:[%s1267_s8 + $0x10] ss:$8 sps:$4 sm:$0xff]  }
  0x36   : > { %979 = vmatprep.subr.bf16.mxu0 %v1100_v21  ;;  %1041 = vmatprep.subr.bf16.mxu1 %v1100_v21  ;;  %v1115_v36 = vld [vmem:[%s1267_s8 + $0x40] ss:$8 sps:$4 sm:$0xff]   ;;  %v1120_v38 = vld [vmem:[%s1267_s8 + $0x54] ss:$8 sps:$4 sm:$0xff]   ;;  %v1123_v40 = vld [vmem:[%s1267_s8 + $0x50] ss:$8 sps:$4 sm:$0xff]  }
  0x37   : > { %673 = vmatprep.mubr.bf16.mxu1 %v1117_v29  ;;  %v1124_v41 = vld [vmem:[%s1267_s8 + $0x24] ss:$8 sps:$4 sm:$0xff]   ;;  %v1128_v43 = vld [vmem:[%s1267_s8 + $0x20] ss:$8 sps:$4 sm:$0xff]   ;;  %v1130_v45 = vld [vmem:[%s1267_s8 + $0x34] ss:$8 sps:$4 sm:$0xff]  }
  0x38   : > { %v1126_v42 = vld [vmem:[%s1267_s8 + $0x64] ss:$8 sps:$4 sm:$0xff]   ;;  %v1129_v44 = vld [vmem:[%s1267_s8 + $0x60] ss:$8 sps:$4 sm:$0xff]   ;;  %v1132_v46 = vld [vmem:[%s1267_s8 + $0x74] ss:$8 sps:$4 sm:$0xff]  }
  0x39   : > { %980 = vmatpush3.bf16.msra.mxu0 %v1101_v22  ;;  %1049 = vmatpush3.bf16.msra.mxu1 %v1101_v22  ;;  %v1134_v47 = vld [vmem:[%s1267_s8 + $0x30] ss:$8 sps:$4 sm:$0xff]   ;;  %v369_v51 = vld [vmem:[#allocation2] sm:$0xff]  ;;  %v370_v59 = vld [vmem:[#allocation2 + $0x8] sm:$0xff] }
  0x3a   : > { %981 = vmatprep.subr.bf16.mxu0 %v1102_v23  ;;  %1042 = vmatprep.subr.bf16.mxu1 %v1102_v23  ;;  %v1135_v48 = vld [vmem:[%s1267_s8 + $0x70] ss:$8 sps:$4 sm:$0xff]   ;;  %v377_v53 = vld [vmem:[#allocation2 + $0x40] sm:$0xff]  ;;  %v378_v61 = vld [vmem:[#allocation2 + $0x48] sm:$0xff] }
  0x3b   : > { %v371_v7 = vld [vmem:[#allocation2 + $0x10] sm:$0xff]  ;;  %v372_v15 = vld [vmem:[#allocation2 + $0x18] sm:$0xff]  ;;  %v381_v29 = vld [vmem:[#allocation2 + $0x60] sm:$0xff] }
  0x3c   : > { %v379_v9 = vld [vmem:[#allocation2 + $0x50] sm:$0xff]  ;;  %v380_v17 = vld [vmem:[#allocation2 + $0x58] sm:$0xff] }
  0x3d   : > { %982 = vmatpush3.bf16.msra.mxu0 %v1103_v24  ;;  %1050 = vmatpush3.bf16.msra.mxu1 %v1103_v24 }
  0x3e   : > { %983 = vmatprep.subr.bf16.mxu0 %v1104_v25  ;;  %1043 = vmatprep.subr.bf16.mxu1 %v1104_v25 }
  0x41   : > { %984 = vmatpush3.bf16.msra.mxu0 %v1105_v26  ;;  %1051 = vmatpush3.bf16.msra.mxu1 %v1105_v26 }
  0x42   : > { %985 = vmatprep.subr.bf16.mxu0 %v1106_v27  ;;  %1044 = vmatprep.subr.bf16.mxu1 %v1106_v27  ;;  %v373_v27 = vld [vmem:[#allocation2 + $0x20] sm:$0xff] }
  0x45   : > { %986 = vmatpush3.bf16.msra.mxu0 %v1107_v30  ;;  %1052 = vmatpush3.bf16.msra.mxu1 %v1107_v30 }
  0x46   : > { %987 = vmatprep.subr.bf16.mxu0 %v1108_v31  ;;  %1045 = vmatprep.subr.bf16.mxu1 %v1108_v31 }
  0x49   : > { %988 = vmatpush3.bf16.msra.mxu0 %v1109_v32  ;;  %1053 = vmatpush3.bf16.msra.mxu1 %v1109_v32 }
  0x4a   : > { %989 = vmatprep.subr.bf16.mxu0 %v1110_v33  ;;  %1046 = vmatprep.subr.bf16.mxu1 %v1110_v33 }
  0x4d   : > { %990 = vmatpush3.bf16.msra.mxu0 %v1111_v34  ;;  %1054 = vmatpush3.bf16.msra.mxu1 %v1111_v34 }
  0x50   : > { %642 = vmatmul.mubr.bf16.vlgmr.msra.gmra.mrb[0].mxu0 %v1112_v35  ;;  %674 = vmatmul.mubr.bf16.vlgmr.msra.gmra.mrb[0].mxu1 %v1115_v36  ;;  %v374_v35 = vld [vmem:[#allocation2 + $0x28] sm:$0xff] }
  0x51   : > { %649 = vmatprep.mubr.bf16.mxu0 %v1118_v37  ;;  %681 = vmatprep.mubr.bf16.mxu1 %v1120_v38  ;;  %v382_v37 = vld [vmem:[#allocation2 + $0x68] sm:$0xff] }
  0x58   : > { %650 = vmatmul.mubr.bf16.gmra.mrb[4].mxu0 %v1122_v39  ;;  %682 = vmatmul.mubr.bf16.gmra.mrb[4].mxu1 %v1123_v40 }
  0x59   : > { %657 = vmatprep.mubr.bf16.mxu0 %v1124_v41  ;;  %689 = vmatprep.mubr.bf16.mxu1 %v1126_v42 }
  0x60   : > { %658 = vmatmul.mubr.bf16.gmra.mrb[8].mxu0 %v1128_v43  ;;  %690 = vmatmul.mubr.bf16.gmra.mrb[8].mxu1 %v1129_v44 }
  0x61   : > { %665 = vmatprep.mubr.bf16.mxu0 %v1130_v45  ;;  %697 = vmatprep.mubr.bf16.mxu1 %v1132_v46 }
  0x68   : > { %666 = vmatmul.mubr.bf16.gmra.mrb[12].mxu0 %v1134_v47  ;;  %698 = vmatmul.mubr.bf16.gmra.mrb[12].mxu1 %v1135_v48  ;;  %v375_v47 = vld [vmem:[#allocation2 + $0x30] sm:$0xff] }
 0x123   : > { %v991_v49 = vpop.f32.mrb[0].mxu0  ;;  %v1015_v50 = vpop.f32.mrb[0].mxu1 }
 0x124   : > { %v992_v52 = vpop.f32.mrb[1].mxu0  ;;  %v1016_v54 = vpop.f32.mrb[1].mxu1 }
 0x125   : > { %v993_v55 = vadd.f32 %v992_v52, %v991_v49  ;;  %v1017_v56 = vadd.f32 %v1016_v54, %v1015_v50  ;;  %v994_v57 = vpop.f32.mrb[2].mxu0  ;;  %v1018_v58 = vpop.f32.mrb[2].mxu1  ;;  %v383_v49 = vld [vmem:[#allocation2 + $0x70] sm:$0xff] }
 0x126   : > { %v995_v60 = vpop.f32.mrb[3].mxu0  ;;  %v1019_v62 = vpop.f32.mrb[3].mxu1 }
 0x127   : > { %v706_v63 = vadd.f32 %v993_v55, %v369_v51  ;;  %v714_v0 = vadd.f32 %v1017_v56, %v377_v53  ;;  %v996_v1 = vadd.f32 %v995_v60, %v994_v57  ;;  %v1020_v2 = vadd.f32 %v1019_v62, %v1018_v58  ;;  %v376_v55 = vld [vmem:[#allocation2 + $0x38] sm:$0xff] }
 0x128   : > { %v384_v57 = vld [vmem:[#allocation2 + $0x78] sm:$0xff] }
 0x129   : > { %722 = vst [vmem:[#allocation2] sm:$0xff] %v706_v63  ;;  %730 = vst [vmem:[#allocation2 + $0x40] sm:$0xff] %v714_v0  ;;  %v707_v3 = vadd.f32 %v996_v1, %v370_v59  ;;  %v715_v4 = vadd.f32 %v1020_v2, %v378_v61  ;;  %v969_v2 = vld [vmem:[%s1371_s2] ss:$0 sm:$0xff] (!%p968_p11) }
 0x12b   : > { %723 = vst [vmem:[#allocation2 + $0x8] sm:$0xff] %v707_v3  ;;  %731 = vst [vmem:[#allocation2 + $0x48] sm:$0xff] %v715_v4  ;;  %v997_v5 = vpop.f32.mrb[4].mxu0  ;;  %v1021_v6 = vpop.f32.mrb[4].mxu1 }
 0x12c   : > { %v998_v8 = vpop.f32.mrb[5].mxu0  ;;  %v1022_v10 = vpop.f32.mrb[5].mxu1 }
 0x12d   : > { %v999_v11 = vadd.f32 %v998_v8, %v997_v5  ;;  %v1023_v12 = vadd.f32 %v1022_v10, %v1021_v6  ;;  %v1000_v13 = vpop.f32.mrb[6].mxu0  ;;  %v1024_v14 = vpop.f32.mrb[6].mxu1 }
 0x12e   : > { %v1001_v16 = vpop.f32.mrb[7].mxu0  ;;  %v1025_v18 = vpop.f32.mrb[7].mxu1 }
 0x12f   : > { %v708_v19 = vadd.f32 %v999_v11, %v371_v7  ;;  %v716_v20 = vadd.f32 %v1023_v12, %v379_v9  ;;  %v1002_v21 = vadd.f32 %v1001_v16, %v1000_v13  ;;  %v1026_v22 = vadd.f32 %v1025_v18, %v1024_v14 }
 0x130   : > { %v742_v1 = vld [vmem:[#allocation2] sm:$0xff] (!%p968_p11) }
 0x131   : > { %724 = vst [vmem:[#allocation2 + $0x10] sm:$0xff] %v708_v19  ;;  %732 = vst [vmem:[#allocation2 + $0x50] sm:$0xff] %v716_v20  ;;  %v709_v23 = vadd.f32 %v1002_v21, %v372_v15  ;;  %v717_v24 = vadd.f32 %v1026_v22, %v380_v17  ;;  %v765_v4 = vadd.f32 (!%p968_p11), %v969_v2, %v742_v1  ;;  %v750_v19 = vld [vmem:[#allocation2 + $0x40] sm:$0xff] (!%p968_p11) }
 0x132   : > { %v743_v3 = vld [vmem:[#allocation2 + $0x8] sm:$0xff] (!%p968_p11) }
 0x133   : > { %725 = vst [vmem:[#allocation2 + $0x18] sm:$0xff] %v709_v23  ;;  %733 = vst [vmem:[#allocation2 + $0x58] sm:$0xff] %v717_v24  ;;  %v1003_v25 = vpop.f32.mrb[8].mxu0  ;;  %v1027_v26 = vpop.f32.mrb[8].mxu1  ;;  %v766_v5 = vadd.f32 (!%p968_p11), %v969_v2, %v743_v3  ;;  %v781_v15 = vmax.f32 (!%p968_p11), %v765_v4, 0.0  ;;  %v751_v20 = vld [vmem:[#allocation2 + $0x48] sm:$0xff] (!%p968_p11) }
 0x134   : > { %v1004_v28 = vpop.f32.mrb[9].mxu0  ;;  %v1028_v30 = vpop.f32.mrb[9].mxu1 }
 0x135   : > { %v1005_v31 = vadd.f32 %v1004_v28, %v1003_v25  ;;  %v1029_v32 = vadd.f32 %v1028_v30, %v1027_v26  ;;  %v1006_v33 = vpop.f32.mrb[10].mxu0  ;;  %v1030_v34 = vpop.f32.mrb[10].mxu1  ;;  %v782_v16 = vmax.f32 (!%p968_p11), %v766_v5, 0.0  ;;  %797 = vst [vmem:[%s1372_s3] sm:$0xff] (!%p968_p11), %v781_v15 }
 0x136   : > { %v1007_v36 = vpop.f32.mrb[11].mxu0  ;;  %v1031_v38 = vpop.f32.mrb[11].mxu1 }
 0x137   : > { %v710_v39 = vadd.f32 %v1005_v31, %v373_v27  ;;  %v718_v40 = vadd.f32 %v1029_v32, %v381_v29  ;;  %v1008_v41 = vadd.f32 %v1007_v36, %v1006_v33  ;;  %v1032_v42 = vadd.f32 %v1031_v38, %v1030_v34  ;;  %798 = vst [vmem:[%s1372_s3 + $0x8] sm:$0xff] (!%p968_p11), %v782_v16 }
 0x138   : > { %v744_v6 = vld [vmem:[#allocation2 + $0x10] sm:$0xff] (!%p968_p11)  ;;  %v773_v31 = vadd.f32 (!%p968_p11), %v969_v2, %v750_v19  ;;  %v774_v32 = vadd.f32 (!%p968_p11), %v969_v2, %v751_v20 }
 0x139   : > { %726 = vst [vmem:[#allocation2 + $0x20] sm:$0xff] %v710_v39  ;;  %734 = vst [vmem:[#allocation2 + $0x60] sm:$0xff] %v718_v40  ;;  %v711_v43 = vadd.f32 %v1008_v41, %v374_v35  ;;  %v719_v44 = vadd.f32 %v1032_v42, %v382_v37  ;;  %v767_v9 = vadd.f32 (!%p968_p11), %v969_v2, %v744_v6  ;;  %v752_v21 = vld [vmem:[#allocation2 + $0x50] sm:$0xff] (!%p968_p11) }
 0x13a   : > { %v745_v7 = vld [vmem:[#allocation2 + $0x18] sm:$0xff] (!%p968_p11)  ;;  %v775_v36 = vadd.f32 (!%p968_p11), %v969_v2, %v752_v21  ;;  %v789_v39 = vmax.f32 (!%p968_p11), %v773_v31, 0.0  ;;  %v790_v40 = vmax.f32 (!%p968_p11), %v774_v32, 0.0 }
 0x13b   : > { %727 = vst [vmem:[#allocation2 + $0x28] sm:$0xff] %v711_v43  ;;  %735 = vst [vmem:[#allocation2 + $0x68] sm:$0xff] %v719_v44  ;;  %v1009_v45 = vpop.f32.mrb[12].mxu0  ;;  %v1033_v46 = vpop.f32.mrb[12].mxu1  ;;  %v768_v10 = vadd.f32 (!%p968_p11), %v969_v2, %v745_v7  ;;  %v783_v22 = vmax.f32 (!%p968_p11), %v767_v9, 0.0  ;;  %v753_v26 = vld [vmem:[#allocation2 + $0x58] sm:$0xff] (!%p968_p11) }
 0x13c   : > { %v1010_v48 = vpop.f32.mrb[13].mxu0  ;;  %v1034_v50 = vpop.f32.mrb[13].mxu1  ;;  %v776_v37 = vadd.f32 (!%p968_p11), %v969_v2, %v753_v26  ;;  %v791_v43 = vmax.f32 (!%p968_p11), %v775_v36, 0.0  ;;  %805 = vst [vmem:[%s1372_s3 + $0x40] sm:$0xff] (!%p968_p11), %v789_v39  ;;  %806 = vst [vmem:[%s1372_s3 + $0x48] sm:$0xff] (!%p968_p11), %v790_v40 }
 0x13d   : > { %v1011_v51 = vadd.f32 %v1010_v48, %v1009_v45  ;;  %v1035_v52 = vadd.f32 %v1034_v50, %v1033_v46  ;;  %v1012_v53 = vpop.f32.mrb[14].mxu0  ;;  %v1036_v54 = vpop.f32.mrb[14].mxu1  ;;  %741 = sbr.rel (%p968_p11) target bundleno = 337 (0x151), region = 78  ;;  %v784_v23 = vmax.f32 (!%p968_p11), %v768_v10, 0.0  ;;  %799 = vst [vmem:[%s1372_s3 + $0x10] sm:$0xff] (!%p968_p11), %v783_v22 }
 0x13e   : > { %v1013_v56 = vpop.f32.mrb[15].mxu0  ;;  %v1037_v58 = vpop.f32.mrb[15].mxu1  ;;  %v792_v44 = vmax.f32 (!%p968_p11), %v776_v37, 0.0  ;;  %807 = vst [vmem:[%s1372_s3 + $0x50] sm:$0xff] (!%p968_p11), %v791_v43 }
 0x13f   : > { %v712_v59 = vadd.f32 %v1011_v51, %v375_v47  ;;  %v720_v60 = vadd.f32 %v1035_v52, %v383_v49  ;;  %v1014_v61 = vadd.f32 %v1013_v56, %v1012_v53  ;;  %v1038_v62 = vadd.f32 %v1037_v58, %v1036_v54  ;;  %800 = vst [vmem:[%s1372_s3 + $0x18] sm:$0xff] (!%p968_p11), %v784_v23 }
 0x140   : > { %v746_v8 = vld [vmem:[#allocation2 + $0x20] sm:$0xff] (!%p968_p11)  ;;  %808 = vst [vmem:[%s1372_s3 + $0x58] sm:$0xff] (!%p968_p11), %v792_v44 }
 0x141   : > { %728 = vst [vmem:[#allocation2 + $0x30] sm:$0xff] %v712_v59  ;;  %736 = vst [vmem:[#allocation2 + $0x70] sm:$0xff] %v720_v60  ;;  %v713_v63 = vadd.f32 %v1014_v61, %v376_v55  ;;  %v721_v0 = vadd.f32 %v1038_v62, %v384_v57  ;;  %v769_v11 = vadd.f32 (!%p968_p11), %v969_v2, %v746_v8  ;;  %v754_v27 = vld [vmem:[#allocation2 + $0x60] sm:$0xff] (!%p968_p11) }
 0x142   : > { %v747_v12 = vld [vmem:[#allocation2 + $0x28] sm:$0xff] (!%p968_p11)  ;;  %v777_v38 = vadd.f32 (!%p968_p11), %v969_v2, %v754_v27 }
 0x143   : > { %729 = vst [vmem:[#allocation2 + $0x38] sm:$0xff] %v713_v63  ;;  %737 = vst [vmem:[#allocation2 + $0x78] sm:$0xff] %v721_v0  ;;  %v770_v17 = vadd.f32 (!%p968_p11), %v969_v2, %v747_v12  ;;  %v785_v24 = vmax.f32 (!%p968_p11), %v769_v11, 0.0  ;;  %v755_v28 = vld [vmem:[#allocation2 + $0x68] sm:$0xff] (!%p968_p11) }
 0x144   : > { %v778_v41 = vadd.f32 %v969_v2, %v755_v28  ;;  %v793_v45 = vmax.f32 %v777_v38, 0.0 }
 0x145   : > { %v786_v29 = vmax.f32 %v770_v17, 0.0  ;;  %801 = vst [vmem:[%s1372_s3 + $0x20] sm:$0xff] %v785_v24 }
 0x146   : > { %v794_v47 = vmax.f32 %v778_v41, 0.0  ;;  %809 = vst [vmem:[%s1372_s3 + $0x60] sm:$0xff] %v793_v45 }
 0x147   : > { %802 = vst [vmem:[%s1372_s3 + $0x28] sm:$0xff] %v786_v29 }
 0x148   : > { %v748_v13 = vld [vmem:[#allocation2 + $0x30] sm:$0xff]  ;;  %810 = vst [vmem:[%s1372_s3 + $0x68] sm:$0xff] %v794_v47 }
 0x149   : > { %v771_v18 = vadd.f32 %v969_v2, %v748_v13  ;;  %v756_v33 = vld [vmem:[#allocation2 + $0x70] sm:$0xff] }
 0x14a   : > { %v749_v14 = vld [vmem:[#allocation2 + $0x38] sm:$0xff]  ;;  %v779_v42 = vadd.f32 %v969_v2, %v756_v33 }
 0x14b   : > { %v772_v25 = vadd.f32 %v969_v2, %v749_v14  ;;  %v787_v30 = vmax.f32 %v771_v18, 0.0  ;;  %v757_v34 = vld [vmem:[#allocation2 + $0x78] sm:$0xff] }
 0x14c   : > { %v780_v46 = vadd.f32 %v969_v2, %v757_v34  ;;  %v795_v48 = vmax.f32 %v779_v42, 0.0 }
 0x14d   : > { %v788_v35 = vmax.f32 %v772_v25, 0.0  ;;  %803 = vst [vmem:[%s1372_s3 + $0x30] sm:$0xff] %v787_v30 }
 0x14e   : > { %v796_v49 = vmax.f32 %v780_v46, 0.0  ;;  %811 = vst [vmem:[%s1372_s3 + $0x70] sm:$0xff] %v795_v48 }
 0x14f   : > { %804 = vst [vmem:[%s1372_s3 + $0x38] sm:$0xff] %v788_v35 }
 0x150   : > { %812 = vst [vmem:[%s1372_s3 + $0x78] sm:$0xff] %v796_v49 }
 0x151 PF: > { %s13_s16 = sadd.s32 1, %s1174_s16   ;;  %s1373_s12 = smov %s1162_s13 }
 0x152   : > { %p10_p12 = scmp.ge.s32.totalorder %s13_s16, 5   ;;  %s1374_s13 = smov %s1232_s20 }
 0x153   : > { %s1375_s14 = smov %s1170_s15  ;;  %s1376_s15 = smov %s1378_s17 }
 0x154   :  { %12 = sbr.rel (!%p10_p12) target bundleno = 3 (0x3), region = 119 }

// kernel: embeddingnet_forward.27
= control target key start
LH: loop header
LB: loop body
LE: loop exit
PB: predicated region body
PF: predicated region fallthrough
CT: control target
= control target key end

     0   :  { %s1313_s15 = smov 0   ;;  %s1315_s16 = smov 0   ;;  %s1551_s0 = inlined_call_operand.vmem [shape: bf16[128,768], index: 0, kind: input, shape index: {}]   ;;  %s1552_s1 = inlined_call_operand.vmem [shape: bf16[768,128], index: 1, kind: input, shape index: {}]   ;;  %s1553_s2 = inlined_call_operand.vmem [shape: f32[1,128], index: 2, kind: input, shape index: {}]   ;;  %s1554_s3 = inlined_call_operand.vmem [shape: f32[128,128], index: 3, kind: input, shape index: {}]   ;;  %s1555_s4 = inlined_call_operand.vmem [shape: f32[128,128], index: 4, kind: output, shape index: {}]  }
   0x1   :  { %s1317_s17 = smov 0   ;;  %s1319_s18 = smov 0  }
   0x2   :  { %s1321_s19 = smov 0  }
   0x3 LB: > { %s26_s20 = sadd.s32 1, %s1281_s18  ;;  %p49_p1 = scmp.ne.s32.totalorder %s1273_s16, %s1269_s15  ;;  %s1285_s19 = sphi %s1321_s19, %s14_s19   ;;  %s1281_s18 = sphi %s1319_s18, %s1559_s18   ;;  %s1277_s17 = sphi %s1317_s17, %s1558_s17   ;;  %s1273_s16 = sphi %s1315_s16, %s1557_s16   ;;  %s1269_s15 = sphi %s1313_s15, %s1556_s15  }
   0x4   : > { %p27_p0 = scmp.ge.s32.totalorder %s26_s20, 3  ;;  %p50_p2 = scmp.eq.s32.totalorder %s1285_s19, 0 }
   0x5   : > { %s42_s22 = sadd.s32 1, %s1273_s16  ;;  %p1038_p5 = scmp.ge.s32.totalorder %s1285_s19, 3 }
   0x6   : > { %s1561_s20 = smov (%p27_p0, %s26_s20), 0  ;;  %p51_p3 = por %p50_p2, %p49_p1 }
   0x7   : > { %s38_s21 = ssub.s32 %s1281_s18, %s1561_s20  ;;  %203 = sbr.rel (%p1038_p5) target bundleno = 26 (0x1a), region = 24 }
   0x8   : > { %p40_p4 = scmp.eq.s32.totalorder %s38_s21, 0 }
   0xa   : > { %s1348_s23 = scalar_select %p40_p4, %s1273_s16, %s42_s22  }
   0xe   : > { %206 = sbr.rel (!%p51_p3) target bundleno = 26 (0x1a), region = 28  ;;  %s208_s24 = sand.u32 (%p51_p3), 1, %s1273_s16  }
   0xf   : > { %s1085_s25 = sshll.u32 (%p51_p3), %s1281_s18, 3  ;;  %s1039_s26 = sshll.u32 (%p51_p3), %s208_s24, 7 }
  0x10   : > { %s1356_s29 = scalar_lea.vmem (%p51_p3), %s1551_s0, %s1085_s25  ;;  %s210_s30 = scalar_lea.vmem (%p51_p3), [#allocation3], %s1039_s26 }
  0x11   : > { %v274_v0 = vld [vmem:[%s1356_s29] sm:$0xff] (%p51_p3)  ;;  %v276_v1 = vld [vmem:[%s1356_s29 + $0x18] sm:$0xff] (%p51_p3)  ;;  %v278_v2 = vld [vmem:[%s1356_s29 + $0x30] sm:$0xff] (%p51_p3) }
  0x12   : > { %275 = vst [vmem:[%s210_s30] sm:$0xff] (%p51_p3), %v274_v0  ;;  %277 = vst [vmem:[%s210_s30 + $0x8] sm:$0xff] (%p51_p3), %v276_v1  ;;  %v280_v3 = vld [vmem:[%s1356_s29 + $0x48] sm:$0xff] (%p51_p3)  ;;  %v282_v4 = vld [vmem:[%s1356_s29 + $0x60] sm:$0xff] (%p51_p3) }
  0x13   : > { %279 = vst [vmem:[%s210_s30 + $0x10] sm:$0xff] (%p51_p3), %v278_v2  ;;  %v284_v5 = vld [vmem:[%s1356_s29 + $0x78] sm:$0xff] (%p51_p3)  ;;  %281 = vst [vmem:[%s210_s30 + $0x18] sm:$0xff] (%p51_p3), %v280_v3  ;;  %v286_v6 = vld [vmem:[%s1356_s29 + $0x90] sm:$0xff] (%p51_p3) }
  0x14   : > { %283 = vst [vmem:[%s210_s30 + $0x20] sm:$0xff] (%p51_p3), %v282_v4  ;;  %285 = vst [vmem:[%s210_s30 + $0x28] sm:$0xff] (%p51_p3), %v284_v5  ;;  %v288_v7 = vld [vmem:[%s1356_s29 + $0xa8] sm:$0xff] (%p51_p3)  ;;  %v290_v8 = vld [vmem:[%s1356_s29 + $0xc0] sm:$0xff] (%p51_p3) }
  0x15   : > { %287 = vst [vmem:[%s210_s30 + $0x30] sm:$0xff] %v286_v6  ;;  %289 = vst [vmem:[%s210_s30 + $0x38] sm:$0xff] %v288_v7  ;;  %v292_v9 = vld [vmem:[%s1356_s29 + $0xd8] sm:$0xff]  ;;  %v294_v10 = vld [vmem:[%s1356_s29 + $0xf0] sm:$0xff] }
  0x16   : > { %291 = vst [vmem:[%s210_s30 + $0x40] sm:$0xff] %v290_v8  ;;  %v296_v11 = vld [vmem:[%s1356_s29 + $0x108] sm:$0xff]  ;;  %293 = vst [vmem:[%s210_s30 + $0x48] sm:$0xff] %v292_v9  ;;  %v298_v12 = vld [vmem:[%s1356_s29 + $0x120] sm:$0xff] }
  0x17   : > { %295 = vst [vmem:[%s210_s30 + $0x50] sm:$0xff] %v294_v10  ;;  %297 = vst [vmem:[%s210_s30 + $0x58] sm:$0xff] %v296_v11  ;;  %v300_v13 = vld [vmem:[%s1356_s29 + $0x138] sm:$0xff]  ;;  %v302_v14 = vld [vmem:[%s1356_s29 + $0x150] sm:$0xff] }
  0x18   : > { %299 = vst [vmem:[%s210_s30 + $0x60] sm:$0xff] %v298_v12  ;;  %301 = vst [vmem:[%s210_s30 + $0x68] sm:$0xff] %v300_v13  ;;  %v304_v15 = vld [vmem:[%s1356_s29 + $0x168] sm:$0xff] }
  0x19   : > { %303 = vst [vmem:[%s210_s30 + $0x70] sm:$0xff] %v302_v14  ;;  %305 = vst [vmem:[%s210_s30 + $0x78] sm:$0xff] %v304_v15 }
  0x1a PF: > { %p1042_p6 = scmp.ge.s32.totalorder %s1285_s19, 1  ;;  %p322_p7 = scmp.lt.s32.totalorder %s1285_s19, 4 }
  0x1c   : > { %p323_p8 = pnand %p1042_p6, %p322_p7 }
  0x1d   : > { %s329_s5 = sand.u32 (!%p323_p8), 1, %s1269_s15   ;;  %s1044_s6 = sshll.u32 (!%p323_p8), %s1277_s17, 5 }
  0x1e   : > { %326 = sbr.rel (%p323_p8) target bundleno = 339 (0x153), region = 70  ;;  %s1043_s7 = sshll.u32 (!%p323_p8), %s329_s5, 7 }
  0x1f   : > { %p379_p9 = scmp.lt.s32.totalorder (!%p323_p8), %s1044_s6, 95  ;;  %s1383_s12 = scalar_lea.vmem (!%p323_p8), [#allocation3], %s1043_s7 }
  0x20   : > { %p1046_p10 = scmp.ne.s32.totalorder (!%p323_p8), %s1277_s17, 0 }
  0x25   : > { %s1563_s6 = smov (!%p379_p9, %s1044_s6), 95  ;;  %412 = sbr.rel (%p1046_p10) target bundleno = 47 (0x2f), region = 78 }
  0x26   : > { %s1045_s8 = sshll.u32 %s1563_s6, 2  ;;  %v1287_v16 = vmov (!%p1046_p10), 0.0  }
  0x27   : > { %s1381_s11 = scalar_lea.vmem %s1552_s1, %s1045_s8  ;;  %413 = vst [vmem:[#allocation2] sm:$0xff] (!%p1046_p10), %v1287_v16  ;;  %414 = vst [vmem:[#allocation2 + $0x8] sm:$0xff] (!%p1046_p10), %v1287_v16 }
  0x28   : > { %415 = vst [vmem:[#allocation2 + $0x10] sm:$0xff] (!%p1046_p10), %v1287_v16  ;;  %416 = vst [vmem:[#allocation2 + $0x18] sm:$0xff] (!%p1046_p10), %v1287_v16 }
  0x29   : > { %417 = vst [vmem:[#allocation2 + $0x20] sm:$0xff] (!%p1046_p10), %v1287_v16  ;;  %418 = vst [vmem:[#allocation2 + $0x28] sm:$0xff] (!%p1046_p10), %v1287_v16 }
  0x2a   : > { %419 = vst [vmem:[#allocation2 + $0x30] sm:$0xff] (!%p1046_p10), %v1287_v16  ;;  %420 = vst [vmem:[#allocation2 + $0x38] sm:$0xff] (!%p1046_p10), %v1287_v16 }
  0x2b   : > { %421 = vst [vmem:[#allocation2 + $0x40] sm:$0xff] (!%p1046_p10), %v1287_v16  ;;  %422 = vst [vmem:[#allocation2 + $0x48] sm:$0xff] (!%p1046_p10), %v1287_v16 }
  0x2c   : > { %423 = vst [vmem:[#allocation2 + $0x50] sm:$0xff] %v1287_v16  ;;  %424 = vst [vmem:[#allocation2 + $0x58] sm:$0xff] %v1287_v16 }
  0x2d   : > { %425 = vst [vmem:[#allocation2 + $0x60] sm:$0xff] %v1287_v16  ;;  %426 = vst [vmem:[#allocation2 + $0x68] sm:$0xff] %v1287_v16 }
  0x2e   : > { %427 = vst [vmem:[#allocation2 + $0x70] sm:$0xff] %v1287_v16  ;;  %428 = vst [vmem:[#allocation2 + $0x78] sm:$0xff] %v1287_v16 }
  0x2f PF: > { %v1207_v17 = vld [vmem:[%s1381_s11 + $0x40] sm:$0xff]   ;;  %v1209_v19 = vld [vmem:[%s1381_s11 + $0x48] sm:$0xff]   ;;  %v1211_v21 = vld [vmem:[%s1381_s11 + $0x50] sm:$0xff]   ;;  %p1079_p11 = scmp.ne.s32.totalorder %s1277_s17, 2 }
  0x30   : > { %v1208_v18 = vld [vmem:[%s1381_s11] sm:$0xff]   ;;  %1086 = vmatprep.subr.bf16.mxu0 %v1207_v17  ;;  %1150 = vmatprep.subr.bf16.mxu1 %v1207_v17  ;;  %v1210_v20 = vld [vmem:[%s1381_s11 + $0x8] sm:$0xff]   ;;  %v1212_v22 = vld [vmem:[%s1381_s11 + $0x10] sm:$0xff]  }
  0x31   : > { %1087 = vmatpush3.bf16.msra.mxu0 %v1208_v18  ;;  %1158 = vmatpush3.bf16.msra.mxu1 %v1208_v18  ;;  %v1213_v23 = vld [vmem:[%s1381_s11 + $0x58] sm:$0xff]   ;;  %v1215_v25 = vld [vmem:[%s1381_s11 + $0x60] sm:$0xff]   ;;  %v1217_v27 = vld [vmem:[%s1381_s11 + $0x68] sm:$0xff]  }
  0x32   : > { %1088 = vmatprep.subr.bf16.mxu0 %v1209_v19  ;;  %1151 = vmatprep.subr.bf16.mxu1 %v1209_v19  ;;  %v1214_v24 = vld [vmem:[%s1381_s11 + $0x18] sm:$0xff]   ;;  %v1216_v26 = vld [vmem:[%s1381_s11 + $0x20] sm:$0xff]   ;;  %v1218_v30 = vld [vmem:[%s1381_s11 + $0x28] sm:$0xff]  }
  0x33   : > { %v1225_v28 = vld [vmem:[%s1383_s12 + $0x4] ss:$8 sps:$4 sm:$0xff]   ;;  %v1219_v31 = vld [vmem:[%s1381_s11 + $0x70] sm:$0xff]   ;;  %v1221_v33 = vld [vmem:[%s1381_s11 + $0x78] sm:$0xff]  }
  0x34   : > { %v1228_v29 = vld [vmem:[%s1383_s12 + $0x44] ss:$8 sps:$4 sm:$0xff]   ;;  %701 = vmatprep.mubr.bf16.mxu0 %v1225_v28  ;;  %v1220_v32 = vld [vmem:[%s1381_s11 + $0x30] sm:$0xff]   ;;  %v1222_v34 = vld [vmem:[%s1381_s11 + $0x38] sm:$0xff]  }
  0x35   : > { %1089 = vmatpush3.bf16.msra.mxu0 %v1210_v20  ;;  %1159 = vmatpush3.bf16.msra.mxu1 %v1210_v20  ;;  %v1223_v35 = vld [vmem:[%s1383_s12] ss:$8 sps:$4 sm:$0xff]   ;;  %v1229_v37 = vld [vmem:[%s1383_s12 + $0x14] ss:$8 sps:$4 sm:$0xff]   ;;  %v1233_v39 = vld [vmem:[%s1383_s12 + $0x10] ss:$8 sps:$4 sm:$0xff]  }
  0x36   : > { %1090 = vmatprep.subr.bf16.mxu0 %v1211_v21  ;;  %1152 = vmatprep.subr.bf16.mxu1 %v1211_v21  ;;  %v1226_v36 = vld [vmem:[%s1383_s12 + $0x40] ss:$8 sps:$4 sm:$0xff]   ;;  %v1231_v38 = vld [vmem:[%s1383_s12 + $0x54] ss:$8 sps:$4 sm:$0xff]   ;;  %v1234_v40 = vld [vmem:[%s1383_s12 + $0x50] ss:$8 sps:$4 sm:$0xff]  }
  0x37   : > { %733 = vmatprep.mubr.bf16.mxu1 %v1228_v29  ;;  %v1235_v41 = vld [vmem:[%s1383_s12 + $0x24] ss:$8 sps:$4 sm:$0xff]   ;;  %v1239_v43 = vld [vmem:[%s1383_s12 + $0x20] ss:$8 sps:$4 sm:$0xff]   ;;  %v1241_v45 = vld [vmem:[%s1383_s12 + $0x34] ss:$8 sps:$4 sm:$0xff]  }
  0x38   : > { %v1237_v42 = vld [vmem:[%s1383_s12 + $0x64] ss:$8 sps:$4 sm:$0xff]   ;;  %v1240_v44 = vld [vmem:[%s1383_s12 + $0x60] ss:$8 sps:$4 sm:$0xff]   ;;  %v1243_v46 = vld [vmem:[%s1383_s12 + $0x74] ss:$8 sps:$4 sm:$0xff]  }
  0x39   : > { %1091 = vmatpush3.bf16.msra.mxu0 %v1212_v22  ;;  %1160 = vmatpush3.bf16.msra.mxu1 %v1212_v22  ;;  %v1245_v47 = vld [vmem:[%s1383_s12 + $0x30] ss:$8 sps:$4 sm:$0xff]   ;;  %v429_v51 = vld [vmem:[#allocation2] sm:$0xff]  ;;  %v430_v59 = vld [vmem:[#allocation2 + $0x8] sm:$0xff] }
  0x3a   : > { %1092 = vmatprep.subr.bf16.mxu0 %v1213_v23  ;;  %1153 = vmatprep.subr.bf16.mxu1 %v1213_v23  ;;  %v1246_v48 = vld [vmem:[%s1383_s12 + $0x70] ss:$8 sps:$4 sm:$0xff]   ;;  %v437_v53 = vld [vmem:[#allocation2 + $0x40] sm:$0xff]  ;;  %v438_v61 = vld [vmem:[#allocation2 + $0x48] sm:$0xff] }
  0x3b   : > { %v431_v7 = vld [vmem:[#allocation2 + $0x10] sm:$0xff]  ;;  %v432_v15 = vld [vmem:[#allocation2 + $0x18] sm:$0xff]  ;;  %v441_v29 = vld [vmem:[#allocation2 + $0x60] sm:$0xff] }
  0x3c   : > { %v439_v9 = vld [vmem:[#allocation2 + $0x50] sm:$0xff]  ;;  %v440_v17 = vld [vmem:[#allocation2 + $0x58] sm:$0xff] }
  0x3d   : > { %1093 = vmatpush3.bf16.msra.mxu0 %v1214_v24  ;;  %1161 = vmatpush3.bf16.msra.mxu1 %v1214_v24 }
  0x3e   : > { %1094 = vmatprep.subr.bf16.mxu0 %v1215_v25  ;;  %1154 = vmatprep.subr.bf16.mxu1 %v1215_v25 }
  0x41   : > { %1095 = vmatpush3.bf16.msra.mxu0 %v1216_v26  ;;  %1162 = vmatpush3.bf16.msra.mxu1 %v1216_v26 }
  0x42   : > { %1096 = vmatprep.subr.bf16.mxu0 %v1217_v27  ;;  %1155 = vmatprep.subr.bf16.mxu1 %v1217_v27  ;;  %v433_v27 = vld [vmem:[#allocation2 + $0x20] sm:$0xff] }
  0x45   : > { %1097 = vmatpush3.bf16.msra.mxu0 %v1218_v30  ;;  %1163 = vmatpush3.bf16.msra.mxu1 %v1218_v30 }
  0x46   : > { %1098 = vmatprep.subr.bf16.mxu0 %v1219_v31  ;;  %1156 = vmatprep.subr.bf16.mxu1 %v1219_v31 }
  0x49   : > { %1099 = vmatpush3.bf16.msra.mxu0 %v1220_v32  ;;  %1164 = vmatpush3.bf16.msra.mxu1 %v1220_v32 }
  0x4a   : > { %1100 = vmatprep.subr.bf16.mxu0 %v1221_v33  ;;  %1157 = vmatprep.subr.bf16.mxu1 %v1221_v33 }
  0x4d   : > { %1101 = vmatpush3.bf16.msra.mxu0 %v1222_v34  ;;  %1165 = vmatpush3.bf16.msra.mxu1 %v1222_v34 }
  0x50   : > { %702 = vmatmul.mubr.bf16.vlgmr.msra.gmra.mrb[0].mxu0 %v1223_v35  ;;  %734 = vmatmul.mubr.bf16.vlgmr.msra.gmra.mrb[0].mxu1 %v1226_v36  ;;  %v434_v35 = vld [vmem:[#allocation2 + $0x28] sm:$0xff] }
  0x51   : > { %709 = vmatprep.mubr.bf16.mxu0 %v1229_v37  ;;  %741 = vmatprep.mubr.bf16.mxu1 %v1231_v38  ;;  %v442_v37 = vld [vmem:[#allocation2 + $0x68] sm:$0xff] }
  0x58   : > { %710 = vmatmul.mubr.bf16.gmra.mrb[4].mxu0 %v1233_v39  ;;  %742 = vmatmul.mubr.bf16.gmra.mrb[4].mxu1 %v1234_v40 }
  0x59   : > { %717 = vmatprep.mubr.bf16.mxu0 %v1235_v41  ;;  %749 = vmatprep.mubr.bf16.mxu1 %v1237_v42 }
  0x60   : > { %718 = vmatmul.mubr.bf16.gmra.mrb[8].mxu0 %v1239_v43  ;;  %750 = vmatmul.mubr.bf16.gmra.mrb[8].mxu1 %v1240_v44 }
  0x61   : > { %725 = vmatprep.mubr.bf16.mxu0 %v1241_v45  ;;  %757 = vmatprep.mubr.bf16.mxu1 %v1243_v46 }
  0x68   : > { %726 = vmatmul.mubr.bf16.gmra.mrb[12].mxu0 %v1245_v47  ;;  %758 = vmatmul.mubr.bf16.gmra.mrb[12].mxu1 %v1246_v48  ;;  %v435_v47 = vld [vmem:[#allocation2 + $0x30] sm:$0xff] }
 0x123   : > { %v1102_v49 = vpop.f32.mrb[0].mxu0  ;;  %v1126_v50 = vpop.f32.mrb[0].mxu1 }
 0x124   : > { %v1103_v52 = vpop.f32.mrb[1].mxu0  ;;  %v1127_v54 = vpop.f32.mrb[1].mxu1 }
 0x125   : > { %v1104_v55 = vadd.f32 %v1103_v52, %v1102_v49  ;;  %v1128_v56 = vadd.f32 %v1127_v54, %v1126_v50  ;;  %v1105_v57 = vpop.f32.mrb[2].mxu0  ;;  %v1129_v58 = vpop.f32.mrb[2].mxu1  ;;  %v443_v49 = vld [vmem:[#allocation2 + $0x70] sm:$0xff] }
 0x126   : > { %v1106_v60 = vpop.f32.mrb[3].mxu0  ;;  %v1130_v62 = vpop.f32.mrb[3].mxu1 }
 0x127   : > { %v766_v63 = vadd.f32 %v1104_v55, %v429_v51  ;;  %v774_v0 = vadd.f32 %v1128_v56, %v437_v53  ;;  %v1107_v1 = vadd.f32 %v1106_v60, %v1105_v57  ;;  %v1131_v2 = vadd.f32 %v1130_v62, %v1129_v58  ;;  %v436_v55 = vld [vmem:[#allocation2 + $0x38] sm:$0xff] }
 0x128   : > { %v444_v57 = vld [vmem:[#allocation2 + $0x78] sm:$0xff] }
 0x129   : > { %782 = vst [vmem:[#allocation2] sm:$0xff] %v766_v63  ;;  %790 = vst [vmem:[#allocation2 + $0x40] sm:$0xff] %v774_v0  ;;  %v767_v3 = vadd.f32 %v1107_v1, %v430_v59  ;;  %v775_v4 = vadd.f32 %v1131_v2, %v438_v61  ;;  %v1422_v2 = vld [vmem:[%s1553_s2] ss:$0 sm:$0xff] (!%p1079_p11) }
 0x12b   : > { %783 = vst [vmem:[#allocation2 + $0x8] sm:$0xff] %v767_v3  ;;  %791 = vst [vmem:[#allocation2 + $0x48] sm:$0xff] %v775_v4  ;;  %v1108_v5 = vpop.f32.mrb[4].mxu0  ;;  %v1132_v6 = vpop.f32.mrb[4].mxu1  ;;  %v841_v3 = vld [vmem:[%s1554_s3] sm:$0xff] (!%p1079_p11) }
 0x12c   : > { %v1109_v8 = vpop.f32.mrb[5].mxu0  ;;  %v1133_v10 = vpop.f32.mrb[5].mxu1 }
 0x12d   : > { %v1110_v11 = vadd.f32 %v1109_v8, %v1108_v5  ;;  %v1134_v12 = vadd.f32 %v1133_v10, %v1132_v6  ;;  %v1111_v13 = vpop.f32.mrb[6].mxu0  ;;  %v1135_v14 = vpop.f32.mrb[6].mxu1  ;;  %v842_v6 = vld [vmem:[%s1554_s3 + $0x8] sm:$0xff] (!%p1079_p11)  ;;  %v843_v10 = vld [vmem:[%s1554_s3 + $0x10] sm:$0xff] (!%p1079_p11) }
 0x12e   : > { %v1112_v16 = vpop.f32.mrb[7].mxu0  ;;  %v1136_v18 = vpop.f32.mrb[7].mxu1 }
 0x12f   : > { %v768_v19 = vadd.f32 %v1110_v11, %v431_v7  ;;  %v776_v20 = vadd.f32 %v1134_v12, %v439_v9  ;;  %v1113_v21 = vadd.f32 %v1112_v16, %v1111_v13  ;;  %v1137_v22 = vadd.f32 %v1136_v18, %v1135_v14  ;;  %v844_v12 = vld [vmem:[%s1554_s3 + $0x18] sm:$0xff] (!%p1079_p11)  ;;  %v845_v16 = vld [vmem:[%s1554_s3 + $0x20] sm:$0xff] (!%p1079_p11) }
 0x130   : > { %v802_v1 = vld [vmem:[#allocation2] sm:$0xff] (!%p1079_p11) }
 0x131   : > { %784 = vst [vmem:[#allocation2 + $0x10] sm:$0xff] %v768_v19  ;;  %792 = vst [vmem:[#allocation2 + $0x50] sm:$0xff] %v776_v20  ;;  %v769_v23 = vadd.f32 %v1113_v21, %v432_v15  ;;  %v777_v24 = vadd.f32 %v1137_v22, %v440_v17  ;;  %v825_v4 = vadd.f32 (!%p1079_p11), %v1422_v2, %v802_v1  ;;  %v846_v22 = vld [vmem:[%s1554_s3 + $0x28] sm:$0xff] (!%p1079_p11) }
 0x132   : > { %v803_v5 = vld [vmem:[#allocation2 + $0x8] sm:$0xff] (!%p1079_p11) }
 0x133   : > { %785 = vst [vmem:[#allocation2 + $0x18] sm:$0xff] %v769_v23  ;;  %793 = vst [vmem:[#allocation2 + $0x58] sm:$0xff] %v777_v24  ;;  %v1114_v25 = vpop.f32.mrb[8].mxu0  ;;  %v1138_v26 = vpop.f32.mrb[8].mxu1  ;;  %v826_v8 = vadd.f32 (!%p1079_p11), %v1422_v2, %v803_v5  ;;  %v857_v13 = vadd.f32 (!%p1079_p11), %v841_v3, %v825_v4  ;;  %v847_v24 = vld [vmem:[%s1554_s3 + $0x30] sm:$0xff] (!%p1079_p11) }
 0x134   : > { %v1115_v28 = vpop.f32.mrb[9].mxu0  ;;  %v1139_v30 = vpop.f32.mrb[9].mxu1 }
 0x135   : > { %v1116_v31 = vadd.f32 %v1115_v28, %v1114_v25  ;;  %v1140_v32 = vadd.f32 %v1139_v30, %v1138_v26  ;;  %v1117_v33 = vpop.f32.mrb[10].mxu0  ;;  %v1141_v34 = vpop.f32.mrb[10].mxu1  ;;  %v858_v18 = vadd.f32 (!%p1079_p11), %v842_v6, %v826_v8  ;;  %v873_v25 = vmax.f32 (!%p1079_p11), %v857_v13, 0.0  ;;  %v810_v30 = vld [vmem:[#allocation2 + $0x40] sm:$0xff] (!%p1079_p11) }
 0x136   : > { %v1118_v36 = vpop.f32.mrb[11].mxu0  ;;  %v1142_v38 = vpop.f32.mrb[11].mxu1 }
 0x137   : > { %v770_v39 = vadd.f32 %v1116_v31, %v433_v27  ;;  %v778_v40 = vadd.f32 %v1140_v32, %v441_v29  ;;  %v1119_v41 = vadd.f32 %v1118_v36, %v1117_v33  ;;  %v1143_v42 = vadd.f32 %v1142_v38, %v1141_v34  ;;  %v848_v29 = vld [vmem:[%s1554_s3 + $0x38] sm:$0xff] (!%p1079_p11)  ;;  %v811_v36 = vld [vmem:[#allocation2 + $0x48] sm:$0xff] (!%p1079_p11)  ;;  %889 = vst [vmem:[%s1555_s4] sm:$0xff] (!%p1079_p11), %v873_v25 }
 0x138   : > { %v804_v7 = vld [vmem:[#allocation2 + $0x10] sm:$0xff] (!%p1079_p11)  ;;  %v874_v31 = vmax.f32 (!%p1079_p11), %v858_v18, 0.0 }
 0x139   : > { %786 = vst [vmem:[#allocation2 + $0x20] sm:$0xff] %v770_v39  ;;  %794 = vst [vmem:[#allocation2 + $0x60] sm:$0xff] %v778_v40  ;;  %v771_v43 = vadd.f32 %v1119_v41, %v434_v35  ;;  %v779_v44 = vadd.f32 %v1143_v42, %v442_v37  ;;  %v827_v9 = vadd.f32 (!%p1079_p11), %v1422_v2, %v804_v7  ;;  %v849_v35 = vld [vmem:[%s1554_s3 + $0x40] sm:$0xff] (!%p1079_p11)  ;;  %v850_v37 = vld [vmem:[%s1554_s3 + $0x48] sm:$0xff] (!%p1079_p11) }
 0x13a   : > { %v805_v11 = vld [vmem:[#allocation2 + $0x18] sm:$0xff] (!%p1079_p11)  ;;  %v833_v41 = vadd.f32 (!%p1079_p11), %v1422_v2, %v810_v30  ;;  %v812_v42 = vld [vmem:[#allocation2 + $0x50] sm:$0xff] (!%p1079_p11)  ;;  %890 = vst [vmem:[%s1555_s4 + $0x8] sm:$0xff] (!%p1079_p11), %v874_v31 }
 0x13b   : > { %787 = vst [vmem:[#allocation2 + $0x28] sm:$0xff] %v771_v43  ;;  %795 = vst [vmem:[#allocation2 + $0x68] sm:$0xff] %v779_v44  ;;  %v1120_v45 = vpop.f32.mrb[12].mxu0  ;;  %v1144_v46 = vpop.f32.mrb[12].mxu1  ;;  %v828_v14 = vadd.f32 (!%p1079_p11), %v1422_v2, %v805_v11  ;;  %v859_v19 = vadd.f32 (!%p1079_p11), %v843_v10, %v827_v9  ;;  %v851_v43 = vld [vmem:[%s1554_s3 + $0x50] sm:$0xff] (!%p1079_p11)  ;;  %v813_v44 = vld [vmem:[#allocation2 + $0x58] sm:$0xff] (!%p1079_p11) }
 0x13c   : > { %v1121_v48 = vpop.f32.mrb[13].mxu0  ;;  %v1145_v50 = vpop.f32.mrb[13].mxu1  ;;  %v856_v10 = vld [vmem:[%s1554_s3 + $0x78] sm:$0xff] (!%p1079_p11) }
 0x13d   : > { %v1122_v51 = vadd.f32 %v1121_v48, %v1120_v45  ;;  %v1146_v52 = vadd.f32 %v1145_v50, %v1144_v46  ;;  %v1123_v53 = vpop.f32.mrb[14].mxu0  ;;  %v1147_v54 = vpop.f32.mrb[14].mxu1  ;;  %801 = sbr.rel (%p1079_p11) target bundleno = 339 (0x153), region = 82  ;;  %v860_v26 = vadd.f32 (!%p1079_p11), %v844_v12, %v828_v14  ;;  %v875_v32 = vmax.f32 (!%p1079_p11), %v859_v19, 0.0 }
 0x13e   : > { %v1124_v56 = vpop.f32.mrb[15].mxu0  ;;  %v1148_v58 = vpop.f32.mrb[15].mxu1  ;;  %v835_v48 = vadd.f32 (!%p1079_p11), %v1422_v2, %v812_v42 }
 0x13f   : > { %v772_v59 = vadd.f32 %v1122_v51, %v435_v47  ;;  %v780_v60 = vadd.f32 %v1146_v52, %v443_v49  ;;  %v1125_v61 = vadd.f32 %v1124_v56, %v1123_v53  ;;  %v1149_v62 = vadd.f32 %v1148_v58, %v1147_v54  ;;  %891 = vst [vmem:[%s1555_s4 + $0x10] sm:$0xff] (!%p1079_p11), %v875_v32  ;;  %v852_v49 = vld [vmem:[%s1554_s3 + $0x58] sm:$0xff] (!%p1079_p11)  ;;  %v853_v51 = vld [vmem:[%s1554_s3 + $0x60] sm:$0xff] (!%p1079_p11) }
 0x140   : > { %v806_v15 = vld [vmem:[#allocation2 + $0x20] sm:$0xff] (!%p1079_p11)  ;;  %v876_v38 = vmax.f32 (!%p1079_p11), %v860_v26, 0.0  ;;  %v834_v47 = vadd.f32 (!%p1079_p11), %v1422_v2, %v811_v36  ;;  %v865_v54 = vadd.f32 (!%p1079_p11), %v849_v35, %v833_v41 }
 0x141   : > { %788 = vst [vmem:[#allocation2 + $0x30] sm:$0xff] %v772_v59  ;;  %796 = vst [vmem:[#allocation2 + $0x70] sm:$0xff] %v780_v60  ;;  %v773_v63 = vadd.f32 %v1125_v61, %v436_v55  ;;  %v781_v0 = vadd.f32 %v1149_v62, %v444_v57  ;;  %v829_v20 = vadd.f32 (!%p1079_p11), %v1422_v2, %v806_v15  ;;  %v814_v50 = vld [vmem:[#allocation2 + $0x60] sm:$0xff] (!%p1079_p11)  ;;  %v854_v57 = vld [vmem:[%s1554_s3 + $0x68] sm:$0xff] (!%p1079_p11) }
 0x142   : > { %v807_v17 = vld [vmem:[#allocation2 + $0x28] sm:$0xff] (!%p1079_p11)  ;;  %892 = vst [vmem:[%s1555_s4 + $0x18] sm:$0xff] (!%p1079_p11), %v876_v38  ;;  %v836_v55 = vadd.f32 (!%p1079_p11), %v1422_v2, %v813_v44  ;;  %v866_v59 = vadd.f32 (!%p1079_p11), %v850_v37, %v834_v47  ;;  %v867_v60 = vadd.f32 (!%p1079_p11), %v851_v43, %v835_v48  ;;  %v837_v61 = vadd.f32 (!%p1079_p11), %v1422_v2, %v814_v50 }
 0x143   : > { %789 = vst [vmem:[#allocation2 + $0x38] sm:$0xff] %v773_v63  ;;  %797 = vst [vmem:[#allocation2 + $0x78] sm:$0xff] %v781_v0  ;;  %v830_v21 = vadd.f32 (!%p1079_p11), %v1422_v2, %v807_v17  ;;  %v861_v33 = vadd.f32 (!%p1079_p11), %v845_v16, %v829_v20  ;;  %v815_v56 = vld [vmem:[#allocation2 + $0x68] sm:$0xff] (!%p1079_p11)  ;;  %v855_v63 = vld [vmem:[%s1554_s3 + $0x70] sm:$0xff] (!%p1079_p11)  ;;  %v881_v3 = vmax.f32 (!%p1079_p11), %v865_v54, 0.0 }
 0x144   : > { %v838_v62 = vadd.f32 %v1422_v2, %v815_v56  ;;  %v868_v4 = vadd.f32 %v852_v49, %v836_v55  ;;  %v882_v6 = vmax.f32 %v866_v59, 0.0  ;;  %v883_v7 = vmax.f32 %v867_v60, 0.0 }
 0x145   : > { %v862_v34 = vadd.f32 %v846_v22, %v830_v21  ;;  %v877_v45 = vmax.f32 %v861_v33, 0.0  ;;  %v869_v8 = vadd.f32 %v853_v51, %v837_v61  ;;  %897 = vst [vmem:[%s1555_s4 + $0x40] sm:$0xff] %v881_v3 }
 0x146   : > { %v870_v9 = vadd.f32 %v854_v57, %v838_v62  ;;  %v884_v11 = vmax.f32 %v868_v4, 0.0  ;;  %898 = vst [vmem:[%s1555_s4 + $0x48] sm:$0xff] %v882_v6  ;;  %899 = vst [vmem:[%s1555_s4 + $0x50] sm:$0xff] %v883_v7 }
 0x147   : > { %v878_v46 = vmax.f32 %v862_v34, 0.0  ;;  %893 = vst [vmem:[%s1555_s4 + $0x20] sm:$0xff] %v877_v45  ;;  %v885_v14 = vmax.f32 %v869_v8, 0.0 }
 0x148   : > { %v808_v23 = vld [vmem:[#allocation2 + $0x30] sm:$0xff]  ;;  %v886_v15 = vmax.f32 %v870_v9, 0.0  ;;  %900 = vst [vmem:[%s1555_s4 + $0x58] sm:$0xff] %v884_v11 }
 0x149   : > { %v831_v27 = vadd.f32 %v1422_v2, %v808_v23  ;;  %v816_v58 = vld [vmem:[#allocation2 + $0x70] sm:$0xff]  ;;  %894 = vst [vmem:[%s1555_s4 + $0x28] sm:$0xff] %v878_v46  ;;  %901 = vst [vmem:[%s1555_s4 + $0x60] sm:$0xff] %v885_v14 }
 0x14a   : > { %v809_v28 = vld [vmem:[#allocation2 + $0x38] sm:$0xff]  ;;  %v839_v5 = vadd.f32 %v1422_v2, %v816_v58  ;;  %902 = vst [vmem:[%s1555_s4 + $0x68] sm:$0xff] %v886_v15 }
 0x14b   : > { %v863_v39 = vadd.f32 %v847_v24, %v831_v27  ;;  %v832_v40 = vadd.f32 %v1422_v2, %v809_v28  ;;  %v817_v0 = vld [vmem:[#allocation2 + $0x78] sm:$0xff] }
 0x14c   : > { %v871_v12 = vadd.f32 %v855_v63, %v839_v5  ;;  %v840_v13 = vadd.f32 %v1422_v2, %v817_v0 }
 0x14d   : > { %v879_v52 = vmax.f32 %v863_v39, 0.0  ;;  %v864_v53 = vadd.f32 %v848_v29, %v832_v40 }
 0x14e   : > { %v887_v16 = vmax.f32 %v871_v12, 0.0  ;;  %v872_v17 = vadd.f32 %v856_v10, %v840_v13 }
 0x14f   : > { %895 = vst [vmem:[%s1555_s4 + $0x30] sm:$0xff] %v879_v52  ;;  %v880_v1 = vmax.f32 %v864_v53, 0.0 }
 0x150   : > { %903 = vst [vmem:[%s1555_s4 + $0x70] sm:$0xff] %v887_v16  ;;  %v888_v2 = vmax.f32 %v872_v17, 0.0 }
 0x151   : > { %896 = vst [vmem:[%s1555_s4 + $0x38] sm:$0xff] %v880_v1 }
 0x152   : > { %904 = vst [vmem:[%s1555_s4 + $0x78] sm:$0xff] %v888_v2 }
 0x153 PF: > { %s14_s19 = sadd.s32 1, %s1285_s19   ;;  %s1556_s15 = smov %s1273_s16 }
 0x154   : > { %p11_p12 = scmp.ge.s32.totalorder %s14_s19, 5   ;;  %s1557_s16 = smov %s1348_s23 }
 0x155   : > { %s1558_s17 = smov %s1281_s18  ;;  %s1559_s18 = smov %s1561_s20 }
 0x156   :  { %13 = sbr.rel (!%p11_p12) target bundleno = 3 (0x3), region = 126 }

// kernel: embeddingnet_forward.30
= control target key start
LH: loop header
LB: loop body
LE: loop exit
PB: predicated region body
PF: predicated region fallthrough
CT: control target
= control target key end

     0   :  { %s867_s12 = smov 0   ;;  %s869_s13 = smov 0   ;;  %s973_s0 = inlined_call_operand.vmem [shape: bf16[32,768], index: 0, kind: input, shape index: {}]   ;;  %s974_s1 = inlined_call_operand.vmem [shape: bf16[768,128], index: 1, kind: input, shape index: {}]   ;;  %s975_s2 = inlined_call_operand.vmem [shape: f32[1,128], index: 2, kind: input, shape index: {}]   ;;  %s976_s3 = inlined_call_operand.vmem [shape: f32[32,128], index: 3, kind: output, shape index: {}]  }
   0x1   :  { %s871_s14 = smov 0   ;;  %s873_s15 = smov 0  }
   0x2   :  { %s875_s16 = smov 0  }
   0x3 LB: > { %s25_s17 = sadd.s32 1, %s840_s15  ;;  %p48_p1 = scmp.ne.s32.totalorder %s832_s13, %s828_s12  ;;  %s844_s16 = sphi %s875_s16, %s13_s16   ;;  %s840_s15 = sphi %s873_s15, %s980_s15   ;;  %s836_s14 = sphi %s871_s14, %s979_s14   ;;  %s832_s13 = sphi %s869_s13, %s978_s13   ;;  %s828_s12 = sphi %s867_s12, %s977_s12  }
   0x4   : > { %p26_p0 = scmp.ge.s32.totalorder %s25_s17, 3  ;;  %p49_p2 = scmp.eq.s32.totalorder %s844_s16, 0 }
   0x5   : > { %s41_s19 = sadd.s32 1, %s832_s13  ;;  %p663_p5 = scmp.ge.s32.totalorder %s844_s16, 3 }
   0x6   : > { %s982_s17 = smov (%p26_p0, %s25_s17), 0  ;;  %p50_p3 = por %p49_p2, %p48_p1 }
   0x7   : > { %s37_s18 = ssub.s32 %s840_s15, %s982_s17  ;;  %162 = sbr.rel (%p663_p5) target bundleno = 21 (0x15), region = 20 }
   0x8   : > { %p39_p4 = scmp.eq.s32.totalorder %s37_s18, 0 }
   0xa   : > { %s902_s20 = scalar_select %p39_p4, %s832_s13, %s41_s19  }
   0xe   : > { %165 = sbr.rel (!%p50_p3) target bundleno = 21 (0x15), region = 24  ;;  %s167_s21 = sand.u32 (%p50_p3), 1, %s832_s13  }
   0xf   : > { %s698_s22 = sshll.u32 (%p50_p3), %s840_s15, 3  ;;  %s664_s23 = sshll.u32 (%p50_p3), %s167_s21, 5 }
  0x10   : > { %s175_s26 = scalar_lea.vmem (%p50_p3), %s973_s0, %s698_s22  ;;  %s169_s27 = scalar_lea.vmem (%p50_p3), [#allocation3], %s664_s23 }
  0x11   : > { %v209_v0 = vld [vmem:[%s175_s26] sm:$0xff] (%p50_p3)  ;;  %v211_v1 = vld [vmem:[%s175_s26 + $0x18] sm:$0xff] (%p50_p3)  ;;  %v213_v2 = vld [vmem:[%s175_s26 + $0x30] sm:$0xff] (%p50_p3) }
  0x12   : > { %210 = vst [vmem:[%s169_s27] sm:$0xff] (%p50_p3), %v209_v0  ;;  %212 = vst [vmem:[%s169_s27 + $0x8] sm:$0xff] (%p50_p3), %v211_v1  ;;  %v215_v3 = vld [vmem:[%s175_s26 + $0x48] sm:$0xff] (%p50_p3) }
  0x13   : > { %214 = vst [vmem:[%s169_s27 + $0x10] sm:$0xff] (%p50_p3), %v213_v2  ;;  %216 = vst [vmem:[%s169_s27 + $0x18] sm:$0xff] (%p50_p3), %v215_v3 }
  0x15 PF: > { %p667_p6 = scmp.ge.s32.totalorder %s844_s16, 1  ;;  %p233_p7 = scmp.lt.s32.totalorder %s844_s16, 4 }
  0x17   : > { %p234_p8 = pnand %p667_p6, %p233_p7 }
  0x18   : > { %s240_s28 = sand.u32 (!%p234_p8), 1, %s828_s12   ;;  %s669_s29 = sshll.u32 (!%p234_p8), %s836_s14, 5 }
  0x19   : > { %237 = sbr.rel (%p234_p8) target bundleno = 304 (0x130), region = 66  ;;  %s668_s30 = sshll.u32 (!%p234_p8), %s240_s28, 5 }
  0x1a   : > { %p280_p9 = scmp.lt.s32.totalorder (!%p234_p8), %s669_s29, 95  ;;  %s919_s8 = scalar_lea.vmem (!%p234_p8), [#allocation3], %s668_s30 }
  0x1b   : > { %p671_p10 = scmp.ne.s32.totalorder (!%p234_p8), %s836_s14, 0 }
  0x20   : > { %s984_s29 = smov (!%p280_p9, %s669_s29), 95  ;;  %304 = sbr.rel (%p671_p10) target bundleno = 39 (0x27), region = 74 }
  0x21   : > { %s670_s4 = sshll.u32 %s984_s29, 2  ;;  %v846_v4 = vmov (!%p671_p10), 0.0  }
  0x22   : > { %s917_s7 = scalar_lea.vmem %s974_s1, %s670_s4  ;;  %305 = vst [vmem:[#allocation2] sm:$0xff] (!%p671_p10), %v846_v4  ;;  %306 = vst [vmem:[#allocation2 + $0x8] sm:$0xff] (!%p671_p10), %v846_v4 }
  0x23   : > { %307 = vst [vmem:[#allocation2 + $0x10] sm:$0xff] (!%p671_p10), %v846_v4  ;;  %308 = vst [vmem:[#allocation2 + $0x18] sm:$0xff] (!%p671_p10), %v846_v4 }
  0x27 PF: > { %v784_v5 = vld [vmem:[%s917_s7 + $0x40] sm:$0xff]   ;;  %v786_v7 = vld [vmem:[%s917_s7 + $0x48] sm:$0xff]   ;;  %v788_v9 = vld [vmem:[%s917_s7 + $0x50] sm:$0xff]   ;;  %p692_p11 = scmp.ne.s32.totalorder %s836_s14, 2 }
  0x28   : > { %v785_v6 = vld [vmem:[%s917_s7] sm:$0xff]   ;;  %699 = vmatprep.subr.bf16.mxu0 %v784_v5  ;;  %727 = vmatprep.subr.bf16.mxu1 %v784_v5  ;;  %v787_v8 = vld [vmem:[%s917_s7 + $0x8] sm:$0xff]   ;;  %v789_v10 = vld [vmem:[%s917_s7 + $0x10] sm:$0xff]  }
  0x29   : > { %700 = vmatpush3.bf16.msra.mxu0 %v785_v6  ;;  %735 = vmatpush3.bf16.msra.mxu1 %v785_v6  ;;  %v790_v11 = vld [vmem:[%s917_s7 + $0x58] sm:$0xff]   ;;  %v792_v13 = vld [vmem:[%s917_s7 + $0x60] sm:$0xff]   ;;  %v794_v15 = vld [vmem:[%s917_s7 + $0x68] sm:$0xff]  }
  0x2a   : > { %701 = vmatprep.subr.bf16.mxu0 %v786_v7  ;;  %728 = vmatprep.subr.bf16.mxu1 %v786_v7  ;;  %v791_v12 = vld [vmem:[%s917_s7 + $0x18] sm:$0xff]   ;;  %v793_v14 = vld [vmem:[%s917_s7 + $0x20] sm:$0xff]   ;;  %v795_v18 = vld [vmem:[%s917_s7 + $0x28] sm:$0xff]  }
  0x2b   : > { %v802_v16 = vld [vmem:[%s919_s8 + $0x4] ss:$8 sps:$4 sm:$0xff]   ;;  %v805_v17 = vld [vmem:[%s919_s8 + $0x14] ss:$8 sps:$4 sm:$0xff]   ;;  %v800_v23 = vld [vmem:[%s919_s8] ss:$8 sps:$4 sm:$0xff]  }
  0x2c   : > { %v796_v19 = vld [vmem:[%s917_s7 + $0x70] sm:$0xff]   ;;  %497 = vmatprep.mubr.bf16.mxu0 %v802_v16  ;;  %505 = vmatprep.mubr.bf16.mxu1 %v805_v17  ;;  %v798_v21 = vld [vmem:[%s917_s7 + $0x78] sm:$0xff]   ;;  %v309_v27 = vld [vmem:[#allocation2] sm:$0xff] }
  0x2d   : > { %702 = vmatpush3.bf16.msra.mxu0 %v787_v8  ;;  %736 = vmatpush3.bf16.msra.mxu1 %v787_v8  ;;  %v797_v20 = vld [vmem:[%s917_s7 + $0x30] sm:$0xff]   ;;  %v799_v22 = vld [vmem:[%s917_s7 + $0x38] sm:$0xff]   ;;  %v310_v35 = vld [vmem:[#allocation2 + $0x8] sm:$0xff] }
  0x2e   : > { %703 = vmatprep.subr.bf16.mxu0 %v788_v9  ;;  %729 = vmatprep.subr.bf16.mxu1 %v788_v9  ;;  %v803_v24 = vld [vmem:[%s919_s8 + $0x10] ss:$8 sps:$4 sm:$0xff]   ;;  %v693_v46 = vld [vmem:[%s975_s2] ss:$0 sm:$0xff] (!%p692_p11) }
  0x2f   : > { %v311_v29 = vld [vmem:[#allocation2 + $0x10] sm:$0xff]  ;;  %v312_v37 = vld [vmem:[#allocation2 + $0x18] sm:$0xff] }
  0x31   : > { %704 = vmatpush3.bf16.msra.mxu0 %v789_v10  ;;  %737 = vmatpush3.bf16.msra.mxu1 %v789_v10 }
  0x32   : > { %705 = vmatprep.subr.bf16.mxu0 %v790_v11  ;;  %730 = vmatprep.subr.bf16.mxu1 %v790_v11 }
  0x35   : > { %706 = vmatpush3.bf16.msra.mxu0 %v791_v12  ;;  %738 = vmatpush3.bf16.msra.mxu1 %v791_v12 }
  0x36   : > { %707 = vmatprep.subr.bf16.mxu0 %v792_v13  ;;  %731 = vmatprep.subr.bf16.mxu1 %v792_v13 }
  0x39   : > { %708 = vmatpush3.bf16.msra.mxu0 %v793_v14  ;;  %739 = vmatpush3.bf16.msra.mxu1 %v793_v14 }
  0x3a   : > { %709 = vmatprep.subr.bf16.mxu0 %v794_v15  ;;  %732 = vmatprep.subr.bf16.mxu1 %v794_v15 }
  0x3d   : > { %710 = vmatpush3.bf16.msra.mxu0 %v795_v18  ;;  %740 = vmatpush3.bf16.msra.mxu1 %v795_v18 }
  0x3e   : > { %711 = vmatprep.subr.bf16.mxu0 %v796_v19  ;;  %733 = vmatprep.subr.bf16.mxu1 %v796_v19 }
  0x41   : > { %712 = vmatpush3.bf16.msra.mxu0 %v797_v20  ;;  %741 = vmatpush3.bf16.msra.mxu1 %v797_v20 }
  0x42   : > { %713 = vmatprep.subr.bf16.mxu0 %v798_v21  ;;  %734 = vmatprep.subr.bf16.mxu1 %v798_v21 }
  0x45   : > { %714 = vmatpush3.bf16.msra.mxu0 %v799_v22  ;;  %742 = vmatpush3.bf16.msra.mxu1 %v799_v22 }
  0x48   : > { %498 = vmatmul.mubr.bf16.vlgmr.msra.gmra.mrb[0].mxu0 %v800_v23  ;;  %506 = vmatmul.mubr.bf16.vlgmr.msra.gmra.mrb[0].mxu1 %v803_v24 }
 0x11b   : > { %v715_v25 = vpop.f32.mrb[0].mxu0  ;;  %v721_v26 = vpop.f32.mrb[0].mxu1 }
 0x11c   : > { %v716_v28 = vpop.f32.mrb[1].mxu0  ;;  %v722_v30 = vpop.f32.mrb[1].mxu1 }
 0x11d   : > { %v717_v31 = vadd.f32 %v716_v28, %v715_v25  ;;  %v723_v32 = vadd.f32 %v722_v30, %v721_v26  ;;  %v718_v33 = vpop.f32.mrb[2].mxu0  ;;  %v724_v34 = vpop.f32.mrb[2].mxu1  ;;  %525 = sbr.rel (%p692_p11) target bundleno = 304 (0x130), region = 78 }
 0x11e   : > { %v719_v36 = vpop.f32.mrb[3].mxu0  ;;  %v725_v38 = vpop.f32.mrb[3].mxu1 }
 0x11f   : > { %v514_v39 = vadd.f32 %v717_v31, %v309_v27  ;;  %v516_v40 = vadd.f32 %v723_v32, %v311_v29  ;;  %v720_v41 = vadd.f32 %v719_v36, %v718_v33  ;;  %v726_v42 = vadd.f32 %v725_v38, %v724_v34 }
 0x121   : > { %518 = vst [vmem:[#allocation2] sm:$0xff] %v514_v39  ;;  %520 = vst [vmem:[#allocation2 + $0x10] sm:$0xff] %v516_v40  ;;  %v515_v43 = vadd.f32 %v720_v41, %v310_v35  ;;  %v517_v44 = vadd.f32 %v726_v42, %v312_v37 }
 0x123   : > { %519 = vst [vmem:[#allocation2 + $0x8] sm:$0xff] %v515_v43  ;;  %521 = vst [vmem:[#allocation2 + $0x18] sm:$0xff] %v517_v44 }
 0x128   : > { %v526_v45 = vld [vmem:[#allocation2] sm:$0xff]  ;;  %v528_v50 = vld [vmem:[#allocation2 + $0x10] sm:$0xff] }
 0x129   : > { %v537_v48 = vadd.f32 %v693_v46, %v526_v45  ;;  %v539_v52 = vadd.f32 %v693_v46, %v528_v50 }
 0x12a   : > { %v527_v47 = vld [vmem:[#allocation2 + $0x8] sm:$0xff]  ;;  %v529_v51 = vld [vmem:[#allocation2 + $0x18] sm:$0xff] }
 0x12b   : > { %v538_v49 = vadd.f32 %v693_v46, %v527_v47  ;;  %v540_v53 = vadd.f32 %v693_v46, %v529_v51  ;;  %v541_v54 = vmax.f32 %v537_v48, 0.0  ;;  %v543_v56 = vmax.f32 %v539_v52, 0.0 }
 0x12d   : > { %v542_v55 = vmax.f32 %v538_v49, 0.0  ;;  %v544_v57 = vmax.f32 %v540_v53, 0.0  ;;  %545 = vst [vmem:[%s976_s3] sm:$0xff] %v541_v54  ;;  %547 = vst [vmem:[%s976_s3 + $0x10] sm:$0xff] %v543_v56 }
 0x12f   : > { %546 = vst [vmem:[%s976_s3 + $0x8] sm:$0xff] %v542_v55  ;;  %548 = vst [vmem:[%s976_s3 + $0x18] sm:$0xff] %v544_v57 }
 0x130 PF: > { %s13_s16 = sadd.s32 1, %s844_s16   ;;  %s977_s12 = smov %s832_s13 }
 0x131   : > { %p10_p12 = scmp.ge.s32.totalorder %s13_s16, 5   ;;  %s978_s13 = smov %s902_s20 }
 0x132   : > { %s979_s14 = smov %s840_s15  ;;  %s980_s15 = smov %s982_s17 }
 0x133   :  { %12 = sbr.rel (!%p10_p12) target bundleno = 3 (0x3), region = 119 }

// kernel: embeddingnet_forward.32
= control target key start
LH: loop header
LB: loop body
LE: loop exit
PB: predicated region body
PF: predicated region fallthrough
CT: control target
= control target key end

     0   :  { %s1128_s15 = smov 0   ;;  %s1130_s16 = smov 0   ;;  %s1256_s0 = inlined_call_operand.vmem [shape: bf16[32,1152], index: 0, kind: input, shape index: {}]   ;;  %s1257_s1 = inlined_call_operand.vmem [shape: bf16[1152,128], index: 1, kind: input, shape index: {}]   ;;  %s1258_s2 = inlined_call_operand.vmem [shape: f32[1,128], index: 2, kind: input, shape index: {}]   ;;  %s1259_s3 = inlined_call_operand.vmem [shape: f32[32,128], index: 3, kind: input, shape index: {}]   ;;  %s1260_s4 = inlined_call_operand.vmem [shape: f32[32,128], index: 4, kind: output, shape index: {}]  }
   0x1   :  { %s1132_s17 = smov 0   ;;  %s1134_s18 = smov 0  }
   0x2   :  { %s1136_s19 = smov 0  }
   0x3 LB: > { %s26_s20 = sadd.s32 1, %s1096_s18  ;;  %p49_p1 = scmp.ne.s32.totalorder %s1088_s16, %s1084_s15  ;;  %s1100_s19 = sphi %s1136_s19, %s14_s19   ;;  %s1096_s18 = sphi %s1134_s18, %s1264_s18   ;;  %s1092_s17 = sphi %s1132_s17, %s1263_s17   ;;  %s1088_s16 = sphi %s1130_s16, %s1262_s16   ;;  %s1084_s15 = sphi %s1128_s15, %s1261_s15  }
   0x4   : > { %p27_p0 = scmp.ge.s32.totalorder %s26_s20, 3  ;;  %p50_p2 = scmp.eq.s32.totalorder %s1100_s19, 0 }
   0x5   : > { %s42_s22 = sadd.s32 1, %s1088_s16  ;;  %p879_p5 = scmp.ge.s32.totalorder %s1100_s19, 3 }
   0x6   : > { %s1266_s20 = smov (%p27_p0, %s26_s20), 0  ;;  %p51_p3 = por %p50_p2, %p49_p1 }
   0x7   : > { %s38_s21 = ssub.s32 %s1096_s18, %s1266_s20  ;;  %203 = sbr.rel (%p879_p5) target bundleno = 23 (0x17), region = 24 }
   0x8   : > { %p40_p4 = scmp.eq.s32.totalorder %s38_s21, 0 }
   0xa   : > { %s1163_s23 = scalar_select %p40_p4, %s1088_s16, %s42_s22  }
   0xe   : > { %206 = sbr.rel (!%p51_p3) target bundleno = 23 (0x17), region = 28  ;;  %s208_s24 = sand.u32 (%p51_p3), 1, %s1088_s16  }
   0xf   : > { %s928_s25 = smul.u32 (%p51_p3), 12, %s1096_s18 }
  0x10   : > { %s987_s26 = smul.u32 (%p51_p3), 48, %s208_s24 }
  0x11   : > { %s216_s29 = scalar_lea.vmem (%p51_p3), %s1256_s0, %s928_s25 }
  0x12   : > { %v231_v0 = vld [vmem:[%s216_s29] sm:$0xff] (%p51_p3)  ;;  %v235_v2 = vld [vmem:[%s216_s29 + $0x48] sm:$0xff] (%p51_p3)  ;;  %s210_s30 = scalar_lea.vmem (%p51_p3), [#allocation3], %s987_s26  ;;  %v885_v6 = vld [vmem:[%s216_s29 + $0x50] sm:$0xf] (%p51_p3) }
  0x13   : > { %v233_v1 = vld [vmem:[%s216_s29 + $0x24] sm:$0xff] (%p51_p3)  ;;  %232 = vst [vmem:[%s210_s30] sm:$0xff] (%p51_p3), %v231_v0  ;;  %236 = vst [vmem:[%s210_s30 + $0x18] sm:$0xff] (%p51_p3), %v235_v2  ;;  %v237_v3 = vld [vmem:[%s216_s29 + $0x6c] sm:$0xff] (%p51_p3) }
  0x14   : > { %234 = vst [vmem:[%s210_s30 + $0xc] sm:$0xff] (%p51_p3), %v233_v1  ;;  %v881_v4 = vld [vmem:[%s216_s29 + $0x8] sm:$0xf] (%p51_p3)  ;;  %v883_v5 = vld [vmem:[%s216_s29 + $0x2c] sm:$0xf] (%p51_p3)  ;;  %238 = vst [vmem:[%s210_s30 + $0x24] sm:$0xff] (%p51_p3), %v237_v3 }
  0x15   : > { %882 = vst [vmem:[%s210_s30 + $0x8] sm:$0xf] %v881_v4  ;;  %884 = vst [vmem:[%s210_s30 + $0x14] sm:$0xf] %v883_v5  ;;  %v887_v7 = vld [vmem:[%s216_s29 + $0x74] sm:$0xf] }
  0x16   : > { %886 = vst [vmem:[%s210_s30 + $0x20] sm:$0xf] %v885_v6  ;;  %888 = vst [vmem:[%s210_s30 + $0x2c] sm:$0xf] %v887_v7 }
  0x17 PF: > { %p889_p6 = scmp.ge.s32.totalorder %s1100_s19, 1  ;;  %p270_p7 = scmp.lt.s32.totalorder %s1100_s19, 4 }
  0x19   : > { %p271_p8 = pnand %p889_p6, %p270_p7 }
  0x1a   : > { %s277_s5 = sand.u32 (!%p271_p8), 1, %s1084_s15   ;;  %s326_s6 = smul.u32 (!%p271_p8), 48, %s1092_s17 }
  0x1b   : > { %274 = sbr.rel (%p271_p8) target bundleno = 318 (0x13e), region = 58  ;;  %p891_p10 = scmp.ne.s32.totalorder (!%p271_p8), %s1092_s17, 0 }
  0x1c   : > { %s988_s7 = smul.u32 (!%p271_p8), 48, %s277_s5  ;;  %p327_p9 = scmp.lt.s32.totalorder (!%p271_p8), %s326_s6, 143 }
  0x1e   : > { %s1180_s12 = scalar_lea.vmem (!%p271_p8), [#allocation3], %s988_s7 }
  0x22   : > { %s1268_s6 = smov (!%p327_p9, %s326_s6), 143  ;;  %360 = sbr.rel (%p891_p10) target bundleno = 41 (0x29), region = 66 }
  0x23   : > { %s890_s8 = sshll.u32 %s1268_s6, 2  ;;  %v1102_v8 = vmov (!%p891_p10), 0.0  }
  0x24   : > { %s1178_s11 = scalar_lea.vmem %s1257_s1, %s890_s8  ;;  %361 = vst [vmem:[#allocation2] sm:$0xff] (!%p891_p10), %v1102_v8  ;;  %362 = vst [vmem:[#allocation2 + $0x8] sm:$0xff] (!%p891_p10), %v1102_v8 }
  0x25   : > { %363 = vst [vmem:[#allocation2 + $0x10] sm:$0xff] (!%p891_p10), %v1102_v8  ;;  %364 = vst [vmem:[#allocation2 + $0x18] sm:$0xff] (!%p891_p10), %v1102_v8 }
  0x29 PF: > { %v1030_v9 = vld [vmem:[%s1178_s11 + $0x40] sm:$0xff]   ;;  %v1033_v12 = vld [vmem:[%s1178_s11 + $0x48] sm:$0xff]   ;;  %v1036_v15 = vld [vmem:[%s1178_s11 + $0x50] sm:$0xff]   ;;  %p922_p11 = scmp.ne.s32.totalorder %s1092_s17, 2 }
  0x2a   : > { %v1031_v10 = vld [vmem:[%s1178_s11] sm:$0xff]   ;;  %929 = vmatprep.subr.bf16.mxu0 %v1030_v9  ;;  %v1034_v13 = vld [vmem:[%s1178_s11 + $0x8] sm:$0xff]   ;;  %v1037_v16 = vld [vmem:[%s1178_s11 + $0x10] sm:$0xff]  }
  0x2b   : > { %v1032_v11 = vld [vmem:[%s1178_s11 + $0x80] sm:$0xff]   ;;  %930 = vmatpush3.bf16.msra.mxu0 %v1031_v10  ;;  %v1035_v14 = vld [vmem:[%s1178_s11 + $0x88] sm:$0xff]   ;;  %v1038_v17 = vld [vmem:[%s1178_s11 + $0x90] sm:$0xff]  }
  0x2c   : > { %967 = vmatprep.subr.bf16.mxu1 %v1032_v11  ;;  %931 = vmatprep.subr.bf16.mxu0 %v1033_v12  ;;  %v1039_v18 = vld [vmem:[%s1178_s11 + $0x58] sm:$0xff]   ;;  %v1042_v21 = vld [vmem:[%s1178_s11 + $0x60] sm:$0xff]   ;;  %v1045_v24 = vld [vmem:[%s1178_s11 + $0x68] sm:$0xff]  }
  0x2d   : > { %968 = vmatpush3.bf16.msra.mxu1 %v1032_v11  ;;  %v1040_v19 = vld [vmem:[%s1178_s11 + $0x18] sm:$0xff]   ;;  %v1044_v22 = vld [vmem:[%s1178_s11 + $0xa0] sm:$0xff]   ;;  %v1047_v25 = vld [vmem:[%s1178_s11 + $0xa8] sm:$0xff]  }
  0x2e   : > { %969 = vmatprep.subr.bf16.mxu1 %v1035_v14  ;;  %v1041_v20 = vld [vmem:[%s1178_s11 + $0x98] sm:$0xff]   ;;  %v1043_v23 = vld [vmem:[%s1178_s11 + $0x20] sm:$0xff]   ;;  %v1046_v26 = vld [vmem:[%s1178_s11 + $0x28] sm:$0xff]  }
  0x2f   : > { %932 = vmatpush3.bf16.msra.mxu0 %v1034_v13  ;;  %v1048_v27 = vld [vmem:[%s1178_s11 + $0x70] sm:$0xff]   ;;  %v1051_v30 = vld [vmem:[%s1178_s11 + $0x78] sm:$0xff]   ;;  %v365_v45 = vld [vmem:[#allocation2] sm:$0xff] }
  0x30   : > { %933 = vmatprep.subr.bf16.mxu0 %v1036_v15  ;;  %v1049_v28 = vld [vmem:[%s1178_s11 + $0x30] sm:$0xff]   ;;  %v1053_v31 = vld [vmem:[%s1178_s11 + $0xb8] sm:$0xff]   ;;  %v366_v50 = vld [vmem:[#allocation2 + $0x8] sm:$0xff] }
  0x31   : > { %970 = vmatpush3.bf16.msra.mxu1 %v1035_v14  ;;  %v1050_v29 = vld [vmem:[%s1178_s11 + $0xb0] sm:$0xff]   ;;  %v1052_v34 = vld [vmem:[%s1178_s11 + $0x38] sm:$0xff]   ;;  %v923_v4 = vld [vmem:[%s1258_s2] ss:$0 sm:$0xff] (!%p922_p11) }
  0x32   : > { %971 = vmatprep.subr.bf16.mxu1 %v1038_v17  ;;  %v1056_v32 = vld [vmem:[%s1180_s12 + $0x4] ss:$12 sps:$4 sm:$0xff]   ;;  %v1057_v33 = vld [vmem:[%s1180_s12 + $0x8] ss:$12 sps:$4 sm:$0xff]   ;;  %v1054_v35 = vld [vmem:[%s1180_s12] ss:$12 sps:$4 sm:$0xff]  }
  0x33   : > { %934 = vmatpush3.bf16.msra.mxu0 %v1037_v16  ;;  %633 = vmatprep.mubr.bf16.mxu0 %v1056_v32  ;;  %v1059_v36 = vld [vmem:[%s1180_s12 + $0x1c] ss:$12 sps:$4 sm:$0xff]   ;;  %v1058_v37 = vld [vmem:[%s1180_s12 + $0x20] ss:$12 sps:$4 sm:$0xff]   ;;  %v1061_v38 = vld [vmem:[%s1180_s12 + $0x18] ss:$12 sps:$4 sm:$0xff]  }
  0x34   : > { %935 = vmatprep.subr.bf16.mxu0 %v1039_v18  ;;  %983 = vmatprep.mubr.bf16.mxu1 %v1057_v33  ;;  %v367_v59 = vld [vmem:[#allocation2 + $0x10] sm:$0xff]  ;;  %v368_v63 = vld [vmem:[#allocation2 + $0x18] sm:$0xff]  ;;  %v726_v5 = vld [vmem:[%s1259_s3] sm:$0xff] (!%p922_p11) }
  0x35   : > { %972 = vmatpush3.bf16.msra.mxu1 %v1038_v17  ;;  %v727_v8 = vld [vmem:[%s1259_s3 + $0x8] sm:$0xff] (!%p922_p11)  ;;  %v728_v12 = vld [vmem:[%s1259_s3 + $0x10] sm:$0xff] (!%p922_p11)  ;;  %v729_v14 = vld [vmem:[%s1259_s3 + $0x18] sm:$0xff] (!%p922_p11) }
  0x36   : > { %973 = vmatprep.subr.bf16.mxu1 %v1041_v20 }
  0x37   : > { %936 = vmatpush3.bf16.msra.mxu0 %v1040_v19 }
  0x38   : > { %937 = vmatprep.subr.bf16.mxu0 %v1042_v21 }
  0x39   : > { %974 = vmatpush3.bf16.msra.mxu1 %v1041_v20 }
  0x3a   : > { %975 = vmatprep.subr.bf16.mxu1 %v1044_v22 }
  0x3b   : > { %938 = vmatpush3.bf16.msra.mxu0 %v1043_v23 }
  0x3c   : > { %939 = vmatprep.subr.bf16.mxu0 %v1045_v24 }
  0x3d   : > { %976 = vmatpush3.bf16.msra.mxu1 %v1044_v22 }
  0x3e   : > { %977 = vmatprep.subr.bf16.mxu1 %v1047_v25 }
  0x3f   : > { %940 = vmatpush3.bf16.msra.mxu0 %v1046_v26 }
  0x40   : > { %941 = vmatprep.subr.bf16.mxu0 %v1048_v27 }
  0x41   : > { %978 = vmatpush3.bf16.msra.mxu1 %v1047_v25 }
  0x42   : > { %979 = vmatprep.subr.bf16.mxu1 %v1050_v29 }
  0x43   : > { %942 = vmatpush3.bf16.msra.mxu0 %v1049_v28 }
  0x44   : > { %943 = vmatprep.subr.bf16.mxu0 %v1051_v30 }
  0x45   : > { %980 = vmatpush3.bf16.msra.mxu1 %v1050_v29 }
  0x46   : > { %981 = vmatprep.subr.bf16.mxu1 %v1053_v31 }
  0x47   : > { %944 = vmatpush3.bf16.msra.mxu0 %v1052_v34 }
  0x49   : > { %982 = vmatpush3.bf16.msra.mxu1 %v1053_v31 }
  0x4a   : > { %634 = vmatmul.mubr.bf16.vlgmr.msra.gmra.mrb[0].mxu0 %v1054_v35 }
  0x4b   : > { %641 = vmatprep.mubr.bf16.mxu0 %v1059_v36 }
  0x4c   : > { %984 = vmatmul.mubr.bf16.vlgmr.msra.gmra.mrb[0].mxu1 %v1058_v37 }
  0x52   : > { %642 = vmatmul.mubr.bf16.gmra.mrb[4].mxu0 %v1061_v38 }
 0x11d   : > { %v945_v39 = vpop.f32.mrb[0].mxu0 }
 0x11e   : > { %v946_v40 = vpop.f32.mrb[1].mxu0 }
 0x11f   : > { %v947_v41 = vadd.f32 %v946_v40, %v945_v39  ;;  %v948_v42 = vpop.f32.mrb[2].mxu0  ;;  %v985_v43 = vpop.f32.mrb[0].mxu1 }
 0x120   : > { %v949_v44 = vpop.f32.mrb[3].mxu0  ;;  %v684_v46 = vpop.f32.mrb[1].mxu1 }
 0x121   : > { %v950_v47 = vadd.f32 %v949_v44, %v948_v42  ;;  %v685_v48 = vadd.f32 %v947_v41, %v684_v46  ;;  %v986_v49 = vpop.f32.mrb[2].mxu1 }
 0x122   : > { %v687_v51 = vpop.f32.mrb[3].mxu1 }
 0x123   : > { %v699_v52 = vadd.f32 %v685_v48, %v365_v45  ;;  %v688_v53 = vadd.f32 %v950_v47, %v687_v51 }
 0x125   : > { %703 = vst [vmem:[#allocation2] sm:$0xff] %v699_v52  ;;  %v700_v54 = vadd.f32 %v688_v53, %v366_v50  ;;  %v951_v55 = vpop.f32.mrb[4].mxu0 }
 0x126   : > { %v952_v56 = vpop.f32.mrb[5].mxu0 }
 0x127   : > { %704 = vst [vmem:[#allocation2 + $0x8] sm:$0xff] %v700_v54  ;;  %v953_v57 = vadd.f32 %v952_v56, %v951_v55  ;;  %v954_v58 = vpop.f32.mrb[6].mxu0 }
 0x128   : > { %v955_v60 = vpop.f32.mrb[7].mxu0 }
 0x129   : > { %v693_v61 = vadd.f32 %v985_v43, %v953_v57  ;;  %v956_v62 = vadd.f32 %v955_v60, %v954_v58  ;;  %710 = sbr.rel (%p922_p11) target bundleno = 318 (0x13e), region = 70 }
 0x12b   : > { %v701_v0 = vadd.f32 %v693_v61, %v367_v59  ;;  %v696_v1 = vadd.f32 %v986_v49, %v956_v62 }
 0x12c   : > { %v711_v3 = vld [vmem:[#allocation2] sm:$0xff] (!%p922_p11) }
 0x12d   : > { %705 = vst [vmem:[#allocation2 + $0x10] sm:$0xff] %v701_v0  ;;  %v702_v2 = vadd.f32 %v696_v1, %v368_v63  ;;  %v722_v6 = vadd.f32 (!%p922_p11), %v923_v4, %v711_v3 }
 0x12e   : > { %v712_v7 = vld [vmem:[#allocation2 + $0x8] sm:$0xff] (!%p922_p11) }
 0x12f   : > { %706 = vst [vmem:[#allocation2 + $0x18] sm:$0xff] %v702_v2  ;;  %v723_v10 = vadd.f32 (!%p922_p11), %v923_v4, %v712_v7  ;;  %v730_v15 = vadd.f32 (!%p922_p11), %v726_v5, %v722_v6 }
 0x131   : > { %v731_v17 = vadd.f32 %v727_v8, %v723_v10  ;;  %v734_v19 = vmax.f32 %v730_v15, 0.0 }
 0x133   : > { %v735_v21 = vmax.f32 %v731_v17, 0.0  ;;  %738 = vst [vmem:[%s1260_s4] sm:$0xff] %v734_v19 }
 0x134   : > { %v713_v9 = vld [vmem:[#allocation2 + $0x10] sm:$0xff] }
 0x135   : > { %v724_v11 = vadd.f32 %v923_v4, %v713_v9  ;;  %739 = vst [vmem:[%s1260_s4 + $0x8] sm:$0xff] %v735_v21 }
 0x136   : > { %v714_v13 = vld [vmem:[#allocation2 + $0x18] sm:$0xff] }
 0x137   : > { %v725_v16 = vadd.f32 %v923_v4, %v714_v13  ;;  %v732_v18 = vadd.f32 %v728_v12, %v724_v11 }
 0x139   : > { %v733_v20 = vadd.f32 %v729_v14, %v725_v16  ;;  %v736_v22 = vmax.f32 %v732_v18, 0.0 }
 0x13b   : > { %v737_v23 = vmax.f32 %v733_v20, 0.0  ;;  %740 = vst [vmem:[%s1260_s4 + $0x10] sm:$0xff] %v736_v22 }
 0x13d   : > { %741 = vst [vmem:[%s1260_s4 + $0x18] sm:$0xff] %v737_v23 }
 0x13e PF: > { %s14_s19 = sadd.s32 1, %s1100_s19   ;;  %s1261_s15 = smov %s1088_s16 }
 0x13f   : > { %p11_p12 = scmp.ge.s32.totalorder %s14_s19, 5   ;;  %s1262_s16 = smov %s1163_s23 }
 0x140   : > { %s1263_s17 = smov %s1096_s18  ;;  %s1264_s18 = smov %s1266_s20 }
 0x141   :  { %13 = sbr.rel (!%p11_p12) target bundleno = 3 (0x3), region = 120 }

// kernel: embeddingnet_forward.33
= control target key start
LH: loop header
LB: loop body
LE: loop exit
PB: predicated region body
PF: predicated region fallthrough
CT: control target
= control target key end

     0   :  { %s1036_s12 = smov 0   ;;  %s1038_s13 = smov 0   ;;  %s1152_s0 = inlined_call_operand.vmem [shape: bf16[32,1152], index: 0, kind: input, shape index: {}]   ;;  %s1153_s1 = inlined_call_operand.vmem [shape: bf16[1152,128], index: 1, kind: input, shape index: {}]   ;;  %s1154_s2 = inlined_call_operand.vmem [shape: f32[1,128], index: 2, kind: input, shape index: {}]   ;;  %s1155_s3 = inlined_call_operand.vmem [shape: f32[32,128], index: 3, kind: output, shape index: {}]  }
   0x1   :  { %s1040_s14 = smov 0   ;;  %s1042_s15 = smov 0  }
   0x2   :  { %s1044_s16 = smov 0  }
   0x3 LB: > { %s25_s17 = sadd.s32 1, %s1009_s15  ;;  %p48_p1 = scmp.ne.s32.totalorder %s1001_s13, %s997_s12  ;;  %s1013_s16 = sphi %s1044_s16, %s13_s16   ;;  %s1009_s15 = sphi %s1042_s15, %s1159_s15   ;;  %s1005_s14 = sphi %s1040_s14, %s1158_s14   ;;  %s1001_s13 = sphi %s1038_s13, %s1157_s13   ;;  %s997_s12 = sphi %s1036_s12, %s1156_s12  }
   0x4   : > { %p26_p0 = scmp.ge.s32.totalorder %s25_s17, 3  ;;  %p49_p2 = scmp.eq.s32.totalorder %s1013_s16, 0 }
   0x5   : > { %s41_s19 = sadd.s32 1, %s1001_s13  ;;  %p792_p5 = scmp.ge.s32.totalorder %s1013_s16, 3 }
   0x6   : > { %s1161_s17 = smov (%p26_p0, %s25_s17), 0  ;;  %p50_p3 = por %p49_p2, %p48_p1 }
   0x7   : > { %s37_s18 = ssub.s32 %s1009_s15, %s1161_s17  ;;  %162 = sbr.rel (%p792_p5) target bundleno = 23 (0x17), region = 20 }
   0x8   : > { %p39_p4 = scmp.eq.s32.totalorder %s37_s18, 0 }
   0xa   : > { %s1071_s20 = scalar_select %p39_p4, %s1001_s13, %s41_s19  }
   0xe   : > { %165 = sbr.rel (!%p50_p3) target bundleno = 23 (0x17), region = 24  ;;  %s167_s21 = sand.u32 (%p50_p3), 1, %s1001_s13  }
   0xf   : > { %s841_s22 = smul.u32 (%p50_p3), 12, %s1009_s15 }
  0x10   : > { %s900_s23 = smul.u32 (%p50_p3), 48, %s167_s21 }
  0x11   : > { %s175_s26 = scalar_lea.vmem (%p50_p3), %s1152_s0, %s841_s22 }
  0x12   : > { %v190_v0 = vld [vmem:[%s175_s26] sm:$0xff] (%p50_p3)  ;;  %v194_v2 = vld [vmem:[%s175_s26 + $0x48] sm:$0xff] (%p50_p3)  ;;  %s169_s27 = scalar_lea.vmem (%p50_p3), [#allocation3], %s900_s23  ;;  %v798_v6 = vld [vmem:[%s175_s26 + $0x50] sm:$0xf] (%p50_p3) }
  0x13   : > { %v192_v1 = vld [vmem:[%s175_s26 + $0x24] sm:$0xff] (%p50_p3)  ;;  %191 = vst [vmem:[%s169_s27] sm:$0xff] (%p50_p3), %v190_v0  ;;  %195 = vst [vmem:[%s169_s27 + $0x18] sm:$0xff] (%p50_p3), %v194_v2  ;;  %v196_v3 = vld [vmem:[%s175_s26 + $0x6c] sm:$0xff] (%p50_p3) }
  0x14   : > { %193 = vst [vmem:[%s169_s27 + $0xc] sm:$0xff] (%p50_p3), %v192_v1  ;;  %v794_v4 = vld [vmem:[%s175_s26 + $0x8] sm:$0xf] (%p50_p3)  ;;  %v796_v5 = vld [vmem:[%s175_s26 + $0x2c] sm:$0xf] (%p50_p3)  ;;  %197 = vst [vmem:[%s169_s27 + $0x24] sm:$0xff] (%p50_p3), %v196_v3 }
  0x15   : > { %795 = vst [vmem:[%s169_s27 + $0x8] sm:$0xf] %v794_v4  ;;  %797 = vst [vmem:[%s169_s27 + $0x14] sm:$0xf] %v796_v5  ;;  %v800_v7 = vld [vmem:[%s175_s26 + $0x74] sm:$0xf] }
  0x16   : > { %799 = vst [vmem:[%s169_s27 + $0x20] sm:$0xf] %v798_v6  ;;  %801 = vst [vmem:[%s169_s27 + $0x2c] sm:$0xf] %v800_v7 }
  0x17 PF: > { %p802_p6 = scmp.ge.s32.totalorder %s1013_s16, 1  ;;  %p229_p7 = scmp.lt.s32.totalorder %s1013_s16, 4 }
  0x19   : > { %p230_p8 = pnand %p802_p6, %p229_p7 }
  0x1a   : > { %s236_s28 = sand.u32 (!%p230_p8), 1, %s997_s12   ;;  %s275_s29 = smul.u32 (!%p230_p8), 48, %s1005_s14 }
  0x1b   : > { %233 = sbr.rel (%p230_p8) target bundleno = 316 (0x13c), region = 54  ;;  %p804_p10 = scmp.ne.s32.totalorder (!%p230_p8), %s1005_s14, 0 }
  0x1c   : > { %s901_s30 = smul.u32 (!%p230_p8), 48, %s236_s28  ;;  %p276_p9 = scmp.lt.s32.totalorder (!%p230_p8), %s275_s29, 143 }
  0x1e   : > { %s1088_s8 = scalar_lea.vmem (!%p230_p8), [#allocation3], %s901_s30 }
  0x22   : > { %s1163_s29 = smov (!%p276_p9, %s275_s29), 143  ;;  %300 = sbr.rel (%p804_p10) target bundleno = 41 (0x29), region = 62 }
  0x23   : > { %s803_s4 = sshll.u32 %s1163_s29, 2  ;;  %v1015_v8 = vmov (!%p804_p10), 0.0  }
  0x24   : > { %s1086_s7 = scalar_lea.vmem %s1153_s1, %s803_s4  ;;  %301 = vst [vmem:[#allocation2] sm:$0xff] (!%p804_p10), %v1015_v8  ;;  %302 = vst [vmem:[#allocation2 + $0x8] sm:$0xff] (!%p804_p10), %v1015_v8 }
  0x25   : > { %303 = vst [vmem:[#allocation2 + $0x10] sm:$0xff] (!%p804_p10), %v1015_v8  ;;  %304 = vst [vmem:[#allocation2 + $0x18] sm:$0xff] (!%p804_p10), %v1015_v8 }
  0x29 PF: > { %v943_v9 = vld [vmem:[%s1086_s7 + $0x40] sm:$0xff]   ;;  %v946_v12 = vld [vmem:[%s1086_s7 + $0x48] sm:$0xff]   ;;  %v949_v15 = vld [vmem:[%s1086_s7 + $0x50] sm:$0xff]   ;;  %p835_p11 = scmp.ne.s32.totalorder %s1005_s14, 2 }
  0x2a   : > { %v944_v10 = vld [vmem:[%s1086_s7] sm:$0xff]   ;;  %842 = vmatprep.subr.bf16.mxu0 %v943_v9  ;;  %v947_v13 = vld [vmem:[%s1086_s7 + $0x8] sm:$0xff]   ;;  %v950_v16 = vld [vmem:[%s1086_s7 + $0x10] sm:$0xff]  }
  0x2b   : > { %v945_v11 = vld [vmem:[%s1086_s7 + $0x80] sm:$0xff]   ;;  %843 = vmatpush3.bf16.msra.mxu0 %v944_v10  ;;  %v948_v14 = vld [vmem:[%s1086_s7 + $0x88] sm:$0xff]   ;;  %v951_v17 = vld [vmem:[%s1086_s7 + $0x90] sm:$0xff]  }
  0x2c   : > { %880 = vmatprep.subr.bf16.mxu1 %v945_v11  ;;  %844 = vmatprep.subr.bf16.mxu0 %v946_v12  ;;  %v952_v18 = vld [vmem:[%s1086_s7 + $0x58] sm:$0xff]   ;;  %v955_v21 = vld [vmem:[%s1086_s7 + $0x60] sm:$0xff]   ;;  %v958_v24 = vld [vmem:[%s1086_s7 + $0x68] sm:$0xff]  }
  0x2d   : > { %881 = vmatpush3.bf16.msra.mxu1 %v945_v11  ;;  %v953_v19 = vld [vmem:[%s1086_s7 + $0x18] sm:$0xff]   ;;  %v957_v22 = vld [vmem:[%s1086_s7 + $0xa0] sm:$0xff]   ;;  %v960_v25 = vld [vmem:[%s1086_s7 + $0xa8] sm:$0xff]  }
  0x2e   : > { %882 = vmatprep.subr.bf16.mxu1 %v948_v14  ;;  %v954_v20 = vld [vmem:[%s1086_s7 + $0x98] sm:$0xff]   ;;  %v956_v23 = vld [vmem:[%s1086_s7 + $0x20] sm:$0xff]   ;;  %v959_v26 = vld [vmem:[%s1086_s7 + $0x28] sm:$0xff]  }
  0x2f   : > { %845 = vmatpush3.bf16.msra.mxu0 %v947_v13  ;;  %v961_v27 = vld [vmem:[%s1086_s7 + $0x70] sm:$0xff]   ;;  %v964_v30 = vld [vmem:[%s1086_s7 + $0x78] sm:$0xff]   ;;  %v305_v45 = vld [vmem:[#allocation2] sm:$0xff] }
  0x30   : > { %846 = vmatprep.subr.bf16.mxu0 %v949_v15  ;;  %v962_v28 = vld [vmem:[%s1086_s7 + $0x30] sm:$0xff]   ;;  %v966_v31 = vld [vmem:[%s1086_s7 + $0xb8] sm:$0xff]   ;;  %v306_v50 = vld [vmem:[#allocation2 + $0x8] sm:$0xff] }
  0x31   : > { %883 = vmatpush3.bf16.msra.mxu1 %v948_v14  ;;  %v963_v29 = vld [vmem:[%s1086_s7 + $0xb0] sm:$0xff]   ;;  %v965_v34 = vld [vmem:[%s1086_s7 + $0x38] sm:$0xff]   ;;  %v836_v4 = vld [vmem:[%s1154_s2] ss:$0 sm:$0xff] (!%p835_p11) }
  0x32   : > { %884 = vmatprep.subr.bf16.mxu1 %v951_v17  ;;  %v969_v32 = vld [vmem:[%s1088_s8 + $0x4] ss:$12 sps:$4 sm:$0xff]   ;;  %v970_v33 = vld [vmem:[%s1088_s8 + $0x8] ss:$12 sps:$4 sm:$0xff]   ;;  %v967_v35 = vld [vmem:[%s1088_s8] ss:$12 sps:$4 sm:$0xff]  }
  0x33   : > { %847 = vmatpush3.bf16.msra.mxu0 %v950_v16  ;;  %573 = vmatprep.mubr.bf16.mxu0 %v969_v32  ;;  %v972_v36 = vld [vmem:[%s1088_s8 + $0x1c] ss:$12 sps:$4 sm:$0xff]   ;;  %v971_v37 = vld [vmem:[%s1088_s8 + $0x20] ss:$12 sps:$4 sm:$0xff]   ;;  %v974_v38 = vld [vmem:[%s1088_s8 + $0x18] ss:$12 sps:$4 sm:$0xff]  }
  0x34   : > { %848 = vmatprep.subr.bf16.mxu0 %v952_v18  ;;  %896 = vmatprep.mubr.bf16.mxu1 %v970_v33  ;;  %v307_v59 = vld [vmem:[#allocation2 + $0x10] sm:$0xff]  ;;  %v308_v63 = vld [vmem:[#allocation2 + $0x18] sm:$0xff] }
  0x35   : > { %885 = vmatpush3.bf16.msra.mxu1 %v951_v17 }
  0x36   : > { %886 = vmatprep.subr.bf16.mxu1 %v954_v20 }
  0x37   : > { %849 = vmatpush3.bf16.msra.mxu0 %v953_v19 }
  0x38   : > { %850 = vmatprep.subr.bf16.mxu0 %v955_v21 }
  0x39   : > { %887 = vmatpush3.bf16.msra.mxu1 %v954_v20 }
  0x3a   : > { %888 = vmatprep.subr.bf16.mxu1 %v957_v22 }
  0x3b   : > { %851 = vmatpush3.bf16.msra.mxu0 %v956_v23 }
  0x3c   : > { %852 = vmatprep.subr.bf16.mxu0 %v958_v24 }
  0x3d   : > { %889 = vmatpush3.bf16.msra.mxu1 %v957_v22 }
  0x3e   : > { %890 = vmatprep.subr.bf16.mxu1 %v960_v25 }
  0x3f   : > { %853 = vmatpush3.bf16.msra.mxu0 %v959_v26 }
  0x40   : > { %854 = vmatprep.subr.bf16.mxu0 %v961_v27 }
  0x41   : > { %891 = vmatpush3.bf16.msra.mxu1 %v960_v25 }
  0x42   : > { %892 = vmatprep.subr.bf16.mxu1 %v963_v29 }
  0x43   : > { %855 = vmatpush3.bf16.msra.mxu0 %v962_v28 }
  0x44   : > { %856 = vmatprep.subr.bf16.mxu0 %v964_v30 }
  0x45   : > { %893 = vmatpush3.bf16.msra.mxu1 %v963_v29 }
  0x46   : > { %894 = vmatprep.subr.bf16.mxu1 %v966_v31 }
  0x47   : > { %857 = vmatpush3.bf16.msra.mxu0 %v965_v34 }
  0x49   : > { %895 = vmatpush3.bf16.msra.mxu1 %v966_v31 }
  0x4a   : > { %574 = vmatmul.mubr.bf16.vlgmr.msra.gmra.mrb[0].mxu0 %v967_v35 }
  0x4b   : > { %581 = vmatprep.mubr.bf16.mxu0 %v972_v36 }
  0x4c   : > { %897 = vmatmul.mubr.bf16.vlgmr.msra.gmra.mrb[0].mxu1 %v971_v37 }
  0x52   : > { %582 = vmatmul.mubr.bf16.gmra.mrb[4].mxu0 %v974_v38 }
 0x11d   : > { %v858_v39 = vpop.f32.mrb[0].mxu0 }
 0x11e   : > { %v859_v40 = vpop.f32.mrb[1].mxu0 }
 0x11f   : > { %v860_v41 = vadd.f32 %v859_v40, %v858_v39  ;;  %v861_v42 = vpop.f32.mrb[2].mxu0  ;;  %v898_v43 = vpop.f32.mrb[0].mxu1 }
 0x120   : > { %v862_v44 = vpop.f32.mrb[3].mxu0  ;;  %v624_v46 = vpop.f32.mrb[1].mxu1 }
 0x121   : > { %v863_v47 = vadd.f32 %v862_v44, %v861_v42  ;;  %v625_v48 = vadd.f32 %v860_v41, %v624_v46  ;;  %v899_v49 = vpop.f32.mrb[2].mxu1 }
 0x122   : > { %v627_v51 = vpop.f32.mrb[3].mxu1 }
 0x123   : > { %v639_v52 = vadd.f32 %v625_v48, %v305_v45  ;;  %v628_v53 = vadd.f32 %v863_v47, %v627_v51 }
 0x125   : > { %643 = vst [vmem:[#allocation2] sm:$0xff] %v639_v52  ;;  %v640_v54 = vadd.f32 %v628_v53, %v306_v50  ;;  %v864_v55 = vpop.f32.mrb[4].mxu0 }
 0x126   : > { %v865_v56 = vpop.f32.mrb[5].mxu0 }
 0x127   : > { %644 = vst [vmem:[#allocation2 + $0x8] sm:$0xff] %v640_v54  ;;  %v866_v57 = vadd.f32 %v865_v56, %v864_v55  ;;  %v867_v58 = vpop.f32.mrb[6].mxu0 }
 0x128   : > { %v868_v60 = vpop.f32.mrb[7].mxu0 }
 0x129   : > { %v633_v61 = vadd.f32 %v898_v43, %v866_v57  ;;  %v869_v62 = vadd.f32 %v868_v60, %v867_v58  ;;  %650 = sbr.rel (%p835_p11) target bundleno = 316 (0x13c), region = 66 }
 0x12b   : > { %v641_v0 = vadd.f32 %v633_v61, %v307_v59  ;;  %v636_v1 = vadd.f32 %v899_v49, %v869_v62 }
 0x12c   : > { %v651_v3 = vld [vmem:[#allocation2] sm:$0xff] (!%p835_p11) }
 0x12d   : > { %645 = vst [vmem:[#allocation2 + $0x10] sm:$0xff] %v641_v0  ;;  %v642_v2 = vadd.f32 %v636_v1, %v308_v63  ;;  %v662_v6 = vadd.f32 (!%p835_p11), %v836_v4, %v651_v3 }
 0x12e   : > { %v652_v5 = vld [vmem:[#allocation2 + $0x8] sm:$0xff] (!%p835_p11) }
 0x12f   : > { %646 = vst [vmem:[#allocation2 + $0x18] sm:$0xff] %v642_v2  ;;  %v663_v7 = vadd.f32 (!%p835_p11), %v836_v4, %v652_v5  ;;  %v666_v12 = vmax.f32 (!%p835_p11), %v662_v6, 0.0 }
 0x131   : > { %v667_v13 = vmax.f32 %v663_v7, 0.0  ;;  %670 = vst [vmem:[%s1155_s3] sm:$0xff] %v666_v12 }
 0x133   : > { %671 = vst [vmem:[%s1155_s3 + $0x8] sm:$0xff] %v667_v13 }
 0x134   : > { %v653_v8 = vld [vmem:[#allocation2 + $0x10] sm:$0xff] }
 0x135   : > { %v664_v10 = vadd.f32 %v836_v4, %v653_v8 }
 0x136   : > { %v654_v9 = vld [vmem:[#allocation2 + $0x18] sm:$0xff] }
 0x137   : > { %v665_v11 = vadd.f32 %v836_v4, %v654_v9  ;;  %v668_v14 = vmax.f32 %v664_v10, 0.0 }
 0x139   : > { %v669_v15 = vmax.f32 %v665_v11, 0.0  ;;  %672 = vst [vmem:[%s1155_s3 + $0x10] sm:$0xff] %v668_v14 }
 0x13b   : > { %673 = vst [vmem:[%s1155_s3 + $0x18] sm:$0xff] %v669_v15 }
 0x13c PF: > { %s13_s16 = sadd.s32 1, %s1013_s16   ;;  %s1156_s12 = smov %s1001_s13 }
 0x13d   : > { %p10_p12 = scmp.ge.s32.totalorder %s13_s16, 5   ;;  %s1157_s13 = smov %s1071_s20 }
 0x13e   : > { %s1158_s14 = smov %s1009_s15  ;;  %s1159_s15 = smov %s1161_s17 }
 0x13f   :  { %12 = sbr.rel (!%p10_p12) target bundleno = 3 (0x3), region = 113 }

// kernel: embeddingnet_forward.31
= control target key start
LH: loop header
LB: loop body
LE: loop exit
PB: predicated region body
PF: predicated region fallthrough
CT: control target
= control target key end

     0   :  { %vm73_vm0 = vcmask 523264   ;;  %s249_s1 = inlined_call_operand.vmem [shape: bf16[64,128], index: 1, kind: input, shape index: {}]   ;;  %s250_s0 = inlined_call_operand.vmem [shape: bf16[32,64], index: 0, kind: input, shape index: {}]   ;;  %s251_s2 = inlined_call_operand.vmem [shape: f32[1,128], index: 2, kind: input, shape index: {}]   ;;  %s252_s3 = inlined_call_operand.vmem [shape: f32[32,128], index: 3, kind: output, shape index: {}]  }
   0x1   :  { %v190_v0 = vld [vmem:[%s249_s1] sm:$0xff]   ;;  %v191_v1 = vld [vmem:[%s249_s1 + $0x8] sm:$0xff]   ;;  %v192_v2 = vld [vmem:[%s249_s1 + $0x10] sm:$0xff]  }
   0x2   :  { %178 = vmatprep.subr.bf16.mxu0 %v190_v0  ;;  %v194_v3 = vld [vmem:[%s250_s0] sm:$0xff]   ;;  %v193_v4 = vld [vmem:[%s249_s1 + $0x18] sm:$0xff]   ;;  %v195_v5 = vld [vmem:[%s250_s0 + $0x8] sm:$0xff]  }
   0x3   :  { %179 = vmatpush3.bf16.msra.mxu0 %v190_v0  ;;  %186 = vmatprep.mubr.msk.bf16.mxu0 %vm73_vm0, %v194_v3  ;;  %v171_v6 = vld [vmem:[%s251_s2] ss:$0 sm:$0xff] }
   0x4   :  { %180 = vmatprep.subr.bf16.mxu0 %v191_v1 }
   0x7   :  { %181 = vmatpush3.bf16.msra.mxu0 %v191_v1 }
   0x8   :  { %182 = vmatprep.subr.bf16.mxu0 %v192_v2 }
   0xb   :  { %183 = vmatpush3.bf16.msra.mxu0 %v192_v2 }
   0xc   :  { %184 = vmatprep.subr.bf16.mxu0 %v193_v4 }
   0xf   :  { %185 = vmatpush3.bf16.msra.mxu0 %v193_v4 }
  0x12   :  { %187 = vmatmul.mubr.msk.bf16.vlgmr.msra.gmra.mrb[0].mxu0 %vm73_vm0, %v195_v5 }
  0xe5   :  { %v188_v7 = vpop.f32.mrb[0].mxu0 }
  0xe6   :  { %v153_v8 = vadd.f32 %v188_v7, %v171_v6  ;;  %v114_v9 = vpop.f32.mrb[1].mxu0 }
  0xe7   :  { %v151_v10 = vadd.f32 %v171_v6, %v114_v9  ;;  %v189_v11 = vpop.f32.mrb[2].mxu0 }
  0xe8   :  { %157 = vst [vmem:[%s252_s3 + $0x10] sm:$0xff] %v153_v8  ;;  %v154_v12 = vadd.f32 %v189_v11, %v171_v6  ;;  %v117_v13 = vpop.f32.mrb[3].mxu0 }
  0xe9   :  { %155 = vst [vmem:[%s252_s3] sm:$0xff] %v151_v10  ;;  %v152_v14 = vadd.f32 %v171_v6, %v117_v13 }
  0xea   :  { %158 = vst [vmem:[%s252_s3 + $0x18] sm:$0xff] %v154_v12 }
  0xeb   :  { %156 = vst [vmem:[%s252_s3 + $0x8] sm:$0xff] %v152_v14 }

// kernel: embeddingnet_forward.35
= control target key start
LH: loop header
LB: loop body
LE: loop exit
PB: predicated region body
PF: predicated region fallthrough
CT: control target
= control target key end

     0   :  { %s1027_s12 = smov 0   ;;  %s1029_s13 = smov 0   ;;  %s1129_s0 = inlined_call_operand.vmem [shape: bf16[8,1152], index: 0, kind: input, shape index: {}]   ;;  %s1130_s1 = inlined_call_operand.vmem [shape: bf16[1152,256], index: 1, kind: input, shape index: {}]   ;;  %s1131_s2 = inlined_call_operand.vmem [shape: f32[1,256], index: 2, kind: input, shape index: {}]   ;;  %s1132_s3 = inlined_call_operand.vmem [shape: f32[8,256], index: 3, kind: output, shape index: {}]  }
   0x1   :  { %s1031_s14 = smov 0  }
   0x2 LB: > { %s25_s15 = sadd.s32 1, %s999_s13  ;;  %p818_p0 = scmp.ge.s32.totalorder %s1003_s14, 1  ;;  %s1003_s14 = sphi %s1031_s14, %s13_s14   ;;  %s999_s13 = sphi %s1029_s13, %s1134_s13   ;;  %s995_s12 = sphi %s1027_s12, %s1133_s12  }
   0x3   : > { %p26_p1 = scmp.ge.s32.totalorder %s25_s15, 3  ;;  %p194_p2 = scmp.lt.s32.totalorder %s1003_s14, 4 }
   0x5   : > { %s1136_s15 = smov (%p26_p1, %s25_s15), 0  ;;  %p195_p3 = pnand %p818_p0, %p194_p2 }
   0x6   : > { %s240_s16 = smul.u32 (!%p195_p3), 3, %s995_s12  ;;  %p822_p6 = scmp.ne.s32.totalorder (!%p195_p3), %s995_s12, 0 }
   0x7   : > { %198 = sbr.rel (%p195_p3) target bundleno = 319 (0x13f), region = 32 }
   0x8   : > { %s250_s17 = smul.u32 (!%p195_p3), 48, %s995_s12  ;;  %p243_p4 = scmp.lt.s32.totalorder (!%p195_p3), %s240_s16, 8 }
   0xa   : > { %p252_p5 = scmp.lt.s32.totalorder (!%p195_p3), %s250_s17, 143 }
   0xe   : > { %s1138_s16 = smov (!%p243_p4, %s240_s16), 8  ;;  %s1140_s17 = smov (!%p252_p5, %s250_s17), 143 }
   0xf   : > { %s819_s18 = sshll.u32 %s1138_s16, 2  ;;  %s879_s22 = sshll.u32 %s1140_s17, 3  ;;  %v1005_v0 = vmov (!%p822_p6), 0.0  }
  0x10   : > { %s1052_s21 = scalar_lea.vmem %s1129_s0, %s819_s18  ;;  %s1057_s25 = scalar_lea.vmem %s1130_s1, %s879_s22  ;;  %282 = vst [vmem:[#allocation2] sm:$0xff] (!%p822_p6), %v1005_v0  ;;  %283 = vst [vmem:[#allocation2 + $0x8] sm:$0xff] (!%p822_p6), %v1005_v0 }
  0x11   : > { %281 = sbr.rel (%p822_p6) target bundleno = 24 (0x18), region = 36 }
  0x18 PF: > { %v906_v1 = vld [vmem:[%s1057_s25 + $0x4] ss:$8 sps:$4 sm:$0xff]   ;;  %v908_v2 = vld [vmem:[%s1057_s25] ss:$8 sps:$4 sm:$0xff]   ;;  %v1006_v3 = vmov 0   ;;  %p874_p7 = scmp.ne.s32.totalorder %s995_s12, 2 }
  0x19   : > { %660 = vmatprep.mubr.bf16.mxu1 %v1006_v3  ;;  %587 = vmatprep.subr.bf16.mxu0 %v906_v1  ;;  %v909_v4 = vld [vmem:[%s1057_s25 + $0x14] ss:$8 sps:$4 sm:$0xff]   ;;  %v911_v5 = vld [vmem:[%s1057_s25 + $0x10] ss:$8 sps:$4 sm:$0xff]   ;;  %v912_v6 = vld [vmem:[%s1057_s25 + $0x24] ss:$8 sps:$4 sm:$0xff]  }
  0x1a   : > { %588 = vmatpush1.bf16.msra.mxu0 %v908_v2  ;;  %v914_v7 = vld [vmem:[%s1057_s25 + $0x20] ss:$8 sps:$4 sm:$0xff]   ;;  %v915_v8 = vld [vmem:[%s1057_s25 + $0x34] ss:$8 sps:$4 sm:$0xff]   ;;  %v917_v9 = vld [vmem:[%s1057_s25 + $0x30] ss:$8 sps:$4 sm:$0xff]  }
  0x1b   : > { %589 = vmatprep.subr.bf16.mxu0 %v909_v4  ;;  %v930_v10 = vld [vmem:[%s1057_s25 + $0x104] ss:$8 sps:$4 sm:$0xff]   ;;  %v932_v11 = vld [vmem:[%s1057_s25 + $0x100] ss:$8 sps:$4 sm:$0xff]   ;;  %v936_v13 = vld [vmem:[%s1057_s25 + $0x114] ss:$8 sps:$4 sm:$0xff]   ;;  %v681_v4 = vlaneseq (!%p874_p7) }
  0x1c   : > { %v918_v12 = vld [vmem:[%s1057_s25 + $0x44] ss:$8 sps:$4 sm:$0xff]   ;;  %628 = vmatprep.subr.bf16.mxu1 %v930_v10  ;;  %v938_v14 = vld [vmem:[%s1057_s25 + $0x110] ss:$8 sps:$4 sm:$0xff]   ;;  %v920_v15 = vld [vmem:[%s1057_s25 + $0x40] ss:$8 sps:$4 sm:$0xff]  }
  0x1d   : > { %629 = vmatpush1.bf16.msra.mxu1 %v932_v11  ;;  %v921_v16 = vld [vmem:[%s1057_s25 + $0x54] ss:$8 sps:$4 sm:$0xff]   ;;  %v942_v17 = vld [vmem:[%s1057_s25 + $0x124] ss:$8 sps:$4 sm:$0xff]   ;;  %v944_v18 = vld [vmem:[%s1057_s25 + $0x120] ss:$8 sps:$4 sm:$0xff]  }
  0x1e   : > { %590 = vmatpush1.bf16.msra.mxu0 %v911_v5  ;;  %630 = vmatprep.subr.bf16.mxu1 %v936_v13  ;;  %v923_v19 = vld [vmem:[%s1057_s25 + $0x50] ss:$8 sps:$4 sm:$0xff]   ;;  %v948_v20 = vld [vmem:[%s1057_s25 + $0x134] ss:$8 sps:$4 sm:$0xff]   ;;  %v924_v21 = vld [vmem:[%s1057_s25 + $0x64] ss:$8 sps:$4 sm:$0xff]  }
  0x1f   : > { %591 = vmatprep.subr.bf16.mxu0 %v912_v6  ;;  %v950_v22 = vld [vmem:[%s1057_s25 + $0x130] ss:$8 sps:$4 sm:$0xff]   ;;  %v926_v23 = vld [vmem:[%s1057_s25 + $0x60] ss:$8 sps:$4 sm:$0xff]   ;;  %v954_v24 = vld [vmem:[%s1057_s25 + $0x144] ss:$8 sps:$4 sm:$0xff]  }
  0x20   : > { %v927_v25 = vld [vmem:[%s1057_s25 + $0x74] ss:$8 sps:$4 sm:$0xff]   ;;  %v956_v26 = vld [vmem:[%s1057_s25 + $0x140] ss:$8 sps:$4 sm:$0xff]   ;;  %v929_v27 = vld [vmem:[%s1057_s25 + $0x70] ss:$8 sps:$4 sm:$0xff]  }
  0x21   : > { %631 = vmatpush1.bf16.msra.mxu1 %v938_v14  ;;  %v960_v28 = vld [vmem:[%s1057_s25 + $0x154] ss:$8 sps:$4 sm:$0xff]   ;;  %v933_v29 = vld [vmem:[%s1057_s25 + $0x84] ss:$8 sps:$4 sm:$0xff]   ;;  %v962_v30 = vld [vmem:[%s1057_s25 + $0x150] ss:$8 sps:$4 sm:$0xff]  }
  0x22   : > { %592 = vmatpush1.bf16.msra.mxu0 %v914_v7  ;;  %632 = vmatprep.subr.bf16.mxu1 %v942_v17  ;;  %v935_v31 = vld [vmem:[%s1057_s25 + $0x80] ss:$8 sps:$4 sm:$0xff]   ;;  %v966_v32 = vld [vmem:[%s1057_s25 + $0x164] ss:$8 sps:$4 sm:$0xff]   ;;  %v939_v33 = vld [vmem:[%s1057_s25 + $0x94] ss:$8 sps:$4 sm:$0xff]  }
  0x23   : > { %593 = vmatprep.subr.bf16.mxu0 %v915_v8  ;;  %v286_v34 = vld [vmem:[%s1052_s21] sm:$0xff]  ;;  %v941_v37 = vld [vmem:[%s1057_s25 + $0x90] ss:$8 sps:$4 sm:$0xff]   ;;  %v972_v38 = vld [vmem:[%s1057_s25 + $0x174] ss:$8 sps:$4 sm:$0xff]   ;;  %v682_v5 = vshrl.u32 (!%p874_p7), %v681_v4, 7 }
  0x24   : > { %v824_v35 = vcombine.high %v286_v34, %v286_v34  ;;  %v968_v36 = vld [vmem:[%s1057_s25 + $0x160] ss:$8 sps:$4 sm:$0xff]   ;;  %v945_v39 = vld [vmem:[%s1057_s25 + $0xa4] ss:$8 sps:$4 sm:$0xff]   ;;  %v974_v40 = vld [vmem:[%s1057_s25 + $0x170] ss:$8 sps:$4 sm:$0xff]   ;;  %v823_v53 = vcombine.low %v286_v34, %v286_v34 }
  0x25   : > { %633 = vmatpush1.bf16.msra.mxu1 %v944_v18  ;;  %v947_v41 = vld [vmem:[%s1057_s25 + $0xa0] ss:$8 sps:$4 sm:$0xff]   ;;  %v951_v42 = vld [vmem:[%s1057_s25 + $0xb4] ss:$8 sps:$4 sm:$0xff]   ;;  %v953_v44 = vld [vmem:[%s1057_s25 + $0xb0] ss:$8 sps:$4 sm:$0xff]  }
  0x26   : > { %594 = vmatpush1.bf16.msra.mxu0 %v917_v9  ;;  %634 = vmatprep.subr.bf16.mxu1 %v948_v20  ;;  %v978_v43 = vld [vmem:[%s1052_s21 + $0x8] ss:$0 sps:$4 sm:$0xff]   ;;  %v957_v45 = vld [vmem:[%s1057_s25 + $0xc4] ss:$8 sps:$4 sm:$0xff]   ;;  %v963_v47 = vld [vmem:[%s1057_s25 + $0xd4] ss:$8 sps:$4 sm:$0xff]  }
  0x27   : > { %595 = vmatprep.subr.bf16.mxu0 %v918_v12  ;;  %619 = vmatprep.mubr.bf16.mxu0 %v824_v35  ;;  %v959_v46 = vld [vmem:[%s1057_s25 + $0xc0] ss:$8 sps:$4 sm:$0xff]   ;;  %v965_v48 = vld [vmem:[%s1057_s25 + $0xd0] ss:$8 sps:$4 sm:$0xff]   ;;  %v969_v49 = vld [vmem:[%s1057_s25 + $0xe4] ss:$8 sps:$4 sm:$0xff]  }
  0x28   : > { %v971_v50 = vld [vmem:[%s1057_s25 + $0xe0] ss:$8 sps:$4 sm:$0xff]   ;;  %v975_v51 = vld [vmem:[%s1057_s25 + $0xf4] ss:$8 sps:$4 sm:$0xff]   ;;  %v977_v52 = vld [vmem:[%s1057_s25 + $0xf0] ss:$8 sps:$4 sm:$0xff]  }
  0x29   : > { %635 = vmatpush1.bf16.msra.mxu1 %v950_v22  ;;  %v284_v58 = vld [vmem:[#allocation2] sm:$0xff]  ;;  %v285_v61 = vld [vmem:[#allocation2 + $0x8] sm:$0xff]  ;;  %v683_v7 = vsub.s32 (!%p874_p7), 0, %v682_v5  ;;  %v687_v8 = vsub.s32 (!%p874_p7), 1, %v682_v5 }
  0x2a   : > { %596 = vmatpush1.bf16.msra.mxu0 %v920_v15  ;;  %636 = vmatprep.subr.bf16.mxu1 %v954_v24  ;;  %v679_v6 = vld [vmem:[%s1131_s2] sm:$0x3] (!%p874_p7) }
  0x2b   : > { %597 = vmatprep.subr.bf16.mxu0 %v921_v16  ;;  %v684_v11 = vrot.slane (!%p874_p7), %v679_v6, %v683_v7  ;;  %v688_v12 = vrot.slane (!%p874_p7), %v679_v6, %v687_v8 }
  0x2d   : > { %637 = vmatpush1.bf16.msra.mxu1 %v956_v26 }
  0x2e   : > { %598 = vmatpush1.bf16.msra.mxu0 %v923_v19  ;;  %638 = vmatprep.subr.bf16.mxu1 %v960_v28 }
  0x2f   : > { %599 = vmatprep.subr.bf16.mxu0 %v924_v21 }
  0x31   : > { %639 = vmatpush1.bf16.msra.mxu1 %v962_v30 }
  0x32   : > { %600 = vmatpush1.bf16.msra.mxu0 %v926_v23  ;;  %640 = vmatprep.subr.bf16.mxu1 %v966_v32 }
  0x33   : > { %601 = vmatprep.subr.bf16.mxu0 %v927_v25 }
  0x35   : > { %641 = vmatpush1.bf16.msra.mxu1 %v968_v36 }
  0x36   : > { %602 = vmatpush1.bf16.msra.mxu0 %v929_v27  ;;  %642 = vmatprep.subr.bf16.mxu1 %v972_v38 }
  0x37   : > { %603 = vmatprep.subr.bf16.mxu0 %v933_v29 }
  0x39   : > { %643 = vmatpush1.bf16.msra.mxu1 %v974_v40 }
  0x3a   : > { %604 = vmatpush1.bf16.msra.mxu0 %v935_v31 }
  0x3b   : > { %605 = vmatprep.subr.bf16.mxu0 %v939_v33 }
  0x3c   : > { %661 = vmatmul.mubr.bf16.vlgmr.msra.gmra.mrb[0].mxu1 %v978_v43 }
  0x3e   : > { %606 = vmatpush1.bf16.msra.mxu0 %v941_v37 }
  0x3f   : > { %607 = vmatprep.subr.bf16.mxu0 %v945_v39 }
  0x42   : > { %608 = vmatpush1.bf16.msra.mxu0 %v947_v41 }
  0x43   : > { %609 = vmatprep.subr.bf16.mxu0 %v951_v42 }
  0x46   : > { %610 = vmatpush1.bf16.msra.mxu0 %v953_v44 }
  0x47   : > { %611 = vmatprep.subr.bf16.mxu0 %v957_v45 }
  0x4a   : > { %612 = vmatpush1.bf16.msra.mxu0 %v959_v46 }
  0x4b   : > { %613 = vmatprep.subr.bf16.mxu0 %v963_v47 }
  0x4e   : > { %614 = vmatpush1.bf16.msra.mxu0 %v965_v48 }
  0x4f   : > { %615 = vmatprep.subr.bf16.mxu0 %v969_v49 }
  0x52   : > { %616 = vmatpush1.bf16.msra.mxu0 %v971_v50 }
  0x53   : > { %617 = vmatprep.subr.bf16.mxu0 %v975_v51 }
  0x56   : > { %618 = vmatpush1.bf16.msra.mxu0 %v977_v52 }
  0x59   : > { %620 = vmatmul.mubr.bf16.vlgmr.msra.gmra.mrb[0].mxu0 %v823_v53 }
 0x10f   : > { %v662_v54 = vpop.f32.mrb[0].mxu1 }
 0x110   : > { %v664_v55 = vpop.f32.mrb[1].mxu1 }
 0x111   : > { %v666_v56 = vpop.f32.mrb[2].mxu1 }
 0x112   : > { %v667_v57 = vpop.f32.mrb[3].mxu1 }
 0x12c   : > { %v621_v59 = vpop.f32.mrb[0].mxu0  ;;  %676 = sbr.rel (%p874_p7) target bundleno = 319 (0x13f), region = 40 }
 0x12d   : > { %v663_v60 = vadd.f32 %v662_v54, %v621_v59  ;;  %v623_v62 = vpop.f32.mrb[1].mxu0 }
 0x12e   : > { %v665_v63 = vadd.f32 %v664_v55, %v623_v62  ;;  %v625_v0 = vpop.f32.mrb[2].mxu0 }
 0x12f   : > { %v669_v1 = vadd.f32 %v663_v60, %v284_v58  ;;  %v626_v2 = vpop.f32.mrb[3].mxu0 }
 0x130   : > { %v670_v3 = vadd.f32 %v665_v63, %v285_v61 }
 0x131   : > { %671 = vst [vmem:[#allocation2] sm:$0xff] %v669_v1 }
 0x132   : > { %672 = vst [vmem:[#allocation2 + $0x8] sm:$0xff] %v670_v3 }
 0x138   : > { %v677_v9 = vld [vmem:[#allocation2] sm:$0xff] }
 0x139   : > { %v678_v10 = vld [vmem:[#allocation2 + $0x8] sm:$0xff]  ;;  %v691_v13 = vadd.f32 %v684_v11, %v677_v9 }
 0x13a   : > { %v692_v14 = vadd.f32 %v688_v12, %v678_v10 }
 0x13b   : > { %v693_v15 = vmax.f32 %v691_v13, 0.0 }
 0x13c   : > { %v694_v16 = vmax.f32 %v692_v14, 0.0 }
 0x13d   : > { %695 = vst [vmem:[%s1132_s3] sm:$0xff] %v693_v15 }
 0x13e   : > { %696 = vst [vmem:[%s1132_s3 + $0x8] sm:$0xff] %v694_v16 }
 0x13f PF: > { %s13_s14 = sadd.s32 1, %s1003_s14   ;;  %s1133_s12 = smov %s999_s13 }
 0x140   : > { %p10_p8 = scmp.ge.s32.totalorder %s13_s14, 5   ;;  %s1134_s13 = smov %s1136_s15 }
 0x142   :  { %12 = sbr.rel (!%p10_p8) target bundleno = 2 (0x2), region = 76 }

// kernel: embeddingnet_forward.36
= control target key start
LH: loop header
LB: loop body
LE: loop exit
PB: predicated region body
PF: predicated region fallthrough
CT: control target
= control target key end

     0   :  { %v231_v1 = vmov 0   ;;  %v172_v18 = vlaneseq  ;;  %s312_s1 = inlined_call_operand.vmem [shape: bf16[128,256], index: 1, kind: input, shape index: {}]   ;;  %s313_s0 = inlined_call_operand.vmem [shape: bf16[8,128], index: 0, kind: input, shape index: {}]   ;;  %s314_s2 = inlined_call_operand.vmem [shape: f32[1,256], index: 2, kind: input, shape index: {}]   ;;  %s315_s3 = inlined_call_operand.vmem [shape: f32[8,256], index: 3, kind: output, shape index: {}]  }
   0x1   :  { %v207_v0 = vld [vmem:[%s312_s1 + $0x4] ss:$8 sps:$4 sm:$0xff]   ;;  %152 = vmatprep.mubr.bf16.mxu0 %v231_v1  ;;  %v209_v2 = vld [vmem:[%s312_s1] ss:$8 sps:$4 sm:$0xff]   ;;  %v210_v3 = vld [vmem:[%s312_s1 + $0x14] ss:$8 sps:$4 sm:$0xff]  }
   0x2   :  { %120 = vmatprep.subr.bf16.mxu0 %v207_v0  ;;  %v212_v4 = vld [vmem:[%s312_s1 + $0x10] ss:$8 sps:$4 sm:$0xff]   ;;  %v213_v5 = vld [vmem:[%s312_s1 + $0x24] ss:$8 sps:$4 sm:$0xff]   ;;  %v215_v6 = vld [vmem:[%s312_s1 + $0x20] ss:$8 sps:$4 sm:$0xff]  }
   0x3   :  { %121 = vmatpush1.bf16.msra.mxu0 %v209_v2  ;;  %v216_v7 = vld [vmem:[%s312_s1 + $0x34] ss:$8 sps:$4 sm:$0xff]   ;;  %v218_v8 = vld [vmem:[%s312_s1 + $0x30] ss:$8 sps:$4 sm:$0xff]   ;;  %v219_v9 = vld [vmem:[%s312_s1 + $0x44] ss:$8 sps:$4 sm:$0xff]  }
   0x4   :  { %122 = vmatprep.subr.bf16.mxu0 %v210_v3  ;;  %v221_v10 = vld [vmem:[%s312_s1 + $0x40] ss:$8 sps:$4 sm:$0xff]   ;;  %v222_v11 = vld [vmem:[%s312_s1 + $0x54] ss:$8 sps:$4 sm:$0xff]   ;;  %v224_v12 = vld [vmem:[%s312_s1 + $0x50] ss:$8 sps:$4 sm:$0xff]  }
   0x5   :  { %v225_v13 = vld [vmem:[%s312_s1 + $0x64] ss:$8 sps:$4 sm:$0xff]   ;;  %v227_v14 = vld [vmem:[%s312_s1 + $0x60] ss:$8 sps:$4 sm:$0xff]   ;;  %v228_v15 = vld [vmem:[%s312_s1 + $0x74] ss:$8 sps:$4 sm:$0xff]  }
   0x6   :  { %v230_v16 = vld [vmem:[%s312_s1 + $0x70] ss:$8 sps:$4 sm:$0xff]   ;;  %v23_v17 = vld [vmem:[%s313_s0] sm:$0xf]  ;;  %v173_v19 = vshrl.u32 %v172_v18, 7 }
   0x7   :  { %123 = vmatpush1.bf16.msra.mxu0 %v212_v4  ;;  %v170_v21 = vld [vmem:[%s314_s2] sm:$0x3] }
   0x8   :  { %124 = vmatprep.subr.bf16.mxu0 %v213_v5  ;;  %v174_v20 = vsub.s32 0, %v173_v19  ;;  %v178_v22 = vsub.s32 1, %v173_v19 }
   0xa   :  { %v175_v23 = vrot.slane %v170_v21, %v174_v20  ;;  %v179_v24 = vrot.slane %v170_v21, %v178_v22 }
   0xb   :  { %125 = vmatpush1.bf16.msra.mxu0 %v215_v6 }
   0xc   :  { %126 = vmatprep.subr.bf16.mxu0 %v216_v7 }
   0xf   :  { %127 = vmatpush1.bf16.msra.mxu0 %v218_v8 }
  0x10   :  { %128 = vmatprep.subr.bf16.mxu0 %v219_v9 }
  0x13   :  { %129 = vmatpush1.bf16.msra.mxu0 %v221_v10 }
  0x14   :  { %130 = vmatprep.subr.bf16.mxu0 %v222_v11 }
  0x17   :  { %131 = vmatpush1.bf16.msra.mxu0 %v224_v12 }
  0x18   :  { %132 = vmatprep.subr.bf16.mxu0 %v225_v13 }
  0x1b   :  { %133 = vmatpush1.bf16.msra.mxu0 %v227_v14 }
  0x1c   :  { %134 = vmatprep.subr.bf16.mxu0 %v228_v15 }
  0x1f   :  { %135 = vmatpush1.bf16.msra.mxu0 %v230_v16 }
  0x22   :  { %153 = vmatmul.mubr.bf16.vlgmr.msra.gmra.mrb[0].mxu0 %v23_v17 }
  0xf5   :  { %v154_v25 = vpop.f32.mrb[0].mxu0 }
  0xf6   :  { %v182_v26 = vadd.f32 %v175_v23, %v154_v25  ;;  %v156_v27 = vpop.f32.mrb[1].mxu0 }
  0xf7   :  { %v183_v28 = vadd.f32 %v179_v24, %v156_v27  ;;  %v158_v29 = vpop.f32.mrb[2].mxu0 }
  0xf8   :  { %184 = vst [vmem:[%s315_s3] sm:$0xff] %v182_v26  ;;  %v159_v30 = vpop.f32.mrb[3].mxu0 }
  0xf9   :  { %185 = vst [vmem:[%s315_s3 + $0x8] sm:$0xff] %v183_v28 }

// kernel: embeddingnet_forward.37
= control target key start
LH: loop header
LB: loop body
LE: loop exit
PB: predicated region body
PF: predicated region fallthrough
CT: control target
= control target key end

     0   :  { %s1121_s15 = smov 0   ;;  %s1123_s16 = smov 0   ;;  %s1229_s0 = inlined_call_operand.vmem [shape: bf16[8,2304], index: 0, kind: input, shape index: {}]   ;;  %s1230_s1 = inlined_call_operand.vmem [shape: bf16[2304,256], index: 1, kind: input, shape index: {}]   ;;  %s1231_s2 = inlined_call_operand.vmem [shape: f32[1,256], index: 2, kind: input, shape index: {}]   ;;  %s1232_s3 = inlined_call_operand.vmem [shape: f32[8,256], index: 3, kind: input, shape index: {}]   ;;  %s1233_s4 = inlined_call_operand.vmem [shape: f32[8,256], index: 4, kind: output, shape index: {}]  }
   0x1   :  { %s1125_s17 = smov 0  }
   0x2 LB: > { %s26_s18 = sadd.s32 1, %s1088_s16  ;;  %p907_p0 = scmp.ge.s32.totalorder %s1092_s17, 1  ;;  %s1092_s17 = sphi %s1125_s17, %s14_s17   ;;  %s1088_s16 = sphi %s1123_s16, %s1235_s16   ;;  %s1084_s15 = sphi %s1121_s15, %s1234_s15  }
   0x3   : > { %p27_p1 = scmp.ge.s32.totalorder %s26_s18, 6  ;;  %p236_p2 = scmp.lt.s32.totalorder %s1092_s17, 7 }
   0x5   : > { %s1237_s18 = smov (%p27_p1, %s26_s18), 0  ;;  %p237_p3 = pnand %p907_p0, %p236_p2 }
   0x6   : > { %s293_s19 = smul.u32 (!%p237_p3), 3, %s1084_s15  ;;  %p911_p6 = scmp.ne.s32.totalorder (!%p237_p3), %s1084_s15, 0 }
   0x7   : > { %240 = sbr.rel (%p237_p3) target bundleno = 321 (0x141), region = 36 }
   0x8   : > { %s303_s20 = smul.u32 (!%p237_p3), 48, %s1084_s15  ;;  %p296_p4 = scmp.lt.s32.totalorder (!%p237_p3), %s293_s19, 17 }
   0xa   : > { %p305_p5 = scmp.lt.s32.totalorder (!%p237_p3), %s303_s20, 287 }
   0xe   : > { %s1239_s19 = smov (!%p296_p4, %s293_s19), 17  ;;  %s1241_s20 = smov (!%p305_p5, %s303_s20), 287 }
   0xf   : > { %s908_s21 = sshll.u32 %s1239_s19, 2  ;;  %s968_s25 = sshll.u32 %s1241_s20, 3  ;;  %v1094_v0 = vmov (!%p911_p6), 0.0  }
  0x10   : > { %s1146_s24 = scalar_lea.vmem %s1229_s0, %s908_s21  ;;  %s1151_s28 = scalar_lea.vmem %s1230_s1, %s968_s25  ;;  %345 = vst [vmem:[#allocation2] sm:$0xff] (!%p911_p6), %v1094_v0  ;;  %346 = vst [vmem:[#allocation2 + $0x8] sm:$0xff] (!%p911_p6), %v1094_v0 }
  0x11   : > { %344 = sbr.rel (%p911_p6) target bundleno = 24 (0x18), region = 40 }
  0x18 PF: > { %v995_v1 = vld [vmem:[%s1151_s28 + $0x4] ss:$8 sps:$4 sm:$0xff]   ;;  %v997_v2 = vld [vmem:[%s1151_s28] ss:$8 sps:$4 sm:$0xff]   ;;  %v1095_v3 = vmov 0   ;;  %p963_p7 = scmp.ne.s32.totalorder %s1084_s15, 5 }
  0x19   : > { %723 = vmatprep.mubr.bf16.mxu1 %v1095_v3  ;;  %650 = vmatprep.subr.bf16.mxu0 %v995_v1  ;;  %v998_v4 = vld [vmem:[%s1151_s28 + $0x14] ss:$8 sps:$4 sm:$0xff]   ;;  %v1000_v5 = vld [vmem:[%s1151_s28 + $0x10] ss:$8 sps:$4 sm:$0xff]   ;;  %v1001_v6 = vld [vmem:[%s1151_s28 + $0x24] ss:$8 sps:$4 sm:$0xff]  }
  0x1a   : > { %651 = vmatpush1.bf16.msra.mxu0 %v997_v2  ;;  %v1003_v7 = vld [vmem:[%s1151_s28 + $0x20] ss:$8 sps:$4 sm:$0xff]   ;;  %v1004_v8 = vld [vmem:[%s1151_s28 + $0x34] ss:$8 sps:$4 sm:$0xff]   ;;  %v1006_v9 = vld [vmem:[%s1151_s28 + $0x30] ss:$8 sps:$4 sm:$0xff]  }
  0x1b   : > { %652 = vmatprep.subr.bf16.mxu0 %v998_v4  ;;  %v1019_v10 = vld [vmem:[%s1151_s28 + $0x104] ss:$8 sps:$4 sm:$0xff]   ;;  %v1021_v11 = vld [vmem:[%s1151_s28 + $0x100] ss:$8 sps:$4 sm:$0xff]   ;;  %v1025_v13 = vld [vmem:[%s1151_s28 + $0x114] ss:$8 sps:$4 sm:$0xff]   ;;  %v744_v4 = vlaneseq (!%p963_p7) }
  0x1c   : > { %v1007_v12 = vld [vmem:[%s1151_s28 + $0x44] ss:$8 sps:$4 sm:$0xff]   ;;  %691 = vmatprep.subr.bf16.mxu1 %v1019_v10  ;;  %v1027_v14 = vld [vmem:[%s1151_s28 + $0x110] ss:$8 sps:$4 sm:$0xff]   ;;  %v1009_v15 = vld [vmem:[%s1151_s28 + $0x40] ss:$8 sps:$4 sm:$0xff]  }
  0x1d   : > { %692 = vmatpush1.bf16.msra.mxu1 %v1021_v11  ;;  %v1010_v16 = vld [vmem:[%s1151_s28 + $0x54] ss:$8 sps:$4 sm:$0xff]   ;;  %v1031_v17 = vld [vmem:[%s1151_s28 + $0x124] ss:$8 sps:$4 sm:$0xff]   ;;  %v1033_v18 = vld [vmem:[%s1151_s28 + $0x120] ss:$8 sps:$4 sm:$0xff]  }
  0x1e   : > { %653 = vmatpush1.bf16.msra.mxu0 %v1000_v5  ;;  %693 = vmatprep.subr.bf16.mxu1 %v1025_v13  ;;  %v1012_v19 = vld [vmem:[%s1151_s28 + $0x50] ss:$8 sps:$4 sm:$0xff]   ;;  %v1037_v20 = vld [vmem:[%s1151_s28 + $0x134] ss:$8 sps:$4 sm:$0xff]   ;;  %v1013_v21 = vld [vmem:[%s1151_s28 + $0x64] ss:$8 sps:$4 sm:$0xff]  }
  0x1f   : > { %654 = vmatprep.subr.bf16.mxu0 %v1001_v6  ;;  %v1039_v22 = vld [vmem:[%s1151_s28 + $0x130] ss:$8 sps:$4 sm:$0xff]   ;;  %v1015_v23 = vld [vmem:[%s1151_s28 + $0x60] ss:$8 sps:$4 sm:$0xff]   ;;  %v1043_v24 = vld [vmem:[%s1151_s28 + $0x144] ss:$8 sps:$4 sm:$0xff]  }
  0x20   : > { %v1016_v25 = vld [vmem:[%s1151_s28 + $0x74] ss:$8 sps:$4 sm:$0xff]   ;;  %v1045_v26 = vld [vmem:[%s1151_s28 + $0x140] ss:$8 sps:$4 sm:$0xff]   ;;  %v1018_v27 = vld [vmem:[%s1151_s28 + $0x70] ss:$8 sps:$4 sm:$0xff]  }
  0x21   : > { %694 = vmatpush1.bf16.msra.mxu1 %v1027_v14  ;;  %v1049_v28 = vld [vmem:[%s1151_s28 + $0x154] ss:$8 sps:$4 sm:$0xff]   ;;  %v1022_v29 = vld [vmem:[%s1151_s28 + $0x84] ss:$8 sps:$4 sm:$0xff]   ;;  %v1051_v30 = vld [vmem:[%s1151_s28 + $0x150] ss:$8 sps:$4 sm:$0xff]  }
  0x22   : > { %655 = vmatpush1.bf16.msra.mxu0 %v1003_v7  ;;  %695 = vmatprep.subr.bf16.mxu1 %v1031_v17  ;;  %v1024_v31 = vld [vmem:[%s1151_s28 + $0x80] ss:$8 sps:$4 sm:$0xff]   ;;  %v1055_v32 = vld [vmem:[%s1151_s28 + $0x164] ss:$8 sps:$4 sm:$0xff]   ;;  %v1028_v33 = vld [vmem:[%s1151_s28 + $0x94] ss:$8 sps:$4 sm:$0xff]  }
  0x23   : > { %656 = vmatprep.subr.bf16.mxu0 %v1004_v8  ;;  %v349_v34 = vld [vmem:[%s1146_s24] sm:$0xff]  ;;  %v1030_v37 = vld [vmem:[%s1151_s28 + $0x90] ss:$8 sps:$4 sm:$0xff]   ;;  %v1061_v38 = vld [vmem:[%s1151_s28 + $0x174] ss:$8 sps:$4 sm:$0xff]   ;;  %v745_v5 = vshrl.u32 (!%p963_p7), %v744_v4, 7 }
  0x24   : > { %v913_v35 = vcombine.high %v349_v34, %v349_v34  ;;  %v1057_v36 = vld [vmem:[%s1151_s28 + $0x160] ss:$8 sps:$4 sm:$0xff]   ;;  %v1034_v39 = vld [vmem:[%s1151_s28 + $0xa4] ss:$8 sps:$4 sm:$0xff]   ;;  %v1063_v40 = vld [vmem:[%s1151_s28 + $0x170] ss:$8 sps:$4 sm:$0xff]   ;;  %v912_v53 = vcombine.low %v349_v34, %v349_v34 }
  0x25   : > { %696 = vmatpush1.bf16.msra.mxu1 %v1033_v18  ;;  %v1036_v41 = vld [vmem:[%s1151_s28 + $0xa0] ss:$8 sps:$4 sm:$0xff]   ;;  %v1040_v42 = vld [vmem:[%s1151_s28 + $0xb4] ss:$8 sps:$4 sm:$0xff]   ;;  %v1042_v44 = vld [vmem:[%s1151_s28 + $0xb0] ss:$8 sps:$4 sm:$0xff]  }
  0x26   : > { %657 = vmatpush1.bf16.msra.mxu0 %v1006_v9  ;;  %697 = vmatprep.subr.bf16.mxu1 %v1037_v20  ;;  %v1067_v43 = vld [vmem:[%s1146_s24 + $0x8] ss:$0 sps:$4 sm:$0xff]   ;;  %v1046_v45 = vld [vmem:[%s1151_s28 + $0xc4] ss:$8 sps:$4 sm:$0xff]   ;;  %v1052_v47 = vld [vmem:[%s1151_s28 + $0xd4] ss:$8 sps:$4 sm:$0xff]  }
  0x27   : > { %658 = vmatprep.subr.bf16.mxu0 %v1007_v12  ;;  %682 = vmatprep.mubr.bf16.mxu0 %v913_v35  ;;  %v1048_v46 = vld [vmem:[%s1151_s28 + $0xc0] ss:$8 sps:$4 sm:$0xff]   ;;  %v1054_v48 = vld [vmem:[%s1151_s28 + $0xd0] ss:$8 sps:$4 sm:$0xff]   ;;  %v1058_v49 = vld [vmem:[%s1151_s28 + $0xe4] ss:$8 sps:$4 sm:$0xff]  }
  0x28   : > { %v1060_v50 = vld [vmem:[%s1151_s28 + $0xe0] ss:$8 sps:$4 sm:$0xff]   ;;  %v1064_v51 = vld [vmem:[%s1151_s28 + $0xf4] ss:$8 sps:$4 sm:$0xff]   ;;  %v1066_v52 = vld [vmem:[%s1151_s28 + $0xf0] ss:$8 sps:$4 sm:$0xff]  }
  0x29   : > { %698 = vmatpush1.bf16.msra.mxu1 %v1039_v22  ;;  %v347_v58 = vld [vmem:[#allocation2] sm:$0xff]  ;;  %v348_v61 = vld [vmem:[#allocation2 + $0x8] sm:$0xff]  ;;  %v746_v7 = vsub.s32 (!%p963_p7), 0, %v745_v5  ;;  %v750_v8 = vsub.s32 (!%p963_p7), 1, %v745_v5 }
  0x2a   : > { %659 = vmatpush1.bf16.msra.mxu0 %v1009_v15  ;;  %699 = vmatprep.subr.bf16.mxu1 %v1043_v24  ;;  %v742_v6 = vld [vmem:[%s1231_s2] sm:$0x3] (!%p963_p7)  ;;  %v757_v14 = vld [vmem:[%s1232_s3 + $0x8] sm:$0xff] (!%p963_p7) }
  0x2b   : > { %660 = vmatprep.subr.bf16.mxu0 %v1010_v16  ;;  %v747_v11 = vrot.slane (!%p963_p7), %v742_v6, %v746_v7  ;;  %v751_v12 = vrot.slane (!%p963_p7), %v742_v6, %v750_v8  ;;  %v756_v13 = vld [vmem:[%s1232_s3] sm:$0xff] (!%p963_p7) }
  0x2d   : > { %700 = vmatpush1.bf16.msra.mxu1 %v1045_v26 }
  0x2e   : > { %661 = vmatpush1.bf16.msra.mxu0 %v1012_v19  ;;  %701 = vmatprep.subr.bf16.mxu1 %v1049_v28 }
  0x2f   : > { %662 = vmatprep.subr.bf16.mxu0 %v1013_v21 }
  0x31   : > { %702 = vmatpush1.bf16.msra.mxu1 %v1051_v30 }
  0x32   : > { %663 = vmatpush1.bf16.msra.mxu0 %v1015_v23  ;;  %703 = vmatprep.subr.bf16.mxu1 %v1055_v32 }
  0x33   : > { %664 = vmatprep.subr.bf16.mxu0 %v1016_v25 }
  0x35   : > { %704 = vmatpush1.bf16.msra.mxu1 %v1057_v36 }
  0x36   : > { %665 = vmatpush1.bf16.msra.mxu0 %v1018_v27  ;;  %705 = vmatprep.subr.bf16.mxu1 %v1061_v38 }
  0x37   : > { %666 = vmatprep.subr.bf16.mxu0 %v1022_v29 }
  0x39   : > { %706 = vmatpush1.bf16.msra.mxu1 %v1063_v40 }
  0x3a   : > { %667 = vmatpush1.bf16.msra.mxu0 %v1024_v31 }
  0x3b   : > { %668 = vmatprep.subr.bf16.mxu0 %v1028_v33 }
  0x3c   : > { %724 = vmatmul.mubr.bf16.vlgmr.msra.gmra.mrb[0].mxu1 %v1067_v43 }
  0x3e   : > { %669 = vmatpush1.bf16.msra.mxu0 %v1030_v37 }
  0x3f   : > { %670 = vmatprep.subr.bf16.mxu0 %v1034_v39 }
  0x42   : > { %671 = vmatpush1.bf16.msra.mxu0 %v1036_v41 }
  0x43   : > { %672 = vmatprep.subr.bf16.mxu0 %v1040_v42 }
  0x46   : > { %673 = vmatpush1.bf16.msra.mxu0 %v1042_v44 }
  0x47   : > { %674 = vmatprep.subr.bf16.mxu0 %v1046_v45 }
  0x4a   : > { %675 = vmatpush1.bf16.msra.mxu0 %v1048_v46 }
  0x4b   : > { %676 = vmatprep.subr.bf16.mxu0 %v1052_v47 }
  0x4e   : > { %677 = vmatpush1.bf16.msra.mxu0 %v1054_v48 }
  0x4f   : > { %678 = vmatprep.subr.bf16.mxu0 %v1058_v49 }
  0x52   : > { %679 = vmatpush1.bf16.msra.mxu0 %v1060_v50 }
  0x53   : > { %680 = vmatprep.subr.bf16.mxu0 %v1064_v51 }
  0x56   : > { %681 = vmatpush1.bf16.msra.mxu0 %v1066_v52 }
  0x59   : > { %683 = vmatmul.mubr.bf16.vlgmr.msra.gmra.mrb[0].mxu0 %v912_v53 }
 0x10f   : > { %v725_v54 = vpop.f32.mrb[0].mxu1 }
 0x110   : > { %v727_v55 = vpop.f32.mrb[1].mxu1 }
 0x111   : > { %v729_v56 = vpop.f32.mrb[2].mxu1 }
 0x112   : > { %v730_v57 = vpop.f32.mrb[3].mxu1 }
 0x12c   : > { %v684_v59 = vpop.f32.mrb[0].mxu0  ;;  %739 = sbr.rel (%p963_p7) target bundleno = 321 (0x141), region = 44 }
 0x12d   : > { %v726_v60 = vadd.f32 %v725_v54, %v684_v59  ;;  %v686_v62 = vpop.f32.mrb[1].mxu0 }
 0x12e   : > { %v728_v63 = vadd.f32 %v727_v55, %v686_v62  ;;  %v688_v0 = vpop.f32.mrb[2].mxu0 }
 0x12f   : > { %v732_v1 = vadd.f32 %v726_v60, %v347_v58  ;;  %v689_v2 = vpop.f32.mrb[3].mxu0 }
 0x130   : > { %v733_v3 = vadd.f32 %v728_v63, %v348_v61 }
 0x131   : > { %734 = vst [vmem:[#allocation2] sm:$0xff] %v732_v1 }
 0x132   : > { %735 = vst [vmem:[#allocation2 + $0x8] sm:$0xff] %v733_v3 }
 0x138   : > { %v740_v9 = vld [vmem:[#allocation2] sm:$0xff] }
 0x139   : > { %v741_v10 = vld [vmem:[#allocation2 + $0x8] sm:$0xff]  ;;  %v754_v15 = vadd.f32 %v747_v11, %v740_v9 }
 0x13a   : > { %v755_v16 = vadd.f32 %v751_v12, %v741_v10 }
 0x13b   : > { %v758_v17 = vadd.f32 %v756_v13, %v754_v15 }
 0x13c   : > { %v759_v18 = vadd.f32 %v757_v14, %v755_v16 }
 0x13d   : > { %v760_v19 = vmax.f32 %v758_v17, 0.0 }
 0x13e   : > { %v761_v20 = vmax.f32 %v759_v18, 0.0 }
 0x13f   : > { %762 = vst [vmem:[%s1233_s4] sm:$0xff] %v760_v19 }
 0x140   : > { %763 = vst [vmem:[%s1233_s4 + $0x8] sm:$0xff] %v761_v20 }
 0x141 PF: > { %s14_s17 = sadd.s32 1, %s1092_s17   ;;  %s1234_s15 = smov %s1088_s16 }
 0x142   : > { %p11_p8 = scmp.ge.s32.totalorder %s14_s17, 8   ;;  %s1235_s16 = smov %s1237_s18 }
 0x144   :  { %13 = sbr.rel (!%p11_p8) target bundleno = 2 (0x2), region = 83 }

// kernel: embeddingnet_forward.38
= control target key start
LH: loop header
LB: loop body
LE: loop exit
PB: predicated region body
PF: predicated region fallthrough
CT: control target
= control target key end

     0   :  { %s1027_s12 = smov 0   ;;  %s1029_s13 = smov 0   ;;  %s1129_s0 = inlined_call_operand.vmem [shape: bf16[8,2304], index: 0, kind: input, shape index: {}]   ;;  %s1130_s1 = inlined_call_operand.vmem [shape: bf16[2304,256], index: 1, kind: input, shape index: {}]   ;;  %s1131_s2 = inlined_call_operand.vmem [shape: f32[1,256], index: 2, kind: input, shape index: {}]   ;;  %s1132_s3 = inlined_call_operand.vmem [shape: f32[8,256], index: 3, kind: output, shape index: {}]  }
   0x1   :  { %s1031_s14 = smov 0  }
   0x2 LB: > { %s25_s15 = sadd.s32 1, %s999_s13  ;;  %p818_p0 = scmp.ge.s32.totalorder %s1003_s14, 1  ;;  %s1003_s14 = sphi %s1031_s14, %s13_s14   ;;  %s999_s13 = sphi %s1029_s13, %s1134_s13   ;;  %s995_s12 = sphi %s1027_s12, %s1133_s12  }
   0x3   : > { %p26_p1 = scmp.ge.s32.totalorder %s25_s15, 6  ;;  %p194_p2 = scmp.lt.s32.totalorder %s1003_s14, 7 }
   0x5   : > { %s1136_s15 = smov (%p26_p1, %s25_s15), 0  ;;  %p195_p3 = pnand %p818_p0, %p194_p2 }
   0x6   : > { %s240_s16 = smul.u32 (!%p195_p3), 3, %s995_s12  ;;  %p822_p6 = scmp.ne.s32.totalorder (!%p195_p3), %s995_s12, 0 }
   0x7   : > { %198 = sbr.rel (%p195_p3) target bundleno = 319 (0x13f), region = 32 }
   0x8   : > { %s250_s17 = smul.u32 (!%p195_p3), 48, %s995_s12  ;;  %p243_p4 = scmp.lt.s32.totalorder (!%p195_p3), %s240_s16, 17 }
   0xa   : > { %p252_p5 = scmp.lt.s32.totalorder (!%p195_p3), %s250_s17, 287 }
   0xe   : > { %s1138_s16 = smov (!%p243_p4, %s240_s16), 17  ;;  %s1140_s17 = smov (!%p252_p5, %s250_s17), 287 }
   0xf   : > { %s819_s18 = sshll.u32 %s1138_s16, 2  ;;  %s879_s22 = sshll.u32 %s1140_s17, 3  ;;  %v1005_v0 = vmov (!%p822_p6), 0.0  }
  0x10   : > { %s1052_s21 = scalar_lea.vmem %s1129_s0, %s819_s18  ;;  %s1057_s25 = scalar_lea.vmem %s1130_s1, %s879_s22  ;;  %282 = vst [vmem:[#allocation2] sm:$0xff] (!%p822_p6), %v1005_v0  ;;  %283 = vst [vmem:[#allocation2 + $0x8] sm:$0xff] (!%p822_p6), %v1005_v0 }
  0x11   : > { %281 = sbr.rel (%p822_p6) target bundleno = 24 (0x18), region = 36 }
  0x18 PF: > { %v906_v1 = vld [vmem:[%s1057_s25 + $0x4] ss:$8 sps:$4 sm:$0xff]   ;;  %v908_v2 = vld [vmem:[%s1057_s25] ss:$8 sps:$4 sm:$0xff]   ;;  %v1006_v3 = vmov 0   ;;  %p874_p7 = scmp.ne.s32.totalorder %s995_s12, 5 }
  0x19   : > { %660 = vmatprep.mubr.bf16.mxu1 %v1006_v3  ;;  %587 = vmatprep.subr.bf16.mxu0 %v906_v1  ;;  %v909_v4 = vld [vmem:[%s1057_s25 + $0x14] ss:$8 sps:$4 sm:$0xff]   ;;  %v911_v5 = vld [vmem:[%s1057_s25 + $0x10] ss:$8 sps:$4 sm:$0xff]   ;;  %v912_v6 = vld [vmem:[%s1057_s25 + $0x24] ss:$8 sps:$4 sm:$0xff]  }
  0x1a   : > { %588 = vmatpush1.bf16.msra.mxu0 %v908_v2  ;;  %v914_v7 = vld [vmem:[%s1057_s25 + $0x20] ss:$8 sps:$4 sm:$0xff]   ;;  %v915_v8 = vld [vmem:[%s1057_s25 + $0x34] ss:$8 sps:$4 sm:$0xff]   ;;  %v917_v9 = vld [vmem:[%s1057_s25 + $0x30] ss:$8 sps:$4 sm:$0xff]  }
  0x1b   : > { %589 = vmatprep.subr.bf16.mxu0 %v909_v4  ;;  %v930_v10 = vld [vmem:[%s1057_s25 + $0x104] ss:$8 sps:$4 sm:$0xff]   ;;  %v932_v11 = vld [vmem:[%s1057_s25 + $0x100] ss:$8 sps:$4 sm:$0xff]   ;;  %v936_v13 = vld [vmem:[%s1057_s25 + $0x114] ss:$8 sps:$4 sm:$0xff]   ;;  %v681_v4 = vlaneseq (!%p874_p7) }
  0x1c   : > { %v918_v12 = vld [vmem:[%s1057_s25 + $0x44] ss:$8 sps:$4 sm:$0xff]   ;;  %628 = vmatprep.subr.bf16.mxu1 %v930_v10  ;;  %v938_v14 = vld [vmem:[%s1057_s25 + $0x110] ss:$8 sps:$4 sm:$0xff]   ;;  %v920_v15 = vld [vmem:[%s1057_s25 + $0x40] ss:$8 sps:$4 sm:$0xff]  }
  0x1d   : > { %629 = vmatpush1.bf16.msra.mxu1 %v932_v11  ;;  %v921_v16 = vld [vmem:[%s1057_s25 + $0x54] ss:$8 sps:$4 sm:$0xff]   ;;  %v942_v17 = vld [vmem:[%s1057_s25 + $0x124] ss:$8 sps:$4 sm:$0xff]   ;;  %v944_v18 = vld [vmem:[%s1057_s25 + $0x120] ss:$8 sps:$4 sm:$0xff]  }
  0x1e   : > { %590 = vmatpush1.bf16.msra.mxu0 %v911_v5  ;;  %630 = vmatprep.subr.bf16.mxu1 %v936_v13  ;;  %v923_v19 = vld [vmem:[%s1057_s25 + $0x50] ss:$8 sps:$4 sm:$0xff]   ;;  %v948_v20 = vld [vmem:[%s1057_s25 + $0x134] ss:$8 sps:$4 sm:$0xff]   ;;  %v924_v21 = vld [vmem:[%s1057_s25 + $0x64] ss:$8 sps:$4 sm:$0xff]  }
  0x1f   : > { %591 = vmatprep.subr.bf16.mxu0 %v912_v6  ;;  %v950_v22 = vld [vmem:[%s1057_s25 + $0x130] ss:$8 sps:$4 sm:$0xff]   ;;  %v926_v23 = vld [vmem:[%s1057_s25 + $0x60] ss:$8 sps:$4 sm:$0xff]   ;;  %v954_v24 = vld [vmem:[%s1057_s25 + $0x144] ss:$8 sps:$4 sm:$0xff]  }
  0x20   : > { %v927_v25 = vld [vmem:[%s1057_s25 + $0x74] ss:$8 sps:$4 sm:$0xff]   ;;  %v956_v26 = vld [vmem:[%s1057_s25 + $0x140] ss:$8 sps:$4 sm:$0xff]   ;;  %v929_v27 = vld [vmem:[%s1057_s25 + $0x70] ss:$8 sps:$4 sm:$0xff]  }
  0x21   : > { %631 = vmatpush1.bf16.msra.mxu1 %v938_v14  ;;  %v960_v28 = vld [vmem:[%s1057_s25 + $0x154] ss:$8 sps:$4 sm:$0xff]   ;;  %v933_v29 = vld [vmem:[%s1057_s25 + $0x84] ss:$8 sps:$4 sm:$0xff]   ;;  %v962_v30 = vld [vmem:[%s1057_s25 + $0x150] ss:$8 sps:$4 sm:$0xff]  }
  0x22   : > { %592 = vmatpush1.bf16.msra.mxu0 %v914_v7  ;;  %632 = vmatprep.subr.bf16.mxu1 %v942_v17  ;;  %v935_v31 = vld [vmem:[%s1057_s25 + $0x80] ss:$8 sps:$4 sm:$0xff]   ;;  %v966_v32 = vld [vmem:[%s1057_s25 + $0x164] ss:$8 sps:$4 sm:$0xff]   ;;  %v939_v33 = vld [vmem:[%s1057_s25 + $0x94] ss:$8 sps:$4 sm:$0xff]  }
  0x23   : > { %593 = vmatprep.subr.bf16.mxu0 %v915_v8  ;;  %v286_v34 = vld [vmem:[%s1052_s21] sm:$0xff]  ;;  %v941_v37 = vld [vmem:[%s1057_s25 + $0x90] ss:$8 sps:$4 sm:$0xff]   ;;  %v972_v38 = vld [vmem:[%s1057_s25 + $0x174] ss:$8 sps:$4 sm:$0xff]   ;;  %v682_v5 = vshrl.u32 (!%p874_p7), %v681_v4, 7 }
  0x24   : > { %v824_v35 = vcombine.high %v286_v34, %v286_v34  ;;  %v968_v36 = vld [vmem:[%s1057_s25 + $0x160] ss:$8 sps:$4 sm:$0xff]   ;;  %v945_v39 = vld [vmem:[%s1057_s25 + $0xa4] ss:$8 sps:$4 sm:$0xff]   ;;  %v974_v40 = vld [vmem:[%s1057_s25 + $0x170] ss:$8 sps:$4 sm:$0xff]   ;;  %v823_v53 = vcombine.low %v286_v34, %v286_v34 }
  0x25   : > { %633 = vmatpush1.bf16.msra.mxu1 %v944_v18  ;;  %v947_v41 = vld [vmem:[%s1057_s25 + $0xa0] ss:$8 sps:$4 sm:$0xff]   ;;  %v951_v42 = vld [vmem:[%s1057_s25 + $0xb4] ss:$8 sps:$4 sm:$0xff]   ;;  %v953_v44 = vld [vmem:[%s1057_s25 + $0xb0] ss:$8 sps:$4 sm:$0xff]  }
  0x26   : > { %594 = vmatpush1.bf16.msra.mxu0 %v917_v9  ;;  %634 = vmatprep.subr.bf16.mxu1 %v948_v20  ;;  %v978_v43 = vld [vmem:[%s1052_s21 + $0x8] ss:$0 sps:$4 sm:$0xff]   ;;  %v957_v45 = vld [vmem:[%s1057_s25 + $0xc4] ss:$8 sps:$4 sm:$0xff]   ;;  %v963_v47 = vld [vmem:[%s1057_s25 + $0xd4] ss:$8 sps:$4 sm:$0xff]  }
  0x27   : > { %595 = vmatprep.subr.bf16.mxu0 %v918_v12  ;;  %619 = vmatprep.mubr.bf16.mxu0 %v824_v35  ;;  %v959_v46 = vld [vmem:[%s1057_s25 + $0xc0] ss:$8 sps:$4 sm:$0xff]   ;;  %v965_v48 = vld [vmem:[%s1057_s25 + $0xd0] ss:$8 sps:$4 sm:$0xff]   ;;  %v969_v49 = vld [vmem:[%s1057_s25 + $0xe4] ss:$8 sps:$4 sm:$0xff]  }
  0x28   : > { %v971_v50 = vld [vmem:[%s1057_s25 + $0xe0] ss:$8 sps:$4 sm:$0xff]   ;;  %v975_v51 = vld [vmem:[%s1057_s25 + $0xf4] ss:$8 sps:$4 sm:$0xff]   ;;  %v977_v52 = vld [vmem:[%s1057_s25 + $0xf0] ss:$8 sps:$4 sm:$0xff]  }
  0x29   : > { %635 = vmatpush1.bf16.msra.mxu1 %v950_v22  ;;  %v284_v58 = vld [vmem:[#allocation2] sm:$0xff]  ;;  %v285_v61 = vld [vmem:[#allocation2 + $0x8] sm:$0xff]  ;;  %v683_v7 = vsub.s32 (!%p874_p7), 0, %v682_v5  ;;  %v687_v8 = vsub.s32 (!%p874_p7), 1, %v682_v5 }
  0x2a   : > { %596 = vmatpush1.bf16.msra.mxu0 %v920_v15  ;;  %636 = vmatprep.subr.bf16.mxu1 %v954_v24  ;;  %v679_v6 = vld [vmem:[%s1131_s2] sm:$0x3] (!%p874_p7) }
  0x2b   : > { %597 = vmatprep.subr.bf16.mxu0 %v921_v16  ;;  %v684_v11 = vrot.slane (!%p874_p7), %v679_v6, %v683_v7  ;;  %v688_v12 = vrot.slane (!%p874_p7), %v679_v6, %v687_v8 }
  0x2d   : > { %637 = vmatpush1.bf16.msra.mxu1 %v956_v26 }
  0x2e   : > { %598 = vmatpush1.bf16.msra.mxu0 %v923_v19  ;;  %638 = vmatprep.subr.bf16.mxu1 %v960_v28 }
  0x2f   : > { %599 = vmatprep.subr.bf16.mxu0 %v924_v21 }
  0x31   : > { %639 = vmatpush1.bf16.msra.mxu1 %v962_v30 }
  0x32   : > { %600 = vmatpush1.bf16.msra.mxu0 %v926_v23  ;;  %640 = vmatprep.subr.bf16.mxu1 %v966_v32 }
  0x33   : > { %601 = vmatprep.subr.bf16.mxu0 %v927_v25 }
  0x35   : > { %641 = vmatpush1.bf16.msra.mxu1 %v968_v36 }
  0x36   : > { %602 = vmatpush1.bf16.msra.mxu0 %v929_v27  ;;  %642 = vmatprep.subr.bf16.mxu1 %v972_v38 }
  0x37   : > { %603 = vmatprep.subr.bf16.mxu0 %v933_v29 }
  0x39   : > { %643 = vmatpush1.bf16.msra.mxu1 %v974_v40 }
  0x3a   : > { %604 = vmatpush1.bf16.msra.mxu0 %v935_v31 }
  0x3b   : > { %605 = vmatprep.subr.bf16.mxu0 %v939_v33 }
  0x3c   : > { %661 = vmatmul.mubr.bf16.vlgmr.msra.gmra.mrb[0].mxu1 %v978_v43 }
  0x3e   : > { %606 = vmatpush1.bf16.msra.mxu0 %v941_v37 }
  0x3f   : > { %607 = vmatprep.subr.bf16.mxu0 %v945_v39 }
  0x42   : > { %608 = vmatpush1.bf16.msra.mxu0 %v947_v41 }
  0x43   : > { %609 = vmatprep.subr.bf16.mxu0 %v951_v42 }
  0x46   : > { %610 = vmatpush1.bf16.msra.mxu0 %v953_v44 }
  0x47   : > { %611 = vmatprep.subr.bf16.mxu0 %v957_v45 }
  0x4a   : > { %612 = vmatpush1.bf16.msra.mxu0 %v959_v46 }
  0x4b   : > { %613 = vmatprep.subr.bf16.mxu0 %v963_v47 }
  0x4e   : > { %614 = vmatpush1.bf16.msra.mxu0 %v965_v48 }
  0x4f   : > { %615 = vmatprep.subr.bf16.mxu0 %v969_v49 }
  0x52   : > { %616 = vmatpush1.bf16.msra.mxu0 %v971_v50 }
  0x53   : > { %617 = vmatprep.subr.bf16.mxu0 %v975_v51 }
  0x56   : > { %618 = vmatpush1.bf16.msra.mxu0 %v977_v52 }
  0x59   : > { %620 = vmatmul.mubr.bf16.vlgmr.msra.gmra.mrb[0].mxu0 %v823_v53 }
 0x10f   : > { %v662_v54 = vpop.f32.mrb[0].mxu1 }
 0x110   : > { %v664_v55 = vpop.f32.mrb[1].mxu1 }
 0x111   : > { %v666_v56 = vpop.f32.mrb[2].mxu1 }
 0x112   : > { %v667_v57 = vpop.f32.mrb[3].mxu1 }
 0x12c   : > { %v621_v59 = vpop.f32.mrb[0].mxu0  ;;  %676 = sbr.rel (%p874_p7) target bundleno = 319 (0x13f), region = 40 }
 0x12d   : > { %v663_v60 = vadd.f32 %v662_v54, %v621_v59  ;;  %v623_v62 = vpop.f32.mrb[1].mxu0 }
 0x12e   : > { %v665_v63 = vadd.f32 %v664_v55, %v623_v62  ;;  %v625_v0 = vpop.f32.mrb[2].mxu0 }
 0x12f   : > { %v669_v1 = vadd.f32 %v663_v60, %v284_v58  ;;  %v626_v2 = vpop.f32.mrb[3].mxu0 }
 0x130   : > { %v670_v3 = vadd.f32 %v665_v63, %v285_v61 }
 0x131   : > { %671 = vst [vmem:[#allocation2] sm:$0xff] %v669_v1 }
 0x132   : > { %672 = vst [vmem:[#allocation2 + $0x8] sm:$0xff] %v670_v3 }
 0x138   : > { %v677_v9 = vld [vmem:[#allocation2] sm:$0xff] }
 0x139   : > { %v678_v10 = vld [vmem:[#allocation2 + $0x8] sm:$0xff]  ;;  %v691_v13 = vadd.f32 %v684_v11, %v677_v9 }
 0x13a   : > { %v692_v14 = vadd.f32 %v688_v12, %v678_v10 }
 0x13b   : > { %v693_v15 = vmax.f32 %v691_v13, 0.0 }
 0x13c   : > { %v694_v16 = vmax.f32 %v692_v14, 0.0 }
 0x13d   : > { %695 = vst [vmem:[%s1132_s3] sm:$0xff] %v693_v15 }
 0x13e   : > { %696 = vst [vmem:[%s1132_s3 + $0x8] sm:$0xff] %v694_v16 }
 0x13f PF: > { %s13_s14 = sadd.s32 1, %s1003_s14   ;;  %s1133_s12 = smov %s999_s13 }
 0x140   : > { %p10_p8 = scmp.ge.s32.totalorder %s13_s14, 8   ;;  %s1134_s13 = smov %s1136_s15 }
 0x142   :  { %12 = sbr.rel (!%p10_p8) target bundleno = 2 (0x2), region = 76 }

// kernel: embeddingnet_forward.40
= control target key start
LH: loop header
LB: loop body
LE: loop exit
PB: predicated region body
PF: predicated region fallthrough
CT: control target
= control target key end

     0   :  { %s1310_s12 = smov 0   ;;  %s1312_s13 = smov 0   ;;  %s1574_s0 = inlined_call_operand.vmem [shape: bf16[8,2304], index: 0, kind: input, shape index: {}]   ;;  %s1575_s1 = inlined_call_operand.vmem [shape: bf16[2304,512], index: 1, kind: input, shape index: {}]   ;;  %s1576_s2 = inlined_call_operand.vmem [shape: f32[1,512], index: 2, kind: input, shape index: {}]   ;;  %s1577_s3 = inlined_call_operand.vmem [shape: f32[8,512], index: 3, kind: output, shape index: {}]  }
   0x1   :  { %s1314_s14 = smov 0   ;;  %s1316_s15 = smov 0  }
   0x2   :  { %s1318_s16 = smov 0   ;;  %s1320_s17 = smov 0  }
   0x3   :  { %s1322_s18 = smov 0  }
   0x4 LB: > { %s25_s19 = sadd.s32 1, %s1278_s16  ;;  %s28_s20 = sadd.s32 1, %s1282_s17  ;;  %s1286_s18 = sphi %s1322_s18, %s13_s18   ;;  %s1282_s17 = sphi %s1320_s17, %s1583_s17   ;;  %s1278_s16 = sphi %s1318_s16, %s1582_s16   ;;  %s1274_s15 = sphi %s1316_s15, %s1581_s15   ;;  %s1270_s14 = sphi %s1314_s14, %s1580_s14   ;;  %s1266_s13 = sphi %s1312_s13, %s1579_s13   ;;  %s1262_s12 = sphi %s1310_s12, %s1578_s12  }
   0x5   : > { %p26_p0 = scmp.ge.s32.totalorder %s25_s19, 6  ;;  %p76_p1 = scmp.ne.s32.totalorder %s1266_s13, %s1262_s12 }
   0x6   : > { %p77_p2 = scmp.eq.s32.totalorder %s1286_s18, 0  ;;  %s69_s24 = sadd.s32 1, %s1266_s13 }
   0x7   : > { %s1585_s19 = smov (%p26_p0, %s25_s19), 0  ;;  %s1587_s20 = smov (!%p26_p0, %s28_s20), %s1282_s17 }
   0x8   : > { %p78_p3 = por %p77_p2, %p76_p1  ;;  %p30_p4 = scmp.ge.s32.totalorder %s1587_s20, 2 }
   0x9   : > { %s64_s21 = ssub.s32 %s1278_s16, %s1585_s19  ;;  %p1032_p6 = scmp.ge.s32.totalorder %s1286_s18, 12 }
   0xa   : > { %s1589_s20 = smov (%p30_p4, %s1587_s20), 0 }
   0xb   : > { %s65_s22 = ssub.s32 %s1282_s17, %s1589_s20  ;;  %156 = sbr.rel (%p1032_p6) target bundleno = 50 (0x32), region = 16 }
   0xc   : > { %s66_s23 = sor.u32 %s65_s22, %s64_s21 }
   0xd   : > { %p67_p5 = scmp.eq.s32.totalorder %s66_s23, 0 }
   0xf   : > { %s1361_s25 = scalar_select %p67_p5, %s1266_s13, %s69_s24  }
  0x12   : > { %172 = sbr.rel (!%p78_p3) target bundleno = 50 (0x32), region = 24  ;;  %s174_s26 = sand.u32 (%p78_p3), 1, %s1266_s13  }
  0x13   : > { %s1097_s27 = smul.u32 (%p78_p3), 384, %s174_s26  ;;  %s1033_s28 = sshll.u32 (%p78_p3), %s1282_s17, 1 }
  0x14   : > { %s1096_s29 = smul.u32 (%p78_p3), 192, %s1278_s16 }
  0x15   : > { %s1375_s8 = scalar_lea.vmem (%p78_p3), [#allocation3], %s1097_s27 }
  0x16   : > { %s180_s30 = sadd.s32 (%p78_p3), %s1096_s29, %s1033_s28 }
  0x17   : > { %s1035_s4 = sshll.u32 (%p78_p3), %s180_s30, 2 }
  0x18   : > { %s1370_s7 = scalar_lea.vmem (%p78_p3), %s1575_s1, %s1035_s4 }
  0x19   : > { %v304_v0 = vld [vmem:[%s1370_s7] sm:$0xff]  ;;  %v306_v1 = vld [vmem:[%s1370_s7 + $0x10] sm:$0xff] }
  0x1a   : > { %v308_v2 = vld [vmem:[%s1370_s7 + $0x20] sm:$0xff]  ;;  %305 = vst [vmem:[%s1375_s8] sm:$0xff] %v304_v0  ;;  %307 = vst [vmem:[%s1375_s8 + $0x8] sm:$0xff] %v306_v1  ;;  %v310_v3 = vld [vmem:[%s1370_s7 + $0x30] sm:$0xff] }
  0x1b   : > { %309 = vst [vmem:[%s1375_s8 + $0x10] sm:$0xff] %v308_v2  ;;  %v312_v4 = vld [vmem:[%s1370_s7 + $0x40] sm:$0xff]  ;;  %v314_v5 = vld [vmem:[%s1370_s7 + $0x50] sm:$0xff]  ;;  %311 = vst [vmem:[%s1375_s8 + $0x18] sm:$0xff] %v310_v3 }
  0x1c   : > { %313 = vst [vmem:[%s1375_s8 + $0x20] sm:$0xff] %v312_v4  ;;  %315 = vst [vmem:[%s1375_s8 + $0x28] sm:$0xff] %v314_v5  ;;  %v316_v6 = vld [vmem:[%s1370_s7 + $0x60] sm:$0xff]  ;;  %v318_v7 = vld [vmem:[%s1370_s7 + $0x70] sm:$0xff] }
  0x1d   : > { %v320_v8 = vld [vmem:[%s1370_s7 + $0x80] sm:$0xff]  ;;  %317 = vst [vmem:[%s1375_s8 + $0x30] sm:$0xff] %v316_v6  ;;  %319 = vst [vmem:[%s1375_s8 + $0x38] sm:$0xff] %v318_v7  ;;  %v322_v9 = vld [vmem:[%s1370_s7 + $0x90] sm:$0xff] }
  0x1e   : > { %321 = vst [vmem:[%s1375_s8 + $0x40] sm:$0xff] %v320_v8  ;;  %v324_v10 = vld [vmem:[%s1370_s7 + $0xa0] sm:$0xff]  ;;  %v326_v11 = vld [vmem:[%s1370_s7 + $0xb0] sm:$0xff]  ;;  %323 = vst [vmem:[%s1375_s8 + $0x48] sm:$0xff] %v322_v9 }
  0x1f   : > { %325 = vst [vmem:[%s1375_s8 + $0x50] sm:$0xff] %v324_v10  ;;  %327 = vst [vmem:[%s1375_s8 + $0x58] sm:$0xff] %v326_v11  ;;  %v328_v12 = vld [vmem:[%s1370_s7 + $0xc0] sm:$0xff]  ;;  %v330_v13 = vld [vmem:[%s1370_s7 + $0xd0] sm:$0xff] }
  0x20   : > { %v332_v14 = vld [vmem:[%s1370_s7 + $0xe0] sm:$0xff]  ;;  %329 = vst [vmem:[%s1375_s8 + $0x60] sm:$0xff] %v328_v12  ;;  %331 = vst [vmem:[%s1375_s8 + $0x68] sm:$0xff] %v330_v13  ;;  %v334_v15 = vld [vmem:[%s1370_s7 + $0xf0] sm:$0xff] }
  0x21   : > { %333 = vst [vmem:[%s1375_s8 + $0x70] sm:$0xff] %v332_v14  ;;  %v336_v16 = vld [vmem:[%s1370_s7 + $0x100] sm:$0xff]  ;;  %v338_v17 = vld [vmem:[%s1370_s7 + $0x110] sm:$0xff]  ;;  %335 = vst [vmem:[%s1375_s8 + $0x78] sm:$0xff] %v334_v15 }
  0x22   : > { %337 = vst [vmem:[%s1375_s8 + $0x80] sm:$0xff] %v336_v16  ;;  %339 = vst [vmem:[%s1375_s8 + $0x88] sm:$0xff] %v338_v17  ;;  %v340_v18 = vld [vmem:[%s1370_s7 + $0x120] sm:$0xff]  ;;  %v342_v19 = vld [vmem:[%s1370_s7 + $0x130] sm:$0xff] }
  0x23   : > { %v344_v20 = vld [vmem:[%s1370_s7 + $0x140] sm:$0xff]  ;;  %341 = vst [vmem:[%s1375_s8 + $0x90] sm:$0xff] %v340_v18  ;;  %343 = vst [vmem:[%s1375_s8 + $0x98] sm:$0xff] %v342_v19  ;;  %v346_v21 = vld [vmem:[%s1370_s7 + $0x150] sm:$0xff] }
  0x24   : > { %345 = vst [vmem:[%s1375_s8 + $0xa0] sm:$0xff] %v344_v20  ;;  %v348_v22 = vld [vmem:[%s1370_s7 + $0x160] sm:$0xff]  ;;  %v350_v23 = vld [vmem:[%s1370_s7 + $0x170] sm:$0xff]  ;;  %347 = vst [vmem:[%s1375_s8 + $0xa8] sm:$0xff] %v346_v21 }
  0x25   : > { %349 = vst [vmem:[%s1375_s8 + $0xb0] sm:$0xff] %v348_v22  ;;  %351 = vst [vmem:[%s1375_s8 + $0xb8] sm:$0xff] %v350_v23  ;;  %v352_v24 = vld [vmem:[%s1370_s7 + $0x180] sm:$0xff]  ;;  %v354_v25 = vld [vmem:[%s1370_s7 + $0x190] sm:$0xff] }
  0x26   : > { %v356_v26 = vld [vmem:[%s1370_s7 + $0x1a0] sm:$0xff]  ;;  %353 = vst [vmem:[%s1375_s8 + $0xc0] sm:$0xff] %v352_v24  ;;  %355 = vst [vmem:[%s1375_s8 + $0xc8] sm:$0xff] %v354_v25  ;;  %v358_v27 = vld [vmem:[%s1370_s7 + $0x1b0] sm:$0xff] }
  0x27   : > { %357 = vst [vmem:[%s1375_s8 + $0xd0] sm:$0xff] %v356_v26  ;;  %v360_v28 = vld [vmem:[%s1370_s7 + $0x1c0] sm:$0xff]  ;;  %v362_v29 = vld [vmem:[%s1370_s7 + $0x1d0] sm:$0xff]  ;;  %359 = vst [vmem:[%s1375_s8 + $0xd8] sm:$0xff] %v358_v27 }
  0x28   : > { %361 = vst [vmem:[%s1375_s8 + $0xe0] sm:$0xff] %v360_v28  ;;  %363 = vst [vmem:[%s1375_s8 + $0xe8] sm:$0xff] %v362_v29  ;;  %v364_v30 = vld [vmem:[%s1370_s7 + $0x1e0] sm:$0xff]  ;;  %v366_v31 = vld [vmem:[%s1370_s7 + $0x1f0] sm:$0xff] }
  0x29   : > { %v368_v32 = vld [vmem:[%s1370_s7 + $0x200] sm:$0xff]  ;;  %365 = vst [vmem:[%s1375_s8 + $0xf0] sm:$0xff] %v364_v30  ;;  %367 = vst [vmem:[%s1375_s8 + $0xf8] sm:$0xff] %v366_v31  ;;  %v370_v33 = vld [vmem:[%s1370_s7 + $0x210] sm:$0xff] }
  0x2a   : > { %369 = vst [vmem:[%s1375_s8 + $0x100] sm:$0xff] %v368_v32  ;;  %v372_v34 = vld [vmem:[%s1370_s7 + $0x220] sm:$0xff]  ;;  %v374_v35 = vld [vmem:[%s1370_s7 + $0x230] sm:$0xff]  ;;  %371 = vst [vmem:[%s1375_s8 + $0x108] sm:$0xff] %v370_v33 }
  0x2b   : > { %373 = vst [vmem:[%s1375_s8 + $0x110] sm:$0xff] %v372_v34  ;;  %375 = vst [vmem:[%s1375_s8 + $0x118] sm:$0xff] %v374_v35  ;;  %v376_v36 = vld [vmem:[%s1370_s7 + $0x240] sm:$0xff]  ;;  %v378_v37 = vld [vmem:[%s1370_s7 + $0x250] sm:$0xff] }
  0x2c   : > { %v380_v38 = vld [vmem:[%s1370_s7 + $0x260] sm:$0xff]  ;;  %377 = vst [vmem:[%s1375_s8 + $0x120] sm:$0xff] %v376_v36  ;;  %379 = vst [vmem:[%s1375_s8 + $0x128] sm:$0xff] %v378_v37  ;;  %v382_v39 = vld [vmem:[%s1370_s7 + $0x270] sm:$0xff] }
  0x2d   : > { %381 = vst [vmem:[%s1375_s8 + $0x130] sm:$0xff] %v380_v38  ;;  %v384_v40 = vld [vmem:[%s1370_s7 + $0x280] sm:$0xff]  ;;  %v386_v41 = vld [vmem:[%s1370_s7 + $0x290] sm:$0xff]  ;;  %383 = vst [vmem:[%s1375_s8 + $0x138] sm:$0xff] %v382_v39 }
  0x2e   : > { %385 = vst [vmem:[%s1375_s8 + $0x140] sm:$0xff] %v384_v40  ;;  %387 = vst [vmem:[%s1375_s8 + $0x148] sm:$0xff] %v386_v41  ;;  %v388_v42 = vld [vmem:[%s1370_s7 + $0x2a0] sm:$0xff]  ;;  %v390_v43 = vld [vmem:[%s1370_s7 + $0x2b0] sm:$0xff] }
  0x2f   : > { %v392_v44 = vld [vmem:[%s1370_s7 + $0x2c0] sm:$0xff]  ;;  %389 = vst [vmem:[%s1375_s8 + $0x150] sm:$0xff] %v388_v42  ;;  %391 = vst [vmem:[%s1375_s8 + $0x158] sm:$0xff] %v390_v43  ;;  %v394_v45 = vld [vmem:[%s1370_s7 + $0x2d0] sm:$0xff] }
  0x30   : > { %393 = vst [vmem:[%s1375_s8 + $0x160] sm:$0xff] %v392_v44  ;;  %v396_v46 = vld [vmem:[%s1370_s7 + $0x2e0] sm:$0xff]  ;;  %v398_v47 = vld [vmem:[%s1370_s7 + $0x2f0] sm:$0xff]  ;;  %395 = vst [vmem:[%s1375_s8 + $0x168] sm:$0xff] %v394_v45 }
  0x31   : > { %397 = vst [vmem:[%s1375_s8 + $0x170] sm:$0xff] %v396_v46  ;;  %399 = vst [vmem:[%s1375_s8 + $0x178] sm:$0xff] %v398_v47 }
  0x32 PF: > { %p1036_p7 = scmp.ge.s32.totalorder %s1286_s18, 1  ;;  %p412_p8 = scmp.lt.s32.totalorder %s1286_s18, 13 }
  0x34   : > { %p413_p9 = pnand %p1036_p7, %p412_p8 }
  0x35   : > { %s419_s9 = sand.u32 (!%p413_p9), 1, %s1262_s12   ;;  %s459_s10 = smul.u32 (!%p413_p9), 3, %s1270_s14 }
  0x36   : > { %416 = sbr.rel (%p413_p9) target bundleno = 366 (0x16e), region = 66  ;;  %s1038_s21 = sshll.u32 (!%p413_p9), %s1274_s15, 1 }
  0x37   : > { %s1098_s11 = smul.u32 (!%p413_p9), 384, %s419_s9  ;;  %p462_p10 = scmp.lt.s32.totalorder (!%p413_p9), %s459_s10, 17 }
  0x38   : > { %p472_p11 = scmp.lt.s32.totalorder (!%p413_p9), %s1038_s21, 3  ;;  %p1041_p12 = scmp.ne.s32.totalorder (!%p413_p9), %s1270_s14, 0 }
  0x39   : > { %s1492_s5 = scalar_lea.vmem (!%p413_p9), [#allocation3], %s1098_s11 }
  0x3d   : > { %s1591_s10 = smov (!%p462_p10, %s459_s10), 17  ;;  %s1593_s21 = smov (!%p472_p11, %s1038_s21), 3 }
  0x3e   : > { %s1037_s22 = sshll.u32 %s1591_s10, 2  ;;  %s474_s12 = scalar_lea.vmem %s1576_s2, %s1593_s21  ;;  %v1288_v48 = vmov (!%p1041_p12), 0.0  }
  0x3f   : > { %s1480_s26 = scalar_lea.vmem %s1574_s0, %s1037_s22  ;;  %s1040_s29 = sshll.u32 %s1593_s21, 3  ;;  %491 = vst [vmem:[#allocation2] sm:$0xff] (!%p1041_p12), %v1288_v48  ;;  %492 = vst [vmem:[#allocation2 + $0x8] sm:$0xff] (!%p1041_p12), %v1288_v48 }
  0x40   : > { %s1490_s4 = scalar_lea.vmem %s1577_s3, %s1040_s29  ;;  %490 = sbr.rel (%p1041_p12) target bundleno = 71 (0x47), region = 74 }
  0x47 PF: > { %v1157_v49 = vld [vmem:[%s1492_s5 + $0x4] ss:$8 sps:$4 sm:$0xff]   ;;  %v1159_v50 = vld [vmem:[%s1492_s5] ss:$8 sps:$4 sm:$0xff]   ;;  %v1289_v51 = vmov 0   ;;  %v495_v18 = vld [vmem:[%s1480_s26] sm:$0xff] }
  0x48   : > { %869 = vmatprep.mubr.bf16.mxu1 %v1289_v51  ;;  %796 = vmatprep.subr.bf16.mxu0 %v1157_v49  ;;  %v1160_v52 = vld [vmem:[%s1492_s5 + $0x14] ss:$8 sps:$4 sm:$0xff]   ;;  %v1162_v53 = vld [vmem:[%s1492_s5 + $0x10] ss:$8 sps:$4 sm:$0xff]   ;;  %v1163_v54 = vld [vmem:[%s1492_s5 + $0x24] ss:$8 sps:$4 sm:$0xff]   ;;  %v1043_v19 = vcombine.high %v495_v18, %v495_v18  ;;  %v1042_v37 = vcombine.low %v495_v18, %v495_v18 }
  0x49   : > { %797 = vmatpush1.bf16.msra.mxu0 %v1159_v50  ;;  %v1165_v55 = vld [vmem:[%s1492_s5 + $0x20] ss:$8 sps:$4 sm:$0xff]   ;;  %v1166_v56 = vld [vmem:[%s1492_s5 + $0x34] ss:$8 sps:$4 sm:$0xff]   ;;  %v1168_v57 = vld [vmem:[%s1492_s5 + $0x30] ss:$8 sps:$4 sm:$0xff]  }
  0x4a   : > { %798 = vmatprep.subr.bf16.mxu0 %v1160_v52  ;;  %v1181_v58 = vld [vmem:[%s1492_s5 + $0x104] ss:$8 sps:$4 sm:$0xff]   ;;  %v1183_v59 = vld [vmem:[%s1492_s5 + $0x100] ss:$8 sps:$4 sm:$0xff]   ;;  %v1187_v61 = vld [vmem:[%s1492_s5 + $0x114] ss:$8 sps:$4 sm:$0xff]   ;;  %828 = vmatprep.mubr.bf16.mxu0 %v1043_v19 }
  0x4b   : > { %v1169_v60 = vld [vmem:[%s1492_s5 + $0x44] ss:$8 sps:$4 sm:$0xff]   ;;  %837 = vmatprep.subr.bf16.mxu1 %v1181_v58  ;;  %v1189_v62 = vld [vmem:[%s1492_s5 + $0x110] ss:$8 sps:$4 sm:$0xff]   ;;  %v1171_v63 = vld [vmem:[%s1492_s5 + $0x40] ss:$8 sps:$4 sm:$0xff]  }
  0x4c   : > { %838 = vmatpush1.bf16.msra.mxu1 %v1183_v59  ;;  %v1172_v0 = vld [vmem:[%s1492_s5 + $0x54] ss:$8 sps:$4 sm:$0xff]   ;;  %v1193_v1 = vld [vmem:[%s1492_s5 + $0x124] ss:$8 sps:$4 sm:$0xff]   ;;  %v1195_v2 = vld [vmem:[%s1492_s5 + $0x120] ss:$8 sps:$4 sm:$0xff]  }
  0x4d   : > { %799 = vmatpush1.bf16.msra.mxu0 %v1162_v53  ;;  %839 = vmatprep.subr.bf16.mxu1 %v1187_v61  ;;  %v1174_v3 = vld [vmem:[%s1492_s5 + $0x50] ss:$8 sps:$4 sm:$0xff]   ;;  %v1199_v4 = vld [vmem:[%s1492_s5 + $0x134] ss:$8 sps:$4 sm:$0xff]   ;;  %v1175_v5 = vld [vmem:[%s1492_s5 + $0x64] ss:$8 sps:$4 sm:$0xff]  }
  0x4e   : > { %800 = vmatprep.subr.bf16.mxu0 %v1163_v54  ;;  %v1201_v6 = vld [vmem:[%s1492_s5 + $0x130] ss:$8 sps:$4 sm:$0xff]   ;;  %v1177_v7 = vld [vmem:[%s1492_s5 + $0x60] ss:$8 sps:$4 sm:$0xff]   ;;  %v1205_v8 = vld [vmem:[%s1492_s5 + $0x144] ss:$8 sps:$4 sm:$0xff]  }
  0x4f   : > { %v1178_v9 = vld [vmem:[%s1492_s5 + $0x74] ss:$8 sps:$4 sm:$0xff]   ;;  %v1207_v10 = vld [vmem:[%s1492_s5 + $0x140] ss:$8 sps:$4 sm:$0xff]   ;;  %v1180_v11 = vld [vmem:[%s1492_s5 + $0x70] ss:$8 sps:$4 sm:$0xff]  }
  0x50   : > { %840 = vmatpush1.bf16.msra.mxu1 %v1189_v62  ;;  %v1211_v12 = vld [vmem:[%s1492_s5 + $0x154] ss:$8 sps:$4 sm:$0xff]   ;;  %v1184_v13 = vld [vmem:[%s1492_s5 + $0x84] ss:$8 sps:$4 sm:$0xff]   ;;  %v1213_v14 = vld [vmem:[%s1492_s5 + $0x150] ss:$8 sps:$4 sm:$0xff]  }
  0x51   : > { %801 = vmatpush1.bf16.msra.mxu0 %v1165_v55  ;;  %841 = vmatprep.subr.bf16.mxu1 %v1193_v1  ;;  %v1186_v15 = vld [vmem:[%s1492_s5 + $0x80] ss:$8 sps:$4 sm:$0xff]   ;;  %v1217_v16 = vld [vmem:[%s1492_s5 + $0x164] ss:$8 sps:$4 sm:$0xff]   ;;  %v1190_v17 = vld [vmem:[%s1492_s5 + $0x94] ss:$8 sps:$4 sm:$0xff]  }
  0x52   : > { %802 = vmatprep.subr.bf16.mxu0 %v1166_v56  ;;  %v1219_v20 = vld [vmem:[%s1492_s5 + $0x160] ss:$8 sps:$4 sm:$0xff]   ;;  %v1192_v21 = vld [vmem:[%s1492_s5 + $0x90] ss:$8 sps:$4 sm:$0xff]   ;;  %v1223_v22 = vld [vmem:[%s1492_s5 + $0x174] ss:$8 sps:$4 sm:$0xff]  }
  0x53   : > { %v1196_v23 = vld [vmem:[%s1492_s5 + $0xa4] ss:$8 sps:$4 sm:$0xff]   ;;  %v1225_v24 = vld [vmem:[%s1492_s5 + $0x170] ss:$8 sps:$4 sm:$0xff]   ;;  %v1198_v25 = vld [vmem:[%s1492_s5 + $0xa0] ss:$8 sps:$4 sm:$0xff]  }
  0x54   : > { %842 = vmatpush1.bf16.msra.mxu1 %v1195_v2  ;;  %v1202_v26 = vld [vmem:[%s1492_s5 + $0xb4] ss:$8 sps:$4 sm:$0xff]   ;;  %v1229_v27 = vld [vmem:[%s1480_s26 + $0x8] ss:$0 sps:$4 sm:$0xff]   ;;  %v1208_v29 = vld [vmem:[%s1492_s5 + $0xc4] ss:$8 sps:$4 sm:$0xff]  }
  0x55   : > { %803 = vmatpush1.bf16.msra.mxu0 %v1168_v57  ;;  %843 = vmatprep.subr.bf16.mxu1 %v1199_v4  ;;  %v1204_v28 = vld [vmem:[%s1492_s5 + $0xb0] ss:$8 sps:$4 sm:$0xff]   ;;  %v1210_v30 = vld [vmem:[%s1492_s5 + $0xc0] ss:$8 sps:$4 sm:$0xff]   ;;  %v1214_v31 = vld [vmem:[%s1492_s5 + $0xd4] ss:$8 sps:$4 sm:$0xff]  }
  0x56   : > { %804 = vmatprep.subr.bf16.mxu0 %v1169_v60  ;;  %v1216_v32 = vld [vmem:[%s1492_s5 + $0xd0] ss:$8 sps:$4 sm:$0xff]   ;;  %v1220_v33 = vld [vmem:[%s1492_s5 + $0xe4] ss:$8 sps:$4 sm:$0xff]   ;;  %v1222_v34 = vld [vmem:[%s1492_s5 + $0xe0] ss:$8 sps:$4 sm:$0xff]  }
  0x57   : > { %v1226_v35 = vld [vmem:[%s1492_s5 + $0xf4] ss:$8 sps:$4 sm:$0xff]   ;;  %v1228_v36 = vld [vmem:[%s1492_s5 + $0xf0] ss:$8 sps:$4 sm:$0xff]   ;;  %p1093_p13 = scmp.ne.s32.totalorder %s1270_s14, 5 }
  0x58   : > { %844 = vmatpush1.bf16.msra.mxu1 %v1201_v6  ;;  %v493_v42 = vld [vmem:[#allocation2] sm:$0xff]  ;;  %v494_v45 = vld [vmem:[#allocation2 + $0x8] sm:$0xff]  ;;  %v890_v52 = vlaneseq (!%p1093_p13) }
  0x59   : > { %805 = vmatpush1.bf16.msra.mxu0 %v1171_v63  ;;  %845 = vmatprep.subr.bf16.mxu1 %v1205_v8  ;;  %v888_v54 = vld [vmem:[%s474_s12] sm:$0x3] (!%p1093_p13) }
  0x5a   : > { %806 = vmatprep.subr.bf16.mxu0 %v1172_v0  ;;  %v891_v53 = vshrl.u32 (!%p1093_p13), %v890_v52, 7 }
  0x5c   : > { %846 = vmatpush1.bf16.msra.mxu1 %v1207_v10  ;;  %v892_v55 = vsub.s32 (!%p1093_p13), 0, %v891_v53  ;;  %v896_v56 = vsub.s32 (!%p1093_p13), 1, %v891_v53 }
  0x5d   : > { %807 = vmatpush1.bf16.msra.mxu0 %v1174_v3  ;;  %847 = vmatprep.subr.bf16.mxu1 %v1211_v12 }
  0x5e   : > { %808 = vmatprep.subr.bf16.mxu0 %v1175_v5  ;;  %v893_v59 = vrot.slane (!%p1093_p13), %v888_v54, %v892_v55  ;;  %v897_v60 = vrot.slane (!%p1093_p13), %v888_v54, %v896_v56 }
  0x60   : > { %848 = vmatpush1.bf16.msra.mxu1 %v1213_v14 }
  0x61   : > { %809 = vmatpush1.bf16.msra.mxu0 %v1177_v7  ;;  %849 = vmatprep.subr.bf16.mxu1 %v1217_v16 }
  0x62   : > { %810 = vmatprep.subr.bf16.mxu0 %v1178_v9 }
  0x64   : > { %850 = vmatpush1.bf16.msra.mxu1 %v1219_v20 }
  0x65   : > { %811 = vmatpush1.bf16.msra.mxu0 %v1180_v11  ;;  %851 = vmatprep.subr.bf16.mxu1 %v1223_v22 }
  0x66   : > { %812 = vmatprep.subr.bf16.mxu0 %v1184_v13 }
  0x68   : > { %852 = vmatpush1.bf16.msra.mxu1 %v1225_v24 }
  0x69   : > { %813 = vmatpush1.bf16.msra.mxu0 %v1186_v15 }
  0x6a   : > { %814 = vmatprep.subr.bf16.mxu0 %v1190_v17 }
  0x6b   : > { %870 = vmatmul.mubr.bf16.vlgmr.msra.gmra.mrb[0].mxu1 %v1229_v27 }
  0x6d   : > { %815 = vmatpush1.bf16.msra.mxu0 %v1192_v21 }
  0x6e   : > { %816 = vmatprep.subr.bf16.mxu0 %v1196_v23 }
  0x71   : > { %817 = vmatpush1.bf16.msra.mxu0 %v1198_v25 }
  0x72   : > { %818 = vmatprep.subr.bf16.mxu0 %v1202_v26 }
  0x75   : > { %819 = vmatpush1.bf16.msra.mxu0 %v1204_v28 }
  0x76   : > { %820 = vmatprep.subr.bf16.mxu0 %v1208_v29 }
  0x79   : > { %821 = vmatpush1.bf16.msra.mxu0 %v1210_v30 }
  0x7a   : > { %822 = vmatprep.subr.bf16.mxu0 %v1214_v31 }
  0x7d   : > { %823 = vmatpush1.bf16.msra.mxu0 %v1216_v32 }
  0x7e   : > { %824 = vmatprep.subr.bf16.mxu0 %v1220_v33 }
  0x81   : > { %825 = vmatpush1.bf16.msra.mxu0 %v1222_v34 }
  0x82   : > { %826 = vmatprep.subr.bf16.mxu0 %v1226_v35 }
  0x85   : > { %827 = vmatpush1.bf16.msra.mxu0 %v1228_v36 }
  0x88   : > { %829 = vmatmul.mubr.bf16.vlgmr.msra.gmra.mrb[0].mxu0 %v1042_v37 }
 0x13e   : > { %v871_v38 = vpop.f32.mrb[0].mxu1 }
 0x13f   : > { %v873_v39 = vpop.f32.mrb[1].mxu1 }
 0x140   : > { %v875_v40 = vpop.f32.mrb[2].mxu1 }
 0x141   : > { %v876_v41 = vpop.f32.mrb[3].mxu1 }
 0x15b   : > { %v830_v43 = vpop.f32.mrb[0].mxu0  ;;  %885 = sbr.rel (%p1093_p13) target bundleno = 366 (0x16e), region = 78 }
 0x15c   : > { %v872_v44 = vadd.f32 %v871_v38, %v830_v43  ;;  %v832_v46 = vpop.f32.mrb[1].mxu0 }
 0x15d   : > { %v874_v47 = vadd.f32 %v873_v39, %v832_v46  ;;  %v834_v48 = vpop.f32.mrb[2].mxu0 }
 0x15e   : > { %v878_v49 = vadd.f32 %v872_v44, %v493_v42  ;;  %v835_v50 = vpop.f32.mrb[3].mxu0 }
 0x15f   : > { %v879_v51 = vadd.f32 %v874_v47, %v494_v45 }
 0x160   : > { %880 = vst [vmem:[#allocation2] sm:$0xff] %v878_v49 }
 0x161   : > { %881 = vst [vmem:[#allocation2 + $0x8] sm:$0xff] %v879_v51 }
 0x167   : > { %v886_v57 = vld [vmem:[#allocation2] sm:$0xff] }
 0x168   : > { %v887_v58 = vld [vmem:[#allocation2 + $0x8] sm:$0xff]  ;;  %v900_v61 = vadd.f32 %v893_v59, %v886_v57 }
 0x169   : > { %v901_v62 = vadd.f32 %v897_v60, %v887_v58 }
 0x16a   : > { %v902_v63 = vmax.f32 %v900_v61, 0.0 }
 0x16b   : > { %v903_v0 = vmax.f32 %v901_v62, 0.0 }
 0x16c   : > { %904 = vst [vmem:[%s1490_s4] sm:$0xff] %v902_v63 }
 0x16d   : > { %905 = vst [vmem:[%s1490_s4 + $0x8] sm:$0xff] %v903_v0 }
 0x16e PF: > { %s13_s18 = sadd.s32 1, %s1286_s18   ;;  %s1578_s12 = smov %s1266_s13 }
 0x16f   : > { %p10_p0 = scmp.ge.s32.totalorder %s13_s18, 14   ;;  %s1579_s13 = smov %s1361_s25 }
 0x170   : > { %s1580_s14 = smov %s1278_s16  ;;  %s1581_s15 = smov %s1282_s17 }
 0x171   : > { %s1582_s16 = smov %s1585_s19  ;;  %s1583_s17 = smov %s1589_s20 }
 0x172   :  { %12 = sbr.rel (!%p10_p0) target bundleno = 4 (0x4), region = 119 }

// kernel: embeddingnet_forward.41
= control target key start
LH: loop header
LB: loop body
LE: loop exit
PB: predicated region body
PF: predicated region fallthrough
CT: control target
= control target key end

     0   :  { %s1019_s12 = smov 0   ;;  %s1021_s13 = smov 0   ;;  %s1198_s0 = inlined_call_operand.vmem [shape: bf16[8,256], index: 0, kind: input, shape index: {}]   ;;  %s1199_s1 = inlined_call_operand.vmem [shape: bf16[256,512], index: 1, kind: input, shape index: {}]   ;;  %s1200_s2 = inlined_call_operand.vmem [shape: f32[1,512], index: 2, kind: input, shape index: {}]   ;;  %s1201_s3 = inlined_call_operand.vmem [shape: f32[8,512], index: 3, kind: output, shape index: {}]  }
   0x1   :  { %s1023_s14 = smov 0   ;;  %s1025_s15 = smov 0  }
   0x2   :  { %s1027_s16 = smov 0  }
   0x3 LB: > { %s28_s17 = sadd.s32 1, %s993_s15  ;;  %p76_p1 = scmp.ne.s32.totalorder %s985_s13, %s981_s12  ;;  %s997_s16 = sphi %s1027_s16, %s13_s16   ;;  %s993_s15 = sphi %s1025_s15, %s1205_s15   ;;  %s989_s14 = sphi %s1023_s14, %s1204_s14   ;;  %s985_s13 = sphi %s1021_s13, %s1203_s13   ;;  %s981_s12 = sphi %s1019_s12, %s1202_s12  }
   0x4   : > { %p30_p0 = scmp.ge.s32.totalorder %s28_s17, 2  ;;  %p77_p2 = scmp.eq.s32.totalorder %s997_s16, 0 }
   0x5   : > { %s69_s19 = sadd.s32 1, %s985_s13  ;;  %p823_p5 = scmp.ge.s32.totalorder %s997_s16, 2 }
   0x6   : > { %s1207_s17 = smov (%p30_p0, %s28_s17), 0  ;;  %p78_p3 = por %p77_p2, %p76_p1 }
   0x7   : > { %s65_s18 = ssub.s32 %s993_s15, %s1207_s17  ;;  %169 = sbr.rel (%p823_p5) target bundleno = 34 (0x22), region = 20 }
   0x8   : > { %p67_p4 = scmp.eq.s32.totalorder %s65_s18, 0 }
   0xa   : > { %s1054_s20 = scalar_select %p67_p4, %s985_s13, %s69_s19  }
   0xe   : > { %172 = sbr.rel (!%p78_p3) target bundleno = 34 (0x22), region = 24  ;;  %s174_s21 = sand.u32 (%p78_p3), 1, %s985_s13  }
   0xf   : > { %s868_s22 = sshll.u32 (%p78_p3), %s993_s15, 3  ;;  %s824_s23 = sshll.u32 (%p78_p3), %s174_s21, 8 }
  0x10   : > { %s1062_s26 = scalar_lea.vmem (%p78_p3), %s1199_s1, %s868_s22  ;;  %s1067_s27 = scalar_lea.vmem (%p78_p3), [#allocation3], %s824_s23 }
  0x11   : > { %v272_v0 = vld [vmem:[%s1062_s26] sm:$0xff] (%p78_p3)  ;;  %v274_v1 = vld [vmem:[%s1062_s26 + $0x10] sm:$0xff] (%p78_p3) }
  0x12   : > { %v276_v2 = vld [vmem:[%s1062_s26 + $0x20] sm:$0xff] (%p78_p3)  ;;  %273 = vst [vmem:[%s1067_s27] sm:$0xff] (%p78_p3), %v272_v0  ;;  %275 = vst [vmem:[%s1067_s27 + $0x8] sm:$0xff] (%p78_p3), %v274_v1  ;;  %v278_v3 = vld [vmem:[%s1062_s26 + $0x30] sm:$0xff] (%p78_p3) }
  0x13   : > { %277 = vst [vmem:[%s1067_s27 + $0x10] sm:$0xff] (%p78_p3), %v276_v2  ;;  %v280_v4 = vld [vmem:[%s1062_s26 + $0x40] sm:$0xff] (%p78_p3)  ;;  %v282_v5 = vld [vmem:[%s1062_s26 + $0x50] sm:$0xff] (%p78_p3)  ;;  %279 = vst [vmem:[%s1067_s27 + $0x18] sm:$0xff] (%p78_p3), %v278_v3 }
  0x14   : > { %281 = vst [vmem:[%s1067_s27 + $0x20] sm:$0xff] (%p78_p3), %v280_v4  ;;  %283 = vst [vmem:[%s1067_s27 + $0x28] sm:$0xff] (%p78_p3), %v282_v5  ;;  %v284_v6 = vld [vmem:[%s1062_s26 + $0x60] sm:$0xff] (%p78_p3)  ;;  %v286_v7 = vld [vmem:[%s1062_s26 + $0x70] sm:$0xff] (%p78_p3) }
  0x15   : > { %v288_v8 = vld [vmem:[%s1062_s26 + $0x80] sm:$0xff]  ;;  %285 = vst [vmem:[%s1067_s27 + $0x30] sm:$0xff] %v284_v6  ;;  %287 = vst [vmem:[%s1067_s27 + $0x38] sm:$0xff] %v286_v7  ;;  %v290_v9 = vld [vmem:[%s1062_s26 + $0x90] sm:$0xff] }
  0x16   : > { %289 = vst [vmem:[%s1067_s27 + $0x40] sm:$0xff] %v288_v8  ;;  %v292_v10 = vld [vmem:[%s1062_s26 + $0xa0] sm:$0xff]  ;;  %v294_v11 = vld [vmem:[%s1062_s26 + $0xb0] sm:$0xff]  ;;  %291 = vst [vmem:[%s1067_s27 + $0x48] sm:$0xff] %v290_v9 }
  0x17   : > { %293 = vst [vmem:[%s1067_s27 + $0x50] sm:$0xff] %v292_v10  ;;  %295 = vst [vmem:[%s1067_s27 + $0x58] sm:$0xff] %v294_v11  ;;  %v296_v12 = vld [vmem:[%s1062_s26 + $0xc0] sm:$0xff]  ;;  %v298_v13 = vld [vmem:[%s1062_s26 + $0xd0] sm:$0xff] }
  0x18   : > { %v300_v14 = vld [vmem:[%s1062_s26 + $0xe0] sm:$0xff]  ;;  %297 = vst [vmem:[%s1067_s27 + $0x60] sm:$0xff] %v296_v12  ;;  %299 = vst [vmem:[%s1067_s27 + $0x68] sm:$0xff] %v298_v13  ;;  %v302_v15 = vld [vmem:[%s1062_s26 + $0xf0] sm:$0xff] }
  0x19   : > { %301 = vst [vmem:[%s1067_s27 + $0x70] sm:$0xff] %v300_v14  ;;  %v304_v16 = vld [vmem:[%s1062_s26 + $0x100] sm:$0xff]  ;;  %v306_v17 = vld [vmem:[%s1062_s26 + $0x110] sm:$0xff]  ;;  %303 = vst [vmem:[%s1067_s27 + $0x78] sm:$0xff] %v302_v15 }
  0x1a   : > { %305 = vst [vmem:[%s1067_s27 + $0x80] sm:$0xff] %v304_v16  ;;  %307 = vst [vmem:[%s1067_s27 + $0x88] sm:$0xff] %v306_v17  ;;  %v308_v18 = vld [vmem:[%s1062_s26 + $0x120] sm:$0xff]  ;;  %v310_v19 = vld [vmem:[%s1062_s26 + $0x130] sm:$0xff] }
  0x1b   : > { %v312_v20 = vld [vmem:[%s1062_s26 + $0x140] sm:$0xff]  ;;  %309 = vst [vmem:[%s1067_s27 + $0x90] sm:$0xff] %v308_v18  ;;  %311 = vst [vmem:[%s1067_s27 + $0x98] sm:$0xff] %v310_v19  ;;  %v314_v21 = vld [vmem:[%s1062_s26 + $0x150] sm:$0xff] }
  0x1c   : > { %313 = vst [vmem:[%s1067_s27 + $0xa0] sm:$0xff] %v312_v20  ;;  %v316_v22 = vld [vmem:[%s1062_s26 + $0x160] sm:$0xff]  ;;  %v318_v23 = vld [vmem:[%s1062_s26 + $0x170] sm:$0xff]  ;;  %315 = vst [vmem:[%s1067_s27 + $0xa8] sm:$0xff] %v314_v21 }
  0x1d   : > { %317 = vst [vmem:[%s1067_s27 + $0xb0] sm:$0xff] %v316_v22  ;;  %319 = vst [vmem:[%s1067_s27 + $0xb8] sm:$0xff] %v318_v23  ;;  %v320_v24 = vld [vmem:[%s1062_s26 + $0x180] sm:$0xff]  ;;  %v322_v25 = vld [vmem:[%s1062_s26 + $0x190] sm:$0xff] }
  0x1e   : > { %v324_v26 = vld [vmem:[%s1062_s26 + $0x1a0] sm:$0xff]  ;;  %321 = vst [vmem:[%s1067_s27 + $0xc0] sm:$0xff] %v320_v24  ;;  %323 = vst [vmem:[%s1067_s27 + $0xc8] sm:$0xff] %v322_v25  ;;  %v326_v27 = vld [vmem:[%s1062_s26 + $0x1b0] sm:$0xff] }
  0x1f   : > { %325 = vst [vmem:[%s1067_s27 + $0xd0] sm:$0xff] %v324_v26  ;;  %v328_v28 = vld [vmem:[%s1062_s26 + $0x1c0] sm:$0xff]  ;;  %v330_v29 = vld [vmem:[%s1062_s26 + $0x1d0] sm:$0xff]  ;;  %327 = vst [vmem:[%s1067_s27 + $0xd8] sm:$0xff] %v326_v27 }
  0x20   : > { %329 = vst [vmem:[%s1067_s27 + $0xe0] sm:$0xff] %v328_v28  ;;  %331 = vst [vmem:[%s1067_s27 + $0xe8] sm:$0xff] %v330_v29  ;;  %v332_v30 = vld [vmem:[%s1062_s26 + $0x1e0] sm:$0xff]  ;;  %v334_v31 = vld [vmem:[%s1062_s26 + $0x1f0] sm:$0xff] }
  0x21   : > { %333 = vst [vmem:[%s1067_s27 + $0xf0] sm:$0xff] %v332_v30  ;;  %335 = vst [vmem:[%s1067_s27 + $0xf8] sm:$0xff] %v334_v31 }
  0x22 PF: > { %p827_p6 = scmp.ge.s32.totalorder %s997_s16, 1  ;;  %p348_p7 = scmp.lt.s32.totalorder %s997_s16, 3 }
  0x24   : > { %p349_p8 = pnand %p827_p6, %p348_p7 }
  0x25   : > { %s355_s28 = sand.u32 (!%p349_p8), 1, %s981_s12   ;;  %v1136_v32 = vld [vmem:[%s1198_s0] sm:$0xff] (!%p349_p8)  ;;  %s829_s6 = sshll.u32 (!%p349_p8), %s989_s14, 1  ;;  %v682_v3 = vlaneseq (!%p349_p8) }
  0x26   : > { %352 = sbr.rel (%p349_p8) target bundleno = 321 (0x141), region = 66  ;;  %s828_s4 = sshll.u32 (!%p349_p8), %s355_s28, 8  ;;  %v833_v33 = vcombine.high (!%p349_p8), %v1136_v32, %v1136_v32  ;;  %v832_v2 = vcombine.low (!%p349_p8), %v1136_v32, %v1136_v32 }
  0x27   : > { %s1140_s5 = scalar_lea.vmem (!%p349_p8), [#allocation3], %s828_s4  ;;  %p408_p9 = scmp.lt.s32.totalorder (!%p349_p8), %s829_s6, 3  ;;  %v683_v4 = vshrl.u32 (!%p349_p8), %v682_v3, 7 }
  0x28   : > { %v909_v34 = vld [vmem:[%s1140_s5 + $0x4] ss:$8 sps:$4 sm:$0xff] (!%p349_p8)   ;;  %662 = vmatprep.mubr.bf16.mxu0 (!%p349_p8), %v833_v33  ;;  %v911_v35 = vld [vmem:[%s1140_s5] ss:$8 sps:$4 sm:$0xff] (!%p349_p8)   ;;  %v912_v36 = vld [vmem:[%s1140_s5 + $0x14] ss:$8 sps:$4 sm:$0xff] (!%p349_p8)  }
  0x29   : > { %630 = vmatprep.subr.bf16.mxu0 (!%p349_p8), %v909_v34  ;;  %v914_v37 = vld [vmem:[%s1140_s5 + $0x10] ss:$8 sps:$4 sm:$0xff] (!%p349_p8)   ;;  %v915_v38 = vld [vmem:[%s1140_s5 + $0x24] ss:$8 sps:$4 sm:$0xff] (!%p349_p8)   ;;  %v917_v39 = vld [vmem:[%s1140_s5 + $0x20] ss:$8 sps:$4 sm:$0xff] (!%p349_p8)  }
  0x2a   : > { %631 = vmatpush1.bf16.msra.mxu0 (!%p349_p8), %v911_v35  ;;  %v918_v40 = vld [vmem:[%s1140_s5 + $0x34] ss:$8 sps:$4 sm:$0xff] (!%p349_p8)   ;;  %v920_v41 = vld [vmem:[%s1140_s5 + $0x30] ss:$8 sps:$4 sm:$0xff] (!%p349_p8)   ;;  %v921_v42 = vld [vmem:[%s1140_s5 + $0x44] ss:$8 sps:$4 sm:$0xff] (!%p349_p8)  }
  0x2b   : > { %632 = vmatprep.subr.bf16.mxu0 (!%p349_p8), %v912_v36  ;;  %v923_v43 = vld [vmem:[%s1140_s5 + $0x40] ss:$8 sps:$4 sm:$0xff] (!%p349_p8)   ;;  %v924_v44 = vld [vmem:[%s1140_s5 + $0x54] ss:$8 sps:$4 sm:$0xff] (!%p349_p8)   ;;  %v926_v45 = vld [vmem:[%s1140_s5 + $0x50] ss:$8 sps:$4 sm:$0xff] (!%p349_p8)  }
  0x2c   : > { %v927_v46 = vld [vmem:[%s1140_s5 + $0x64] ss:$8 sps:$4 sm:$0xff] (!%p349_p8)   ;;  %v929_v47 = vld [vmem:[%s1140_s5 + $0x60] ss:$8 sps:$4 sm:$0xff] (!%p349_p8)   ;;  %v930_v48 = vld [vmem:[%s1140_s5 + $0x74] ss:$8 sps:$4 sm:$0xff] (!%p349_p8)  }
  0x2d   : > { %v932_v49 = vld [vmem:[%s1140_s5 + $0x70] ss:$8 sps:$4 sm:$0xff]   ;;  %v933_v50 = vld [vmem:[%s1140_s5 + $0x84] ss:$8 sps:$4 sm:$0xff]   ;;  %v935_v51 = vld [vmem:[%s1140_s5 + $0x80] ss:$8 sps:$4 sm:$0xff]  }
  0x2e   : > { %633 = vmatpush1.bf16.msra.mxu0 %v914_v37  ;;  %v936_v52 = vld [vmem:[%s1140_s5 + $0x94] ss:$8 sps:$4 sm:$0xff]   ;;  %v938_v53 = vld [vmem:[%s1140_s5 + $0x90] ss:$8 sps:$4 sm:$0xff]   ;;  %v939_v54 = vld [vmem:[%s1140_s5 + $0xa4] ss:$8 sps:$4 sm:$0xff]  }
  0x2f   : > { %634 = vmatprep.subr.bf16.mxu0 %v915_v38  ;;  %v941_v55 = vld [vmem:[%s1140_s5 + $0xa0] ss:$8 sps:$4 sm:$0xff]   ;;  %v942_v56 = vld [vmem:[%s1140_s5 + $0xb4] ss:$8 sps:$4 sm:$0xff]   ;;  %v944_v57 = vld [vmem:[%s1140_s5 + $0xb0] ss:$8 sps:$4 sm:$0xff]  }
  0x30   : > { %v945_v58 = vld [vmem:[%s1140_s5 + $0xc4] ss:$8 sps:$4 sm:$0xff]   ;;  %v947_v59 = vld [vmem:[%s1140_s5 + $0xc0] ss:$8 sps:$4 sm:$0xff]   ;;  %v948_v60 = vld [vmem:[%s1140_s5 + $0xd4] ss:$8 sps:$4 sm:$0xff]  }
  0x31   : > { %v950_v61 = vld [vmem:[%s1140_s5 + $0xd0] ss:$8 sps:$4 sm:$0xff]   ;;  %v951_v62 = vld [vmem:[%s1140_s5 + $0xe4] ss:$8 sps:$4 sm:$0xff]   ;;  %v953_v63 = vld [vmem:[%s1140_s5 + $0xe0] ss:$8 sps:$4 sm:$0xff]  }
  0x32   : > { %635 = vmatpush1.bf16.msra.mxu0 %v917_v39  ;;  %v954_v0 = vld [vmem:[%s1140_s5 + $0xf4] ss:$8 sps:$4 sm:$0xff]   ;;  %v956_v1 = vld [vmem:[%s1140_s5 + $0xf0] ss:$8 sps:$4 sm:$0xff]   ;;  %s1209_s6 = smov (!%p408_p9, %s829_s6), 3  ;;  %v684_v5 = vsub.s32 0, %v683_v4 }
  0x33   : > { %636 = vmatprep.subr.bf16.mxu0 %v918_v40  ;;  %s410_s9 = scalar_lea.vmem %s1200_s2, %s1209_s6  ;;  %v688_v7 = vsub.s32 1, %v683_v4  ;;  %s831_s10 = sshll.u32 %s1209_s6, 3 }
  0x34   : > { %v680_v6 = vld [vmem:[%s410_s9] sm:$0x3]  ;;  %s420_s18 = scalar_lea.vmem %s1201_s3, %s831_s10 }
  0x35   : > { %v685_v8 = vrot.slane %v680_v6, %v684_v5  ;;  %v689_v9 = vrot.slane %v680_v6, %v688_v7 }
  0x36   : > { %637 = vmatpush1.bf16.msra.mxu0 %v920_v41 }
  0x37   : > { %638 = vmatprep.subr.bf16.mxu0 %v921_v42 }
  0x3a   : > { %639 = vmatpush1.bf16.msra.mxu0 %v923_v43 }
  0x3b   : > { %640 = vmatprep.subr.bf16.mxu0 %v924_v44 }
  0x3e   : > { %641 = vmatpush1.bf16.msra.mxu0 %v926_v45 }
  0x3f   : > { %642 = vmatprep.subr.bf16.mxu0 %v927_v46 }
  0x42   : > { %643 = vmatpush1.bf16.msra.mxu0 %v929_v47 }
  0x43   : > { %644 = vmatprep.subr.bf16.mxu0 %v930_v48 }
  0x46   : > { %645 = vmatpush1.bf16.msra.mxu0 %v932_v49 }
  0x47   : > { %646 = vmatprep.subr.bf16.mxu0 %v933_v50 }
  0x4a   : > { %647 = vmatpush1.bf16.msra.mxu0 %v935_v51 }
  0x4b   : > { %648 = vmatprep.subr.bf16.mxu0 %v936_v52 }
  0x4e   : > { %649 = vmatpush1.bf16.msra.mxu0 %v938_v53 }
  0x4f   : > { %650 = vmatprep.subr.bf16.mxu0 %v939_v54 }
  0x52   : > { %651 = vmatpush1.bf16.msra.mxu0 %v941_v55 }
  0x53   : > { %652 = vmatprep.subr.bf16.mxu0 %v942_v56 }
  0x56   : > { %653 = vmatpush1.bf16.msra.mxu0 %v944_v57 }
  0x57   : > { %654 = vmatprep.subr.bf16.mxu0 %v945_v58 }
  0x5a   : > { %655 = vmatpush1.bf16.msra.mxu0 %v947_v59 }
  0x5b   : > { %656 = vmatprep.subr.bf16.mxu0 %v948_v60 }
  0x5e   : > { %657 = vmatpush1.bf16.msra.mxu0 %v950_v61 }
  0x5f   : > { %658 = vmatprep.subr.bf16.mxu0 %v951_v62 }
  0x62   : > { %659 = vmatpush1.bf16.msra.mxu0 %v953_v63 }
  0x63   : > { %660 = vmatprep.subr.bf16.mxu0 %v954_v0 }
  0x66   : > { %661 = vmatpush1.bf16.msra.mxu0 %v956_v1 }
  0x69   : > { %663 = vmatmul.mubr.bf16.vlgmr.msra.gmra.mrb[0].mxu0 %v832_v2 }
 0x13c   : > { %v664_v10 = vpop.f32.mrb[0].mxu0 }
 0x13d   : > { %v692_v11 = vadd.f32 %v685_v8, %v664_v10  ;;  %v666_v12 = vpop.f32.mrb[1].mxu0 }
 0x13e   : > { %v693_v13 = vadd.f32 %v689_v9, %v666_v12  ;;  %v668_v14 = vpop.f32.mrb[2].mxu0 }
 0x13f   : > { %694 = vst [vmem:[%s420_s18] sm:$0xff] %v692_v11  ;;  %v669_v15 = vpop.f32.mrb[3].mxu0 }
 0x140   : > { %695 = vst [vmem:[%s420_s18 + $0x8] sm:$0xff] %v693_v13 }
 0x141 PF: > { %s13_s16 = sadd.s32 1, %s997_s16   ;;  %s1202_s12 = smov %s985_s13 }
 0x142   : > { %p10_p10 = scmp.ge.s32.totalorder %s13_s16, 4   ;;  %s1203_s13 = smov %s1054_s20 }
 0x143   : > { %s1204_s14 = smov %s993_s15  ;;  %s1205_s15 = smov %s1207_s17 }
 0x144   :  { %12 = sbr.rel (!%p10_p10) target bundleno = 3 (0x3), region = 119 }

// kernel: embeddingnet_forward.42
= control target key start
LH: loop header
LB: loop body
LE: loop exit
PB: predicated region body
PF: predicated region fallthrough
CT: control target
= control target key end

     0   :  { %s1606_s15 = smov 0   ;;  %s1608_s16 = smov 0   ;;  %s1925_s0 = inlined_call_operand.vmem [shape: bf16[8,4608], index: 0, kind: input, shape index: {}]   ;;  %s1926_s1 = inlined_call_operand.vmem [shape: bf16[4608,512], index: 1, kind: input, shape index: {}]   ;;  %s1927_s2 = inlined_call_operand.vmem [shape: f32[1,512], index: 2, kind: input, shape index: {}]   ;;  %s1928_s3 = inlined_call_operand.vmem [shape: f32[8,512], index: 3, kind: input, shape index: {}]   ;;  %s1929_s4 = inlined_call_operand.vmem [shape: f32[8,512], index: 4, kind: output, shape index: {}]  }
   0x1   :  { %s1610_s17 = smov 0   ;;  %s1612_s18 = smov 0  }
   0x2   :  { %s1614_s19 = smov 0   ;;  %s1616_s20 = smov 0  }
   0x3   :  { %s1618_s21 = smov 0  }
   0x4 LB: > { %s26_s22 = sadd.s32 1, %s1570_s19  ;;  %s29_s23 = sadd.s32 1, %s1574_s20  ;;  %s1578_s21 = sphi %s1618_s21, %s14_s21   ;;  %s1574_s20 = sphi %s1616_s20, %s1935_s20   ;;  %s1570_s19 = sphi %s1614_s19, %s1934_s19   ;;  %s1566_s18 = sphi %s1612_s18, %s1933_s18   ;;  %s1562_s17 = sphi %s1610_s17, %s1932_s17   ;;  %s1558_s16 = sphi %s1608_s16, %s1931_s16   ;;  %s1554_s15 = sphi %s1606_s15, %s1930_s15  }
   0x5   : > { %p27_p0 = scmp.ge.s32.totalorder %s26_s22, 9  ;;  %p77_p1 = scmp.ne.s32.totalorder %s1558_s16, %s1554_s15 }
   0x6   : > { %p78_p2 = scmp.eq.s32.totalorder %s1578_s21, 0  ;;  %s70_s27 = sadd.s32 1, %s1558_s16 }
   0x7   : > { %s1937_s22 = smov (%p27_p0, %s26_s22), 0  ;;  %s1939_s23 = smov (!%p27_p0, %s29_s23), %s1574_s20 }
   0x8   : > { %p79_p3 = por %p78_p2, %p77_p1  ;;  %p31_p4 = scmp.ge.s32.totalorder %s1939_s23, 2 }
   0x9   : > { %s65_s24 = ssub.s32 %s1570_s19, %s1937_s22  ;;  %p1279_p6 = scmp.ge.s32.totalorder %s1578_s21, 18 }
   0xa   : > { %s1941_s23 = smov (%p31_p4, %s1939_s23), 0 }
   0xb   : > { %s66_s25 = ssub.s32 %s1574_s20, %s1941_s23  ;;  %185 = sbr.rel (%p1279_p6) target bundleno = 57 (0x39), region = 16 }
   0xc   : > { %s67_s26 = sor.u32 %s66_s25, %s65_s24 }
   0xd   : > { %p68_p5 = scmp.eq.s32.totalorder %s67_s26, 0 }
   0xf   : > { %s1657_s28 = scalar_select %p68_p5, %s1558_s16, %s70_s27  }
  0x12   : > { %201 = sbr.rel (!%p79_p3) target bundleno = 57 (0x39), region = 24  ;;  %s203_s29 = sand.u32 (%p79_p3), 1, %s1558_s16  }
  0x13   : > { %s1282_s30 = sshll.u32 (%p79_p3), %s1574_s20, 1  ;;  %s1280_s5 = sshll.u32 (%p79_p3), %s203_s29, 9 }
  0x14   : > { %s1366_s6 = sshll.u32 (%p79_p3), %s1570_s19, 8  ;;  %s1671_s12 = scalar_lea.vmem (%p79_p3), [#allocation3], %s1280_s5 }
  0x15   : > { %s209_s7 = sadd.s32 (%p79_p3), %s1366_s6, %s1282_s30 }
  0x16   : > { %s1284_s8 = sshll.u32 (%p79_p3), %s209_s7, 2 }
  0x17   : > { %s1666_s11 = scalar_lea.vmem (%p79_p3), %s1926_s1, %s1284_s8 }
  0x18   : > { %v365_v0 = vld [vmem:[%s1666_s11] sm:$0xff] (%p79_p3)  ;;  %v367_v1 = vld [vmem:[%s1666_s11 + $0x10] sm:$0xff] (%p79_p3) }
  0x19   : > { %v369_v2 = vld [vmem:[%s1666_s11 + $0x20] sm:$0xff]  ;;  %366 = vst [vmem:[%s1671_s12] sm:$0xff] %v365_v0  ;;  %368 = vst [vmem:[%s1671_s12 + $0x8] sm:$0xff] %v367_v1  ;;  %v371_v3 = vld [vmem:[%s1666_s11 + $0x30] sm:$0xff] }
  0x1a   : > { %370 = vst [vmem:[%s1671_s12 + $0x10] sm:$0xff] %v369_v2  ;;  %v373_v4 = vld [vmem:[%s1666_s11 + $0x40] sm:$0xff]  ;;  %v375_v5 = vld [vmem:[%s1666_s11 + $0x50] sm:$0xff]  ;;  %372 = vst [vmem:[%s1671_s12 + $0x18] sm:$0xff] %v371_v3 }
  0x1b   : > { %374 = vst [vmem:[%s1671_s12 + $0x20] sm:$0xff] %v373_v4  ;;  %376 = vst [vmem:[%s1671_s12 + $0x28] sm:$0xff] %v375_v5  ;;  %v377_v6 = vld [vmem:[%s1666_s11 + $0x60] sm:$0xff]  ;;  %v379_v7 = vld [vmem:[%s1666_s11 + $0x70] sm:$0xff] }
  0x1c   : > { %v381_v8 = vld [vmem:[%s1666_s11 + $0x80] sm:$0xff]  ;;  %378 = vst [vmem:[%s1671_s12 + $0x30] sm:$0xff] %v377_v6  ;;  %380 = vst [vmem:[%s1671_s12 + $0x38] sm:$0xff] %v379_v7  ;;  %v383_v9 = vld [vmem:[%s1666_s11 + $0x90] sm:$0xff] }
  0x1d   : > { %382 = vst [vmem:[%s1671_s12 + $0x40] sm:$0xff] %v381_v8  ;;  %v385_v10 = vld [vmem:[%s1666_s11 + $0xa0] sm:$0xff]  ;;  %v387_v11 = vld [vmem:[%s1666_s11 + $0xb0] sm:$0xff]  ;;  %384 = vst [vmem:[%s1671_s12 + $0x48] sm:$0xff] %v383_v9 }
  0x1e   : > { %386 = vst [vmem:[%s1671_s12 + $0x50] sm:$0xff] %v385_v10  ;;  %388 = vst [vmem:[%s1671_s12 + $0x58] sm:$0xff] %v387_v11  ;;  %v389_v12 = vld [vmem:[%s1666_s11 + $0xc0] sm:$0xff]  ;;  %v391_v13 = vld [vmem:[%s1666_s11 + $0xd0] sm:$0xff] }
  0x1f   : > { %v393_v14 = vld [vmem:[%s1666_s11 + $0xe0] sm:$0xff]  ;;  %390 = vst [vmem:[%s1671_s12 + $0x60] sm:$0xff] %v389_v12  ;;  %392 = vst [vmem:[%s1671_s12 + $0x68] sm:$0xff] %v391_v13  ;;  %v395_v15 = vld [vmem:[%s1666_s11 + $0xf0] sm:$0xff] }
  0x20   : > { %394 = vst [vmem:[%s1671_s12 + $0x70] sm:$0xff] %v393_v14  ;;  %v397_v16 = vld [vmem:[%s1666_s11 + $0x100] sm:$0xff]  ;;  %v399_v17 = vld [vmem:[%s1666_s11 + $0x110] sm:$0xff]  ;;  %396 = vst [vmem:[%s1671_s12 + $0x78] sm:$0xff] %v395_v15 }
  0x21   : > { %398 = vst [vmem:[%s1671_s12 + $0x80] sm:$0xff] %v397_v16  ;;  %400 = vst [vmem:[%s1671_s12 + $0x88] sm:$0xff] %v399_v17  ;;  %v401_v18 = vld [vmem:[%s1666_s11 + $0x120] sm:$0xff]  ;;  %v403_v19 = vld [vmem:[%s1666_s11 + $0x130] sm:$0xff] }
  0x22   : > { %v405_v20 = vld [vmem:[%s1666_s11 + $0x140] sm:$0xff]  ;;  %402 = vst [vmem:[%s1671_s12 + $0x90] sm:$0xff] %v401_v18  ;;  %404 = vst [vmem:[%s1671_s12 + $0x98] sm:$0xff] %v403_v19  ;;  %v407_v21 = vld [vmem:[%s1666_s11 + $0x150] sm:$0xff] }
  0x23   : > { %406 = vst [vmem:[%s1671_s12 + $0xa0] sm:$0xff] %v405_v20  ;;  %v409_v22 = vld [vmem:[%s1666_s11 + $0x160] sm:$0xff]  ;;  %v411_v23 = vld [vmem:[%s1666_s11 + $0x170] sm:$0xff]  ;;  %408 = vst [vmem:[%s1671_s12 + $0xa8] sm:$0xff] %v407_v21 }
  0x24   : > { %410 = vst [vmem:[%s1671_s12 + $0xb0] sm:$0xff] %v409_v22  ;;  %412 = vst [vmem:[%s1671_s12 + $0xb8] sm:$0xff] %v411_v23  ;;  %v413_v24 = vld [vmem:[%s1666_s11 + $0x180] sm:$0xff]  ;;  %v415_v25 = vld [vmem:[%s1666_s11 + $0x190] sm:$0xff] }
  0x25   : > { %v417_v26 = vld [vmem:[%s1666_s11 + $0x1a0] sm:$0xff]  ;;  %414 = vst [vmem:[%s1671_s12 + $0xc0] sm:$0xff] %v413_v24  ;;  %416 = vst [vmem:[%s1671_s12 + $0xc8] sm:$0xff] %v415_v25  ;;  %v419_v27 = vld [vmem:[%s1666_s11 + $0x1b0] sm:$0xff] }
  0x26   : > { %418 = vst [vmem:[%s1671_s12 + $0xd0] sm:$0xff] %v417_v26  ;;  %v421_v28 = vld [vmem:[%s1666_s11 + $0x1c0] sm:$0xff]  ;;  %v423_v29 = vld [vmem:[%s1666_s11 + $0x1d0] sm:$0xff]  ;;  %420 = vst [vmem:[%s1671_s12 + $0xd8] sm:$0xff] %v419_v27 }
  0x27   : > { %422 = vst [vmem:[%s1671_s12 + $0xe0] sm:$0xff] %v421_v28  ;;  %424 = vst [vmem:[%s1671_s12 + $0xe8] sm:$0xff] %v423_v29  ;;  %v425_v30 = vld [vmem:[%s1666_s11 + $0x1e0] sm:$0xff]  ;;  %v427_v31 = vld [vmem:[%s1666_s11 + $0x1f0] sm:$0xff] }
  0x28   : > { %v429_v32 = vld [vmem:[%s1666_s11 + $0x200] sm:$0xff]  ;;  %426 = vst [vmem:[%s1671_s12 + $0xf0] sm:$0xff] %v425_v30  ;;  %428 = vst [vmem:[%s1671_s12 + $0xf8] sm:$0xff] %v427_v31  ;;  %v431_v33 = vld [vmem:[%s1666_s11 + $0x210] sm:$0xff] }
  0x29   : > { %430 = vst [vmem:[%s1671_s12 + $0x100] sm:$0xff] %v429_v32  ;;  %v433_v34 = vld [vmem:[%s1666_s11 + $0x220] sm:$0xff]  ;;  %v435_v35 = vld [vmem:[%s1666_s11 + $0x230] sm:$0xff]  ;;  %432 = vst [vmem:[%s1671_s12 + $0x108] sm:$0xff] %v431_v33 }
  0x2a   : > { %434 = vst [vmem:[%s1671_s12 + $0x110] sm:$0xff] %v433_v34  ;;  %436 = vst [vmem:[%s1671_s12 + $0x118] sm:$0xff] %v435_v35  ;;  %v437_v36 = vld [vmem:[%s1666_s11 + $0x240] sm:$0xff]  ;;  %v439_v37 = vld [vmem:[%s1666_s11 + $0x250] sm:$0xff] }
  0x2b   : > { %v441_v38 = vld [vmem:[%s1666_s11 + $0x260] sm:$0xff]  ;;  %438 = vst [vmem:[%s1671_s12 + $0x120] sm:$0xff] %v437_v36  ;;  %440 = vst [vmem:[%s1671_s12 + $0x128] sm:$0xff] %v439_v37  ;;  %v443_v39 = vld [vmem:[%s1666_s11 + $0x270] sm:$0xff] }
  0x2c   : > { %442 = vst [vmem:[%s1671_s12 + $0x130] sm:$0xff] %v441_v38  ;;  %v445_v40 = vld [vmem:[%s1666_s11 + $0x280] sm:$0xff]  ;;  %v447_v41 = vld [vmem:[%s1666_s11 + $0x290] sm:$0xff]  ;;  %444 = vst [vmem:[%s1671_s12 + $0x138] sm:$0xff] %v443_v39 }
  0x2d   : > { %446 = vst [vmem:[%s1671_s12 + $0x140] sm:$0xff] %v445_v40  ;;  %448 = vst [vmem:[%s1671_s12 + $0x148] sm:$0xff] %v447_v41  ;;  %v449_v42 = vld [vmem:[%s1666_s11 + $0x2a0] sm:$0xff]  ;;  %v451_v43 = vld [vmem:[%s1666_s11 + $0x2b0] sm:$0xff] }
  0x2e   : > { %v453_v44 = vld [vmem:[%s1666_s11 + $0x2c0] sm:$0xff]  ;;  %450 = vst [vmem:[%s1671_s12 + $0x150] sm:$0xff] %v449_v42  ;;  %452 = vst [vmem:[%s1671_s12 + $0x158] sm:$0xff] %v451_v43  ;;  %v455_v45 = vld [vmem:[%s1666_s11 + $0x2d0] sm:$0xff] }
  0x2f   : > { %454 = vst [vmem:[%s1671_s12 + $0x160] sm:$0xff] %v453_v44  ;;  %v457_v46 = vld [vmem:[%s1666_s11 + $0x2e0] sm:$0xff]  ;;  %v459_v47 = vld [vmem:[%s1666_s11 + $0x2f0] sm:$0xff]  ;;  %456 = vst [vmem:[%s1671_s12 + $0x168] sm:$0xff] %v455_v45 }
  0x30   : > { %458 = vst [vmem:[%s1671_s12 + $0x170] sm:$0xff] %v457_v46  ;;  %460 = vst [vmem:[%s1671_s12 + $0x178] sm:$0xff] %v459_v47  ;;  %v461_v48 = vld [vmem:[%s1666_s11 + $0x300] sm:$0xff]  ;;  %v463_v49 = vld [vmem:[%s1666_s11 + $0x310] sm:$0xff] }
  0x31   : > { %v465_v50 = vld [vmem:[%s1666_s11 + $0x320] sm:$0xff]  ;;  %462 = vst [vmem:[%s1671_s12 + $0x180] sm:$0xff] %v461_v48  ;;  %464 = vst [vmem:[%s1671_s12 + $0x188] sm:$0xff] %v463_v49  ;;  %v467_v51 = vld [vmem:[%s1666_s11 + $0x330] sm:$0xff] }
  0x32   : > { %466 = vst [vmem:[%s1671_s12 + $0x190] sm:$0xff] %v465_v50  ;;  %v469_v52 = vld [vmem:[%s1666_s11 + $0x340] sm:$0xff]  ;;  %v471_v53 = vld [vmem:[%s1666_s11 + $0x350] sm:$0xff]  ;;  %468 = vst [vmem:[%s1671_s12 + $0x198] sm:$0xff] %v467_v51 }
  0x33   : > { %470 = vst [vmem:[%s1671_s12 + $0x1a0] sm:$0xff] %v469_v52  ;;  %472 = vst [vmem:[%s1671_s12 + $0x1a8] sm:$0xff] %v471_v53  ;;  %v473_v54 = vld [vmem:[%s1666_s11 + $0x360] sm:$0xff]  ;;  %v475_v55 = vld [vmem:[%s1666_s11 + $0x370] sm:$0xff] }
  0x34   : > { %v477_v56 = vld [vmem:[%s1666_s11 + $0x380] sm:$0xff]  ;;  %474 = vst [vmem:[%s1671_s12 + $0x1b0] sm:$0xff] %v473_v54  ;;  %476 = vst [vmem:[%s1671_s12 + $0x1b8] sm:$0xff] %v475_v55  ;;  %v479_v57 = vld [vmem:[%s1666_s11 + $0x390] sm:$0xff] }
  0x35   : > { %478 = vst [vmem:[%s1671_s12 + $0x1c0] sm:$0xff] %v477_v56  ;;  %v481_v58 = vld [vmem:[%s1666_s11 + $0x3a0] sm:$0xff]  ;;  %v483_v59 = vld [vmem:[%s1666_s11 + $0x3b0] sm:$0xff]  ;;  %480 = vst [vmem:[%s1671_s12 + $0x1c8] sm:$0xff] %v479_v57 }
  0x36   : > { %482 = vst [vmem:[%s1671_s12 + $0x1d0] sm:$0xff] %v481_v58  ;;  %484 = vst [vmem:[%s1671_s12 + $0x1d8] sm:$0xff] %v483_v59  ;;  %v485_v60 = vld [vmem:[%s1666_s11 + $0x3c0] sm:$0xff]  ;;  %v487_v61 = vld [vmem:[%s1666_s11 + $0x3d0] sm:$0xff] }
  0x37   : > { %v489_v62 = vld [vmem:[%s1666_s11 + $0x3e0] sm:$0xff]  ;;  %486 = vst [vmem:[%s1671_s12 + $0x1e0] sm:$0xff] %v485_v60  ;;  %488 = vst [vmem:[%s1671_s12 + $0x1e8] sm:$0xff] %v487_v61  ;;  %v491_v63 = vld [vmem:[%s1666_s11 + $0x3f0] sm:$0xff] }
  0x38   : > { %490 = vst [vmem:[%s1671_s12 + $0x1f0] sm:$0xff] %v489_v62  ;;  %492 = vst [vmem:[%s1671_s12 + $0x1f8] sm:$0xff] %v491_v63 }
  0x39 PF: > { %p1285_p7 = scmp.ge.s32.totalorder %s1578_s21, 1  ;;  %p518_p8 = scmp.lt.s32.totalorder %s1578_s21, 19 }
  0x3b   : > { %p519_p9 = pnand %p1285_p7, %p518_p8 }
  0x3c   : > { %s525_s13 = sand.u32 (!%p519_p9), 1, %s1554_s15   ;;  %s1287_s14 = sshll.u32 (!%p519_p9), %s1562_s17, 2 }
  0x3d   : > { %522 = sbr.rel (%p519_p9) target bundleno = 377 (0x179), region = 70  ;;  %s1286_s24 = sshll.u32 (!%p519_p9), %s525_s13, 9 }
  0x3e   : > { %p579_p10 = scmp.lt.s32.totalorder (!%p519_p9), %s1287_s14, 35  ;;  %s1289_s25 = sshll.u32 (!%p519_p9), %s1566_s18, 1 }
  0x3f   : > { %p589_p11 = scmp.lt.s32.totalorder (!%p519_p9), %s1289_s25, 3  ;;  %s1825_s13 = scalar_lea.vmem (!%p519_p9), [#allocation3], %s1286_s24 }
  0x40   : > { %p1294_p12 = scmp.ne.s32.totalorder (!%p519_p9), %s1562_s17, 0 }
  0x44   : > { %s1943_s14 = smov (!%p579_p10, %s1287_s14), 35  ;;  %s1945_s25 = smov (!%p589_p11, %s1289_s25), 3 }
  0x45   : > { %s1288_s26 = sshll.u32 %s1943_s14, 2  ;;  %s591_s15 = scalar_lea.vmem %s1927_s2, %s1945_s25  ;;  %v1580_v0 = vmov (!%p1294_p12), 0.0  }
  0x46   : > { %s1806_s30 = scalar_lea.vmem %s1925_s0, %s1288_s26  ;;  %s1291_s7 = sshll.u32 %s1945_s25, 3  ;;  %617 = vst [vmem:[#allocation2] sm:$0xff] (!%p1294_p12), %v1580_v0  ;;  %618 = vst [vmem:[#allocation2 + $0x8] sm:$0xff] (!%p1294_p12), %v1580_v0 }
  0x47   : > { %s1818_s18 = scalar_lea.vmem %s1928_s3, %s1291_s7  ;;  %s1823_s12 = scalar_lea.vmem %s1929_s4, %s1291_s7 }
  0x48   : > { %616 = sbr.rel (%p1294_p12) target bundleno = 79 (0x4f), region = 78 }
  0x4f PF: > { %v1424_v1 = vld [vmem:[%s1825_s13 + $0x4] ss:$8 sps:$4 sm:$0xff]   ;;  %v1428_v3 = vld [vmem:[%s1825_s13] ss:$8 sps:$4 sm:$0xff]   ;;  %v1430_v5 = vld [vmem:[%s1825_s13 + $0x14] ss:$8 sps:$4 sm:$0xff]  }
  0x50   : > { %v1426_v2 = vld [vmem:[%s1825_s13 + $0x104] ss:$8 sps:$4 sm:$0xff]   ;;  %1021 = vmatprep.subr.bf16.mxu0 %v1424_v1  ;;  %v1429_v4 = vld [vmem:[%s1825_s13 + $0x100] ss:$8 sps:$4 sm:$0xff]   ;;  %v1432_v6 = vld [vmem:[%s1825_s13 + $0x114] ss:$8 sps:$4 sm:$0xff]  }
  0x51   : > { %1062 = vmatprep.subr.bf16.mxu1 %v1426_v2  ;;  %1022 = vmatpush1.bf16.msra.mxu0 %v1428_v3  ;;  %v1434_v7 = vld [vmem:[%s1825_s13 + $0x10] ss:$8 sps:$4 sm:$0xff]   ;;  %v1436_v9 = vld [vmem:[%s1825_s13 + $0x24] ss:$8 sps:$4 sm:$0xff]   ;;  %v1440_v11 = vld [vmem:[%s1825_s13 + $0x20] ss:$8 sps:$4 sm:$0xff]  }
  0x52   : > { %1063 = vmatpush1.bf16.msra.mxu1 %v1429_v4  ;;  %1023 = vmatprep.subr.bf16.mxu0 %v1430_v5  ;;  %v1435_v8 = vld [vmem:[%s1825_s13 + $0x110] ss:$8 sps:$4 sm:$0xff]   ;;  %v1438_v10 = vld [vmem:[%s1825_s13 + $0x124] ss:$8 sps:$4 sm:$0xff]   ;;  %v1441_v12 = vld [vmem:[%s1825_s13 + $0x120] ss:$8 sps:$4 sm:$0xff]  }
  0x53   : > { %1064 = vmatprep.subr.bf16.mxu1 %v1432_v6  ;;  %v1442_v13 = vld [vmem:[%s1825_s13 + $0x34] ss:$8 sps:$4 sm:$0xff]   ;;  %v1446_v15 = vld [vmem:[%s1825_s13 + $0x30] ss:$8 sps:$4 sm:$0xff]   ;;  %v1448_v17 = vld [vmem:[%s1825_s13 + $0x44] ss:$8 sps:$4 sm:$0xff]  }
  0x54   : > { %v1444_v14 = vld [vmem:[%s1825_s13 + $0x134] ss:$8 sps:$4 sm:$0xff]   ;;  %v1447_v16 = vld [vmem:[%s1825_s13 + $0x130] ss:$8 sps:$4 sm:$0xff]   ;;  %v1450_v18 = vld [vmem:[%s1825_s13 + $0x144] ss:$8 sps:$4 sm:$0xff]  }
  0x55   : > { %1024 = vmatpush1.bf16.msra.mxu0 %v1434_v7  ;;  %v1452_v19 = vld [vmem:[%s1825_s13 + $0x40] ss:$8 sps:$4 sm:$0xff]   ;;  %v1454_v21 = vld [vmem:[%s1825_s13 + $0x54] ss:$8 sps:$4 sm:$0xff]   ;;  %v1458_v23 = vld [vmem:[%s1825_s13 + $0x50] ss:$8 sps:$4 sm:$0xff]  }
  0x56   : > { %1065 = vmatpush1.bf16.msra.mxu1 %v1435_v8  ;;  %1025 = vmatprep.subr.bf16.mxu0 %v1436_v9  ;;  %v1453_v20 = vld [vmem:[%s1825_s13 + $0x140] ss:$8 sps:$4 sm:$0xff]   ;;  %v1456_v22 = vld [vmem:[%s1825_s13 + $0x154] ss:$8 sps:$4 sm:$0xff]   ;;  %v1459_v24 = vld [vmem:[%s1825_s13 + $0x150] ss:$8 sps:$4 sm:$0xff]  }
  0x57   : > { %1066 = vmatprep.subr.bf16.mxu1 %v1438_v10  ;;  %v1460_v25 = vld [vmem:[%s1825_s13 + $0x64] ss:$8 sps:$4 sm:$0xff]   ;;  %v1464_v27 = vld [vmem:[%s1825_s13 + $0x60] ss:$8 sps:$4 sm:$0xff]   ;;  %v1466_v29 = vld [vmem:[%s1825_s13 + $0x74] ss:$8 sps:$4 sm:$0xff]  }
  0x58   : > { %v1462_v26 = vld [vmem:[%s1825_s13 + $0x164] ss:$8 sps:$4 sm:$0xff]   ;;  %v1465_v28 = vld [vmem:[%s1825_s13 + $0x160] ss:$8 sps:$4 sm:$0xff]   ;;  %v1468_v30 = vld [vmem:[%s1825_s13 + $0x174] ss:$8 sps:$4 sm:$0xff]  }
  0x59   : > { %1026 = vmatpush1.bf16.msra.mxu0 %v1440_v11  ;;  %v1470_v31 = vld [vmem:[%s1825_s13 + $0x70] ss:$8 sps:$4 sm:$0xff]   ;;  %v1472_v33 = vld [vmem:[%s1825_s13 + $0x84] ss:$8 sps:$4 sm:$0xff]   ;;  %v1476_v35 = vld [vmem:[%s1825_s13 + $0x80] ss:$8 sps:$4 sm:$0xff]  }
  0x5a   : > { %1067 = vmatpush1.bf16.msra.mxu1 %v1441_v12  ;;  %1027 = vmatprep.subr.bf16.mxu0 %v1442_v13  ;;  %v1471_v32 = vld [vmem:[%s1825_s13 + $0x170] ss:$8 sps:$4 sm:$0xff]   ;;  %v1474_v34 = vld [vmem:[%s1825_s13 + $0x184] ss:$8 sps:$4 sm:$0xff]   ;;  %v1477_v36 = vld [vmem:[%s1825_s13 + $0x180] ss:$8 sps:$4 sm:$0xff]  }
  0x5b   : > { %1068 = vmatprep.subr.bf16.mxu1 %v1444_v14  ;;  %v1478_v37 = vld [vmem:[%s1825_s13 + $0x94] ss:$8 sps:$4 sm:$0xff]   ;;  %v1482_v39 = vld [vmem:[%s1825_s13 + $0x90] ss:$8 sps:$4 sm:$0xff]   ;;  %v1484_v41 = vld [vmem:[%s1825_s13 + $0xa4] ss:$8 sps:$4 sm:$0xff]  }
  0x5c   : > { %v1480_v38 = vld [vmem:[%s1825_s13 + $0x194] ss:$8 sps:$4 sm:$0xff]   ;;  %v1483_v40 = vld [vmem:[%s1825_s13 + $0x190] ss:$8 sps:$4 sm:$0xff]   ;;  %v1486_v42 = vld [vmem:[%s1825_s13 + $0x1a4] ss:$8 sps:$4 sm:$0xff]  }
  0x5d   : > { %1028 = vmatpush1.bf16.msra.mxu0 %v1446_v15  ;;  %v1488_v43 = vld [vmem:[%s1825_s13 + $0xa0] ss:$8 sps:$4 sm:$0xff]   ;;  %v1490_v45 = vld [vmem:[%s1825_s13 + $0xb4] ss:$8 sps:$4 sm:$0xff]   ;;  %v1494_v50 = vld [vmem:[%s1825_s13 + $0xb0] ss:$8 sps:$4 sm:$0xff]  }
  0x5e   : > { %1069 = vmatpush1.bf16.msra.mxu1 %v1447_v16  ;;  %1029 = vmatprep.subr.bf16.mxu0 %v1448_v17  ;;  %v1489_v44 = vld [vmem:[%s1825_s13 + $0x1a0] ss:$8 sps:$4 sm:$0xff]   ;;  %v1492_v46 = vld [vmem:[%s1825_s13 + $0x1b4] ss:$8 sps:$4 sm:$0xff]   ;;  %v1495_v51 = vld [vmem:[%s1825_s13 + $0x1b0] ss:$8 sps:$4 sm:$0xff]  }
  0x5f   : > { %1070 = vmatprep.subr.bf16.mxu1 %v1450_v18  ;;  %v621_v47 = vld [vmem:[%s1806_s30] sm:$0xff]  ;;  %v622_v49 = vld [vmem:[%s1806_s30 + $0x8] sm:$0xff]  ;;  %v1496_v53 = vld [vmem:[%s1825_s13 + $0xc4] ss:$8 sps:$4 sm:$0xff]   ;;  %p1363_p13 = scmp.ne.s32.totalorder %s1562_s17, 8 }
  0x60   : > { %v1296_v48 = vcombine.high %v621_v47, %v621_v47  ;;  %v1298_v52 = vcombine.high %v622_v49, %v622_v49  ;;  %v1498_v54 = vld [vmem:[%s1825_s13 + $0x1c4] ss:$8 sps:$4 sm:$0xff]   ;;  %v1500_v55 = vld [vmem:[%s1825_s13 + $0xc0] ss:$8 sps:$4 sm:$0xff]   ;;  %v1502_v57 = vld [vmem:[%s1825_s13 + $0xd4] ss:$8 sps:$4 sm:$0xff]   ;;  %v1295_v5 = vcombine.low %v621_v47, %v621_v47  ;;  %v1297_v6 = vcombine.low %v622_v49, %v622_v49 }
  0x61   : > { %1030 = vmatpush1.bf16.msra.mxu0 %v1452_v19  ;;  %v1501_v56 = vld [vmem:[%s1825_s13 + $0x1c0] ss:$8 sps:$4 sm:$0xff]   ;;  %v1504_v58 = vld [vmem:[%s1825_s13 + $0x1d4] ss:$8 sps:$4 sm:$0xff]   ;;  %v1506_v59 = vld [vmem:[%s1825_s13 + $0xd0] ss:$8 sps:$4 sm:$0xff]  }
  0x62   : > { %1071 = vmatpush1.bf16.msra.mxu1 %v1453_v20  ;;  %1031 = vmatprep.subr.bf16.mxu0 %v1454_v21  ;;  %v1507_v60 = vld [vmem:[%s1825_s13 + $0x1d0] ss:$8 sps:$4 sm:$0xff]   ;;  %v1508_v61 = vld [vmem:[%s1825_s13 + $0xe4] ss:$8 sps:$4 sm:$0xff]   ;;  %v1512_v63 = vld [vmem:[%s1825_s13 + $0xe0] ss:$8 sps:$4 sm:$0xff]   ;;  %v1115_v21 = vlaneseq (!%p1363_p13) }
  0x63   : > { %1072 = vmatprep.subr.bf16.mxu1 %v1456_v22  ;;  %1053 = vmatprep.mubr.bf16.mxu0 %v1296_v48  ;;  %v1510_v62 = vld [vmem:[%s1825_s13 + $0x1e4] ss:$8 sps:$4 sm:$0xff]   ;;  %v1513_v0 = vld [vmem:[%s1825_s13 + $0x1e0] ss:$8 sps:$4 sm:$0xff]   ;;  %v1514_v1 = vld [vmem:[%s1825_s13 + $0xf4] ss:$8 sps:$4 sm:$0xff]  }
  0x64   : > { %1094 = vmatprep.mubr.bf16.mxu1 %v1298_v52  ;;  %v1516_v2 = vld [vmem:[%s1825_s13 + $0x1f4] ss:$8 sps:$4 sm:$0xff]   ;;  %v1518_v3 = vld [vmem:[%s1825_s13 + $0xf0] ss:$8 sps:$4 sm:$0xff]   ;;  %v1116_v22 = vshrl.u32 (!%p1363_p13), %v1115_v21, 7 }
  0x65   : > { %1032 = vmatpush1.bf16.msra.mxu0 %v1458_v23  ;;  %v1519_v4 = vld [vmem:[%s1825_s13 + $0x1f0] ss:$8 sps:$4 sm:$0xff]  }
  0x66   : > { %1073 = vmatpush1.bf16.msra.mxu1 %v1459_v24  ;;  %1033 = vmatprep.subr.bf16.mxu0 %v1460_v25  ;;  %v619_v8 = vld [vmem:[#allocation2] sm:$0xff]  ;;  %v620_v12 = vld [vmem:[#allocation2 + $0x8] sm:$0xff]  ;;  %v1117_v24 = vsub.s32 (!%p1363_p13), 0, %v1116_v22  ;;  %v1121_v25 = vsub.s32 (!%p1363_p13), 1, %v1116_v22 }
  0x67   : > { %1074 = vmatprep.subr.bf16.mxu1 %v1462_v26  ;;  %v1113_v23 = vld [vmem:[%s591_s15] sm:$0x3] (!%p1363_p13) }
  0x69   : > { %1034 = vmatpush1.bf16.msra.mxu0 %v1464_v27 }
  0x6a   : > { %1075 = vmatpush1.bf16.msra.mxu1 %v1465_v28  ;;  %1035 = vmatprep.subr.bf16.mxu0 %v1466_v29  ;;  %v1118_v28 = vrot.slane (!%p1363_p13), %v1113_v23, %v1117_v24  ;;  %v1122_v29 = vrot.slane (!%p1363_p13), %v1113_v23, %v1121_v25 }
  0x6b   : > { %1076 = vmatprep.subr.bf16.mxu1 %v1468_v30  ;;  %v1127_v30 = vld [vmem:[%s1818_s18] sm:$0xff] (!%p1363_p13) }
  0x6d   : > { %1036 = vmatpush1.bf16.msra.mxu0 %v1470_v31  ;;  %v1128_v31 = vld [vmem:[%s1818_s18 + $0x8] sm:$0xff] (!%p1363_p13) }
  0x6e   : > { %1077 = vmatpush1.bf16.msra.mxu1 %v1471_v32  ;;  %1037 = vmatprep.subr.bf16.mxu0 %v1472_v33 }
  0x6f   : > { %1078 = vmatprep.subr.bf16.mxu1 %v1474_v34 }
  0x71   : > { %1038 = vmatpush1.bf16.msra.mxu0 %v1476_v35 }
  0x72   : > { %1079 = vmatpush1.bf16.msra.mxu1 %v1477_v36  ;;  %1039 = vmatprep.subr.bf16.mxu0 %v1478_v37 }
  0x73   : > { %1080 = vmatprep.subr.bf16.mxu1 %v1480_v38 }
  0x75   : > { %1040 = vmatpush1.bf16.msra.mxu0 %v1482_v39 }
  0x76   : > { %1081 = vmatpush1.bf16.msra.mxu1 %v1483_v40  ;;  %1041 = vmatprep.subr.bf16.mxu0 %v1484_v41 }
  0x77   : > { %1082 = vmatprep.subr.bf16.mxu1 %v1486_v42 }
  0x79   : > { %1042 = vmatpush1.bf16.msra.mxu0 %v1488_v43 }
  0x7a   : > { %1083 = vmatpush1.bf16.msra.mxu1 %v1489_v44  ;;  %1043 = vmatprep.subr.bf16.mxu0 %v1490_v45 }
  0x7b   : > { %1084 = vmatprep.subr.bf16.mxu1 %v1492_v46 }
  0x7d   : > { %1044 = vmatpush1.bf16.msra.mxu0 %v1494_v50 }
  0x7e   : > { %1085 = vmatpush1.bf16.msra.mxu1 %v1495_v51  ;;  %1045 = vmatprep.subr.bf16.mxu0 %v1496_v53 }
  0x7f   : > { %1086 = vmatprep.subr.bf16.mxu1 %v1498_v54 }
  0x81   : > { %1046 = vmatpush1.bf16.msra.mxu0 %v1500_v55 }
  0x82   : > { %1087 = vmatpush1.bf16.msra.mxu1 %v1501_v56  ;;  %1047 = vmatprep.subr.bf16.mxu0 %v1502_v57 }
  0x83   : > { %1088 = vmatprep.subr.bf16.mxu1 %v1504_v58 }
  0x85   : > { %1048 = vmatpush1.bf16.msra.mxu0 %v1506_v59 }
  0x86   : > { %1089 = vmatpush1.bf16.msra.mxu1 %v1507_v60  ;;  %1049 = vmatprep.subr.bf16.mxu0 %v1508_v61 }
  0x87   : > { %1090 = vmatprep.subr.bf16.mxu1 %v1510_v62 }
  0x89   : > { %1050 = vmatpush1.bf16.msra.mxu0 %v1512_v63 }
  0x8a   : > { %1091 = vmatpush1.bf16.msra.mxu1 %v1513_v0  ;;  %1051 = vmatprep.subr.bf16.mxu0 %v1514_v1 }
  0x8b   : > { %1092 = vmatprep.subr.bf16.mxu1 %v1516_v2 }
  0x8d   : > { %1052 = vmatpush1.bf16.msra.mxu0 %v1518_v3 }
  0x8e   : > { %1093 = vmatpush1.bf16.msra.mxu1 %v1519_v4 }
  0x90   : > { %1054 = vmatmul.mubr.bf16.vlgmr.msra.gmra.mrb[0].mxu0 %v1295_v5 }
  0x91   : > { %1095 = vmatmul.mubr.bf16.vlgmr.msra.gmra.mrb[0].mxu1 %v1297_v6 }
 0x163   : > { %v1055_v7 = vpop.f32.mrb[0].mxu0 }
 0x164   : > { %v1096_v9 = vpop.f32.mrb[0].mxu1  ;;  %v1057_v11 = vpop.f32.mrb[1].mxu0  ;;  %1110 = sbr.rel (%p1363_p13) target bundleno = 377 (0x179), region = 82 }
 0x165   : > { %v1097_v10 = vadd.f32 %v1096_v9, %v1055_v7  ;;  %v1098_v13 = vpop.f32.mrb[1].mxu1  ;;  %v1059_v15 = vpop.f32.mrb[2].mxu0 }
 0x166   : > { %v1099_v14 = vadd.f32 %v1098_v13, %v1057_v11  ;;  %v1100_v16 = vpop.f32.mrb[2].mxu1  ;;  %v1060_v18 = vpop.f32.mrb[3].mxu0 }
 0x167   : > { %v1103_v17 = vadd.f32 %v1097_v10, %v619_v8  ;;  %v1101_v19 = vpop.f32.mrb[3].mxu1 }
 0x168   : > { %v1104_v20 = vadd.f32 %v1099_v14, %v620_v12 }
 0x169   : > { %1105 = vst [vmem:[#allocation2] sm:$0xff] %v1103_v17 }
 0x16a   : > { %1106 = vst [vmem:[#allocation2 + $0x8] sm:$0xff] %v1104_v20 }
 0x170   : > { %v1111_v26 = vld [vmem:[#allocation2] sm:$0xff] }
 0x171   : > { %v1112_v27 = vld [vmem:[#allocation2 + $0x8] sm:$0xff]  ;;  %v1125_v32 = vadd.f32 %v1118_v28, %v1111_v26 }
 0x172   : > { %v1126_v33 = vadd.f32 %v1122_v29, %v1112_v27 }
 0x173   : > { %v1129_v34 = vadd.f32 %v1127_v30, %v1125_v32 }
 0x174   : > { %v1130_v35 = vadd.f32 %v1128_v31, %v1126_v33 }
 0x175   : > { %v1131_v36 = vmax.f32 %v1129_v34, 0.0 }
 0x176   : > { %v1132_v37 = vmax.f32 %v1130_v35, 0.0 }
 0x177   : > { %1133 = vst [vmem:[%s1823_s12] sm:$0xff] %v1131_v36 }
 0x178   : > { %1134 = vst [vmem:[%s1823_s12 + $0x8] sm:$0xff] %v1132_v37 }
 0x179 PF: > { %s14_s21 = sadd.s32 1, %s1578_s21   ;;  %s1930_s15 = smov %s1558_s16 }
 0x17a   : > { %p11_p0 = scmp.ge.s32.totalorder %s14_s21, 20   ;;  %s1931_s16 = smov %s1657_s28 }
 0x17b   : > { %s1932_s17 = smov %s1570_s19  ;;  %s1933_s18 = smov %s1574_s20 }
 0x17c   : > { %s1934_s19 = smov %s1937_s22  ;;  %s1935_s20 = smov %s1941_s23 }
 0x17d   :  { %13 = sbr.rel (!%p11_p0) target bundleno = 4 (0x4), region = 126 }

// kernel: embeddingnet_forward.43
= control target key start
LH: loop header
LB: loop body
LE: loop exit
PB: predicated region body
PF: predicated region fallthrough
CT: control target
= control target key end

     0   :  { %s1514_s12 = smov 0   ;;  %s1516_s13 = smov 0   ;;  %s1826_s0 = inlined_call_operand.vmem [shape: bf16[8,4608], index: 0, kind: input, shape index: {}]   ;;  %s1827_s1 = inlined_call_operand.vmem [shape: bf16[4608,512], index: 1, kind: input, shape index: {}]   ;;  %s1828_s2 = inlined_call_operand.vmem [shape: f32[1,512], index: 2, kind: input, shape index: {}]   ;;  %s1829_s3 = inlined_call_operand.vmem [shape: f32[8,512], index: 3, kind: output, shape index: {}]  }
   0x1   :  { %s1518_s14 = smov 0   ;;  %s1520_s15 = smov 0  }
   0x2   :  { %s1522_s16 = smov 0   ;;  %s1524_s17 = smov 0  }
   0x3   :  { %s1526_s18 = smov 0  }
   0x4 LB: > { %s25_s19 = sadd.s32 1, %s1483_s16  ;;  %s28_s20 = sadd.s32 1, %s1487_s17  ;;  %s1491_s18 = sphi %s1526_s18, %s13_s18   ;;  %s1487_s17 = sphi %s1524_s17, %s1835_s17   ;;  %s1483_s16 = sphi %s1522_s16, %s1834_s16   ;;  %s1479_s15 = sphi %s1520_s15, %s1833_s15   ;;  %s1475_s14 = sphi %s1518_s14, %s1832_s14   ;;  %s1471_s13 = sphi %s1516_s13, %s1831_s13   ;;  %s1467_s12 = sphi %s1514_s12, %s1830_s12  }
   0x5   : > { %p26_p0 = scmp.ge.s32.totalorder %s25_s19, 9  ;;  %p76_p1 = scmp.ne.s32.totalorder %s1471_s13, %s1467_s12 }
   0x6   : > { %p77_p2 = scmp.eq.s32.totalorder %s1491_s18, 0  ;;  %s69_s24 = sadd.s32 1, %s1471_s13 }
   0x7   : > { %s1837_s19 = smov (%p26_p0, %s25_s19), 0  ;;  %s1839_s20 = smov (!%p26_p0, %s28_s20), %s1487_s17 }
   0x8   : > { %p78_p3 = por %p77_p2, %p76_p1  ;;  %p30_p4 = scmp.ge.s32.totalorder %s1839_s20, 2 }
   0x9   : > { %s64_s21 = ssub.s32 %s1483_s16, %s1837_s19  ;;  %p1194_p6 = scmp.ge.s32.totalorder %s1491_s18, 18 }
   0xa   : > { %s1841_s20 = smov (%p30_p4, %s1839_s20), 0 }
   0xb   : > { %s65_s22 = ssub.s32 %s1487_s17, %s1841_s20  ;;  %156 = sbr.rel (%p1194_p6) target bundleno = 57 (0x39), region = 16 }
   0xc   : > { %s66_s23 = sor.u32 %s65_s22, %s64_s21 }
   0xd   : > { %p67_p5 = scmp.eq.s32.totalorder %s66_s23, 0 }
   0xf   : > { %s1565_s25 = scalar_select %p67_p5, %s1471_s13, %s69_s24  }
  0x12   : > { %172 = sbr.rel (!%p78_p3) target bundleno = 57 (0x39), region = 24  ;;  %s174_s26 = sand.u32 (%p78_p3), 1, %s1471_s13  }
  0x13   : > { %s1197_s27 = sshll.u32 (%p78_p3), %s1487_s17, 1  ;;  %s1195_s28 = sshll.u32 (%p78_p3), %s174_s26, 9 }
  0x14   : > { %s1279_s29 = sshll.u32 (%p78_p3), %s1483_s16, 8  ;;  %s1579_s8 = scalar_lea.vmem (%p78_p3), [#allocation3], %s1195_s28 }
  0x15   : > { %s180_s30 = sadd.s32 (%p78_p3), %s1279_s29, %s1197_s27 }
  0x16   : > { %s1199_s4 = sshll.u32 (%p78_p3), %s180_s30, 2 }
  0x17   : > { %s1574_s7 = scalar_lea.vmem (%p78_p3), %s1827_s1, %s1199_s4 }
  0x18   : > { %v336_v0 = vld [vmem:[%s1574_s7] sm:$0xff] (%p78_p3)  ;;  %v338_v1 = vld [vmem:[%s1574_s7 + $0x10] sm:$0xff] (%p78_p3) }
  0x19   : > { %v340_v2 = vld [vmem:[%s1574_s7 + $0x20] sm:$0xff]  ;;  %337 = vst [vmem:[%s1579_s8] sm:$0xff] %v336_v0  ;;  %339 = vst [vmem:[%s1579_s8 + $0x8] sm:$0xff] %v338_v1  ;;  %v342_v3 = vld [vmem:[%s1574_s7 + $0x30] sm:$0xff] }
  0x1a   : > { %341 = vst [vmem:[%s1579_s8 + $0x10] sm:$0xff] %v340_v2  ;;  %v344_v4 = vld [vmem:[%s1574_s7 + $0x40] sm:$0xff]  ;;  %v346_v5 = vld [vmem:[%s1574_s7 + $0x50] sm:$0xff]  ;;  %343 = vst [vmem:[%s1579_s8 + $0x18] sm:$0xff] %v342_v3 }
  0x1b   : > { %345 = vst [vmem:[%s1579_s8 + $0x20] sm:$0xff] %v344_v4  ;;  %347 = vst [vmem:[%s1579_s8 + $0x28] sm:$0xff] %v346_v5  ;;  %v348_v6 = vld [vmem:[%s1574_s7 + $0x60] sm:$0xff]  ;;  %v350_v7 = vld [vmem:[%s1574_s7 + $0x70] sm:$0xff] }
  0x1c   : > { %v352_v8 = vld [vmem:[%s1574_s7 + $0x80] sm:$0xff]  ;;  %349 = vst [vmem:[%s1579_s8 + $0x30] sm:$0xff] %v348_v6  ;;  %351 = vst [vmem:[%s1579_s8 + $0x38] sm:$0xff] %v350_v7  ;;  %v354_v9 = vld [vmem:[%s1574_s7 + $0x90] sm:$0xff] }
  0x1d   : > { %353 = vst [vmem:[%s1579_s8 + $0x40] sm:$0xff] %v352_v8  ;;  %v356_v10 = vld [vmem:[%s1574_s7 + $0xa0] sm:$0xff]  ;;  %v358_v11 = vld [vmem:[%s1574_s7 + $0xb0] sm:$0xff]  ;;  %355 = vst [vmem:[%s1579_s8 + $0x48] sm:$0xff] %v354_v9 }
  0x1e   : > { %357 = vst [vmem:[%s1579_s8 + $0x50] sm:$0xff] %v356_v10  ;;  %359 = vst [vmem:[%s1579_s8 + $0x58] sm:$0xff] %v358_v11  ;;  %v360_v12 = vld [vmem:[%s1574_s7 + $0xc0] sm:$0xff]  ;;  %v362_v13 = vld [vmem:[%s1574_s7 + $0xd0] sm:$0xff] }
  0x1f   : > { %v364_v14 = vld [vmem:[%s1574_s7 + $0xe0] sm:$0xff]  ;;  %361 = vst [vmem:[%s1579_s8 + $0x60] sm:$0xff] %v360_v12  ;;  %363 = vst [vmem:[%s1579_s8 + $0x68] sm:$0xff] %v362_v13  ;;  %v366_v15 = vld [vmem:[%s1574_s7 + $0xf0] sm:$0xff] }
  0x20   : > { %365 = vst [vmem:[%s1579_s8 + $0x70] sm:$0xff] %v364_v14  ;;  %v368_v16 = vld [vmem:[%s1574_s7 + $0x100] sm:$0xff]  ;;  %v370_v17 = vld [vmem:[%s1574_s7 + $0x110] sm:$0xff]  ;;  %367 = vst [vmem:[%s1579_s8 + $0x78] sm:$0xff] %v366_v15 }
  0x21   : > { %369 = vst [vmem:[%s1579_s8 + $0x80] sm:$0xff] %v368_v16  ;;  %371 = vst [vmem:[%s1579_s8 + $0x88] sm:$0xff] %v370_v17  ;;  %v372_v18 = vld [vmem:[%s1574_s7 + $0x120] sm:$0xff]  ;;  %v374_v19 = vld [vmem:[%s1574_s7 + $0x130] sm:$0xff] }
  0x22   : > { %v376_v20 = vld [vmem:[%s1574_s7 + $0x140] sm:$0xff]  ;;  %373 = vst [vmem:[%s1579_s8 + $0x90] sm:$0xff] %v372_v18  ;;  %375 = vst [vmem:[%s1579_s8 + $0x98] sm:$0xff] %v374_v19  ;;  %v378_v21 = vld [vmem:[%s1574_s7 + $0x150] sm:$0xff] }
  0x23   : > { %377 = vst [vmem:[%s1579_s8 + $0xa0] sm:$0xff] %v376_v20  ;;  %v380_v22 = vld [vmem:[%s1574_s7 + $0x160] sm:$0xff]  ;;  %v382_v23 = vld [vmem:[%s1574_s7 + $0x170] sm:$0xff]  ;;  %379 = vst [vmem:[%s1579_s8 + $0xa8] sm:$0xff] %v378_v21 }
  0x24   : > { %381 = vst [vmem:[%s1579_s8 + $0xb0] sm:$0xff] %v380_v22  ;;  %383 = vst [vmem:[%s1579_s8 + $0xb8] sm:$0xff] %v382_v23  ;;  %v384_v24 = vld [vmem:[%s1574_s7 + $0x180] sm:$0xff]  ;;  %v386_v25 = vld [vmem:[%s1574_s7 + $0x190] sm:$0xff] }
  0x25   : > { %v388_v26 = vld [vmem:[%s1574_s7 + $0x1a0] sm:$0xff]  ;;  %385 = vst [vmem:[%s1579_s8 + $0xc0] sm:$0xff] %v384_v24  ;;  %387 = vst [vmem:[%s1579_s8 + $0xc8] sm:$0xff] %v386_v25  ;;  %v390_v27 = vld [vmem:[%s1574_s7 + $0x1b0] sm:$0xff] }
  0x26   : > { %389 = vst [vmem:[%s1579_s8 + $0xd0] sm:$0xff] %v388_v26  ;;  %v392_v28 = vld [vmem:[%s1574_s7 + $0x1c0] sm:$0xff]  ;;  %v394_v29 = vld [vmem:[%s1574_s7 + $0x1d0] sm:$0xff]  ;;  %391 = vst [vmem:[%s1579_s8 + $0xd8] sm:$0xff] %v390_v27 }
  0x27   : > { %393 = vst [vmem:[%s1579_s8 + $0xe0] sm:$0xff] %v392_v28  ;;  %395 = vst [vmem:[%s1579_s8 + $0xe8] sm:$0xff] %v394_v29  ;;  %v396_v30 = vld [vmem:[%s1574_s7 + $0x1e0] sm:$0xff]  ;;  %v398_v31 = vld [vmem:[%s1574_s7 + $0x1f0] sm:$0xff] }
  0x28   : > { %v400_v32 = vld [vmem:[%s1574_s7 + $0x200] sm:$0xff]  ;;  %397 = vst [vmem:[%s1579_s8 + $0xf0] sm:$0xff] %v396_v30  ;;  %399 = vst [vmem:[%s1579_s8 + $0xf8] sm:$0xff] %v398_v31  ;;  %v402_v33 = vld [vmem:[%s1574_s7 + $0x210] sm:$0xff] }
  0x29   : > { %401 = vst [vmem:[%s1579_s8 + $0x100] sm:$0xff] %v400_v32  ;;  %v404_v34 = vld [vmem:[%s1574_s7 + $0x220] sm:$0xff]  ;;  %v406_v35 = vld [vmem:[%s1574_s7 + $0x230] sm:$0xff]  ;;  %403 = vst [vmem:[%s1579_s8 + $0x108] sm:$0xff] %v402_v33 }
  0x2a   : > { %405 = vst [vmem:[%s1579_s8 + $0x110] sm:$0xff] %v404_v34  ;;  %407 = vst [vmem:[%s1579_s8 + $0x118] sm:$0xff] %v406_v35  ;;  %v408_v36 = vld [vmem:[%s1574_s7 + $0x240] sm:$0xff]  ;;  %v410_v37 = vld [vmem:[%s1574_s7 + $0x250] sm:$0xff] }
  0x2b   : > { %v412_v38 = vld [vmem:[%s1574_s7 + $0x260] sm:$0xff]  ;;  %409 = vst [vmem:[%s1579_s8 + $0x120] sm:$0xff] %v408_v36  ;;  %411 = vst [vmem:[%s1579_s8 + $0x128] sm:$0xff] %v410_v37  ;;  %v414_v39 = vld [vmem:[%s1574_s7 + $0x270] sm:$0xff] }
  0x2c   : > { %413 = vst [vmem:[%s1579_s8 + $0x130] sm:$0xff] %v412_v38  ;;  %v416_v40 = vld [vmem:[%s1574_s7 + $0x280] sm:$0xff]  ;;  %v418_v41 = vld [vmem:[%s1574_s7 + $0x290] sm:$0xff]  ;;  %415 = vst [vmem:[%s1579_s8 + $0x138] sm:$0xff] %v414_v39 }
  0x2d   : > { %417 = vst [vmem:[%s1579_s8 + $0x140] sm:$0xff] %v416_v40  ;;  %419 = vst [vmem:[%s1579_s8 + $0x148] sm:$0xff] %v418_v41  ;;  %v420_v42 = vld [vmem:[%s1574_s7 + $0x2a0] sm:$0xff]  ;;  %v422_v43 = vld [vmem:[%s1574_s7 + $0x2b0] sm:$0xff] }
  0x2e   : > { %v424_v44 = vld [vmem:[%s1574_s7 + $0x2c0] sm:$0xff]  ;;  %421 = vst [vmem:[%s1579_s8 + $0x150] sm:$0xff] %v420_v42  ;;  %423 = vst [vmem:[%s1579_s8 + $0x158] sm:$0xff] %v422_v43  ;;  %v426_v45 = vld [vmem:[%s1574_s7 + $0x2d0] sm:$0xff] }
  0x2f   : > { %425 = vst [vmem:[%s1579_s8 + $0x160] sm:$0xff] %v424_v44  ;;  %v428_v46 = vld [vmem:[%s1574_s7 + $0x2e0] sm:$0xff]  ;;  %v430_v47 = vld [vmem:[%s1574_s7 + $0x2f0] sm:$0xff]  ;;  %427 = vst [vmem:[%s1579_s8 + $0x168] sm:$0xff] %v426_v45 }
  0x30   : > { %429 = vst [vmem:[%s1579_s8 + $0x170] sm:$0xff] %v428_v46  ;;  %431 = vst [vmem:[%s1579_s8 + $0x178] sm:$0xff] %v430_v47  ;;  %v432_v48 = vld [vmem:[%s1574_s7 + $0x300] sm:$0xff]  ;;  %v434_v49 = vld [vmem:[%s1574_s7 + $0x310] sm:$0xff] }
  0x31   : > { %v436_v50 = vld [vmem:[%s1574_s7 + $0x320] sm:$0xff]  ;;  %433 = vst [vmem:[%s1579_s8 + $0x180] sm:$0xff] %v432_v48  ;;  %435 = vst [vmem:[%s1579_s8 + $0x188] sm:$0xff] %v434_v49  ;;  %v438_v51 = vld [vmem:[%s1574_s7 + $0x330] sm:$0xff] }
  0x32   : > { %437 = vst [vmem:[%s1579_s8 + $0x190] sm:$0xff] %v436_v50  ;;  %v440_v52 = vld [vmem:[%s1574_s7 + $0x340] sm:$0xff]  ;;  %v442_v53 = vld [vmem:[%s1574_s7 + $0x350] sm:$0xff]  ;;  %439 = vst [vmem:[%s1579_s8 + $0x198] sm:$0xff] %v438_v51 }
  0x33   : > { %441 = vst [vmem:[%s1579_s8 + $0x1a0] sm:$0xff] %v440_v52  ;;  %443 = vst [vmem:[%s1579_s8 + $0x1a8] sm:$0xff] %v442_v53  ;;  %v444_v54 = vld [vmem:[%s1574_s7 + $0x360] sm:$0xff]  ;;  %v446_v55 = vld [vmem:[%s1574_s7 + $0x370] sm:$0xff] }
  0x34   : > { %v448_v56 = vld [vmem:[%s1574_s7 + $0x380] sm:$0xff]  ;;  %445 = vst [vmem:[%s1579_s8 + $0x1b0] sm:$0xff] %v444_v54  ;;  %447 = vst [vmem:[%s1579_s8 + $0x1b8] sm:$0xff] %v446_v55  ;;  %v450_v57 = vld [vmem:[%s1574_s7 + $0x390] sm:$0xff] }
  0x35   : > { %449 = vst [vmem:[%s1579_s8 + $0x1c0] sm:$0xff] %v448_v56  ;;  %v452_v58 = vld [vmem:[%s1574_s7 + $0x3a0] sm:$0xff]  ;;  %v454_v59 = vld [vmem:[%s1574_s7 + $0x3b0] sm:$0xff]  ;;  %451 = vst [vmem:[%s1579_s8 + $0x1c8] sm:$0xff] %v450_v57 }
  0x36   : > { %453 = vst [vmem:[%s1579_s8 + $0x1d0] sm:$0xff] %v452_v58  ;;  %455 = vst [vmem:[%s1579_s8 + $0x1d8] sm:$0xff] %v454_v59  ;;  %v456_v60 = vld [vmem:[%s1574_s7 + $0x3c0] sm:$0xff]  ;;  %v458_v61 = vld [vmem:[%s1574_s7 + $0x3d0] sm:$0xff] }
  0x37   : > { %v460_v62 = vld [vmem:[%s1574_s7 + $0x3e0] sm:$0xff]  ;;  %457 = vst [vmem:[%s1579_s8 + $0x1e0] sm:$0xff] %v456_v60  ;;  %459 = vst [vmem:[%s1579_s8 + $0x1e8] sm:$0xff] %v458_v61  ;;  %v462_v63 = vld [vmem:[%s1574_s7 + $0x3f0] sm:$0xff] }
  0x38   : > { %461 = vst [vmem:[%s1579_s8 + $0x1f0] sm:$0xff] %v460_v62  ;;  %463 = vst [vmem:[%s1579_s8 + $0x1f8] sm:$0xff] %v462_v63 }
  0x39 PF: > { %p1200_p7 = scmp.ge.s32.totalorder %s1491_s18, 1  ;;  %p476_p8 = scmp.lt.s32.totalorder %s1491_s18, 19 }
  0x3b   : > { %p477_p9 = pnand %p1200_p7, %p476_p8 }
  0x3c   : > { %s483_s9 = sand.u32 (!%p477_p9), 1, %s1467_s12   ;;  %s1202_s10 = sshll.u32 (!%p477_p9), %s1475_s14, 2 }
  0x3d   : > { %480 = sbr.rel (%p477_p9) target bundleno = 374 (0x176), region = 66  ;;  %s1201_s11 = sshll.u32 (!%p477_p9), %s483_s9, 9 }
  0x3e   : > { %p526_p10 = scmp.lt.s32.totalorder (!%p477_p9), %s1202_s10, 35  ;;  %s1204_s21 = sshll.u32 (!%p477_p9), %s1479_s15, 1 }
  0x3f   : > { %p536_p11 = scmp.lt.s32.totalorder (!%p477_p9), %s1204_s21, 3  ;;  %s1728_s5 = scalar_lea.vmem (!%p477_p9), [#allocation3], %s1201_s11 }
  0x40   : > { %p1207_p12 = scmp.ne.s32.totalorder (!%p477_p9), %s1475_s14, 0 }
  0x44   : > { %s1843_s10 = smov (!%p526_p10, %s1202_s10), 35  ;;  %s1845_s21 = smov (!%p536_p11, %s1204_s21), 3 }
  0x45   : > { %s1203_s22 = sshll.u32 %s1843_s10, 2  ;;  %s538_s12 = scalar_lea.vmem %s1828_s2, %s1845_s21  ;;  %v1493_v0 = vmov (!%p1207_p12), 0.0  }
  0x46   : > { %s1714_s26 = scalar_lea.vmem %s1826_s0, %s1203_s22  ;;  %s1206_s29 = sshll.u32 %s1845_s21, 3  ;;  %554 = vst [vmem:[#allocation2] sm:$0xff] (!%p1207_p12), %v1493_v0  ;;  %555 = vst [vmem:[#allocation2 + $0x8] sm:$0xff] (!%p1207_p12), %v1493_v0 }
  0x47   : > { %s1726_s15 = scalar_lea.vmem %s1829_s3, %s1206_s29  ;;  %553 = sbr.rel (%p1207_p12) target bundleno = 78 (0x4e), region = 74 }
  0x4e PF: > { %v1337_v1 = vld [vmem:[%s1728_s5 + $0x4] ss:$8 sps:$4 sm:$0xff]   ;;  %v1341_v3 = vld [vmem:[%s1728_s5] ss:$8 sps:$4 sm:$0xff]   ;;  %v1343_v5 = vld [vmem:[%s1728_s5 + $0x14] ss:$8 sps:$4 sm:$0xff]  }
  0x4f   : > { %v1339_v2 = vld [vmem:[%s1728_s5 + $0x104] ss:$8 sps:$4 sm:$0xff]   ;;  %958 = vmatprep.subr.bf16.mxu0 %v1337_v1  ;;  %v1342_v4 = vld [vmem:[%s1728_s5 + $0x100] ss:$8 sps:$4 sm:$0xff]   ;;  %v1345_v6 = vld [vmem:[%s1728_s5 + $0x114] ss:$8 sps:$4 sm:$0xff]  }
  0x50   : > { %999 = vmatprep.subr.bf16.mxu1 %v1339_v2  ;;  %959 = vmatpush1.bf16.msra.mxu0 %v1341_v3  ;;  %v1347_v7 = vld [vmem:[%s1728_s5 + $0x10] ss:$8 sps:$4 sm:$0xff]   ;;  %v1349_v9 = vld [vmem:[%s1728_s5 + $0x24] ss:$8 sps:$4 sm:$0xff]   ;;  %v1353_v11 = vld [vmem:[%s1728_s5 + $0x20] ss:$8 sps:$4 sm:$0xff]  }
  0x51   : > { %1000 = vmatpush1.bf16.msra.mxu1 %v1342_v4  ;;  %960 = vmatprep.subr.bf16.mxu0 %v1343_v5  ;;  %v1348_v8 = vld [vmem:[%s1728_s5 + $0x110] ss:$8 sps:$4 sm:$0xff]   ;;  %v1351_v10 = vld [vmem:[%s1728_s5 + $0x124] ss:$8 sps:$4 sm:$0xff]   ;;  %v1354_v12 = vld [vmem:[%s1728_s5 + $0x120] ss:$8 sps:$4 sm:$0xff]  }
  0x52   : > { %1001 = vmatprep.subr.bf16.mxu1 %v1345_v6  ;;  %v1355_v13 = vld [vmem:[%s1728_s5 + $0x34] ss:$8 sps:$4 sm:$0xff]   ;;  %v1359_v15 = vld [vmem:[%s1728_s5 + $0x30] ss:$8 sps:$4 sm:$0xff]   ;;  %v1361_v17 = vld [vmem:[%s1728_s5 + $0x44] ss:$8 sps:$4 sm:$0xff]  }
  0x53   : > { %v1357_v14 = vld [vmem:[%s1728_s5 + $0x134] ss:$8 sps:$4 sm:$0xff]   ;;  %v1360_v16 = vld [vmem:[%s1728_s5 + $0x130] ss:$8 sps:$4 sm:$0xff]   ;;  %v1363_v18 = vld [vmem:[%s1728_s5 + $0x144] ss:$8 sps:$4 sm:$0xff]  }
  0x54   : > { %961 = vmatpush1.bf16.msra.mxu0 %v1347_v7  ;;  %v1365_v19 = vld [vmem:[%s1728_s5 + $0x40] ss:$8 sps:$4 sm:$0xff]   ;;  %v1367_v21 = vld [vmem:[%s1728_s5 + $0x54] ss:$8 sps:$4 sm:$0xff]   ;;  %v1371_v23 = vld [vmem:[%s1728_s5 + $0x50] ss:$8 sps:$4 sm:$0xff]  }
  0x55   : > { %1002 = vmatpush1.bf16.msra.mxu1 %v1348_v8  ;;  %962 = vmatprep.subr.bf16.mxu0 %v1349_v9  ;;  %v1366_v20 = vld [vmem:[%s1728_s5 + $0x140] ss:$8 sps:$4 sm:$0xff]   ;;  %v1369_v22 = vld [vmem:[%s1728_s5 + $0x154] ss:$8 sps:$4 sm:$0xff]   ;;  %v1372_v24 = vld [vmem:[%s1728_s5 + $0x150] ss:$8 sps:$4 sm:$0xff]  }
  0x56   : > { %1003 = vmatprep.subr.bf16.mxu1 %v1351_v10  ;;  %v1373_v25 = vld [vmem:[%s1728_s5 + $0x64] ss:$8 sps:$4 sm:$0xff]   ;;  %v1377_v27 = vld [vmem:[%s1728_s5 + $0x60] ss:$8 sps:$4 sm:$0xff]   ;;  %v1379_v29 = vld [vmem:[%s1728_s5 + $0x74] ss:$8 sps:$4 sm:$0xff]  }
  0x57   : > { %v1375_v26 = vld [vmem:[%s1728_s5 + $0x164] ss:$8 sps:$4 sm:$0xff]   ;;  %v1378_v28 = vld [vmem:[%s1728_s5 + $0x160] ss:$8 sps:$4 sm:$0xff]   ;;  %v1381_v30 = vld [vmem:[%s1728_s5 + $0x174] ss:$8 sps:$4 sm:$0xff]  }
  0x58   : > { %963 = vmatpush1.bf16.msra.mxu0 %v1353_v11  ;;  %v1383_v31 = vld [vmem:[%s1728_s5 + $0x70] ss:$8 sps:$4 sm:$0xff]   ;;  %v1385_v33 = vld [vmem:[%s1728_s5 + $0x84] ss:$8 sps:$4 sm:$0xff]   ;;  %v1389_v35 = vld [vmem:[%s1728_s5 + $0x80] ss:$8 sps:$4 sm:$0xff]  }
  0x59   : > { %1004 = vmatpush1.bf16.msra.mxu1 %v1354_v12  ;;  %964 = vmatprep.subr.bf16.mxu0 %v1355_v13  ;;  %v1384_v32 = vld [vmem:[%s1728_s5 + $0x170] ss:$8 sps:$4 sm:$0xff]   ;;  %v1387_v34 = vld [vmem:[%s1728_s5 + $0x184] ss:$8 sps:$4 sm:$0xff]   ;;  %v1390_v36 = vld [vmem:[%s1728_s5 + $0x180] ss:$8 sps:$4 sm:$0xff]  }
  0x5a   : > { %1005 = vmatprep.subr.bf16.mxu1 %v1357_v14  ;;  %v1391_v37 = vld [vmem:[%s1728_s5 + $0x94] ss:$8 sps:$4 sm:$0xff]   ;;  %v1395_v39 = vld [vmem:[%s1728_s5 + $0x90] ss:$8 sps:$4 sm:$0xff]   ;;  %v1397_v41 = vld [vmem:[%s1728_s5 + $0xa4] ss:$8 sps:$4 sm:$0xff]  }
  0x5b   : > { %v1393_v38 = vld [vmem:[%s1728_s5 + $0x194] ss:$8 sps:$4 sm:$0xff]   ;;  %v1396_v40 = vld [vmem:[%s1728_s5 + $0x190] ss:$8 sps:$4 sm:$0xff]   ;;  %v1399_v42 = vld [vmem:[%s1728_s5 + $0x1a4] ss:$8 sps:$4 sm:$0xff]  }
  0x5c   : > { %965 = vmatpush1.bf16.msra.mxu0 %v1359_v15  ;;  %v1401_v43 = vld [vmem:[%s1728_s5 + $0xa0] ss:$8 sps:$4 sm:$0xff]   ;;  %v1403_v45 = vld [vmem:[%s1728_s5 + $0xb4] ss:$8 sps:$4 sm:$0xff]   ;;  %v1407_v50 = vld [vmem:[%s1728_s5 + $0xb0] ss:$8 sps:$4 sm:$0xff]  }
  0x5d   : > { %1006 = vmatpush1.bf16.msra.mxu1 %v1360_v16  ;;  %966 = vmatprep.subr.bf16.mxu0 %v1361_v17  ;;  %v1402_v44 = vld [vmem:[%s1728_s5 + $0x1a0] ss:$8 sps:$4 sm:$0xff]   ;;  %v1405_v46 = vld [vmem:[%s1728_s5 + $0x1b4] ss:$8 sps:$4 sm:$0xff]   ;;  %v1408_v51 = vld [vmem:[%s1728_s5 + $0x1b0] ss:$8 sps:$4 sm:$0xff]  }
  0x5e   : > { %1007 = vmatprep.subr.bf16.mxu1 %v1363_v18  ;;  %v558_v47 = vld [vmem:[%s1714_s26] sm:$0xff]  ;;  %v559_v49 = vld [vmem:[%s1714_s26 + $0x8] sm:$0xff]  ;;  %v1409_v53 = vld [vmem:[%s1728_s5 + $0xc4] ss:$8 sps:$4 sm:$0xff]   ;;  %p1276_p13 = scmp.ne.s32.totalorder %s1475_s14, 8 }
  0x5f   : > { %v1209_v48 = vcombine.high %v558_v47, %v558_v47  ;;  %v1211_v52 = vcombine.high %v559_v49, %v559_v49  ;;  %v1411_v54 = vld [vmem:[%s1728_s5 + $0x1c4] ss:$8 sps:$4 sm:$0xff]   ;;  %v1413_v55 = vld [vmem:[%s1728_s5 + $0xc0] ss:$8 sps:$4 sm:$0xff]   ;;  %v1415_v57 = vld [vmem:[%s1728_s5 + $0xd4] ss:$8 sps:$4 sm:$0xff]   ;;  %v1208_v5 = vcombine.low %v558_v47, %v558_v47  ;;  %v1210_v6 = vcombine.low %v559_v49, %v559_v49 }
  0x60   : > { %967 = vmatpush1.bf16.msra.mxu0 %v1365_v19  ;;  %v1414_v56 = vld [vmem:[%s1728_s5 + $0x1c0] ss:$8 sps:$4 sm:$0xff]   ;;  %v1417_v58 = vld [vmem:[%s1728_s5 + $0x1d4] ss:$8 sps:$4 sm:$0xff]   ;;  %v1419_v59 = vld [vmem:[%s1728_s5 + $0xd0] ss:$8 sps:$4 sm:$0xff]  }
  0x61   : > { %1008 = vmatpush1.bf16.msra.mxu1 %v1366_v20  ;;  %968 = vmatprep.subr.bf16.mxu0 %v1367_v21  ;;  %v1420_v60 = vld [vmem:[%s1728_s5 + $0x1d0] ss:$8 sps:$4 sm:$0xff]   ;;  %v1421_v61 = vld [vmem:[%s1728_s5 + $0xe4] ss:$8 sps:$4 sm:$0xff]   ;;  %v1425_v63 = vld [vmem:[%s1728_s5 + $0xe0] ss:$8 sps:$4 sm:$0xff]   ;;  %v1052_v21 = vlaneseq (!%p1276_p13) }
  0x62   : > { %1009 = vmatprep.subr.bf16.mxu1 %v1369_v22  ;;  %990 = vmatprep.mubr.bf16.mxu0 %v1209_v48  ;;  %v1423_v62 = vld [vmem:[%s1728_s5 + $0x1e4] ss:$8 sps:$4 sm:$0xff]   ;;  %v1426_v0 = vld [vmem:[%s1728_s5 + $0x1e0] ss:$8 sps:$4 sm:$0xff]   ;;  %v1427_v1 = vld [vmem:[%s1728_s5 + $0xf4] ss:$8 sps:$4 sm:$0xff]  }
  0x63   : > { %1031 = vmatprep.mubr.bf16.mxu1 %v1211_v52  ;;  %v1429_v2 = vld [vmem:[%s1728_s5 + $0x1f4] ss:$8 sps:$4 sm:$0xff]   ;;  %v1431_v3 = vld [vmem:[%s1728_s5 + $0xf0] ss:$8 sps:$4 sm:$0xff]   ;;  %v1053_v22 = vshrl.u32 (!%p1276_p13), %v1052_v21, 7 }
  0x64   : > { %969 = vmatpush1.bf16.msra.mxu0 %v1371_v23  ;;  %v1432_v4 = vld [vmem:[%s1728_s5 + $0x1f0] ss:$8 sps:$4 sm:$0xff]  }
  0x65   : > { %1010 = vmatpush1.bf16.msra.mxu1 %v1372_v24  ;;  %970 = vmatprep.subr.bf16.mxu0 %v1373_v25  ;;  %v556_v8 = vld [vmem:[#allocation2] sm:$0xff]  ;;  %v557_v12 = vld [vmem:[#allocation2 + $0x8] sm:$0xff]  ;;  %v1054_v24 = vsub.s32 (!%p1276_p13), 0, %v1053_v22  ;;  %v1058_v25 = vsub.s32 (!%p1276_p13), 1, %v1053_v22 }
  0x66   : > { %1011 = vmatprep.subr.bf16.mxu1 %v1375_v26  ;;  %v1050_v23 = vld [vmem:[%s538_s12] sm:$0x3] (!%p1276_p13) }
  0x68   : > { %971 = vmatpush1.bf16.msra.mxu0 %v1377_v27 }
  0x69   : > { %1012 = vmatpush1.bf16.msra.mxu1 %v1378_v28  ;;  %972 = vmatprep.subr.bf16.mxu0 %v1379_v29  ;;  %v1055_v28 = vrot.slane (!%p1276_p13), %v1050_v23, %v1054_v24  ;;  %v1059_v29 = vrot.slane (!%p1276_p13), %v1050_v23, %v1058_v25 }
  0x6a   : > { %1013 = vmatprep.subr.bf16.mxu1 %v1381_v30 }
  0x6c   : > { %973 = vmatpush1.bf16.msra.mxu0 %v1383_v31 }
  0x6d   : > { %1014 = vmatpush1.bf16.msra.mxu1 %v1384_v32  ;;  %974 = vmatprep.subr.bf16.mxu0 %v1385_v33 }
  0x6e   : > { %1015 = vmatprep.subr.bf16.mxu1 %v1387_v34 }
  0x70   : > { %975 = vmatpush1.bf16.msra.mxu0 %v1389_v35 }
  0x71   : > { %1016 = vmatpush1.bf16.msra.mxu1 %v1390_v36  ;;  %976 = vmatprep.subr.bf16.mxu0 %v1391_v37 }
  0x72   : > { %1017 = vmatprep.subr.bf16.mxu1 %v1393_v38 }
  0x74   : > { %977 = vmatpush1.bf16.msra.mxu0 %v1395_v39 }
  0x75   : > { %1018 = vmatpush1.bf16.msra.mxu1 %v1396_v40  ;;  %978 = vmatprep.subr.bf16.mxu0 %v1397_v41 }
  0x76   : > { %1019 = vmatprep.subr.bf16.mxu1 %v1399_v42 }
  0x78   : > { %979 = vmatpush1.bf16.msra.mxu0 %v1401_v43 }
  0x79   : > { %1020 = vmatpush1.bf16.msra.mxu1 %v1402_v44  ;;  %980 = vmatprep.subr.bf16.mxu0 %v1403_v45 }
  0x7a   : > { %1021 = vmatprep.subr.bf16.mxu1 %v1405_v46 }
  0x7c   : > { %981 = vmatpush1.bf16.msra.mxu0 %v1407_v50 }
  0x7d   : > { %1022 = vmatpush1.bf16.msra.mxu1 %v1408_v51  ;;  %982 = vmatprep.subr.bf16.mxu0 %v1409_v53 }
  0x7e   : > { %1023 = vmatprep.subr.bf16.mxu1 %v1411_v54 }
  0x80   : > { %983 = vmatpush1.bf16.msra.mxu0 %v1413_v55 }
  0x81   : > { %1024 = vmatpush1.bf16.msra.mxu1 %v1414_v56  ;;  %984 = vmatprep.subr.bf16.mxu0 %v1415_v57 }
  0x82   : > { %1025 = vmatprep.subr.bf16.mxu1 %v1417_v58 }
  0x84   : > { %985 = vmatpush1.bf16.msra.mxu0 %v1419_v59 }
  0x85   : > { %1026 = vmatpush1.bf16.msra.mxu1 %v1420_v60  ;;  %986 = vmatprep.subr.bf16.mxu0 %v1421_v61 }
  0x86   : > { %1027 = vmatprep.subr.bf16.mxu1 %v1423_v62 }
  0x88   : > { %987 = vmatpush1.bf16.msra.mxu0 %v1425_v63 }
  0x89   : > { %1028 = vmatpush1.bf16.msra.mxu1 %v1426_v0  ;;  %988 = vmatprep.subr.bf16.mxu0 %v1427_v1 }
  0x8a   : > { %1029 = vmatprep.subr.bf16.mxu1 %v1429_v2 }
  0x8c   : > { %989 = vmatpush1.bf16.msra.mxu0 %v1431_v3 }
  0x8d   : > { %1030 = vmatpush1.bf16.msra.mxu1 %v1432_v4 }
  0x8f   : > { %991 = vmatmul.mubr.bf16.vlgmr.msra.gmra.mrb[0].mxu0 %v1208_v5 }
  0x90   : > { %1032 = vmatmul.mubr.bf16.vlgmr.msra.gmra.mrb[0].mxu1 %v1210_v6 }
 0x162   : > { %v992_v7 = vpop.f32.mrb[0].mxu0 }
 0x163   : > { %v1033_v9 = vpop.f32.mrb[0].mxu1  ;;  %v994_v11 = vpop.f32.mrb[1].mxu0  ;;  %1047 = sbr.rel (%p1276_p13) target bundleno = 374 (0x176), region = 78 }
 0x164   : > { %v1034_v10 = vadd.f32 %v1033_v9, %v992_v7  ;;  %v1035_v13 = vpop.f32.mrb[1].mxu1  ;;  %v996_v15 = vpop.f32.mrb[2].mxu0 }
 0x165   : > { %v1036_v14 = vadd.f32 %v1035_v13, %v994_v11  ;;  %v1037_v16 = vpop.f32.mrb[2].mxu1  ;;  %v997_v18 = vpop.f32.mrb[3].mxu0 }
 0x166   : > { %v1040_v17 = vadd.f32 %v1034_v10, %v556_v8  ;;  %v1038_v19 = vpop.f32.mrb[3].mxu1 }
 0x167   : > { %v1041_v20 = vadd.f32 %v1036_v14, %v557_v12 }
 0x168   : > { %1042 = vst [vmem:[#allocation2] sm:$0xff] %v1040_v17 }
 0x169   : > { %1043 = vst [vmem:[#allocation2 + $0x8] sm:$0xff] %v1041_v20 }
 0x16f   : > { %v1048_v26 = vld [vmem:[#allocation2] sm:$0xff] }
 0x170   : > { %v1049_v27 = vld [vmem:[#allocation2 + $0x8] sm:$0xff]  ;;  %v1062_v30 = vadd.f32 %v1055_v28, %v1048_v26 }
 0x171   : > { %v1063_v31 = vadd.f32 %v1059_v29, %v1049_v27 }
 0x172   : > { %v1064_v32 = vmax.f32 %v1062_v30, 0.0 }
 0x173   : > { %v1065_v33 = vmax.f32 %v1063_v31, 0.0 }
 0x174   : > { %1066 = vst [vmem:[%s1726_s15] sm:$0xff] %v1064_v32 }
 0x175   : > { %1067 = vst [vmem:[%s1726_s15 + $0x8] sm:$0xff] %v1065_v33 }
 0x176 PF: > { %s13_s18 = sadd.s32 1, %s1491_s18   ;;  %s1830_s12 = smov %s1471_s13 }
 0x177   : > { %p10_p0 = scmp.ge.s32.totalorder %s13_s18, 20   ;;  %s1831_s13 = smov %s1565_s25 }
 0x178   : > { %s1832_s14 = smov %s1483_s16  ;;  %s1833_s15 = smov %s1487_s17 }
 0x179   : > { %s1834_s16 = smov %s1837_s19  ;;  %s1835_s17 = smov %s1841_s20 }
 0x17a   :  { %12 = sbr.rel (!%p10_p0) target bundleno = 4 (0x4), region = 119 }

// kernel: embeddingnet_forward.45
= control target key start
LH: loop header
LB: loop body
LE: loop exit
PB: predicated region body
PF: predicated region fallthrough
CT: control target
= control target key end

     0   :  { %s46_s0 = inlined_call_operand.vmem [shape: f32[2,1,512], index: 0, kind: input, shape index: {}]   ;;  %s47_s1 = inlined_call_operand.vmem [shape: f32[2,512], index: 1, kind: output, shape index: {}]  }
   0x1   :  { %v29_v0 = vld [vmem:[%s46_s0] sm:$0xff]  }
   0x2   :  { %28 = vst.sshfl [vmem:[%s47_s1] sm:$0xff pattern:$0x75316420] %v29_v0 }

// kernel: embeddingnet_forward.46
= control target key start
LH: loop header
LB: loop body
LE: loop exit
PB: predicated region body
PF: predicated region fallthrough
CT: control target
= control target key end

     0   :  { %s637_s1 = inlined_call_operand.vmem [shape: bf16[512,128], index: 1, kind: input, shape index: {}]   ;;  %s638_s0 = inlined_call_operand.vmem [shape: bf16[8,512], index: 0, kind: input, shape index: {}]   ;;  %s639_s2 = inlined_call_operand.vmem [shape: f32[1,128], index: 2, kind: input, shape index: {}]   ;;  %s640_s3 = inlined_call_operand.vmem [shape: f32[8,128], index: 3, kind: output, shape index: {}]  }
   0x1   :  { %v473_v0 = vld [vmem:[%s637_s1 + $0x40] sm:$0xff]   ;;  %v477_v4 = vld [vmem:[%s637_s1 + $0x48] sm:$0xff]   ;;  %v481_v8 = vld [vmem:[%s637_s1 + $0x50] sm:$0xff]  }
   0x2   :  { %v474_v1 = vld [vmem:[%s637_s1 + $0xc0] sm:$0xff]   ;;  %429 = vmatprep.subr.bf16.mxu0 %v473_v0  ;;  %v478_v5 = vld [vmem:[%s637_s1 + $0xc8] sm:$0xff]   ;;  %v482_v9 = vld [vmem:[%s637_s1 + $0xd0] sm:$0xff]  }
   0x3   :  { %v475_v2 = vld [vmem:[%s637_s1] sm:$0xff]   ;;  %451 = vmatprep.subr.bf16.mxu1 %v474_v1  ;;  %v479_v6 = vld [vmem:[%s637_s1 + $0x8] sm:$0xff]   ;;  %v483_v10 = vld [vmem:[%s637_s1 + $0x10] sm:$0xff]  }
   0x4   :  { %v476_v3 = vld [vmem:[%s637_s1 + $0x80] sm:$0xff]   ;;  %430 = vmatpush3.bf16.msra.mxu0 %v475_v2  ;;  %v480_v7 = vld [vmem:[%s637_s1 + $0x88] sm:$0xff]   ;;  %v484_v11 = vld [vmem:[%s637_s1 + $0x90] sm:$0xff]  }
   0x5   :  { %452 = vmatpush3.bf16.msra.mxu1 %v476_v3  ;;  %431 = vmatprep.subr.bf16.mxu0 %v477_v4  ;;  %v485_v12 = vld [vmem:[%s637_s1 + $0x58] sm:$0xff]   ;;  %v489_v16 = vld [vmem:[%s637_s1 + $0x60] sm:$0xff]   ;;  %v493_v20 = vld [vmem:[%s637_s1 + $0x68] sm:$0xff]  }
   0x6   :  { %453 = vmatprep.subr.bf16.mxu1 %v478_v5  ;;  %v486_v13 = vld [vmem:[%s637_s1 + $0xd8] sm:$0xff]   ;;  %v490_v17 = vld [vmem:[%s637_s1 + $0xe0] sm:$0xff]   ;;  %v494_v21 = vld [vmem:[%s637_s1 + $0xe8] sm:$0xff]  }
   0x7   :  { %v487_v14 = vld [vmem:[%s637_s1 + $0x18] sm:$0xff]   ;;  %v491_v18 = vld [vmem:[%s637_s1 + $0x20] sm:$0xff]   ;;  %v495_v22 = vld [vmem:[%s637_s1 + $0x28] sm:$0xff]  }
   0x8   :  { %432 = vmatpush3.bf16.msra.mxu0 %v479_v6  ;;  %v488_v15 = vld [vmem:[%s637_s1 + $0x98] sm:$0xff]   ;;  %v492_v19 = vld [vmem:[%s637_s1 + $0xa0] sm:$0xff]   ;;  %v496_v23 = vld [vmem:[%s637_s1 + $0xa8] sm:$0xff]  }
   0x9   :  { %454 = vmatpush3.bf16.msra.mxu1 %v480_v7  ;;  %433 = vmatprep.subr.bf16.mxu0 %v481_v8  ;;  %v497_v24 = vld [vmem:[%s637_s1 + $0x70] sm:$0xff]   ;;  %v501_v28 = vld [vmem:[%s637_s1 + $0x78] sm:$0xff]   ;;  %v21_v32 = vld [vmem:[%s638_s0] sm:$0xff] }
   0xa   :  { %455 = vmatprep.subr.bf16.mxu1 %v482_v9  ;;  %v498_v25 = vld [vmem:[%s637_s1 + $0xf0] sm:$0xff]   ;;  %v502_v29 = vld [vmem:[%s637_s1 + $0xf8] sm:$0xff]   ;;  %v22_v33 = vld [vmem:[%s638_s0 + $0x8] sm:$0xff]  ;;  %v392_v34 = vcombine.low %v21_v32, %v21_v32  ;;  %v393_v35 = vcombine.high %v21_v32, %v21_v32 }
   0xb   :  { %v499_v26 = vld [vmem:[%s637_s1 + $0x30] sm:$0xff]   ;;  %v503_v30 = vld [vmem:[%s637_s1 + $0x38] sm:$0xff]   ;;  %v394_v36 = vcombine.low %v22_v33, %v22_v33  ;;  %v395_v37 = vcombine.high %v22_v33, %v22_v33  ;;  %v428_v46 = vld [vmem:[%s639_s2] ss:$0 sm:$0xff] }
   0xc   :  { %434 = vmatpush3.bf16.msra.mxu0 %v483_v10  ;;  %v500_v27 = vld [vmem:[%s637_s1 + $0xb0] sm:$0xff]   ;;  %v504_v31 = vld [vmem:[%s637_s1 + $0xb8] sm:$0xff]   ;;  %325 = vmatprep.mubr.bf16.mxu0 %v393_v35 }
   0xd   :  { %456 = vmatpush3.bf16.msra.mxu1 %v484_v11  ;;  %435 = vmatprep.subr.bf16.mxu0 %v485_v12 }
   0xe   :  { %457 = vmatprep.subr.bf16.mxu1 %v486_v13  ;;  %365 = vmatprep.mubr.bf16.mxu1 %v395_v37 }
  0x10   :  { %436 = vmatpush3.bf16.msra.mxu0 %v487_v14 }
  0x11   :  { %458 = vmatpush3.bf16.msra.mxu1 %v488_v15  ;;  %437 = vmatprep.subr.bf16.mxu0 %v489_v16 }
  0x12   :  { %459 = vmatprep.subr.bf16.mxu1 %v490_v17 }
  0x14   :  { %438 = vmatpush3.bf16.msra.mxu0 %v491_v18 }
  0x15   :  { %460 = vmatpush3.bf16.msra.mxu1 %v492_v19  ;;  %439 = vmatprep.subr.bf16.mxu0 %v493_v20 }
  0x16   :  { %461 = vmatprep.subr.bf16.mxu1 %v494_v21 }
  0x18   :  { %440 = vmatpush3.bf16.msra.mxu0 %v495_v22 }
  0x19   :  { %462 = vmatpush3.bf16.msra.mxu1 %v496_v23  ;;  %441 = vmatprep.subr.bf16.mxu0 %v497_v24 }
  0x1a   :  { %463 = vmatprep.subr.bf16.mxu1 %v498_v25 }
  0x1c   :  { %442 = vmatpush3.bf16.msra.mxu0 %v499_v26 }
  0x1d   :  { %464 = vmatpush3.bf16.msra.mxu1 %v500_v27  ;;  %443 = vmatprep.subr.bf16.mxu0 %v501_v28 }
  0x1e   :  { %465 = vmatprep.subr.bf16.mxu1 %v502_v29 }
  0x20   :  { %444 = vmatpush3.bf16.msra.mxu0 %v503_v30 }
  0x21   :  { %466 = vmatpush3.bf16.msra.mxu1 %v504_v31 }
  0x23   :  { %326 = vmatmul.mubr.bf16.vlgmr.msra.gmra.mrb[0].mxu0 %v392_v34 }
  0x24   :  { %366 = vmatmul.mubr.bf16.vlgmr.msra.gmra.mrb[0].mxu1 %v394_v36 }
  0xf6   :  { %v445_v38 = vpop.f32.mrb[0].mxu0 }
  0xf7   :  { %v467_v39 = vpop.f32.mrb[0].mxu1  ;;  %v446_v40 = vpop.f32.mrb[1].mxu0 }
  0xf8   :  { %v468_v41 = vpop.f32.mrb[1].mxu1  ;;  %v447_v42 = vadd.f32 %v446_v40, %v445_v38  ;;  %v448_v44 = vpop.f32.mrb[2].mxu0 }
  0xf9   :  { %v469_v43 = vadd.f32 %v468_v41, %v467_v39  ;;  %v470_v45 = vpop.f32.mrb[2].mxu1  ;;  %v449_v47 = vpop.f32.mrb[3].mxu0 }
  0xfa   :  { %v471_v48 = vpop.f32.mrb[3].mxu1 }
  0xfb   :  { %v368_v49 = vadd.f32 %v469_v43, %v447_v42 }
  0xfd   :  { %v386_v50 = vadd.f32 %v428_v46, %v368_v49 }
  0xff   :  { %387 = vst [vmem:[%s640_s3] sm:$0xff] %v386_v50 }

// kernel: embeddingnet_forward.47
= control target key start
LH: loop header
LB: loop body
LE: loop exit
PB: predicated region body
PF: predicated region fallthrough
CT: control target
= control target key end

     0   :  { %vm11_vm0 = vcmask 123904   ;;  %s97_s0 = inlined_call_operand.vmem [shape: f32[2,16], index: 0, kind: input, shape index: {}]   ;;  %s98_s1 = inlined_call_operand.hbm [shape: f32[2,16], index: 1, kind: output, shape index: {}]  }
   0x1   :  { %v9_v0 = vld [vmem:[%s97_s0] sm:$0x3] }
   0x2   :  { %6 = vsyncpa [#allocation3], 0  ;;  %v10_v1 = vmul.f32 %v9_v0, %v9_v0  ;;  %s69_s8 = smov [#allocation2]  }
   0x3   :  { %s32_s9 = sshll.u32 %s69_s8, 4  ;;  %s33_s9 = int_to_ptr.vmem [resolvable:$true] %s32_s9 }
   0x4   :  { %v12_v2 = vsel %vm11_vm0, %v10_v1, 0.0  ;;  %s45_s0 = scalar_lea.vmem %s33_s9, 32  ;;  %p50_p1 = scmp.lt.s32.totalorder %s33_s9, %s33_s9 }
   0x5   :  { %13 = vadd.xlane.f32.xlu0 %v12_v2  ;;  %p46_p0 = scmp.ne.s32.totalorder %s33_s9, %s45_s0  ;;  %p51_p2 = scmp.lt.s32.totalorder %s45_s0, %s45_s0 }
   0x7   :  { %p52_p3 = por %p51_p2, %p50_p1 }
   0x9   :  { %p53_p4 = pnand %p52_p3, %p46_p0 }
  0x92   :  { %v14_v3 = vpop.xlane.xlu0 %13 }
  0x93   :  { %41 = vrsqrt.f32 %v14_v3  ;;  %vm17_vm1 = vcmp.eq.f32.partialorder %v14_v3, inf  ;;  %v20_v6 = vand.u32 2147483648, %v14_v3  ;;  %vm19_vm2 = vcmp.eq.f32.partialorder %v14_v3, 0.0 }
  0x9d   :  { %v42_v4 = vpop.eup %41 }
  0x9e   :  { %v16_v5 = vmul.f32 %v42_v4, %v14_v3 }
  0xa0   :  { %v18_v7 = vsel %vm17_vm1, %v14_v3, %v16_v5 }
  0xa1   :  { %v21_v8 = vsel %vm19_vm2, %v20_v6, %v18_v7 }
  0xa2   :  { %v22_v9 = vmax.f32 %v21_v8, 1e-12 }
  0xa4   :  { %43 = vrcp.f32 %v22_v9 }
  0xae   :  { %v44_v10 = vpop.eup %43 }
  0xaf   :  { %v24_v11 = vmul.f32 %v44_v10, %v9_v0 }
  0xb1   :  { %25 = vst.msk [vmem:[#allocation2] sm:$0x3] %vm11_vm0, %v24_v11 }
  0xb2   :  { %56 = shalt.err (!%p53_p4)
}
  0xb3   :  { %s57_s12 = scalar_lea.hbm %s98_s1, 32 }
  0xb4   :  { %p58_p5 = scmp.ne.s32.totalorder %s98_s1, %s57_s12  ;;  %p61_p6 = scmp.lt.u32.totalorder %s57_s12, %s98_s1 }
  0xb6   :  { %p63_p7 = pnand %p61_p6, %p58_p5 }
  0xb8   :  { %66 = shalt.err (!%p63_p7)
}
  0xb9   :  { %35 = dma.vmem_to_hbm [thread:$0]  %s33_s9, 32, %s98_s1, [#allocation3]  }
  0xba   :  { %67 = dma.done.wait [#allocation3], 32  }
  0xbb   :  { %68 = vsyncadd [#allocation3], 4294967264 }
  0xbc   :  { %39 = vsyncpa [#allocation3], 1 }

</bundles_post_ra>
